<compile_context>
chip_gen: v5e
topology: v5e:2x2
jax: 0.10.0
libtpu: 0.0.40
codegen_flags: <defaults>
</compile_context>

<pallas_src>
import functools

import jax
import jax.numpy as jnp
from jax.experimental import pallas as pl
from jax.experimental.pallas import tpu as pltpu


# ------------------------------ Fused Pallas kernel ------------------------------

def _fused_forward_kernel(p_ref, cw_ref, cb_ref, w1_ref, b1_ref, w2_ref, b2_ref,
                          o_ref, h_ref, *, n_pos, bb):
    # conv1 as im2col matmul (bf16 x bf16 -> f32 accumulation) + bias + relu.
    # p_ref rows are ordered (p=(ho,wo), b-within-block); result stays in registers.
    conv = jnp.dot(p_ref[...], cw_ref[...], preferred_element_type=jnp.float32)
    conv = jnp.maximum(conv + cb_ref[...], 0.0)            # (n_pos*bb, 64) f32

    # "Flatten": scatter (p, b) rows into (b, p*64 + c).  The PyTorch NCHW flatten
    # order is folded into w1 at prep time, so no runtime transpose is needed.
    # Single VMEM scratch (layout change can't be done as an in-register reshape of
    # a 64-lane value); n_pos static column-block stores.
    for p in range(n_pos):
        h_ref[:, p * 64:(p + 1) * 64] = conv[p * bb:(p + 1) * bb, :]

    # fc1 + relu, fc2 + relu (bf16 weights, f32 accumulation), all in registers.
    h = h_ref[...].astype(jnp.bfloat16)                    # (bb, n_pos*64)
    a1 = jnp.dot(h, w1_ref[...], preferred_element_type=jnp.float32)
    a1 = jnp.maximum(a1 + b1_ref[...], 0.0)
    a2 = jnp.dot(a1.astype(jnp.bfloat16), w2_ref[...],
                 preferred_element_type=jnp.float32)
    o_ref[...] = jnp.maximum(a2 + b2_ref[...], 0.0)


# ------------------------------ Forward wrapper ------------------------------

@jax.jit
def _forward_impl(x_taskonomy, x_target, conv_w, conv_b, w1, b1, w2, b2):
    B = x_taskonomy.shape[0]
    x_cat = jnp.concatenate([x_taskonomy, x_target], axis=1)      # (B, C, H, W) NCHW
    C, H, W = x_cat.shape[1], x_cat.shape[2], x_cat.shape[3]
    Ho, Wo = H - 2, W - 2                                         # valid 3x3, stride 1
    n_pos = Ho * Wo
    k = C * 9
    k_pad = conv_w.shape[0]
    n_hid = w1.shape[1]
    n_out = w2.shape[1]
    assert n_pos * 64 == w1.shape[0], "spatial size inconsistent with fc1"

    # Batch blocking: 8 samples per block (=128 patch rows) once the batch is large
    # enough; otherwise one block.  Weights stay resident across blocks either way.
    if B > 8 and B % 8 == 0:
        BB = 8
    else:
        BB = B
    G = B // BB

    # im2col glue (fused by XLA under this jit): rows ordered
    # (batch-block, p=(ho,wo), b-within-block); columns ordered (kh, kw, c_in) with
    # c_in fastest -- matching the prepped conv weight -- zero-padded to k_pad lanes.
    x_hwbc = jnp.transpose(x_cat, (2, 3, 0, 1))                   # (H, W, B, C)
    cols = [x_hwbc[kh:kh + Ho, kw:kw + Wo, :, :]
            for kh in range(3) for kw in range(3)]
    patches = jnp.concatenate(cols, axis=-1)                      # (Ho, Wo, B, 9C)
    if k_pad > k:
        patches = jnp.pad(patches, ((0, 0), (0, 0), (0, 0), (0, k_pad - k)))
    patches = (patches.reshape(n_pos, G, BB, k_pad)
               .transpose(1, 0, 2, 3)
               .reshape(G * n_pos * BB, k_pad).astype(jnp.bfloat16))

    flops = 2 * (n_pos * B * k_pad * 64
                 + B * w1.shape[0] * n_hid
                 + B * w2.shape[0] * n_out)
    bytes_accessed = (patches.size * 2 + conv_w.size * 2 + w1.size * 2
                      + w2.size * 2
                      + (conv_b.size + b1.size + b2.size) * 4 + B * n_out * 4)

    kernel = functools.partial(_fused_forward_kernel, n_pos=n_pos, bb=BB)
    const = lambda g: (0, 0)   # weights/biases: same block every step -> resident in VMEM
    return pl.pallas_call(
        kernel,
        out_shape=jax.ShapeDtypeStruct((B, n_out), jnp.float32),
        grid=(G,),
        in_specs=[
            pl.BlockSpec((n_pos * BB, k_pad), lambda g: (g, 0)),   # patches (per block)
            pl.BlockSpec((k_pad, 64), const),                      # conv weight (resident)
            pl.BlockSpec((1, 64), const),                          # conv bias
            pl.BlockSpec((w1.shape[0], n_hid), const),             # fc1 weight (resident)
            pl.BlockSpec((1, n_hid), const),                       # fc1 bias
            pl.BlockSpec((w2.shape[0], n_out), const),             # fc2 weight (resident)
            pl.BlockSpec((1, n_out), const),                       # fc2 bias
        ],
        out_specs=pl.BlockSpec((BB, n_out), lambda g: (g, 0)),
        scratch_shapes=[
            pltpu.VMEM((BB, n_pos * 64), jnp.float32),   # flattened features (never in HBM)
        ],
        compiler_params=pltpu.CompilerParams(
            dimension_semantics=("parallel",),           # batch blocks independent (v7x megacore)
            vmem_limit_bytes=32 * 1024 * 1024),
        cost_estimate=pl.CostEstimate(flops=flops, transcendentals=0,
                                      bytes_accessed=bytes_accessed),
    )(patches, conv_w, conv_b, w1, b1, w2, b2)


def base_model_autoencoder_forward(x_taskonomy, x_target, prep):
    return _forward_impl(x_taskonomy, x_target, prep["conv_w"], prep["conv_b"],
                         prep["w1"], prep["b1"], prep["w2"], prep["b2"])


# ------------------------------ One-time weight prep ------------------------------

def prepare_params(params):
    """Hoisted out of the per-call path: run once per parameter set."""
    c_out, c_in = params["conv1_w"].shape[0], params["conv1_w"].shape[1]
    k = c_in * 9
    k_pad = ((k + 127) // 128) * 128
    # conv1 (Cout, Cin, 3, 3) -> im2col matrix (k_pad, Cout), rows ordered
    # (kh, kw, c_in) with c_in fastest, zero-padded along the contraction dim.
    cw = jnp.transpose(params["conv1_w"], (2, 3, 1, 0)).reshape(k, c_out)
    cw = jnp.pad(cw, ((0, k_pad - k), (0, 0))).astype(jnp.bfloat16)
    cb = params["conv1_b"].reshape(1, c_out).astype(jnp.float32)
    # fc1: transpose to (in, out) AND fold the PyTorch NCHW Flatten order
    # (index c*n_pos + p) into the kernel's (p*64 + c) feature order.
    fc1_w = params["fc1_w"]                                  # (1024, 64*4*4)
    n_hid, n_in = fc1_w.shape
    n_pos = n_in // c_out
    w1 = (fc1_w.reshape(n_hid, c_out, n_pos)
          .transpose(2, 1, 0).reshape(n_in, n_hid).astype(jnp.bfloat16))
    b1 = params["fc1_b"].reshape(1, n_hid).astype(jnp.float32)
    w2 = params["fc2_w"].T.astype(jnp.bfloat16)              # (1024, output_size)
    b2 = params["fc2_b"].reshape(1, -1).astype(jnp.float32)
    return {"conv_w": cw, "conv_b": cb, "w1": w1, "b1": b1, "w2": w2, "b2": b2}


# ------------------------------ Parameter init ------------------------------

def init_params(key, n_frames, output_size):
    target_channels = 3                       # use_target=True
    c_in = n_frames * (64 + target_channels)  # conv1 in_channels
    fc1_in = 64 * 4 * 4                       # use_map=False
    k = jax.random.split(key, 4)
    return {
        # deterministic synthetic init (module uses orthogonal; values are arbitrary)
        "conv1_w": 0.05 * jax.random.normal(k[0], (64, c_in, 3, 3), jnp.float32),
        "conv1_b": 0.01 * jax.random.normal(k[1], (64,), jnp.float32),
        "fc1_w": (1.0 / jnp.sqrt(fc1_in)) * jax.random.normal(k[2], (1024, fc1_in), jnp.float32),
        "fc1_b": jnp.zeros((1024,), jnp.float32),
        "fc2_w": (1.0 / jnp.sqrt(1024.0)) * jax.random.normal(k[3], (output_size, 1024), jnp.float32),
        "fc2_b": jnp.zeros((output_size,), jnp.float32),
    }


# ------------------------------ Main ------------------------------

if __name__ == "__main__":
    n_frames = 2
    output_size = 512      # module default; keeps the final HBM store lane-dense
    batch = 2

    key = jax.random.PRNGKey(0)
    k_in, k_tgt, k_par = jax.random.split(key, 3)

    # Spatial 6x6 so conv1 (3x3 valid) yields 4x4, matching fc1's 64*4*4 input.
    x_taskonomy = jax.random.normal(k_in, (batch, n_frames * 64, 6, 6), jnp.float32)
    x_target = jax.random.normal(k_tgt, (batch, n_frames * 3, 6, 6), jnp.float32)

    params = init_params(k_par, n_frames, output_size)
    prep = jax.block_until_ready(prepare_params(params))   # one-time weight prep

    out = base_model_autoencoder_forward(x_taskonomy, x_target, prep)
    out = jax.block_until_ready(out)
    assert out.shape == (batch, output_size), out.shape
    assert out.dtype == jnp.float32
    print("KERNEL_OK")
</pallas_src>

<mosaic_0001>
module attributes {stable_mosaic.version = 11 : i64} {
  func.func @_fused_forward_kernel(%arg0: i32, %arg1: memref<32x1280xbf16, #tpu.memory_space<vmem>>, %arg2: memref<1280x64xbf16, #tpu.memory_space<vmem>>, %arg3: memref<1x64xf32, #tpu.memory_space<vmem>>, %arg4: memref<1024x1024xbf16, #tpu.memory_space<vmem>>, %arg5: memref<1x1024xf32, #tpu.memory_space<vmem>>, %arg6: memref<1024x512xbf16, #tpu.memory_space<vmem>>, %arg7: memref<1x512xf32, #tpu.memory_space<vmem>>, %arg8: memref<2x512xf32, #tpu.memory_space<vmem>>, %arg9: memref<2x1024xf32, #tpu.memory_space<vmem>>) attributes {dimension_semantics = [#tpu.dimension_semantics<parallel>], iteration_bounds = array<i64: 1>, scalar_prefetch = 0 : i64, scratch_operands = 1 : i64, tpu.core_type = #tpu.core_type<tc>, window_params = [{transform_indices = @transform_0, window_bounds = array<i64: 32, 1280>}, {pipeline_mode = #tpu.pipeline_mode<synchronous>, transform_indices = @transform_1, window_bounds = array<i64: 1280, 64>}, {pipeline_mode = #tpu.pipeline_mode<synchronous>, transform_indices = @transform_2, window_bounds = array<i64: 1, 64>}, {pipeline_mode = #tpu.pipeline_mode<synchronous>, transform_indices = @transform_3, window_bounds = array<i64: 1024, 1024>}, {pipeline_mode = #tpu.pipeline_mode<synchronous>, transform_indices = @transform_4, window_bounds = array<i64: 1, 1024>}, {pipeline_mode = #tpu.pipeline_mode<synchronous>, transform_indices = @transform_5, window_bounds = array<i64: 1024, 512>}, {pipeline_mode = #tpu.pipeline_mode<synchronous>, transform_indices = @transform_6, window_bounds = array<i64: 1, 512>}, {transform_indices = @transform_7, window_bounds = array<i64: 2, 512>}]} {
    %c0 = arith.constant 0 : index
    %c0_0 = arith.constant 0 : index
    %0 = vector.load %arg1[%c0, %c0_0] : memref<32x1280xbf16, #tpu.memory_space<vmem>>, vector<32x1280xbf16>
    %c0_1 = arith.constant 0 : index
    %c0_2 = arith.constant 0 : index
    %1 = vector.load %arg2[%c0_1, %c0_2] : memref<1280x64xbf16, #tpu.memory_space<vmem>>, vector<1280x64xbf16>
    %cst = arith.constant dense<0.000000e+00> : vector<32x64xf32>
    %2 = tpu.matmul %0, %1, %cst {dimension_numbers = #tpu.dot_dimension_numbers<[1], [0], [0], [1], [0, 0, 1, 1], [], []>} : vector<32x1280xbf16>, vector<1280x64xbf16>, vector<32x64xf32> -> vector<32x64xf32>
    %c0_3 = arith.constant 0 : index
    %c0_4 = arith.constant 0 : index
    %3 = vector.load %arg3[%c0_3, %c0_4] : memref<1x64xf32, #tpu.memory_space<vmem>>, vector<1x64xf32>
    %4 = vector.broadcast %3 : vector<1x64xf32> to vector<32x64xf32>
    %5 = arith.addf %2, %4 : vector<32x64xf32>
    %cst_5 = arith.constant 0.000000e+00 : f32
    %6 = vector.broadcast %cst_5 : f32 to vector<32x64xf32>
    %7 = arith.maximumf %5, %6 : vector<32x64xf32>
    %8 = vector.extract_strided_slice %7 {offsets = [0, 0], sizes = [2, 64], strides = [1, 1]} : vector<32x64xf32> to vector<2x64xf32>
    %c0_6 = arith.constant 0 : index
    %c0_7 = arith.constant 0 : index
    %9 = vector.load %arg9[%c0_6, %c0_7] : memref<2x1024xf32, #tpu.memory_space<vmem>>, vector<2x64xf32>
    tpu.vector_store %arg9[%c0_6, %c0_7], %8 {strides = array<i32>} : memref<2x1024xf32, #tpu.memory_space<vmem>>, vector<2x64xf32>,
    %10 = vector.extract_strided_slice %7 {offsets = [2, 0], sizes = [2, 64], strides = [1, 1]} : vector<32x64xf32> to vector<2x64xf32>
    %c0_8 = arith.constant 0 : index
    %c64 = arith.constant 64 : index
    %11 = vector.load %arg9[%c0_8, %c64] : memref<2x1024xf32, #tpu.memory_space<vmem>>, vector<2x64xf32>
    tpu.vector_store %arg9[%c0_8, %c64], %10 {strides = array<i32>} : memref<2x1024xf32, #tpu.memory_space<vmem>>, vector<2x64xf32>,
    %12 = vector.extract_strided_slice %7 {offsets = [4, 0], sizes = [2, 64], strides = [1, 1]} : vector<32x64xf32> to vector<2x64xf32>
    %c0_9 = arith.constant 0 : index
    %c128 = arith.constant 128 : index
    %13 = vector.load %arg9[%c0_9, %c128] : memref<2x1024xf32, #tpu.memory_space<vmem>>, vector<2x64xf32>
    tpu.vector_store %arg9[%c0_9, %c128], %12 {strides = array<i32>} : memref<2x1024xf32, #tpu.memory_space<vmem>>, vector<2x64xf32>,
    %14 = vector.extract_strided_slice %7 {offsets = [6, 0], sizes = [2, 64], strides = [1, 1]} : vector<32x64xf32> to vector<2x64xf32>
    %c0_10 = arith.constant 0 : index
    %c192 = arith.constant 192 : index
    %15 = vector.load %arg9[%c0_10, %c192] : memref<2x1024xf32, #tpu.memory_space<vmem>>, vector<2x64xf32>
    tpu.vector_store %arg9[%c0_10, %c192], %14 {strides = array<i32>} : memref<2x1024xf32, #tpu.memory_space<vmem>>, vector<2x64xf32>,
    %16 = vector.extract_strided_slice %7 {offsets = [8, 0], sizes = [2, 64], strides = [1, 1]} : vector<32x64xf32> to vector<2x64xf32>
    %c0_11 = arith.constant 0 : index
    %c256 = arith.constant 256 : index
    %17 = vector.load %arg9[%c0_11, %c256] : memref<2x1024xf32, #tpu.memory_space<vmem>>, vector<2x64xf32>
    tpu.vector_store %arg9[%c0_11, %c256], %16 {strides = array<i32>} : memref<2x1024xf32, #tpu.memory_space<vmem>>, vector<2x64xf32>,
    %18 = vector.extract_strided_slice %7 {offsets = [10, 0], sizes = [2, 64], strides = [1, 1]} : vector<32x64xf32> to vector<2x64xf32>
    %c0_12 = arith.constant 0 : index
    %c320 = arith.constant 320 : index
    %19 = vector.load %arg9[%c0_12, %c320] : memref<2x1024xf32, #tpu.memory_space<vmem>>, vector<2x64xf32>
    tpu.vector_store %arg9[%c0_12, %c320], %18 {strides = array<i32>} : memref<2x1024xf32, #tpu.memory_space<vmem>>, vector<2x64xf32>,
    %20 = vector.extract_strided_slice %7 {offsets = [12, 0], sizes = [2, 64], strides = [1, 1]} : vector<32x64xf32> to vector<2x64xf32>
    %c0_13 = arith.constant 0 : index
    %c384 = arith.constant 384 : index
    %21 = vector.load %arg9[%c0_13, %c384] : memref<2x1024xf32, #tpu.memory_space<vmem>>, vector<2x64xf32>
    tpu.vector_store %arg9[%c0_13, %c384], %20 {strides = array<i32>} : memref<2x1024xf32, #tpu.memory_space<vmem>>, vector<2x64xf32>,
    %22 = vector.extract_strided_slice %7 {offsets = [14, 0], sizes = [2, 64], strides = [1, 1]} : vector<32x64xf32> to vector<2x64xf32>
    %c0_14 = arith.constant 0 : index
    %c448 = arith.constant 448 : index
    %23 = vector.load %arg9[%c0_14, %c448] : memref<2x1024xf32, #tpu.memory_space<vmem>>, vector<2x64xf32>
    tpu.vector_store %arg9[%c0_14, %c448], %22 {strides = array<i32>} : memref<2x1024xf32, #tpu.memory_space<vmem>>, vector<2x64xf32>,
    %24 = vector.extract_strided_slice %7 {offsets = [16, 0], sizes = [2, 64], strides = [1, 1]} : vector<32x64xf32> to vector<2x64xf32>
    %c0_15 = arith.constant 0 : index
    %c512 = arith.constant 512 : index
    %25 = vector.load %arg9[%c0_15, %c512] : memref<2x1024xf32, #tpu.memory_space<vmem>>, vector<2x64xf32>
    tpu.vector_store %arg9[%c0_15, %c512], %24 {strides = array<i32>} : memref<2x1024xf32, #tpu.memory_space<vmem>>, vector<2x64xf32>,
    %26 = vector.extract_strided_slice %7 {offsets = [18, 0], sizes = [2, 64], strides = [1, 1]} : vector<32x64xf32> to vector<2x64xf32>
    %c0_16 = arith.constant 0 : index
    %c576 = arith.constant 576 : index
    %27 = vector.load %arg9[%c0_16, %c576] : memref<2x1024xf32, #tpu.memory_space<vmem>>, vector<2x64xf32>
    tpu.vector_store %arg9[%c0_16, %c576], %26 {strides = array<i32>} : memref<2x1024xf32, #tpu.memory_space<vmem>>, vector<2x64xf32>,
    %28 = vector.extract_strided_slice %7 {offsets = [20, 0], sizes = [2, 64], strides = [1, 1]} : vector<32x64xf32> to vector<2x64xf32>
    %c0_17 = arith.constant 0 : index
    %c640 = arith.constant 640 : index
    %29 = vector.load %arg9[%c0_17, %c640] : memref<2x1024xf32, #tpu.memory_space<vmem>>, vector<2x64xf32>
    tpu.vector_store %arg9[%c0_17, %c640], %28 {strides = array<i32>} : memref<2x1024xf32, #tpu.memory_space<vmem>>, vector<2x64xf32>,
    %30 = vector.extract_strided_slice %7 {offsets = [22, 0], sizes = [2, 64], strides = [1, 1]} : vector<32x64xf32> to vector<2x64xf32>
    %c0_18 = arith.constant 0 : index
    %c704 = arith.constant 704 : index
    %31 = vector.load %arg9[%c0_18, %c704] : memref<2x1024xf32, #tpu.memory_space<vmem>>, vector<2x64xf32>
    tpu.vector_store %arg9[%c0_18, %c704], %30 {strides = array<i32>} : memref<2x1024xf32, #tpu.memory_space<vmem>>, vector<2x64xf32>,
    %32 = vector.extract_strided_slice %7 {offsets = [24, 0], sizes = [2, 64], strides = [1, 1]} : vector<32x64xf32> to vector<2x64xf32>
    %c0_19 = arith.constant 0 : index
    %c768 = arith.constant 768 : index
    %33 = vector.load %arg9[%c0_19, %c768] : memref<2x1024xf32, #tpu.memory_space<vmem>>, vector<2x64xf32>
    tpu.vector_store %arg9[%c0_19, %c768], %32 {strides = array<i32>} : memref<2x1024xf32, #tpu.memory_space<vmem>>, vector<2x64xf32>,
    %34 = vector.extract_strided_slice %7 {offsets = [26, 0], sizes = [2, 64], strides = [1, 1]} : vector<32x64xf32> to vector<2x64xf32>
    %c0_20 = arith.constant 0 : index
    %c832 = arith.constant 832 : index
    %35 = vector.load %arg9[%c0_20, %c832] : memref<2x1024xf32, #tpu.memory_space<vmem>>, vector<2x64xf32>
    tpu.vector_store %arg9[%c0_20, %c832], %34 {strides = array<i32>} : memref<2x1024xf32, #tpu.memory_space<vmem>>, vector<2x64xf32>,
    %36 = vector.extract_strided_slice %7 {offsets = [28, 0], sizes = [2, 64], strides = [1, 1]} : vector<32x64xf32> to vector<2x64xf32>
    %c0_21 = arith.constant 0 : index
    %c896 = arith.constant 896 : index
    %37 = vector.load %arg9[%c0_21, %c896] : memref<2x1024xf32, #tpu.memory_space<vmem>>, vector<2x64xf32>
    tpu.vector_store %arg9[%c0_21, %c896], %36 {strides = array<i32>} : memref<2x1024xf32, #tpu.memory_space<vmem>>, vector<2x64xf32>,
    %38 = vector.extract_strided_slice %7 {offsets = [30, 0], sizes = [2, 64], strides = [1, 1]} : vector<32x64xf32> to vector<2x64xf32>
    %c0_22 = arith.constant 0 : index
    %c960 = arith.constant 960 : index
    %39 = vector.load %arg9[%c0_22, %c960] : memref<2x1024xf32, #tpu.memory_space<vmem>>, vector<2x64xf32>
    tpu.vector_store %arg9[%c0_22, %c960], %38 {strides = array<i32>} : memref<2x1024xf32, #tpu.memory_space<vmem>>, vector<2x64xf32>,
    %c0_23 = arith.constant 0 : index
    %c0_24 = arith.constant 0 : index
    %40 = vector.load %arg9[%c0_23, %c0_24] : memref<2x1024xf32, #tpu.memory_space<vmem>>, vector<2x1024xf32>
    %41 = arith.truncf %40 : vector<2x1024xf32> to vector<2x1024xbf16>
    %c0_25 = arith.constant 0 : index
    %c0_26 = arith.constant 0 : index
    %42 = vector.load %arg4[%c0_25, %c0_26] : memref<1024x1024xbf16, #tpu.memory_space<vmem>>, vector<1024x1024xbf16>
    %cst_27 = arith.constant dense<0.000000e+00> : vector<2x1024xf32>
    %43 = tpu.matmul %41, %42, %cst_27 {dimension_numbers = #tpu.dot_dimension_numbers<[1], [0], [0], [1], [0, 0, 1, 1], [], []>} : vector<2x1024xbf16>, vector<1024x1024xbf16>, vector<2x1024xf32> -> vector<2x1024xf32>
    %c0_28 = arith.constant 0 : index
    %c0_29 = arith.constant 0 : index
    %44 = vector.load %arg5[%c0_28, %c0_29] : memref<1x1024xf32, #tpu.memory_space<vmem>>, vector<1x1024xf32>
    %45 = vector.broadcast %44 : vector<1x1024xf32> to vector<2x1024xf32>
    %46 = arith.addf %43, %45 : vector<2x1024xf32>
    %cst_30 = arith.constant 0.000000e+00 : f32
    %47 = vector.broadcast %cst_30 : f32 to vector<2x1024xf32>
    %48 = arith.maximumf %46, %47 : vector<2x1024xf32>
    %49 = arith.truncf %48 : vector<2x1024xf32> to vector<2x1024xbf16>
    %c0_31 = arith.constant 0 : index
    %c0_32 = arith.constant 0 : index
    %50 = vector.load %arg6[%c0_31, %c0_32] : memref<1024x512xbf16, #tpu.memory_space<vmem>>, vector<1024x512xbf16>
    %cst_33 = arith.constant dense<0.000000e+00> : vector<2x512xf32>
    %51 = tpu.matmul %49, %50, %cst_33 {dimension_numbers = #tpu.dot_dimension_numbers<[1], [0], [0], [1], [0, 0, 1, 1], [], []>} : vector<2x1024xbf16>, vector<1024x512xbf16>, vector<2x512xf32> -> vector<2x512xf32>
    %c0_34 = arith.constant 0 : index
    %c0_35 = arith.constant 0 : index
    %52 = vector.load %arg7[%c0_34, %c0_35] : memref<1x512xf32, #tpu.memory_space<vmem>>, vector<1x512xf32>
    %53 = vector.broadcast %52 : vector<1x512xf32> to vector<2x512xf32>
    %54 = arith.addf %51, %53 : vector<2x512xf32>
    %cst_36 = arith.constant 0.000000e+00 : f32
    %55 = vector.broadcast %cst_36 : f32 to vector<2x512xf32>
    %56 = arith.maximumf %54, %55 : vector<2x512xf32>
    %c0_37 = arith.constant 0 : index
    %c0_38 = arith.constant 0 : index
    %57 = vector.load %arg8[%c0_37, %c0_38] : memref<2x512xf32, #tpu.memory_space<vmem>>, vector<2x512xf32>
    tpu.vector_store %arg8[%c0_37, %c0_38], %56 {strides = array<i32>} : memref<2x512xf32, #tpu.memory_space<vmem>>, vector<2x512xf32>,
    return
  }
  func.func @transform_0(%arg0: i32) -> (i32, i32) {
    %c0_i32 = arith.constant 0 : i32
    %c0_i32_0 = arith.constant 0 : i32
    return %arg0, %c0_i32 : i32, i32
  }
  func.func @transform_1(%arg0: i32) -> (i32, i32) {
    %c0_i32 = arith.constant 0 : i32
    %c0_i32_0 = arith.constant 0 : i32
    %c0_i32_1 = arith.constant 0 : i32
    return %c0_i32, %c0_i32_0 : i32, i32
  }
  func.func @transform_2(%arg0: i32) -> (i32, i32) {
    %c0_i32 = arith.constant 0 : i32
    %c0_i32_0 = arith.constant 0 : i32
    %c0_i32_1 = arith.constant 0 : i32
    return %c0_i32, %c0_i32_0 : i32, i32
  }
  func.func @transform_3(%arg0: i32) -> (i32, i32) {
    %c0_i32 = arith.constant 0 : i32
    %c0_i32_0 = arith.constant 0 : i32
    %c0_i32_1 = arith.constant 0 : i32
    return %c0_i32, %c0_i32_0 : i32, i32
  }
  func.func @transform_4(%arg0: i32) -> (i32, i32) {
    %c0_i32 = arith.constant 0 : i32
    %c0_i32_0 = arith.constant 0 : i32
    %c0_i32_1 = arith.constant 0 : i32
    return %c0_i32, %c0_i32_0 : i32, i32
  }
  func.func @transform_5(%arg0: i32) -> (i32, i32) {
    %c0_i32 = arith.constant 0 : i32
    %c0_i32_0 = arith.constant 0 : i32
    %c0_i32_1 = arith.constant 0 : i32
    return %c0_i32, %c0_i32_0 : i32, i32
  }
  func.func @transform_6(%arg0: i32) -> (i32, i32) {
    %c0_i32 = arith.constant 0 : i32
    %c0_i32_0 = arith.constant 0 : i32
    %c0_i32_1 = arith.constant 0 : i32
    return %c0_i32, %c0_i32_0 : i32, i32
  }
  func.func @transform_7(%arg0: i32) -> (i32, i32) {
    %c0_i32 = arith.constant 0 : i32
    %c0_i32_0 = arith.constant 0 : i32
    return %arg0, %c0_i32 : i32, i32
  }
}

</mosaic_0001>

<bundles_post_ra>
// kernel: _forward_impl.1
= control target key start
LH: loop header
LB: loop body
LE: loop exit
PB: predicated region body
PF: predicated region fallthrough
CT: control target
= control target key end

     0   :  { %12 = vsyncpa [#allocation4], 0  ;;  %s13815_s0 = inlined_call_operand.vmem [shape: bf16[32,1280], index: 0, kind: input, shape index: {}]   ;;  %s13816_s1 = inlined_call_operand.vmem [shape: bf16[1280,64], index: 1, kind: input, shape index: {}]   ;;  %s13817_s2 = inlined_call_operand.hbm [shape: f32[1,64], index: 2, kind: input, shape index: {}]   ;;  %s13818_s3 = inlined_call_operand.hbm [shape: bf16[1024,1024], index: 3, kind: input, shape index: {}]   ;;  %s13819_s4 = inlined_call_operand.hbm [shape: f32[1,1024], index: 4, kind: input, shape index: {}]   ;;  %s13820_s5 = inlined_call_operand.vmem [shape: bf16[1024,512], index: 5, kind: input, shape index: {}]   ;;  %s13821_s6 = inlined_call_operand.hbm [shape: f32[1,512], index: 6, kind: input, shape index: {}]   ;;  %s13822_s7 = inlined_call_operand.hbm [shape: f32[2,512], index: 7, kind: output, shape index: {}]  }
   0x1   :  { %13 = vsyncpa [#allocation7], 0 }
   0x2   :  { %14 = vsyncpa [#allocation10], 0  ;;  %s35_s26 = sshll.u32 %s13818_s3, 4  ;;  %s36_s26 = int_to_ptr.hbm [resolvable:$true] %s35_s26 }
   0x3   :  { %15 = vsyncpa [#allocation5], 0  ;;  %s11577_s27 = smov [#allocation6]   ;;  %s25_s8 = sshll.u32 %s13817_s2, 4  ;;  %s26_s8 = int_to_ptr.hbm [resolvable:$true] %s25_s8 }
   0x4   :  { %s37_s28 = sshll.u32 %s11577_s27, 4  ;;  %s11578_s9 = smov 512   ;;  %s38_s28 = int_to_ptr.vmem [resolvable:$true] %s37_s28 }
   0x5   :  { %s11579_s10 = smov 32   ;;  %s11580_s11 = smov [#allocation3]  }
   0x6   :  { %43 = dma.hbm_to_vmem [thread:$0]  %s36_s26, 65536, %s38_s28, [#allocation7], %s11578_s9, %s11578_s9, %s11579_s10  }
   0x7   :  { %s27_s12 = sshll.u32 %s11580_s11, 4  ;;  %s49_s15 = sshll.u32 %s13819_s4, 4  ;;  %s28_s12 = int_to_ptr.vmem [resolvable:$true] %s27_s12  ;;  %s50_s15 = int_to_ptr.hbm [resolvable:$true] %s49_s15 }
   0x8   :  { %30 = dma.hbm_to_vmem [thread:$0]  %s26_s8, 16, %s28_s12, [#allocation4]  }
   0x9   :  { %s62_s17 = sshll.u32 %s13821_s6, 4  ;;  %s11581_s18 = smov [#allocation8]   ;;  %s63_s17 = int_to_ptr.hbm [resolvable:$true] %s62_s17 }
   0xa   :  { %s51_s19 = sshll.u32 %s11581_s18, 4  ;;  %s11582_s2 = smov [#allocation9]   ;;  %s52_s19 = int_to_ptr.vmem [resolvable:$true] %s51_s19 }
   0xb   :  { %54 = dma.hbm_to_vmem [thread:$0]  %s50_s15, 128, %s52_s19, [#allocation7]  }
   0xc   :  { %s64_s20 = sshll.u32 %s11582_s2, 4  ;;  %s65_s20 = int_to_ptr.vmem [resolvable:$true] %s64_s20 }
   0xd   :  { %67 = dma.hbm_to_vmem [thread:$0]  %s63_s17, 64, %s65_s20, [#allocation10]  }
   0xe   :  { %11569 = dma.done.wait [#allocation4], 16  }
   0xf   :  { %11570 = vsyncadd [#allocation4], 4294967280 }
  0x10   :  { %11571 = dma.done.wait [#allocation7], 65664  }
  0x11   :  { %11572 = vsyncadd [#allocation7], 4294901632 }
  0x12   :  { %11573 = dma.done.wait [#allocation10], 64  }
  0x13   :  { %11574 = vsyncadd [#allocation10], 4294967232  ;;  %v10596_v0 = vld [vmem:[%s13816_s1 + $0x38] sm:$0xff]  ;;  %v10595_v4 = vld [vmem:[%s13816_s1 + $0x30] sm:$0xff]  ;;  %vm1042_vm0 = vcmask 517120   ;;  %vm1051_vm1 = vcmask 1041920  }
  0x14   :  { %v10604_v1 = vld [vmem:[%s13816_s1 + $0x78] sm:$0xff]  ;;  %848 = vmatpush.bf16.msra.mxu0 %v10596_v0  ;;  %v10603_v5 = vld [vmem:[%s13816_s1 + $0x70] sm:$0xff]  ;;  %v10594_v8 = vld [vmem:[%s13816_s1 + $0x28] sm:$0xff]  ;;  %vm7070_vm2 = vcmask 1041408   ;;  %vm7072_vm3 = vcmask 1045508   ;;  %s7085_s27 = sshll.u32 %s13822_s7, 4  ;;  %s7086_s27 = int_to_ptr.hbm [resolvable:$true] %s7085_s27 }
  0x15   :  { %v10612_v2 = vld [vmem:[%s13816_s1 + $0xb8] sm:$0xff]  ;;  %867 = vmatpush.bf16.msra.mxu1 %v10604_v1  ;;  %v10611_v6 = vld [vmem:[%s13816_s1 + $0xb0] sm:$0xff]  ;;  %v10602_v9 = vld [vmem:[%s13816_s1 + $0x68] sm:$0xff]  ;;  %vm7074_vm4 = vcmask 1043456  }
  0x16   :  { %v10620_v3 = vld [vmem:[%s13816_s1 + $0xf8] sm:$0xff]  ;;  %886 = vmatpush.bf16.msra.mxu2 %v10612_v2  ;;  %v10619_v7 = vld [vmem:[%s13816_s1 + $0xf0] sm:$0xff]  ;;  %v10610_v10 = vld [vmem:[%s13816_s1 + $0xa8] sm:$0xff] }
  0x17   :  { %905 = vmatpush.bf16.msra.mxu3 %v10620_v3  ;;  %v10618_v11 = vld [vmem:[%s13816_s1 + $0xe8] sm:$0xff]  ;;  %v10593_v12 = vld [vmem:[%s13816_s1 + $0x20] sm:$0xff]  ;;  %v10592_v16 = vld [vmem:[%s13816_s1 + $0x18] sm:$0xff] }
  0x18   :  { %849 = vmatpush.bf16.msra.mxu0 %v10595_v4  ;;  %v10601_v13 = vld [vmem:[%s13816_s1 + $0x60] sm:$0xff]  ;;  %v10600_v17 = vld [vmem:[%s13816_s1 + $0x58] sm:$0xff]  ;;  %v10591_v20 = vld [vmem:[%s13816_s1 + $0x10] sm:$0xff] }
  0x19   :  { %868 = vmatpush.bf16.msra.mxu1 %v10603_v5  ;;  %v10609_v14 = vld [vmem:[%s13816_s1 + $0xa0] sm:$0xff]  ;;  %v10608_v18 = vld [vmem:[%s13816_s1 + $0x98] sm:$0xff]  ;;  %v10599_v21 = vld [vmem:[%s13816_s1 + $0x50] sm:$0xff] }
  0x1a   :  { %887 = vmatpush.bf16.msra.mxu2 %v10611_v6  ;;  %v10617_v15 = vld [vmem:[%s13816_s1 + $0xe0] sm:$0xff]  ;;  %v10616_v19 = vld [vmem:[%s13816_s1 + $0xd8] sm:$0xff]  ;;  %v10607_v22 = vld [vmem:[%s13816_s1 + $0x90] sm:$0xff] }
  0x1b   :  { %906 = vmatpush.bf16.msra.mxu3 %v10619_v7  ;;  %v10615_v23 = vld [vmem:[%s13816_s1 + $0xd0] sm:$0xff]  ;;  %v10590_v24 = vld [vmem:[%s13816_s1 + $0x8] sm:$0xff]  ;;  %v10589_v28 = vld [vmem:[%s13816_s1] sm:$0xff] }
  0x1c   :  { %850 = vmatpush.bf16.msra.mxu0 %v10594_v8  ;;  %v10598_v25 = vld [vmem:[%s13816_s1 + $0x48] sm:$0xff]  ;;  %v10597_v29 = vld [vmem:[%s13816_s1 + $0x40] sm:$0xff]  ;;  %v10575_v37 = vld [vmem:[%s13815_s0 + $0x2c] sm:$0xf0] }
  0x1d   :  { %869 = vmatpush.bf16.msra.mxu1 %v10602_v9  ;;  %v10606_v26 = vld [vmem:[%s13816_s1 + $0x88] sm:$0xff]  ;;  %v10605_v30 = vld [vmem:[%s13816_s1 + $0x80] sm:$0xff]  ;;  %v7109_v39 = vld [vmem:[%s13815_s0 + $0x30] sm:$0xf0] }
  0x1e   :  { %888 = vmatpush.bf16.msra.mxu2 %v10610_v10  ;;  %v10614_v27 = vld [vmem:[%s13816_s1 + $0xc8] sm:$0xff]  ;;  %v10613_v31 = vld [vmem:[%s13816_s1 + $0xc0] sm:$0xff]  ;;  %v10628_v40 = vld [vmem:[%s13816_s1 + $0x138] sm:$0xff] }
  0x1f   :  { %907 = vmatpush.bf16.msra.mxu3 %v10618_v11  ;;  %v7099_v32 = vld [vmem:[%s13815_s0] sm:$0xf]  ;;  %v10574_v33 = vld [vmem:[%s13815_s0 + $0x24] sm:$0xf0]  ;;  %v10569_v34 = vld [vmem:[%s13815_s0 + $0x4] sm:$0xf] }
  0x20   :  { %851 = vmatpush.bf16.msra.mxu0 %v10593_v12  ;;  %v7101_v35 = vld [vmem:[%s13815_s0 + $0x28] sm:$0xf0]  ;;  %v7107_v36 = vld [vmem:[%s13815_s0 + $0x8] sm:$0xf]  ;;  %v10636_v41 = vld [vmem:[%s13816_s1 + $0x178] sm:$0xff]  ;;  %v7100_v42 = vor.u32 %v10574_v33, %v7099_v32 }
  0x21   :  { %870 = vmatpush.bf16.msra.mxu1 %v10601_v13  ;;  %v10570_v38 = vld [vmem:[%s13815_s0 + $0xc] sm:$0xf]  ;;  %v7104_v43 = vor.u32 %v10569_v34, %v7101_v35  ;;  %v7108_v44 = vor.u32 %v10575_v37, %v7107_v36  ;;  %v10644_v46 = vld [vmem:[%s13816_s1 + $0x1b8] sm:$0xff]  ;;  %v10627_v48 = vld [vmem:[%s13816_s1 + $0x130] sm:$0xff] }
  0x22   :  { %889 = vmatpush.bf16.msra.mxu2 %v10609_v14  ;;  %v7112_v45 = vor.u32 %v10570_v38, %v7109_v39  ;;  %v10652_v47 = vld [vmem:[%s13816_s1 + $0x1f8] sm:$0xff]  ;;  %v10635_v49 = vld [vmem:[%s13816_s1 + $0x170] sm:$0xff]  ;;  %v10626_v52 = vld [vmem:[%s13816_s1 + $0x128] sm:$0xff] }
  0x23   :  { %908 = vmatpush.bf16.msra.mxu3 %v10617_v15  ;;  %v10643_v50 = vld [vmem:[%s13816_s1 + $0x1b0] sm:$0xff]  ;;  %v10634_v53 = vld [vmem:[%s13816_s1 + $0x168] sm:$0xff]  ;;  %v10625_v56 = vld [vmem:[%s13816_s1 + $0x120] sm:$0xff] }
  0x24   :  { %852 = vmatpush.bf16.msra.mxu0 %v10592_v16  ;;  %v10651_v51 = vld [vmem:[%s13816_s1 + $0x1f0] sm:$0xff]  ;;  %v10642_v54 = vld [vmem:[%s13816_s1 + $0x1a8] sm:$0xff]  ;;  %v10633_v57 = vld [vmem:[%s13816_s1 + $0x160] sm:$0xff] }
  0x25   :  { %871 = vmatpush.bf16.msra.mxu1 %v10600_v17  ;;  %v10650_v55 = vld [vmem:[%s13816_s1 + $0x1e8] sm:$0xff]  ;;  %v10641_v58 = vld [vmem:[%s13816_s1 + $0x1a0] sm:$0xff]  ;;  %v7139_v60 = vld [vmem:[%s13815_s0 + $0x50] sm:$0xf] }
  0x26   :  { %890 = vmatpush.bf16.msra.mxu2 %v10608_v18  ;;  %v10649_v59 = vld [vmem:[%s13816_s1 + $0x1e0] sm:$0xff]  ;;  %v10584_v61 = vld [vmem:[%s13815_s0 + $0x74] sm:$0xf0]  ;;  %v10579_v62 = vld [vmem:[%s13815_s0 + $0x54] sm:$0xf] }
  0x27   :  { %909 = vmatpush.bf16.msra.mxu3 %v10616_v19  ;;  %v7141_v63 = vld [vmem:[%s13815_s0 + $0x78] sm:$0xf0]  ;;  %v7147_v0 = vld [vmem:[%s13815_s0 + $0x58] sm:$0xf]  ;;  %v10585_v1 = vld [vmem:[%s13815_s0 + $0x7c] sm:$0xf0]  ;;  %v7140_v6 = vor.u32 %v10584_v61, %v7139_v60 }
  0x28   :  { %853 = vmatpush.bf16.msra.mxu0 %v10591_v20  ;;  %v10580_v2 = vld [vmem:[%s13815_s0 + $0x5c] sm:$0xf]  ;;  %v7149_v3 = vld [vmem:[%s13815_s0 + $0x80] sm:$0xf0]  ;;  %v7144_v7 = vor.u32 %v10579_v62, %v7141_v63  ;;  %v7148_v8 = vor.u32 %v10585_v1, %v7147_v0  ;;  %v10623_v12 = vld [vmem:[%s13816_s1 + $0x110] sm:$0xff] }
  0x29   :  { %872 = vmatpush.bf16.msra.mxu1 %v10599_v21  ;;  %v10624_v4 = vld [vmem:[%s13816_s1 + $0x118] sm:$0xff]  ;;  %v7152_v9 = vor.u32 %v10580_v2, %v7149_v3  ;;  %v10631_v13 = vld [vmem:[%s13816_s1 + $0x150] sm:$0xff]  ;;  %v10622_v16 = vld [vmem:[%s13816_s1 + $0x108] sm:$0xff] }
  0x2a   :  { %891 = vmatpush.bf16.msra.mxu2 %v10607_v22  ;;  %v10632_v5 = vld [vmem:[%s13816_s1 + $0x158] sm:$0xff]  ;;  %v10639_v14 = vld [vmem:[%s13816_s1 + $0x190] sm:$0xff]  ;;  %v10630_v17 = vld [vmem:[%s13816_s1 + $0x148] sm:$0xff] }
  0x2b   :  { %910 = vmatpush.bf16.msra.mxu3 %v10615_v23  ;;  %v10640_v10 = vld [vmem:[%s13816_s1 + $0x198] sm:$0xff]  ;;  %v10647_v15 = vld [vmem:[%s13816_s1 + $0x1d0] sm:$0xff]  ;;  %v10638_v18 = vld [vmem:[%s13816_s1 + $0x188] sm:$0xff] }
  0x2c   :  { %854 = vmatpush.bf16.msra.mxu0 %v10590_v24  ;;  %v10648_v11 = vld [vmem:[%s13816_s1 + $0x1d8] sm:$0xff]  ;;  %v10646_v19 = vld [vmem:[%s13816_s1 + $0x1c8] sm:$0xff]  ;;  %v10621_v20 = vld [vmem:[%s13816_s1 + $0x100] sm:$0xff] }
  0x2d   :  { %873 = vmatpush.bf16.msra.mxu1 %v10598_v25  ;;  %v10629_v21 = vld [vmem:[%s13816_s1 + $0x140] sm:$0xff]  ;;  %v7115_v22 = vld [vmem:[%s13815_s0 + $0x10] sm:$0xf]  ;;  %v10576_v25 = vld [vmem:[%s13815_s0 + $0x34] sm:$0xf0] }
  0x2e   :  { %892 = vmatpush.bf16.msra.mxu2 %v10606_v26  ;;  %v10637_v23 = vld [vmem:[%s13816_s1 + $0x180] sm:$0xff]  ;;  %v10660_v26 = vld [vmem:[%s13816_s1 + $0x238] sm:$0xff]  ;;  %v7116_v34 = vor.u32 %v10576_v25, %v7115_v22  ;;  %v10659_v38 = vld [vmem:[%s13816_s1 + $0x230] sm:$0xff] }
  0x2f   :  { %911 = vmatpush.bf16.msra.mxu3 %v10614_v27  ;;  %v10645_v24 = vld [vmem:[%s13816_s1 + $0x1c0] sm:$0xff]  ;;  %v10668_v27 = vld [vmem:[%s13816_s1 + $0x278] sm:$0xff]  ;;  %v10667_v39 = vld [vmem:[%s13816_s1 + $0x270] sm:$0xff] }
  0x30   :  { %855 = vmatpush.bf16.msra.mxu0 %v10589_v28  ;;  %v10571_v28 = vld [vmem:[%s13815_s0 + $0x14] sm:$0xf]  ;;  %v10572_v32 = vld [vmem:[%s13815_s0 + $0x1c] sm:$0xf]  ;;  %v7125_v33 = vld [vmem:[%s13815_s0 + $0x40] sm:$0xf0] }
  0x31   :  { %874 = vmatpush.bf16.msra.mxu1 %v10597_v29  ;;  %v7117_v29 = vld [vmem:[%s13815_s0 + $0x38] sm:$0xf0]  ;;  %v7128_v37 = vor.u32 %v10572_v32, %v7125_v33  ;;  %v10654_v60 = vld [vmem:[%s13816_s1 + $0x208] sm:$0xff]  ;;  %v10653_v62 = vld [vmem:[%s13816_s1 + $0x200] sm:$0xff] }
  0x32   :  { %893 = vmatpush.bf16.msra.mxu2 %v10605_v30  ;;  %v7123_v30 = vld [vmem:[%s13815_s0 + $0x18] sm:$0xf]  ;;  %v7120_v35 = vor.u32 %v10571_v28, %v7117_v29  ;;  %v10662_v61 = vld [vmem:[%s13816_s1 + $0x248] sm:$0xff]  ;;  %v10661_v63 = vld [vmem:[%s13816_s1 + $0x240] sm:$0xff] }
  0x33   :  { %912 = vmatpush.bf16.msra.mxu3 %v10613_v31  ;;  %856 = vmatmul.bf16.vlgmr.msra.gmra.mxu0 %v7100_v42  ;;  %v10577_v31 = vld [vmem:[%s13815_s0 + $0x3c] sm:$0xf0]  ;;  %v10578_v1 = vld [vmem:[%s13815_s0 + $0x44] sm:$0xf0]  ;;  %v10573_v2 = vld [vmem:[%s13815_s0 + $0x24] sm:$0xf] }
  0x34   :  { %924 = vmatpush.bf16.msrb.mxu0 %v10628_v40  ;;  %875 = vmatmul.bf16.vlgmr.msra.gmra.mxu1 %v7104_v43  ;;  %v7124_v36 = vor.u32 %v10577_v31, %v7123_v30  ;;  %v10658_v40 = vld [vmem:[%s13816_s1 + $0x228] sm:$0xff]  ;;  %v10657_v42 = vld [vmem:[%s13816_s1 + $0x220] sm:$0xff]  ;;  %v11445_v28 = vld [vmem:[#allocation3] ss:$0 sm:$0xff] }
  0x35   :  { %943 = vmatpush.bf16.msrb.mxu1 %v10636_v41  ;;  %894 = vmatmul.bf16.vlgmr.msra.gmra.mxu2 %v7108_v44  ;;  %v10666_v41 = vld [vmem:[%s13816_s1 + $0x268] sm:$0xff]  ;;  %v10665_v43 = vld [vmem:[%s13816_s1 + $0x260] sm:$0xff] }
  0x36   :  { %913 = vmatmul.bf16.vlgmr.msra.gmra.mxu3 %v7112_v45  ;;  %962 = vmatpush.bf16.msrb.mxu2 %v10644_v46  ;;  %v7155_v44 = vld [vmem:[%s13815_s0 + $0x60] sm:$0xf]  ;;  %v10586_v45 = vld [vmem:[%s13815_s0 + $0x84] sm:$0xf0]  ;;  %v10581_v46 = vld [vmem:[%s13815_s0 + $0x64] sm:$0xf] }
  0x37   :  { %981 = vmatpush.bf16.msrb.mxu3 %v10652_v47  ;;  %v7157_v47 = vld [vmem:[%s13815_s0 + $0x88] sm:$0xf0]  ;;  %v7131_v0 = vld [vmem:[%s13815_s0 + $0x20] sm:$0xf] }
  0x38   :  { %925 = vmatpush.bf16.msrb.mxu0 %v10627_v48  ;;  %v7163_v48 = vld [vmem:[%s13815_s0 + $0x68] sm:$0xf]  ;;  %v7133_v3 = vld [vmem:[%s13815_s0 + $0x48] sm:$0xf0] }
  0x39   :  { %944 = vmatpush.bf16.msrb.mxu1 %v10635_v49  ;;  %v10587_v49 = vld [vmem:[%s13815_s0 + $0x8c] sm:$0xf0] }
  0x3a   :  { %963 = vmatpush.bf16.msrb.mxu2 %v10643_v50  ;;  %v10656_v50 = vld [vmem:[%s13816_s1 + $0x218] sm:$0xff] }
  0x3b   :  { %982 = vmatpush.bf16.msrb.mxu3 %v10651_v51  ;;  %v10664_v51 = vld [vmem:[%s13816_s1 + $0x258] sm:$0xff] }
  0x3c   :  { %926 = vmatpush.bf16.msrb.mxu0 %v10626_v52  ;;  %v10582_v52 = vld [vmem:[%s13815_s0 + $0x6c] sm:$0xf] }
  0x3d   :  { %945 = vmatpush.bf16.msrb.mxu1 %v10634_v53  ;;  %v7165_v53 = vld [vmem:[%s13815_s0 + $0x90] sm:$0xf0] }
  0x3e   :  { %964 = vmatpush.bf16.msrb.mxu2 %v10642_v54  ;;  %v7156_v54 = vor.u32 %v10586_v45, %v7155_v44 }
  0x3f   :  { %983 = vmatpush.bf16.msrb.mxu3 %v10650_v55  ;;  %v7160_v55 = vor.u32 %v10581_v46, %v7157_v47 }
  0x40   :  { %927 = vmatpush.bf16.msrb.mxu0 %v10625_v56  ;;  %v7164_v56 = vor.u32 %v10587_v49, %v7163_v48 }
  0x41   :  { %946 = vmatpush.bf16.msrb.mxu1 %v10633_v57  ;;  %v7168_v57 = vor.u32 %v10582_v52, %v7165_v53 }
  0x42   :  { %965 = vmatpush.bf16.msrb.mxu2 %v10641_v58  ;;  %v10655_v58 = vld [vmem:[%s13816_s1 + $0x210] sm:$0xff] }
  0x43   :  { %984 = vmatpush.bf16.msrb.mxu3 %v10649_v59  ;;  %861 = vmatmul.bf16.gmra.mxu0 %v7140_v6  ;;  %v10663_v59 = vld [vmem:[%s13816_s1 + $0x250] sm:$0xff] }
  0x44   :  { %928 = vmatpush.bf16.msrb.mxu0 %v10624_v4  ;;  %880 = vmatmul.bf16.gmra.mxu1 %v7144_v7  ;;  %v7132_v4 = vor.u32 %v10578_v1, %v7131_v0  ;;  %v7171_v6 = vld [vmem:[%s13815_s0 + $0x70] sm:$0xf]  ;;  %v10588_v7 = vld [vmem:[%s13815_s0 + $0x94] sm:$0xf0] }
  0x45   :  { %947 = vmatpush.bf16.msrb.mxu1 %v10632_v5  ;;  %899 = vmatmul.bf16.gmra.mxu2 %v7148_v8  ;;  %v7136_v5 = vor.u32 %v10573_v2, %v7133_v3  ;;  %v10583_v8 = vld [vmem:[%s13815_s0 + $0x74] sm:$0xf] }
  0x46   :  { %918 = vmatmul.bf16.gmra.mxu3 %v7152_v9  ;;  %966 = vmatpush.bf16.msrb.mxu2 %v10640_v10  ;;  %v7173_v9 = vld [vmem:[%s13815_s0 + $0x98] sm:$0xf0]  ;;  %v7172_v10 = vor.u32 %v10588_v7, %v7171_v6  ;;  %s11583_s0 = smov 64  }
  0x47   :  { %985 = vmatpush.bf16.msrb.mxu3 %v10648_v11  ;;  %v7176_v11 = vor.u32 %v10583_v8, %v7173_v9 }
  0x48   :  { %929 = vmatpush.bf16.msrb.mxu0 %v10623_v12 }
  0x49   :  { %948 = vmatpush.bf16.msrb.mxu1 %v10631_v13 }
  0x4a   :  { %967 = vmatpush.bf16.msrb.mxu2 %v10639_v14 }
  0x4b   :  { %986 = vmatpush.bf16.msrb.mxu3 %v10647_v15 }
  0x4c   :  { %930 = vmatpush.bf16.msrb.mxu0 %v10622_v16 }
  0x4d   :  { %949 = vmatpush.bf16.msrb.mxu1 %v10630_v17 }
  0x4e   :  { %968 = vmatpush.bf16.msrb.mxu2 %v10638_v18 }
  0x4f   :  { %987 = vmatpush.bf16.msrb.mxu3 %v10646_v19 }
  0x50   :  { %931 = vmatpush.bf16.msrb.mxu0 %v10621_v20 }
  0x51   :  { %950 = vmatpush.bf16.msrb.mxu1 %v10629_v21 }
  0x52   :  { %969 = vmatpush.bf16.msrb.mxu2 %v10637_v23 }
  0x53   :  { %988 = vmatpush.bf16.msrb.mxu3 %v10645_v24  ;;  %932 = vmatmul.bf16.vlgmr.msrb.gmra.mxu0 %v7116_v34 }
  0x54   :  { %1000 = vmatpush.bf16.msra.mxu0 %v10660_v26  ;;  %951 = vmatmul.bf16.vlgmr.msrb.gmra.mxu1 %v7120_v35 }
  0x55   :  { %1019 = vmatpush.bf16.msra.mxu1 %v10668_v27  ;;  %970 = vmatmul.bf16.vlgmr.msrb.gmra.mxu2 %v7124_v36 }
  0x56   :  { %989 = vmatmul.bf16.vlgmr.msrb.gmra.mxu3 %v7128_v37 }
  0x58   :  { %1001 = vmatpush.bf16.msra.mxu0 %v10659_v38 }
  0x59   :  { %1020 = vmatpush.bf16.msra.mxu1 %v10667_v39 }
  0x5c   :  { %1002 = vmatpush.bf16.msra.mxu0 %v10658_v40 }
  0x5d   :  { %1021 = vmatpush.bf16.msra.mxu1 %v10666_v41 }
  0x60   :  { %1003 = vmatpush.bf16.msra.mxu0 %v10657_v42 }
  0x61   :  { %1022 = vmatpush.bf16.msra.mxu1 %v10665_v43 }
  0x63   :  { %937 = vmatmul.bf16.gmra.mxu0 %v7156_v54 }
  0x64   :  { %1004 = vmatpush.bf16.msra.mxu0 %v10656_v50  ;;  %956 = vmatmul.bf16.gmra.mxu1 %v7160_v55 }
  0x65   :  { %1023 = vmatpush.bf16.msra.mxu1 %v10664_v51  ;;  %975 = vmatmul.bf16.gmra.mxu2 %v7164_v56 }
  0x66   :  { %994 = vmatmul.bf16.gmra.mxu3 %v7168_v57 }
  0x68   :  { %1005 = vmatpush.bf16.msra.mxu0 %v10655_v58 }
  0x69   :  { %1024 = vmatpush.bf16.msra.mxu1 %v10663_v59 }
  0x6c   :  { %1006 = vmatpush.bf16.msra.mxu0 %v10654_v60 }
  0x6d   :  { %1025 = vmatpush.bf16.msra.mxu1 %v10662_v61 }
  0x70   :  { %1007 = vmatpush.bf16.msra.mxu0 %v10653_v62 }
  0x71   :  { %1026 = vmatpush.bf16.msra.mxu1 %v10661_v63 }
  0x73   :  { %1008 = vmatmul.bf16.vlgmr.msra.gmra.mxu0 %v7132_v4 }
  0x74   :  { %1027 = vmatmul.bf16.vlgmr.msra.gmra.mxu1 %v7136_v5 }
  0x83   :  { %1013 = vmatmul.bf16.gmra.mxu0 %v7172_v10 }
  0x84   :  { %1032 = vmatmul.bf16.gmra.mxu1 %v7176_v11 }
  0xb0   :  { %v857_v12 = vpop.f32.mrf.mxu0 }
  0xb1   :  { %v876_v13 = vpop.f32.mrf.mxu1  ;;  %v858_v32 = vadd.f32 %v11445_v28, %v857_v12 }
  0xb3   :  { %v877_v34 = vadd.f32 %v876_v13, %v858_v32 }
  0xb8   :  { %v859_v14 = vpop.f32.mrf.mxu0  ;;  %v895_v16 = vpop.f32.mrf.mxu2 }
  0xb9   :  { %v878_v15 = vpop.f32.mrf.mxu1  ;;  %v914_v17 = vpop.f32.mrf.mxu3  ;;  %v896_v35 = vadd.f32 %v895_v16, %v877_v34  ;;  %v860_v38 = vadd.f32 %v11445_v28, %v859_v14 }
  0xbb   :  { %v915_v40 = vadd.f32 %v914_v17, %v896_v35  ;;  %v879_v41 = vadd.f32 %v878_v15, %v860_v38 }
  0xc0   :  { %v862_v18 = vpop.f32.mrf.mxu0  ;;  %v897_v20 = vpop.f32.mrf.mxu2 }
  0xc1   :  { %v881_v19 = vpop.f32.mrf.mxu1  ;;  %v916_v21 = vpop.f32.mrf.mxu3  ;;  %v898_v44 = vadd.f32 %v897_v20, %v879_v41  ;;  %v863_v47 = vadd.f32 %v11445_v28, %v862_v18 }
  0xc3   :  { %v917_v49 = vadd.f32 %v916_v21, %v898_v44  ;;  %v882_v52 = vadd.f32 %v881_v19, %v863_v47  ;;  %v7979_v47 = vld [vmem:[#allocation6 + $0x3c0] sm:$0xf] }
  0xc8   :  { %v864_v22 = vpop.f32.mrf.mxu0  ;;  %v900_v24 = vpop.f32.mrf.mxu2 }
  0xc9   :  { %v883_v23 = vpop.f32.mrf.mxu1  ;;  %v919_v27 = vpop.f32.mrf.mxu3  ;;  %v901_v54 = vadd.f32 %v900_v24, %v882_v52  ;;  %v865_v59 = vadd.f32 %v11445_v28, %v864_v22 }
  0xcb   :  { %v920_v62 = vadd.f32 %v919_v27, %v901_v54  ;;  %v884_v1 = vadd.f32 %v883_v23, %v865_v59  ;;  %v8491_v54 = vld [vmem:[#allocation6 + $0x7c0] sm:$0xf] }
  0xcc   :  { %v7947_v59 = vld [vmem:[#allocation6 + $0x380] sm:$0xf] }
  0xd0   :  { %v933_v25 = vpop.f32.mrf.mxu0  ;;  %v902_v29 = vpop.f32.mrf.mxu2 }
  0xd1   :  { %v952_v26 = vpop.f32.mrf.mxu1  ;;  %v921_v33 = vpop.f32.mrf.mxu3  ;;  %v934_v42 = vadd.f32 %v933_v25, %v915_v40  ;;  %v903_v5 = vadd.f32 %v902_v29, %v884_v1  ;;  %v8459_v1 = vld [vmem:[#allocation6 + $0x780] sm:$0xf] }
  0xd3   :  { %v953_v48 = vadd.f32 %v952_v26, %v934_v42  ;;  %v922_v12 = vadd.f32 %v921_v33, %v903_v5  ;;  %v7659_v5 = vld [vmem:[#allocation6 + $0x140] sm:$0xf] }
  0xd8   :  { %v935_v30 = vpop.f32.mrf.mxu0  ;;  %v971_v39 = vpop.f32.mrf.mxu2 }
  0xd9   :  { %v954_v31 = vpop.f32.mrf.mxu1  ;;  %v990_v43 = vpop.f32.mrf.mxu3  ;;  %v972_v50 = vadd.f32 %v971_v39, %v953_v48  ;;  %v936_v53 = vadd.f32 %v935_v30, %v917_v49  ;;  %v10793_v49 = vld [vmem:[#allocation6 + $0x3dc] sm:$0xf0] }
  0xda   :  { %v7980_v52 = vor.u32 %v10793_v49, %v7979_v47  ;;  %v10817_v47 = vld [vmem:[#allocation6 + $0x49c] sm:$0xf0] }
  0xdb   :  { %v991_v55 = vadd.f32 %v990_v43, %v972_v50  ;;  %v955_v60 = vadd.f32 %v954_v31, %v936_v53  ;;  %v8235_v50 = vld [vmem:[#allocation6 + $0x5c0] sm:$0xf] }
  0xdc   :  { %4262 = vmatpush.bf16.msra.mxu3 %v7980_v52  ;;  %v10881_v49 = vld [vmem:[#allocation6 + $0x69c] sm:$0xf0] }
  0xe0   :  { %v938_v36 = vpop.f32.mrf.mxu0  ;;  %v973_v51 = vpop.f32.mrf.mxu2 }
  0xe1   :  { %v957_v37 = vpop.f32.mrf.mxu1  ;;  %v992_v56 = vpop.f32.mrf.mxu3  ;;  %v974_v63 = vadd.f32 %v973_v51, %v955_v60  ;;  %v939_v2 = vadd.f32 %v938_v36, %v920_v62  ;;  %v10857_v51 = vld [vmem:[#allocation6 + $0x5dc] sm:$0xf0] }
  0xe2   :  { %v8236_v53 = vor.u32 %v10857_v51, %v8235_v50  ;;  %v10785_v60 = vld [vmem:[#allocation6 + $0x39c] sm:$0xf0] }
  0xe3   :  { %v993_v6 = vadd.f32 %v992_v56, %v974_v63  ;;  %v958_v9 = vadd.f32 %v957_v37, %v939_v2  ;;  %v7691_v56 = vld [vmem:[#allocation6 + $0x180] sm:$0xf]  ;;  %v7948_v62 = vor.u32 %v10785_v60, %v7947_v59 }
  0xe4   :  { %4275 = vmatpush.bf16.msrb.mxu0 %v8236_v53  ;;  %v8203_v63 = vld [vmem:[#allocation6 + $0x580] sm:$0xf] }
  0xe5   :  { %4263 = vmatpush.bf16.msra.mxu3 %v7948_v62  ;;  %v8043_v59 = vld [vmem:[#allocation6 + $0x440] sm:$0xf] }
  0xe6   :  { %v10809_v60 = vld [vmem:[#allocation6 + $0x45c] sm:$0xf0] }
  0xe7   :  { %v8044_v62 = vor.u32 %v10809_v60, %v8043_v59  ;;  %v11089_v59 = vld [vmem:[#allocation6 + $0xd1c] sm:$0xf0] }
  0xe8   :  { %v940_v45 = vpop.f32.mrf.mxu0  ;;  %v976_v3 = vpop.f32.mrf.mxu2 }
  0xe9   :  { %v959_v46 = vpop.f32.mrf.mxu1  ;;  %v995_v11 = vpop.f32.mrf.mxu3  ;;  %v977_v13 = vadd.f32 %v976_v3, %v958_v9  ;;  %v941_v15 = vadd.f32 %v940_v45, %v922_v12  ;;  %v7723_v45 = vld [vmem:[#allocation6 + $0x1c0] sm:$0xf] }
  0xea   :  { %v10913_v3 = vld [vmem:[#allocation6 + $0x79c] sm:$0xf0] }
  0xeb   :  { %v996_v18 = vadd.f32 %v995_v11, %v977_v13  ;;  %v960_v22 = vadd.f32 %v959_v46, %v941_v15  ;;  %v10729_v46 = vld [vmem:[#allocation6 + $0x1dc] sm:$0xf0] }
  0xec   :  { %v7724_v48 = vor.u32 %v10729_v46, %v7723_v45  ;;  %v10777_v9 = vld [vmem:[#allocation6 + $0x35c] sm:$0xf0] }
  0xed   :  { %v10841_v11 = vld [vmem:[#allocation6 + $0x55c] sm:$0xf0] }
  0xee   :  { %4249 = vmatpush.bf16.msra.mxu2 %v7724_v48  ;;  %v10905_v15 = vld [vmem:[#allocation6 + $0x75c] sm:$0xf0] }
  0xef   :  { %v10753_v45 = vld [vmem:[#allocation6 + $0x29c] sm:$0xf0] }
  0xf0   :  { %v1009_v57 = vpop.f32.mrf.mxu0  ;;  %v978_v19 = vpop.f32.mrf.mxu2  ;;  %v8075_v46 = vld [vmem:[#allocation6 + $0x480] sm:$0xf] }
  0xf1   :  { %v1028_v58 = vpop.f32.mrf.mxu1  ;;  %v1010_v61 = vadd.f32 %v1009_v57, %v991_v55  ;;  %v979_v24 = vadd.f32 %v978_v19, %v960_v22  ;;  %v997_v26 = vpop.f32.mrf.mxu3  ;;  %v10921_v55 = vld [vmem:[#allocation6 + $0x7dc] sm:$0xf0]  ;;  %v8076_v52 = vor.u32 %v10817_v47, %v8075_v46 }
  0xf2   :  { %v8492_v57 = vor.u32 %v10921_v55, %v8491_v54  ;;  %v7883_v19 = vld [vmem:[#allocation6 + $0x300] sm:$0xf] }
  0xf3   :  { %v1029_v0 = vadd.f32 %v1028_v58, %v1010_v61  ;;  %v998_v29 = vadd.f32 %v997_v26, %v979_v24  ;;  %v10721_v58 = vld [vmem:[#allocation6 + $0x19c] sm:$0xf0] }
  0xf4   :  { %v7692_v61 = vor.u32 %v10721_v58, %v7691_v56  ;;  %4288 = vmatpush.bf16.msrb.mxu1 %v8492_v57  ;;  %v10833_v24 = vld [vmem:[#allocation6 + $0x51c] sm:$0xf0] }
  0xf5   :  { %v1038_v4 = vmax.f32 %v1029_v0, 0.0  ;;  %v10849_v0 = vld [vmem:[#allocation6 + $0x59c] sm:$0xf0] }
  0xf6   :  { %v8204_v2 = vor.u32 %v10849_v0, %v8203_v63  ;;  %4250 = vmatpush.bf16.msra.mxu2 %v7692_v61  ;;  %v8331_v48 = vld [vmem:[#allocation6 + $0x680] sm:$0xf] }
  0xf7   :  { %1045 = vst.sshfl [vmem:[#allocation1] sm:$0xff pattern:$0x73625140] %v1038_v4  ;;  %v8332_v53 = vor.u32 %v10881_v49, %v8331_v48  ;;  %v7531_v54 = vld [vmem:[#allocation6 + $0x40] sm:$0xf] }
  0xf8   :  { %v1011_v7 = vpop.f32.mrf.mxu0  ;;  %1043 = vst.msk [vmem:[#allocation2] sm:$0x3] %vm1042_vm0, %v1038_v4  ;;  %4276 = vmatpush.bf16.msrb.mxu0 %v8204_v2  ;;  %v10681_v55 = vld [vmem:[#allocation6 + $0x5c] sm:$0xf0] }
  0xf9   :  { %v1030_v8 = vpop.f32.mrf.mxu1  ;;  %v1012_v10 = vadd.f32 %v1011_v7, %v993_v6  ;;  %v10713_v6 = vld [vmem:[#allocation6 + $0x15c] sm:$0xf0]  ;;  %v7532_v57 = vor.u32 %v10681_v55, %v7531_v54 }
  0xfa   :  { %v7915_v7 = vld [vmem:[#allocation6 + $0x340] sm:$0xf] }
  0xfb   :  { %v1031_v14 = vadd.f32 %v1030_v8, %v1012_v10  ;;  %v7660_v8 = vor.u32 %v10713_v6, %v7659_v5  ;;  %v8171_v10 = vld [vmem:[#allocation6 + $0x540] sm:$0xf]  ;;  %v7916_v12 = vor.u32 %v10777_v9, %v7915_v7 }
  0xfc   :  { %v8172_v13 = vor.u32 %v10841_v11, %v8171_v10  ;;  %v7787_v56 = vld [vmem:[#allocation6 + $0x240] sm:$0xf] }
  0xfd   :  { %v1039_v16 = vmax.f32 %v1031_v14, 0.0  ;;  %v8427_v14 = vld [vmem:[#allocation6 + $0x740] sm:$0xf]  ;;  %4251 = vmatpush.bf16.msra.mxu2 %v7660_v8  ;;  %4264 = vmatpush.bf16.msra.mxu3 %v7916_v12 }
  0xfe   :  { %v1047_v17 = vld [vmem:[#allocation1 + $0x1] ss:$4 sm:$0xff]  ;;  %4277 = vmatpush.bf16.msrb.mxu0 %v8172_v13 }
  0xff   :  { %1053 = vst.sshfl [vmem:[#allocation1] sm:$0xff pattern:$0x73625140] %v1038_v4  ;;  %1048 = vrot.lane.b32.xlu0 %v1047_v17, %s11583_s0  ;;  %v8428_v17 = vor.u32 %v10905_v15, %v8427_v14  ;;  %v10745_v58 = vld [vmem:[#allocation6 + $0x25c] sm:$0xf0] }
 0x100   :  { %v1014_v20 = vpop.f32.mrf.mxu0  ;;  %1065 = vst.msk [vmem:[#allocation2 + $0x4] sm:$0x3] %vm1042_vm0, %v1039_v16  ;;  %v7788_v61 = vor.u32 %v10745_v58, %v7787_v56  ;;  %v8299_v63 = vld [vmem:[#allocation6 + $0x640] sm:$0xf] }
 0x101   :  { %v1033_v21 = vpop.f32.mrf.mxu1  ;;  %v1015_v23 = vadd.f32 %v1014_v20, %v996_v18  ;;  %v10705_v18 = vld [vmem:[#allocation6 + $0x11c] sm:$0xf0] }
 0x102   :  { %v10769_v20 = vld [vmem:[#allocation6 + $0x31c] sm:$0xf0] }
 0x103   :  { %v1034_v25 = vadd.f32 %v1033_v21, %v1015_v23  ;;  %v7884_v22 = vor.u32 %v10769_v20, %v7883_v19  ;;  %v8139_v23 = vld [vmem:[#allocation6 + $0x500] sm:$0xf] }
 0x104   :  { %v8140_v26 = vor.u32 %v10833_v24, %v8139_v23  ;;  %v10873_v0 = vld [vmem:[#allocation6 + $0x65c] sm:$0xf0] }
 0x105   :  { %v1040_v27 = vmax.f32 %v1034_v25, 0.0  ;;  %v8395_v25 = vld [vmem:[#allocation6 + $0x700] sm:$0xf]  ;;  %4265 = vmatpush.bf16.msra.mxu3 %v7884_v22 }
 0x106   :  { %v1055_v28 = vld [vmem:[#allocation1 + $0x2] ss:$4 sm:$0xff]  ;;  %4278 = vmatpush.bf16.msrb.mxu0 %v8140_v26 }
 0x107   :  { %1058 = vst.sshfl [vmem:[#allocation1] sm:$0xff pattern:$0x73625140] %v1038_v4  ;;  %v8460_v4 = vor.u32 %v10913_v3, %v8459_v1  ;;  %v8300_v1 = vor.u32 %v10873_v0, %v8299_v63  ;;  %v7499_v2 = vld [vmem:[#allocation6] sm:$0xf] }
 0x108   :  { %v1016_v30 = vpop.f32.mrf.mxu0  ;;  %1057 = vst.msk [vmem:[#allocation2 + $0x2] sm:$0x3] %vm1042_vm0, %v1055_v28  ;;  %v7595_v28 = vld [vmem:[#allocation6 + $0xc0] sm:$0xf] }
 0x109   :  { %v1035_v31 = vpop.f32.mrf.mxu1  ;;  %v1017_v32 = vadd.f32 %v1016_v30, %v998_v29  ;;  %1086 = vst.msk [vmem:[#allocation2 + $0x8] sm:$0x3] %vm1042_vm0, %v1040_v27  ;;  %4289 = vmatpush.bf16.msrb.mxu1 %v8460_v4  ;;  %v10697_v29 = vld [vmem:[#allocation6 + $0xdc] sm:$0xf0] }
 0x10a   :  { %v10673_v3 = vld [vmem:[#allocation6 + $0x1c] sm:$0xf0] }
 0x10b   :  { %v1036_v33 = vadd.f32 %v1035_v31, %v1017_v32  ;;  %v7851_v32 = vld [vmem:[#allocation6 + $0x2c0] sm:$0xf]  ;;  %v7500_v6 = vor.u32 %v10673_v3, %v7499_v2 }
 0x10c   :  { %v7755_v4 = vld [vmem:[#allocation6 + $0x200] sm:$0xf] }
 0x10d   :  { %v1041_v34 = vmax.f32 %v1036_v33, 0.0  ;;  %4290 = vmatpush.bf16.msrb.mxu1 %v8428_v17  ;;  %v10761_v33 = vld [vmem:[#allocation6 + $0x2dc] sm:$0xf0] }
 0x10e   :  { %v1060_v35 = vld [vmem:[#allocation1 + $0x3] ss:$4 sm:$0xff] }
 0x10f   :  { %1067 = vst.sshfl [vmem:[#allocation1] sm:$0xff pattern:$0x73625140] %v1039_v16  ;;  %1061 = vrot.lane.b32.xlu0 %v1060_v35, %s11583_s0  ;;  %v7596_v35 = vor.u32 %v10697_v29, %v7595_v28  ;;  %v10737_v7 = vld [vmem:[#allocation6 + $0x21c] sm:$0xf0] }
 0x110   :  { %1107 = vst.msk [vmem:[#allocation2 + $0xc] sm:$0x3] %vm1042_vm0, %v1041_v34  ;;  %v8011_v8 = vld [vmem:[#allocation6 + $0x400] sm:$0xf]  ;;  %v7756_v10 = vor.u32 %v10737_v7, %v7755_v4 }
 0x111   :  { %v10801_v9 = vld [vmem:[#allocation6 + $0x41c] sm:$0xf0] }
 0x112   :  { %v8012_v11 = vor.u32 %v10801_v9, %v8011_v8  ;;  %v8267_v12 = vld [vmem:[#allocation6 + $0x600] sm:$0xf] }
 0x113   :  { %v10865_v13 = vld [vmem:[#allocation6 + $0x61c] sm:$0xf0] }
 0x114   :  { %v8268_v14 = vor.u32 %v10865_v13, %v8267_v12  ;;  %v8747_v15 = vld [vmem:[#allocation6 + $0x9c0] sm:$0xf] }
 0x115   :  { %v9003_v17 = vld [vmem:[#allocation6 + $0xbc0] sm:$0xf] }
 0x116   :  { %v1069_v36 = vld [vmem:[#allocation1 + $0x1] ss:$4 sm:$0xff] }
 0x117   :  { %1070 = vrot.lane.b32.xlu1 %v1069_v36, %s11583_s0  ;;  %1074 = vst.sshfl [vmem:[#allocation1] sm:$0xff pattern:$0x73625140] %v1039_v16  ;;  %v10825_v36 = vld [vmem:[#allocation6 + $0x4dc] sm:$0xf0] }
 0x118   :  { %v11049_v19 = vld [vmem:[#allocation6 + $0xbdc] sm:$0xf0] }
 0x119   :  { %v9259_v20 = vld [vmem:[#allocation6 + $0xdc0] sm:$0xf]  ;;  %v9004_v22 = vor.u32 %v11049_v19, %v9003_v17 }
 0x11a   :  { %v9515_v24 = vld [vmem:[#allocation6 + $0xfc0] sm:$0xf] }
 0x11b   :  { %v8715_v26 = vld [vmem:[#allocation6 + $0x980] sm:$0xf] }
 0x11c   :  { %v10977_v28 = vld [vmem:[#allocation6 + $0x99c] sm:$0xf0] }
 0x11d   :  { %v8971_v29 = vld [vmem:[#allocation6 + $0xb80] sm:$0xf] }
 0x11e   :  { %v1076_v37 = vld [vmem:[#allocation1 + $0x2] ss:$4 sm:$0xff] }
 0x11f   :  { %1079 = vst.sshfl [vmem:[#allocation1] sm:$0xff pattern:$0x73625140] %v1039_v16  ;;  %v7627_v16 = vld [vmem:[#allocation6 + $0x100] sm:$0xf] }
 0x120   :  { %1078 = vst.msk [vmem:[#allocation2 + $0x6] sm:$0x3] %vm1042_vm0, %v1076_v37  ;;  %v7628_v21 = vor.u32 %v10705_v18, %v7627_v16  ;;  %v8363_v37 = vld [vmem:[#allocation6 + $0x6c0] sm:$0xf] }
 0x121   :  { %v10985_v16 = vld [vmem:[#allocation6 + $0x9dc] sm:$0xf0] }
 0x122   :  { %4252 = vmatpush.bf16.msra.mxu2 %v7628_v21  ;;  %v8748_v18 = vor.u32 %v10985_v16, %v8747_v15  ;;  %v11113_v21 = vld [vmem:[#allocation6 + $0xddc] sm:$0xf0] }
 0x123   :  { %v9260_v23 = vor.u32 %v11113_v21, %v9259_v20  ;;  %v11097_v47 = vld [vmem:[#allocation6 + $0xd5c] sm:$0xf0] }
 0x124   :  { %v9451_v48 = vld [vmem:[#allocation6 + $0xf40] sm:$0xf] }
 0x125   :  { %v10961_v54 = vld [vmem:[#allocation6 + $0x91c] sm:$0xf0] }
 0x126   :  { %v1081_v38 = vld [vmem:[#allocation1 + $0x3] ss:$4 sm:$0xff]  ;;  %4253 = vmatpush.bf16.msra.mxu2 %v7596_v35 }
 0x127   :  { %1082 = vrot.lane.b32.xlu1 %v1081_v38, %s11583_s0  ;;  %1088 = vst.sshfl [vmem:[#allocation1] sm:$0xff pattern:$0x73625140] %v1040_v27  ;;  %v7852_v38 = vor.u32 %v10761_v33, %v7851_v32  ;;  %v9227_v33 = vld [vmem:[#allocation6 + $0xd80] sm:$0xf] }
 0x128   :  { %v9483_v35 = vld [vmem:[#allocation6 + $0xf80] sm:$0xf] }
 0x129   :  { %4266 = vmatpush.bf16.msra.mxu3 %v7852_v38  ;;  %v8683_v38 = vld [vmem:[#allocation6 + $0x940] sm:$0xf] }
 0x12a   :  { %v8907_v55 = vld [vmem:[#allocation6 + $0xb00] sm:$0xf] }
 0x12b   :  { %v9163_v58 = vld [vmem:[#allocation6 + $0xd00] sm:$0xf] }
 0x12c   :  { %v11153_v63 = vld [vmem:[#allocation6 + $0xf1c] sm:$0xf0] }
 0x12d   :  { %v8619_v0 = vld [vmem:[#allocation6 + $0x8c0] sm:$0xf] }
 0x12e   :  { %v1090_v39 = vld [vmem:[#allocation1 + $0x1] ss:$4 sm:$0xff] }
 0x12f   :  { %1091 = vrot.lane.b32.xlu2 %v1090_v39, %s11583_s0  ;;  %1095 = vst.sshfl [vmem:[#allocation1] sm:$0xff pattern:$0x73625140] %v1040_v27  ;;  %v10953_v2 = vld [vmem:[#allocation6 + $0x8dc] sm:$0xf0] }
 0x130   :  { %v8875_v3 = vld [vmem:[#allocation6 + $0xac0] sm:$0xf]  ;;  %v8620_v8 = vor.u32 %v10953_v2, %v8619_v0 }
 0x131   :  { %v11017_v4 = vld [vmem:[#allocation6 + $0xadc] sm:$0xf0] }
 0x132   :  { %v9387_v7 = vld [vmem:[#allocation6 + $0xec0] sm:$0xf] }
 0x133   :  { %v11145_v9 = vld [vmem:[#allocation6 + $0xedc] sm:$0xf0] }
 0x134   :  { %v8587_v12 = vld [vmem:[#allocation6 + $0x880] sm:$0xf]  ;;  %v9388_v15 = vor.u32 %v11145_v9, %v9387_v7 }
 0x135   :  { %v10945_v13 = vld [vmem:[#allocation6 + $0x89c] sm:$0xf0] }
 0x136   :  { %v1097_v40 = vld [vmem:[#allocation1 + $0x2] ss:$4 sm:$0xff]  ;;  %v8588_v21 = vor.u32 %v10945_v13, %v8587_v12 }
 0x137   :  { %1100 = vst.sshfl [vmem:[#allocation1] sm:$0xff pattern:$0x73625140] %v1040_v27  ;;  %v10897_v27 = vld [vmem:[#allocation6 + $0x71c] sm:$0xf0] }
 0x138   :  { %1099 = vst.msk [vmem:[#allocation2 + $0xa] sm:$0x3] %vm1042_vm0, %v1097_v40  ;;  %v8396_v31 = vor.u32 %v10897_v27, %v8395_v25  ;;  %v10889_v40 = vld [vmem:[#allocation6 + $0x6dc] sm:$0xf0]  ;;  %v10845_v12 = vld [vmem:[#allocation6 + $0x584] sm:$0xf] }
 0x139   :  { %v11177_v25 = vld [vmem:[#allocation6 + $0xfdc] sm:$0xf0]  ;;  %v8205_v13 = vld [vmem:[#allocation6 + $0x5a0] sm:$0xf0] }
 0x13a   :  { %4291 = vmatpush.bf16.msrb.mxu1 %v8396_v31  ;;  %v9516_v27 = vor.u32 %v11177_v25, %v9515_v24  ;;  %v8716_v31 = vor.u32 %v10977_v28, %v8715_v26  ;;  %v11009_v16 = vld [vmem:[#allocation6 + $0xa9c] sm:$0xf0] }
 0x13b   :  { %v9099_v17 = vld [vmem:[#allocation6 + $0xc80] sm:$0xf] }
 0x13c   :  { %v9355_v19 = vld [vmem:[#allocation6 + $0xe80] sm:$0xf] }
 0x13d   :  { %v11137_v20 = vld [vmem:[#allocation6 + $0xe9c] sm:$0xf0] }
 0x13e   :  { %v1102_v41 = vld [vmem:[#allocation1 + $0x3] ss:$4 sm:$0xff]  ;;  %v9356_v24 = vor.u32 %v11137_v20, %v9355_v19  ;;  %v8208_v20 = vor.u32 %v10845_v12, %v8205_v13 }
 0x13f   :  { %1103 = vrot.lane.b32.xlu2 %v1102_v41, %s11583_s0  ;;  %1109 = vst.sshfl [vmem:[#allocation1] sm:$0xff pattern:$0x73625140] %v1041_v34  ;;  %v7563_v41 = vld [vmem:[#allocation6 + $0x80] sm:$0xf] }
 0x140   :  { %v10937_v28 = vld [vmem:[#allocation6 + $0x85c] sm:$0xf0]  ;;  %v7661_v19 = vld [vmem:[#allocation6 + $0x160] sm:$0xf0] }
 0x141   :  { %v7789_v12 = vld [vmem:[#allocation6 + $0x260] sm:$0xf0] }
 0x142   :  { %v10805_v13 = vld [vmem:[#allocation6 + $0x444] sm:$0xf] }
 0x146   :  { %v1111_v42 = vld [vmem:[#allocation1 + $0x1] ss:$4 sm:$0xff] }
 0x147   :  { %1112 = vrot.lane.b32.xlu0 %v1111_v42, %s11583_s0  ;;  %1116 = vst.sshfl [vmem:[#allocation1] sm:$0xff pattern:$0x73625140] %v1041_v34  ;;  %v10689_v42 = vld [vmem:[#allocation6 + $0x9c] sm:$0xf0] }
 0x148   :  { %v7564_v50 = vor.u32 %v10689_v42, %v7563_v41 }
 0x14a   :  { %4254 = vmatpush.bf16.msra.mxu2 %v7564_v50 }
 0x14e   :  { %v1118_v43 = vld [vmem:[#allocation1 + $0x2] ss:$4 sm:$0xff]  ;;  %4255 = vmatpush.bf16.msra.mxu2 %v7532_v57 }
 0x14f   :  { %1121 = vst.sshfl [vmem:[#allocation1] sm:$0xff pattern:$0x73625140] %v1041_v34  ;;  %v8107_v34 = vld [vmem:[#allocation6 + $0x4c0] sm:$0xf] }
 0x150   :  { %1120 = vst.msk [vmem:[#allocation2 + $0xe] sm:$0x3] %vm1042_vm0, %v1118_v43  ;;  %v8108_v39 = vor.u32 %v10825_v36, %v8107_v34  ;;  %v8364_v43 = vor.u32 %v10889_v40, %v8363_v37  ;;  %v11105_v34 = vld [vmem:[#allocation6 + $0xd9c] sm:$0xf0] }
 0x151   :  { %v9228_v36 = vor.u32 %v11105_v34, %v9227_v33  ;;  %v11169_v37 = vld [vmem:[#allocation6 + $0xf9c] sm:$0xf0] }
 0x152   :  { %4279 = vmatpush.bf16.msrb.mxu0 %v8108_v39  ;;  %4292 = vmatpush.bf16.msrb.mxu1 %v8364_v43  ;;  %v10969_v39 = vld [vmem:[#allocation6 + $0x95c] sm:$0xf0]  ;;  %v9484_v42 = vor.u32 %v11169_v37, %v9483_v35 }
 0x153   :  { %4256 = vmatpush.bf16.msra.mxu2 %v7500_v6  ;;  %v8939_v43 = vld [vmem:[#allocation6 + $0xb40] sm:$0xf]  ;;  %v8684_v46 = vor.u32 %v10969_v39, %v8683_v38 }
 0x154   :  { %v11025_v57 = vld [vmem:[#allocation6 + $0xb1c] sm:$0xf0] }
 0x155   :  { %v8908_v60 = vor.u32 %v11025_v57, %v8907_v55  ;;  %v11081_v6 = vld [vmem:[#allocation6 + $0xcdc] sm:$0xf0]  ;;  %v7981_v55 = vld [vmem:[#allocation6 + $0x3e0] sm:$0xf0] }
 0x156   :  { %v1123_v44 = vld [vmem:[#allocation1 + $0x3] ss:$4 sm:$0xff]  ;;  %4280 = vmatpush.bf16.msrb.mxu0 %v8076_v52  ;;  %4293 = vmatpush.bf16.msrb.mxu1 %v8332_v53 }
 0x157   :  { %1124 = vrot.lane.b32.xlu1 %v1123_v44, %s11583_s0  ;;  %v7819_v44 = vld [vmem:[#allocation6 + $0x280] sm:$0xf]  ;;  %4301 = vmatpush.bf16.msrb.mxu2 %v8748_v18  ;;  %v8237_v57 = vld [vmem:[#allocation6 + $0x5e0] sm:$0xf0] }
 0x158   :  { %v7820_v51 = vor.u32 %v10753_v45, %v7819_v44  ;;  %v11033_v44 = vld [vmem:[#allocation6 + $0xb5c] sm:$0xf0] }
 0x159   :  { %v9195_v45 = vld [vmem:[#allocation6 + $0xd40] sm:$0xf]  ;;  %v8940_v49 = vor.u32 %v11033_v44, %v8939_v43 }
 0x15a   :  { %4267 = vmatpush.bf16.msra.mxu3 %v7820_v51  ;;  %4281 = vmatpush.bf16.msrb.mxu0 %v8044_v62  ;;  %v9196_v50 = vor.u32 %v11097_v47, %v9195_v45  ;;  %v11161_v51 = vld [vmem:[#allocation6 + $0xf5c] sm:$0xf0] }
 0x15b   :  { %4294 = vmatpush.bf16.msrb.mxu1 %v8300_v1  ;;  %4302 = vmatpush.bf16.msrb.mxu2 %v8716_v31  ;;  %v9452_v52 = vor.u32 %v11161_v51, %v9451_v48  ;;  %v8651_v53 = vld [vmem:[#allocation6 + $0x900] sm:$0xf] }
 0x15c   :  { %v8652_v56 = vor.u32 %v10961_v54, %v8651_v53  ;;  %v9419_v62 = vld [vmem:[#allocation6 + $0xf00] sm:$0xf]  ;;  %v7725_v53 = vld [vmem:[#allocation6 + $0x1e0] sm:$0xf0] }
 0x15d   :  { %v9420_v1 = vor.u32 %v11153_v63, %v9419_v62  ;;  %v11073_v18 = vld [vmem:[#allocation6 + $0xc9c] sm:$0xf0]  ;;  %v10789_v54 = vld [vmem:[#allocation6 + $0x3c4] sm:$0xf] }
 0x15e   :  { %4268 = vmatpush.bf16.msra.mxu3 %v7788_v61  ;;  %4282 = vmatpush.bf16.msrb.mxu0 %v8012_v11  ;;  %v9164_v61 = vor.u32 %v11089_v59, %v9163_v58  ;;  %v11001_v31 = vld [vmem:[#allocation6 + $0xa5c] sm:$0xf0]  ;;  %v10917_v58 = vld [vmem:[#allocation6 + $0x7c4] sm:$0xf] }
 0x15f   :  { %4295 = vmatpush.bf16.msrb.mxu1 %v8268_v14  ;;  %4303 = vmatpush.bf16.msrb.mxu2 %v8684_v46  ;;  %v8843_v14 = vld [vmem:[#allocation6 + $0xa80] sm:$0xf]  ;;  %v8493_v59 = vld [vmem:[#allocation6 + $0x7e0] sm:$0xf0] }
 0x160   :  { %v11065_v34 = vld [vmem:[#allocation6 + $0xc5c] sm:$0xf0]  ;;  %v10717_v62 = vld [vmem:[#allocation6 + $0x184] sm:$0xf]  ;;  %v8496_v9 = vor.u32 %v10917_v58, %v8493_v59 }
 0x161   :  { %v9323_v35 = vld [vmem:[#allocation6 + $0xe40] sm:$0xf]  ;;  %v7693_v63 = vld [vmem:[#allocation6 + $0x1a0] sm:$0xf0] }
 0x162   :  { %4269 = vmatpush.bf16.msra.mxu3 %v7756_v10  ;;  %4327 = vmatpush.bf16.msra.mxu0 %v9260_v23  ;;  %v8876_v10 = vor.u32 %v11017_v4, %v8875_v3  ;;  %v9100_v23 = vor.u32 %v11073_v18, %v9099_v17  ;;  %v11129_v37 = vld [vmem:[#allocation6 + $0xe5c] sm:$0xf0]  ;;  %v10709_v18 = vld [vmem:[#allocation6 + $0x144] sm:$0xf] }
 0x163   :  { %4340 = vmatpush.bf16.msra.mxu1 %v9516_v27  ;;  %4304 = vmatpush.bf16.msrb.mxu2 %v8652_v56  ;;  %v8555_v27 = vld [vmem:[#allocation6 + $0x840] sm:$0xf]  ;;  %v10853_v56 = vld [vmem:[#allocation6 + $0x5c4] sm:$0xf] }
 0x164   :  { %v8523_v38 = vld [vmem:[#allocation6 + $0x800] sm:$0xf]  ;;  %v10749_v59 = vld [vmem:[#allocation6 + $0x284] sm:$0xf] }
 0x165   :  { %v10929_v39 = vld [vmem:[#allocation6 + $0x81c] sm:$0xf0] }
 0x166   :  { %4314 = vmatpush.bf16.msrb.mxu3 %v9004_v22  ;;  %4328 = vmatpush.bf16.msra.mxu0 %v9228_v36  ;;  %v8844_v22 = vor.u32 %v11009_v16, %v8843_v14  ;;  %v9035_v43 = vld [vmem:[#allocation6 + $0xc00] sm:$0xf]  ;;  %v8524_v44 = vor.u32 %v10929_v39, %v8523_v38  ;;  %v10909_v14 = vld [vmem:[#allocation6 + $0x784] sm:$0xf]  ;;  %v7696_v16 = vor.u32 %v10717_v62, %v7693_v63 }
 0x167   :  { %4341 = vmatpush.bf16.msra.mxu1 %v9484_v42  ;;  %4305 = vmatpush.bf16.msrb.mxu2 %v8620_v8  ;;  %v10993_v42 = vld [vmem:[#allocation6 + $0xa1c] sm:$0xf0]  ;;  %v8240_v8 = vor.u32 %v10853_v56, %v8237_v57  ;;  %v10893_v38 = vld [vmem:[#allocation6 + $0x704] sm:$0xf] }
 0x168   :  { %v11057_v45 = vld [vmem:[#allocation6 + $0xc1c] sm:$0xf0]  ;;  %v8397_v39 = vld [vmem:[#allocation6 + $0x720] sm:$0xf0] }
 0x169   :  { %v9291_v46 = vld [vmem:[#allocation6 + $0xe00] sm:$0xf]  ;;  %v7565_v56 = vld [vmem:[#allocation6 + $0xa0] sm:$0xf0] }
 0x16a   :  { %4329 = vmatpush.bf16.msra.mxu0 %v9196_v50  ;;  %v11121_v47 = vld [vmem:[#allocation6 + $0xe1c] sm:$0xf0]  ;;  %v8077_v62 = vld [vmem:[#allocation6 + $0x4a0] sm:$0xf0] }
 0x16b   :  { %4342 = vmatpush.bf16.msra.mxu1 %v9452_v52  ;;  %4306 = vmatpush.bf16.msrb.mxu2 %v8588_v21  ;;  %v9292_v50 = vor.u32 %v11121_v47, %v9291_v46  ;;  %v10725_v52 = vld [vmem:[#allocation6 + $0x1c4] sm:$0xf] }
 0x16c   :  { %v7728_v4 = vor.u32 %v10725_v52, %v7725_v53  ;;  %v10757_v46 = vld [vmem:[#allocation6 + $0x2c4] sm:$0xf] }
 0x16d   :  { %v7853_v47 = vld [vmem:[#allocation6 + $0x2e0] sm:$0xf0] }
 0x16e   :  { %4330 = vmatpush.bf16.msra.mxu0 %v9164_v61  ;;  %v10877_v63 = vld [vmem:[#allocation6 + $0x684] sm:$0xf] }
 0x16f   :  { %4343 = vmatpush.bf16.msra.mxu1 %v9420_v1 }
 0x171   :  { %v1049_v30 = vpop.permute.xlu0 %1048 }
 0x172   :  { %1052 = vst.msk [vmem:[#allocation2] sm:$0x3] %vm1051_vm1, %v1049_v30  ;;  %v11041_v30 = vld [vmem:[#allocation6 + $0xb9c] sm:$0xf0] }
 0x173   :  { %v8972_v32 = vor.u32 %v11041_v30, %v8971_v29  ;;  %4344 = vmatpush.bf16.msra.mxu1 %v9388_v15  ;;  %v8811_v29 = vld [vmem:[#allocation6 + $0xa40] sm:$0xf]  ;;  %v8556_v30 = vor.u32 %v10937_v28, %v8555_v27  ;;  %v8461_v15 = vld [vmem:[#allocation6 + $0x7a0] sm:$0xf0]  ;;  %v7664_v28 = vor.u32 %v10709_v18, %v7661_v19 }
 0x174   :  { %v8812_v33 = vor.u32 %v11001_v31, %v8811_v29  ;;  %v8464_v21 = vor.u32 %v10909_v14, %v8461_v15  ;;  %v8429_v27 = vld [vmem:[#allocation6 + $0x760] sm:$0xf0] }
 0x175   :  { %4315 = vmatpush.bf16.msrb.mxu3 %v8972_v32  ;;  %v9067_v32 = vld [vmem:[#allocation6 + $0xc40] sm:$0xf]  ;;  %4307 = vmatpush.bf16.msrb.mxu2 %v8556_v30  ;;  %v10701_v30 = vld [vmem:[#allocation6 + $0x104] sm:$0xf] }
 0x176   :  { %v9068_v36 = vor.u32 %v11065_v34, %v9067_v32  ;;  %v7629_v31 = vld [vmem:[#allocation6 + $0x120] sm:$0xf0] }
 0x177   :  { %4345 = vmatpush.bf16.msra.mxu1 %v9356_v24  ;;  %v10837_v24 = vld [vmem:[#allocation6 + $0x544] sm:$0xf] }
 0x178   :  { %v10765_v34 = vld [vmem:[#allocation6 + $0x304] sm:$0xf] }
 0x179   :  { %4316 = vmatpush.bf16.msrb.mxu3 %v8940_v49  ;;  %v9036_v49 = vor.u32 %v11057_v45, %v9035_v43  ;;  %4308 = vmatpush.bf16.msrb.mxu2 %v8524_v44  ;;  %v7597_v43 = vld [vmem:[#allocation6 + $0xe0] sm:$0xf0]  ;;  %v8400_v45 = vor.u32 %v10893_v38, %v8397_v39 }
 0x17a   :  { %v8045_v14 = vld [vmem:[#allocation6 + $0x460] sm:$0xf0] }
 0x17b   :  { %v10869_v15 = vld [vmem:[#allocation6 + $0x644] sm:$0xf] }
 0x17c   :  { %v10669_v19 = vld [vmem:[#allocation6 + $0x4] sm:$0xf] }
 0x17d   :  { %4317 = vmatpush.bf16.msrb.mxu3 %v8908_v60  ;;  %v9005_v38 = vld [vmem:[#allocation6 + $0xbe0] sm:$0xf0] }
 0x17e   :  { %v11109_v39 = vld [vmem:[#allocation6 + $0xdc4] sm:$0xf] }
 0x181   :  { %v1062_v5 = vpop.permute.xlu0 %1061  ;;  %4318 = vmatpush.bf16.msrb.mxu3 %v8876_v10  ;;  %v10781_v10 = vld [vmem:[#allocation6 + $0x384] sm:$0xf] }
 0x182   :  { %1064 = vst.msk [vmem:[#allocation2 + $0x2] sm:$0x3] %vm1051_vm1, %v1062_v5  ;;  %v9131_v5 = vld [vmem:[#allocation6 + $0xcc0] sm:$0xf] }
 0x183   :  { %v9132_v11 = vor.u32 %v11081_v6, %v9131_v5  ;;  %v7984_v5 = vor.u32 %v10789_v54, %v7981_v55  ;;  %v7856_v54 = vor.u32 %v10757_v46, %v7853_v47  ;;  %v10685_v55 = vld [vmem:[#allocation6 + $0x84] sm:$0xf] }
 0x184   :  { %v8717_v46 = vld [vmem:[#allocation6 + $0x9a0] sm:$0xf0] }
 0x185   :  { %4331 = vmatpush.bf16.msra.mxu0 %v9132_v11  ;;  %4319 = vmatpush.bf16.msrb.mxu3 %v8844_v22  ;;  %v7949_v11 = vld [vmem:[#allocation6 + $0x3a0] sm:$0xf0] }
 0x186   :  { %v7952_v17 = vor.u32 %v10781_v10, %v7949_v11  ;;  %v10773_v22 = vld [vmem:[#allocation6 + $0x344] sm:$0xf] }
 0x187   :  { %v10741_v11 = vld [vmem:[#allocation6 + $0x244] sm:$0xf] }
 0x188   :  { %v7792_v18 = vor.u32 %v10741_v11, %v7789_v12  ;;  %v11093_v11 = vld [vmem:[#allocation6 + $0xd44] sm:$0xf] }
 0x189   :  { %v1071_v40 = vpop.permute.xlu1 %1070  ;;  %v1092_v41 = vpop.permute.xlu2 %1091  ;;  %4332 = vmatpush.bf16.msra.mxu0 %v9100_v23  ;;  %4320 = vmatpush.bf16.msrb.mxu3 %v8812_v33  ;;  %v7917_v23 = vld [vmem:[#allocation6 + $0x360] sm:$0xf0] }
 0x18a   :  { %1073 = vst.msk [vmem:[#allocation2 + $0x4] sm:$0x3] %vm1051_vm1, %v1071_v40  ;;  %v9324_v40 = vor.u32 %v11129_v37, %v9323_v35  ;;  %v7920_v29 = vor.u32 %v10773_v22, %v7917_v23  ;;  %v7885_v35 = vld [vmem:[#allocation6 + $0x320] sm:$0xf0] }
 0x18b   :  { %1094 = vst.msk [vmem:[#allocation2 + $0x8] sm:$0x3] %vm1051_vm1, %v1092_v41  ;;  %v8779_v41 = vld [vmem:[#allocation6 + $0xa00] sm:$0xf]  ;;  %v8141_v37 = vld [vmem:[#allocation6 + $0x520] sm:$0xf0] }
 0x18c   :  { %v8780_v48 = vor.u32 %v10993_v42, %v8779_v41  ;;  %4346 = vmatpush.bf16.msra.mxu1 %v9324_v40  ;;  %v7632_v40 = vor.u32 %v10701_v30, %v7629_v31  ;;  %v7888_v41 = vor.u32 %v10765_v34, %v7885_v35  ;;  %v10693_v42 = vld [vmem:[#allocation6 + $0xc4] sm:$0xf] }
 0x18d   :  { %4333 = vmatpush.bf16.msra.mxu0 %v9068_v36  ;;  %v10829_v36 = vld [vmem:[#allocation6 + $0x504] sm:$0xf]  ;;  %v7600_v53 = vor.u32 %v10693_v42, %v7597_v43 }
 0x18e   :  { %4321 = vmatpush.bf16.msrb.mxu3 %v8780_v48  ;;  %v8144_v44 = vor.u32 %v10829_v36, %v8141_v37  ;;  %v10821_v48 = vld [vmem:[#allocation6 + $0x4c4] sm:$0xf] }
 0x18f   :  { %v10733_v23 = vld [vmem:[#allocation6 + $0x204] sm:$0xf] }
 0x190   :  { %4347 = vmatpush.bf16.msra.mxu1 %v9292_v50  ;;  %v10885_v50 = vld [vmem:[#allocation6 + $0x6c4] sm:$0xf] }
 0x191   :  { %4334 = vmatpush.bf16.msra.mxu0 %v9036_v49  ;;  %v8109_v49 = vld [vmem:[#allocation6 + $0x4e0] sm:$0xf0] }
 0x192   :  { %v8112_v57 = vor.u32 %v10821_v48, %v8109_v49  ;;  %v10981_v35 = vld [vmem:[#allocation6 + $0x9c4] sm:$0xf] }
 0x193   :  { %v8749_v36 = vld [vmem:[#allocation6 + $0x9e0] sm:$0xf0] }
 0x194   :  { %v11045_v37 = vld [vmem:[#allocation6 + $0xbc4] sm:$0xf] }
 0x195   :  { %v9517_v42 = vld [vmem:[#allocation6 + $0xfe0] sm:$0xf0] }
 0x196   :  { %v9197_v12 = vld [vmem:[#allocation6 + $0xd60] sm:$0xf0] }
 0x199   :  { %v1083_v25 = vpop.permute.xlu1 %1082  ;;  %v1104_v26 = vpop.permute.xlu2 %1103 }
 0x19a   :  { %1085 = vst.msk [vmem:[#allocation2 + $0x6] sm:$0x3] %vm1051_vm1, %v1083_v25  ;;  %v8173_v25 = vld [vmem:[#allocation6 + $0x560] sm:$0xf0] }
 0x19b   :  { %1106 = vst.msk [vmem:[#allocation2 + $0xa] sm:$0x3] %vm1051_vm1, %v1104_v26  ;;  %v10901_v26 = vld [vmem:[#allocation6 + $0x744] sm:$0xf]  ;;  %v8176_v32 = vor.u32 %v10837_v24, %v8173_v25 }
 0x19c   :  { %v8432_v33 = vor.u32 %v10901_v26, %v8429_v27  ;;  %v7757_v24 = vld [vmem:[#allocation6 + $0x220] sm:$0xf0] }
 0x19d   :  { %v10797_v25 = vld [vmem:[#allocation6 + $0x404] sm:$0xf]  ;;  %v7760_v30 = vor.u32 %v10733_v23, %v7757_v24 }
 0x19e   :  { %v8013_v26 = vld [vmem:[#allocation6 + $0x420] sm:$0xf0] }
 0x19f   :  { %v10861_v27 = vld [vmem:[#allocation6 + $0x604] sm:$0xf]  ;;  %v8016_v31 = vor.u32 %v10797_v25, %v8013_v26 }
 0x1a0   :  { %v11085_v23 = vld [vmem:[#allocation6 + $0xd04] sm:$0xf] }
 0x1a1   :  { %v1128_v51 = vld [vmem:[#allocation2] sm:$0xff]  ;;  %v9165_v24 = vld [vmem:[#allocation6 + $0xd20] sm:$0xf0] }
 0x1a2   :  { %1132 = vst [vmem:[#allocation1] ss:$4 sm:$0xff] %v1128_v51  ;;  %v8365_v51 = vld [vmem:[#allocation6 + $0x6e0] sm:$0xf0] }
 0x1a3   :  { %v8368_v58 = vor.u32 %v10885_v50, %v8365_v51  ;;  %v8752_v51 = vor.u32 %v10981_v35, %v8749_v36  ;;  %v11149_v25 = vld [vmem:[#allocation6 + $0xf04] sm:$0xf] }
 0x1a4   :  { %v9421_v26 = vld [vmem:[#allocation6 + $0xf20] sm:$0xf0] }
 0x1a5   :  { %v11077_v35 = vld [vmem:[#allocation6 + $0xcc4] sm:$0xf] }
 0x1a6   :  { %v9133_v36 = vld [vmem:[#allocation6 + $0xce0] sm:$0xf0] }
 0x1a9   :  { %v1135_v60 = vld.sshfl [vmem:[#allocation1] sm:$0xff pattern:$0x73625140]  ;;  %v1136_v61 = vld.sshfl [vmem:[#allocation1 + $0x8] sm:$0xff pattern:$0x73625140] }
 0x1aa   :  { %v12019_v0 = vpack.c.bf16 %v1135_v60, %v1135_v60  ;;  %v12021_v1 = vpack.c.bf16 %v1136_v61, %v1136_v61  ;;  %v1137_v2 = vld.sshfl [vmem:[#allocation1 + $0x10] sm:$0xff pattern:$0x73625140]  ;;  %v1138_v3 = vld.sshfl [vmem:[#allocation1 + $0x18] sm:$0xff pattern:$0x73625140] }
 0x1ab   :  { %v12023_v6 = vpack.c.bf16 %v1137_v2, %v1137_v2  ;;  %v12025_v7 = vpack.c.bf16 %v1138_v3, %v1138_v3  ;;  %v7821_v60 = vld [vmem:[#allocation6 + $0x2a0] sm:$0xf0]  ;;  %v7568_v3 = vor.u32 %v10685_v55, %v7565_v56 }
 0x1ac   :  { %4257 = vmatmul.bf16.vlgmr.msra.gmra.mxu2 %v12019_v0  ;;  %4270 = vmatmul.bf16.vlgmr.msra.gmra.mxu3 %v12021_v1  ;;  %v10813_v61 = vld [vmem:[#allocation6 + $0x484] sm:$0xf] }
 0x1ad   :  { %4283 = vmatmul.bf16.vlgmr.msrb.gmra.mxu0 %v12023_v6  ;;  %4296 = vmatmul.bf16.vlgmr.msrb.gmra.mxu1 %v12025_v7  ;;  %v8333_v2 = vld [vmem:[#allocation6 + $0x6a0] sm:$0xf0] }
 0x1ae   :  { %4353 = vmatpush.bf16.msra.mxu2 %v7728_v4  ;;  %4366 = vmatpush.bf16.msra.mxu3 %v7984_v5  ;;  %v7824_v4 = vor.u32 %v10749_v59, %v7821_v60  ;;  %v10677_v5 = vld [vmem:[#allocation6 + $0x44] sm:$0xf]  ;;  %v8336_v10 = vor.u32 %v10877_v63, %v8333_v2 }
 0x1af   :  { %4379 = vmatpush.bf16.msrb.mxu0 %v8240_v8  ;;  %4392 = vmatpush.bf16.msrb.mxu1 %v8496_v9  ;;  %v7533_v8 = vld [vmem:[#allocation6 + $0x60] sm:$0xf0]  ;;  %v8080_v9 = vor.u32 %v10813_v61, %v8077_v62 }
 0x1b0   :  { %v11101_v59 = vld [vmem:[#allocation6 + $0xd84] sm:$0xf] }
 0x1b1   :  { %v9229_v60 = vld [vmem:[#allocation6 + $0xda0] sm:$0xf0] }
 0x1b2   :  { %4354 = vmatpush.bf16.msra.mxu2 %v7696_v16  ;;  %4367 = vmatpush.bf16.msra.mxu3 %v7952_v17  ;;  %v8301_v16 = vld [vmem:[#allocation6 + $0x660] sm:$0xf0]  ;;  %v7536_v17 = vor.u32 %v10677_v5, %v7533_v8  ;;  %v9232_v5 = vor.u32 %v11101_v59, %v9229_v60 }
 0x1b3   :  { %4380 = vmatpush.bf16.msrb.mxu0 %v8208_v20  ;;  %4393 = vmatpush.bf16.msrb.mxu1 %v8464_v21  ;;  %v7501_v20 = vld [vmem:[#allocation6 + $0x20] sm:$0xf0]  ;;  %v8048_v21 = vor.u32 %v10805_v13, %v8045_v14  ;;  %v8304_v22 = vor.u32 %v10869_v15, %v8301_v16 }
 0x1b4   :  { %v11165_v61 = vld [vmem:[#allocation6 + $0xf84] sm:$0xf] }
 0x1b5   :  { %v9485_v62 = vld [vmem:[#allocation6 + $0xfa0] sm:$0xf0] }
 0x1b6   :  { %4355 = vmatpush.bf16.msra.mxu2 %v7664_v28  ;;  %4368 = vmatpush.bf16.msra.mxu3 %v7920_v29  ;;  %v8269_v28 = vld [vmem:[#allocation6 + $0x620] sm:$0xf0]  ;;  %v7504_v29 = vor.u32 %v10669_v19, %v7501_v20  ;;  %v9488_v8 = vor.u32 %v11165_v61, %v9485_v62  ;;  %v9200_v19 = vor.u32 %v11093_v11, %v9197_v12 }
 0x1b7   :  { %4381 = vmatpush.bf16.msrb.mxu0 %v8176_v32  ;;  %4394 = vmatpush.bf16.msrb.mxu1 %v8432_v33  ;;  %v8272_v32 = vor.u32 %v10861_v27, %v8269_v28  ;;  %v11157_v13 = vld [vmem:[#allocation6 + $0xf44] sm:$0xf] }
 0x1b8   :  { %v9453_v14 = vld [vmem:[#allocation6 + $0xf60] sm:$0xf0] }
 0x1b9   :  { %v1113_v52 = vpop.permute.xlu0 %1112  ;;  %v9456_v20 = vor.u32 %v11157_v13, %v9453_v14  ;;  %v10997_v61 = vld [vmem:[#allocation6 + $0xa44] sm:$0xf] }
 0x1ba   :  { %1115 = vst.msk [vmem:[#allocation2 + $0xc] sm:$0x3] %vm1051_vm1, %v1113_v52  ;;  %4356 = vmatpush.bf16.msra.mxu2 %v7632_v40  ;;  %4369 = vmatpush.bf16.msra.mxu3 %v7888_v41  ;;  %v9261_v40 = vld [vmem:[#allocation6 + $0xde0] sm:$0xf0]  ;;  %v9008_v52 = vor.u32 %v11045_v37, %v9005_v38 }
 0x1bb   :  { %4382 = vmatpush.bf16.msrb.mxu0 %v8144_v44  ;;  %4395 = vmatpush.bf16.msrb.mxu1 %v8400_v45  ;;  %v11173_v41 = vld [vmem:[#allocation6 + $0xfc4] sm:$0xf]  ;;  %v9264_v55 = vor.u32 %v11109_v39, %v9261_v40 }
 0x1bc   :  { %v10973_v45 = vld [vmem:[#allocation6 + $0x984] sm:$0xf]  ;;  %v9520_v56 = vor.u32 %v11173_v41, %v9517_v42 }
 0x1bd   :  { %v8720_v63 = vor.u32 %v10973_v45, %v8717_v46  ;;  %v11141_v37 = vld [vmem:[#allocation6 + $0xec4] sm:$0xf] }
 0x1be   :  { %4357 = vmatpush.bf16.msra.mxu2 %v7600_v53  ;;  %4370 = vmatpush.bf16.msra.mxu3 %v7856_v54  ;;  %v9389_v38 = vld [vmem:[#allocation6 + $0xee0] sm:$0xf0] }
 0x1bf   :  { %4383 = vmatpush.bf16.msrb.mxu0 %v8112_v57  ;;  %4396 = vmatpush.bf16.msrb.mxu1 %v8368_v58  ;;  %v11037_v57 = vld [vmem:[#allocation6 + $0xb84] sm:$0xf] }
 0x1c0   :  { %v8973_v58 = vld [vmem:[#allocation6 + $0xba0] sm:$0xf0] }
 0x1c1   :  { %v8976_v2 = vor.u32 %v11037_v57, %v8973_v58  ;;  %v10941_v41 = vld [vmem:[#allocation6 + $0x884] sm:$0xf] }
 0x1c2   :  { %4358 = vmatpush.bf16.msra.mxu2 %v7568_v3  ;;  %4371 = vmatpush.bf16.msra.mxu3 %v7824_v4  ;;  %v10965_v3 = vld [vmem:[#allocation6 + $0x944] sm:$0xf] }
 0x1c3   :  { %4384 = vmatpush.bf16.msrb.mxu0 %v8080_v9  ;;  %4397 = vmatpush.bf16.msrb.mxu1 %v8336_v10  ;;  %v8685_v4 = vld [vmem:[#allocation6 + $0x960] sm:$0xf0] }
 0x1c4   :  { %v11029_v9 = vld [vmem:[#allocation6 + $0xb44] sm:$0xf]  ;;  %v8688_v15 = vor.u32 %v10965_v3, %v8685_v4 }
 0x1c5   :  { %v8941_v10 = vld [vmem:[#allocation6 + $0xb60] sm:$0xf0] }
 0x1c6   :  { %4359 = vmatpush.bf16.msra.mxu2 %v7536_v17  ;;  %4372 = vmatpush.bf16.msra.mxu3 %v7792_v18  ;;  %v8944_v16 = vor.u32 %v11029_v9, %v8941_v10  ;;  %v10957_v17 = vld [vmem:[#allocation6 + $0x904] sm:$0xf] }
 0x1c7   :  { %4385 = vmatpush.bf16.msrb.mxu0 %v8048_v21  ;;  %4398 = vmatpush.bf16.msrb.mxu1 %v8304_v22  ;;  %v8653_v18 = vld [vmem:[#allocation6 + $0x920] sm:$0xf0] }
 0x1c8   :  { %v11021_v21 = vld [vmem:[#allocation6 + $0xb04] sm:$0xf]  ;;  %v8656_v27 = vor.u32 %v10957_v17, %v8653_v18 }
 0x1c9   :  { %v1125_v33 = vpop.permute.xlu1 %1124  ;;  %v8909_v22 = vld [vmem:[#allocation6 + $0xb20] sm:$0xf0] }
 0x1ca   :  { %1127 = vst.msk [vmem:[#allocation2 + $0xe] sm:$0x3] %vm1051_vm1, %v1125_v33  ;;  %4360 = vmatpush.bf16.msra.mxu2 %v7504_v29  ;;  %4373 = vmatpush.bf16.msra.mxu3 %v7760_v30  ;;  %v8912_v28 = vor.u32 %v11021_v21, %v8909_v22  ;;  %v10949_v29 = vld [vmem:[#allocation6 + $0x8c4] sm:$0xf]  ;;  %v7987_v21 = vld [vmem:[#allocation6 + $0x3c8] sm:$0xf] }
 0x1cb   :  { %4386 = vmatpush.bf16.msrb.mxu0 %v8016_v31  ;;  %4399 = vmatpush.bf16.msrb.mxu1 %v8272_v32  ;;  %v8621_v30 = vld [vmem:[#allocation6 + $0x8e0] sm:$0xf0]  ;;  %v9168_v31 = vor.u32 %v11085_v23, %v9165_v24  ;;  %v9424_v32 = vor.u32 %v11149_v25, %v9421_v26  ;;  %v10794_v22 = vld [vmem:[#allocation6 + $0x3e4] sm:$0xf0] }
 0x1cc   :  { %v11013_v33 = vld [vmem:[#allocation6 + $0xac4] sm:$0xf]  ;;  %v8624_v39 = vor.u32 %v10949_v29, %v8621_v30  ;;  %v8243_v23 = vld [vmem:[#allocation6 + $0x5c8] sm:$0xf] }
 0x1cd   :  { %v8589_v42 = vld [vmem:[#allocation6 + $0x8a0] sm:$0xf0]  ;;  %v10858_v26 = vld [vmem:[#allocation6 + $0x5e4] sm:$0xf0] }
 0x1ce   :  { %v11005_v45 = vld [vmem:[#allocation6 + $0xa84] sm:$0xf] }
 0x1cf   :  { %v8845_v46 = vld [vmem:[#allocation6 + $0xaa0] sm:$0xf0] }
 0x1d0   :  { %v10933_v57 = vld [vmem:[#allocation6 + $0x844] sm:$0xf] }
 0x1d1   :  { %v1129_v34 = vld [vmem:[#allocation2 + $0x8] sm:$0xff]  ;;  %v8557_v58 = vld [vmem:[#allocation6 + $0x860] sm:$0xf0] }
 0x1d2   :  { %1134 = vst [vmem:[#allocation1 + $0x20] ss:$4 sm:$0xff] %v1129_v34  ;;  %v8877_v34 = vld [vmem:[#allocation6 + $0xae0] sm:$0xf0] }
 0x1d3   :  { %v8880_v40 = vor.u32 %v11013_v33, %v8877_v34  ;;  %v8813_v62 = vld [vmem:[#allocation6 + $0xa60] sm:$0xf0]  ;;  %v7699_v33 = vld [vmem:[#allocation6 + $0x188] sm:$0xf] }
 0x1d4   :  { %v11125_v3 = vld [vmem:[#allocation6 + $0xe44] sm:$0xf]  ;;  %v8816_v9 = vor.u32 %v10997_v61, %v8813_v62  ;;  %v10722_v34 = vld [vmem:[#allocation6 + $0x1a4] sm:$0xf0] }
 0x1d5   :  { %v9325_v4 = vld [vmem:[#allocation6 + $0xe60] sm:$0xf0]  ;;  %v7635_v61 = vld [vmem:[#allocation6 + $0x108] sm:$0xf] }
 0x1d6   :  { %v8525_v10 = vld [vmem:[#allocation6 + $0x820] sm:$0xf0]  ;;  %v9328_v14 = vor.u32 %v11125_v3, %v9325_v4  ;;  %v10706_v62 = vld [vmem:[#allocation6 + $0x124] sm:$0xf0] }
 0x1d7   :  { %v10989_v11 = vld [vmem:[#allocation6 + $0xa04] sm:$0xf]  ;;  %v7891_v3 = vld [vmem:[#allocation6 + $0x308] sm:$0xf] }
 0x1d8   :  { %v8781_v12 = vld [vmem:[#allocation6 + $0xa20] sm:$0xf0]  ;;  %v10770_v4 = vld [vmem:[#allocation6 + $0x324] sm:$0xf0] }
 0x1d9   :  { %v1139_v43 = vld.sshfl [vmem:[#allocation1 + $0x20] sm:$0xff pattern:$0x73625140]  ;;  %v1140_v44 = vld.sshfl [vmem:[#allocation1 + $0x28] sm:$0xff pattern:$0x73625140]  ;;  %v8784_v25 = vor.u32 %v10989_v11, %v8781_v12  ;;  %v7636_v11 = vor.u32 %v10706_v62, %v7635_v61  ;;  %v7892_v12 = vor.u32 %v10770_v4, %v7891_v3 }
 0x1da   :  { %v12033_v47 = vpack.c.bf16 %v1139_v43, %v1139_v43  ;;  %v12035_v48 = vpack.c.bf16 %v1140_v44, %v1140_v44  ;;  %v1141_v49 = vld.sshfl [vmem:[#allocation1 + $0x30] sm:$0xff pattern:$0x73625140]  ;;  %v1142_v50 = vld.sshfl [vmem:[#allocation1 + $0x38] sm:$0xff pattern:$0x73625140]  ;;  %v9136_v43 = vor.u32 %v11077_v35, %v9133_v36  ;;  %v9392_v44 = vor.u32 %v11141_v37, %v9389_v38 }
 0x1db   :  { %v12037_v53 = vpack.c.bf16 %v1141_v49, %v1141_v49  ;;  %v12039_v54 = vpack.c.bf16 %v1142_v50, %v1142_v50  ;;  %v11069_v49 = vld [vmem:[#allocation6 + $0xc84] sm:$0xf]  ;;  %v8244_v35 = vor.u32 %v10858_v26, %v8243_v23  ;;  %v7955_v37 = vld [vmem:[#allocation6 + $0x388] sm:$0xf] }
 0x1dc   :  { %4309 = vmatmul.bf16.vlgmr.msrb.gmra.mxu2 %v12033_v47  ;;  %4322 = vmatmul.bf16.vlgmr.msrb.gmra.mxu3 %v12035_v48  ;;  %v9101_v50 = vld [vmem:[#allocation6 + $0xca0] sm:$0xf0]  ;;  %v10786_v38 = vld [vmem:[#allocation6 + $0x3a4] sm:$0xf0] }
 0x1dd   :  { %4335 = vmatmul.bf16.vlgmr.msra.gmra.mxu0 %v12037_v53  ;;  %4348 = vmatmul.bf16.vlgmr.msra.gmra.mxu1 %v12039_v54  ;;  %v9104_v59 = vor.u32 %v11069_v49, %v9101_v50  ;;  %v11117_v17 = vld [vmem:[#allocation6 + $0xe04] sm:$0xf]  ;;  %v10690_v26 = vld [vmem:[#allocation6 + $0xa4] sm:$0xf0] }
 0x1de   :  { %4405 = vmatpush.bf16.msrb.mxu2 %v8752_v51  ;;  %4418 = vmatpush.bf16.msrb.mxu3 %v9008_v52  ;;  %v11133_v51 = vld [vmem:[#allocation6 + $0xe84] sm:$0xf]  ;;  %v8275_v61 = vld [vmem:[#allocation6 + $0x608] sm:$0xf] }
 0x1df   :  { %4431 = vmatpush.bf16.msra.mxu0 %v9264_v55  ;;  %4444 = vmatpush.bf16.msra.mxu1 %v9520_v56  ;;  %v9357_v52 = vld [vmem:[#allocation6 + $0xea0] sm:$0xf0]  ;;  %v8592_v55 = vor.u32 %v10941_v41, %v8589_v42  ;;  %v8848_v56 = vor.u32 %v11005_v45, %v8845_v46  ;;  %v8467_v41 = vld [vmem:[#allocation6 + $0x788] sm:$0xf] }
 0x1e0   :  { %v9360_v60 = vor.u32 %v11133_v51, %v9357_v52  ;;  %v9293_v18 = vld [vmem:[#allocation6 + $0xe20] sm:$0xf0]  ;;  %v10914_v42 = vld [vmem:[#allocation6 + $0x7a4] sm:$0xf0] }
 0x1e1   :  { %v9296_v30 = vor.u32 %v11117_v17, %v9293_v18  ;;  %v7667_v45 = vld [vmem:[#allocation6 + $0x148] sm:$0xf]  ;;  %v8468_v50 = vor.u32 %v10914_v42, %v8467_v41 }
 0x1e2   :  { %4406 = vmatpush.bf16.msrb.mxu2 %v8720_v63  ;;  %4419 = vmatpush.bf16.msrb.mxu3 %v8976_v2  ;;  %v11061_v63 = vld [vmem:[#allocation6 + $0xc44] sm:$0xf]  ;;  %v10714_v46 = vld [vmem:[#allocation6 + $0x164] sm:$0xf0] }
 0x1e3   :  { %4432 = vmatpush.bf16.msra.mxu0 %v9232_v5  ;;  %4445 = vmatpush.bf16.msra.mxu1 %v9488_v8  ;;  %v9069_v2 = vld [vmem:[#allocation6 + $0xc60] sm:$0xf0]  ;;  %v8560_v8 = vor.u32 %v10933_v57, %v8557_v58  ;;  %v7923_v51 = vld [vmem:[#allocation6 + $0x348] sm:$0xf] }
 0x1e4   :  { %v10925_v5 = vld [vmem:[#allocation6 + $0x804] sm:$0xf]  ;;  %v9072_v13 = vor.u32 %v11061_v63, %v9069_v2  ;;  %v10778_v52 = vld [vmem:[#allocation6 + $0x364] sm:$0xf0] }
 0x1e5   :  { %v8528_v24 = vor.u32 %v10925_v5, %v8525_v10  ;;  %v8435_v57 = vld [vmem:[#allocation6 + $0x748] sm:$0xf] }
 0x1e6   :  { %4407 = vmatpush.bf16.msrb.mxu2 %v8688_v15  ;;  %4420 = vmatpush.bf16.msrb.mxu3 %v8944_v16  ;;  %v11053_v15 = vld [vmem:[#allocation6 + $0xc04] sm:$0xf]  ;;  %v10906_v58 = vld [vmem:[#allocation6 + $0x764] sm:$0xf0] }
 0x1e7   :  { %4433 = vmatpush.bf16.msra.mxu0 %v9200_v19  ;;  %4446 = vmatpush.bf16.msra.mxu1 %v9456_v20  ;;  %v9037_v16 = vld [vmem:[#allocation6 + $0xc20] sm:$0xf0]  ;;  %v7731_v19 = vld [vmem:[#allocation6 + $0x1c8] sm:$0xf]  ;;  %v8436_v2 = vor.u32 %v10906_v58, %v8435_v57 }
 0x1e8   :  { %v10730_v20 = vld [vmem:[#allocation6 + $0x1e4] sm:$0xf0]  ;;  %v9040_v29 = vor.u32 %v11053_v15, %v9037_v16 }
 0x1e9   :  { %v8147_v5 = vld [vmem:[#allocation6 + $0x508] sm:$0xf] }
 0x1ea   :  { %4408 = vmatpush.bf16.msrb.mxu2 %v8656_v27  ;;  %4421 = vmatpush.bf16.msrb.mxu3 %v8912_v28  ;;  %v8499_v27 = vld [vmem:[#allocation6 + $0x7c8] sm:$0xf] }
 0x1eb   :  { %4434 = vmatpush.bf16.msra.mxu0 %v9168_v31  ;;  %4447 = vmatpush.bf16.msra.mxu1 %v9424_v32  ;;  %v10922_v28 = vld [vmem:[#allocation6 + $0x7e4] sm:$0xf0]  ;;  %v7732_v31 = vor.u32 %v10730_v20, %v7731_v19  ;;  %v7988_v32 = vor.u32 %v10794_v22, %v7987_v21 }
 0x1ec   :  { %4361 = vmatmul.bf16.vlgmr.msra.gmra.mxu2 %v12019_v0  ;;  %4374 = vmatmul.bf16.vlgmr.msra.gmra.mxu3 %v12021_v1  ;;  %v8500_v36 = vor.u32 %v10922_v28, %v8499_v27  ;;  %v10898_v10 = vld [vmem:[#allocation6 + $0x724] sm:$0xf0] }
 0x1ed   :  { %4387 = vmatmul.bf16.vlgmr.msrb.gmra.mxu0 %v12023_v6  ;;  %4400 = vmatmul.bf16.vlgmr.msrb.gmra.mxu1 %v12025_v7  ;;  %v7859_v17 = vld [vmem:[#allocation6 + $0x2c8] sm:$0xf] }
 0x1ee   :  { %4409 = vmatpush.bf16.msrb.mxu2 %v8624_v39  ;;  %4422 = vmatpush.bf16.msrb.mxu3 %v8880_v40  ;;  %v8211_v39 = vld [vmem:[#allocation6 + $0x588] sm:$0xf] }
 0x1ef   :  { %4435 = vmatpush.bf16.msra.mxu0 %v9136_v43  ;;  %4448 = vmatpush.bf16.msra.mxu1 %v9392_v44  ;;  %v10850_v40 = vld [vmem:[#allocation6 + $0x5a4] sm:$0xf0]  ;;  %v7700_v43 = vor.u32 %v10722_v34, %v7699_v33  ;;  %v7956_v44 = vor.u32 %v10786_v38, %v7955_v37 }
 0x1f0   :  { %v8212_v49 = vor.u32 %v10850_v40, %v8211_v39  ;;  %v10762_v18 = vld [vmem:[#allocation6 + $0x2e4] sm:$0xf0] }
 0x1f1   :  { %v8115_v19 = vld [vmem:[#allocation6 + $0x4c8] sm:$0xf] }
 0x1f2   :  { %4410 = vmatpush.bf16.msrb.mxu2 %v8592_v55  ;;  %4423 = vmatpush.bf16.msrb.mxu3 %v8848_v56  ;;  %v8179_v55 = vld [vmem:[#allocation6 + $0x548] sm:$0xf] }
 0x1f3   :  { %4436 = vmatpush.bf16.msra.mxu0 %v9104_v59  ;;  %4449 = vmatpush.bf16.msra.mxu1 %v9360_v60  ;;  %v10842_v56 = vld [vmem:[#allocation6 + $0x564] sm:$0xf0]  ;;  %v7668_v59 = vor.u32 %v10714_v46, %v7667_v45  ;;  %v7924_v60 = vor.u32 %v10778_v52, %v7923_v51 }
 0x1f4   :  { %v8180_v63 = vor.u32 %v10842_v56, %v8179_v55  ;;  %v10826_v20 = vld [vmem:[#allocation6 + $0x4e4] sm:$0xf0] }
 0x1f5   :  { %v8371_v21 = vld [vmem:[#allocation6 + $0x6c8] sm:$0xf]  ;;  %v8116_v27 = vor.u32 %v10826_v20, %v8115_v19 }
 0x1f6   :  { %4411 = vmatpush.bf16.msrb.mxu2 %v8560_v8  ;;  %4424 = vmatpush.bf16.msrb.mxu3 %v8816_v9  ;;  %v10834_v8 = vld [vmem:[#allocation6 + $0x524] sm:$0xf0] }
 0x1f7   :  { %4437 = vmatpush.bf16.msra.mxu0 %v9072_v13  ;;  %4450 = vmatpush.bf16.msra.mxu1 %v9328_v14  ;;  %v8403_v9 = vld [vmem:[#allocation6 + $0x708] sm:$0xf]  ;;  %v8148_v15 = vor.u32 %v10834_v8, %v8147_v5 }
 0x1f8   :  { %v7603_v13 = vld [vmem:[#allocation6 + $0xc8] sm:$0xf]  ;;  %v8404_v16 = vor.u32 %v10898_v10, %v8403_v9 }
 0x1f9   :  { %v10698_v14 = vld [vmem:[#allocation6 + $0xe4] sm:$0xf0] }
 0x1fa   :  { %4412 = vmatpush.bf16.msrb.mxu2 %v8528_v24  ;;  %4425 = vmatpush.bf16.msrb.mxu3 %v8784_v25  ;;  %v10890_v22 = vld [vmem:[#allocation6 + $0x6e4] sm:$0xf0]  ;;  %v7604_v23 = vor.u32 %v10698_v14, %v7603_v13  ;;  %v7860_v24 = vor.u32 %v10762_v18, %v7859_v17 }
 0x1fb   :  { %4438 = vmatpush.bf16.msra.mxu0 %v9040_v29  ;;  %4451 = vmatpush.bf16.msra.mxu1 %v9296_v30  ;;  %v7571_v25 = vld [vmem:[#allocation6 + $0x88] sm:$0xf]  ;;  %v8372_v28 = vor.u32 %v10890_v22, %v8371_v21 }
 0x1fc   :  { %v7827_v29 = vld [vmem:[#allocation6 + $0x288] sm:$0xf] }
 0x1fd   :  { %4413 = vmatmul.bf16.vlgmr.msrb.gmra.mxu2 %v12033_v47  ;;  %4426 = vmatmul.bf16.vlgmr.msrb.gmra.mxu3 %v12035_v48  ;;  %v10754_v30 = vld [vmem:[#allocation6 + $0x2a4] sm:$0xf0] }
 0x1fe   :  { %4457 = vmatpush.bf16.msra.mxu2 %v7732_v31  ;;  %4470 = vmatpush.bf16.msra.mxu3 %v7988_v32  ;;  %v8083_v31 = vld [vmem:[#allocation6 + $0x488] sm:$0xf] }
 0x1ff   :  { %4483 = vmatpush.bf16.msrb.mxu0 %v8244_v35  ;;  %4496 = vmatpush.bf16.msrb.mxu1 %v8500_v36  ;;  %v10818_v32 = vld [vmem:[#allocation6 + $0x4a4] sm:$0xf0]  ;;  %v7572_v35 = vor.u32 %v10690_v26, %v7571_v25  ;;  %v7828_v36 = vor.u32 %v10754_v30, %v7827_v29 }
 0x200   :  { %4439 = vmatmul.bf16.vlgmr.msra.gmra.mxu0 %v12037_v53  ;;  %4452 = vmatmul.bf16.vlgmr.msra.gmra.mxu1 %v12039_v54  ;;  %v8339_v33 = vld [vmem:[#allocation6 + $0x688] sm:$0xf]  ;;  %v8084_v39 = vor.u32 %v10818_v32, %v8083_v31 }
 0x201   :  { %v10882_v34 = vld [vmem:[#allocation6 + $0x6a4] sm:$0xf0] }
 0x202   :  { %4458 = vmatpush.bf16.msra.mxu2 %v7700_v43  ;;  %4471 = vmatpush.bf16.msra.mxu3 %v7956_v44  ;;  %v7539_v37 = vld [vmem:[#allocation6 + $0x48] sm:$0xf]  ;;  %v8340_v40 = vor.u32 %v10882_v34, %v8339_v33 }
 0x203   :  { %4484 = vmatpush.bf16.msrb.mxu0 %v8212_v49  ;;  %4497 = vmatpush.bf16.msrb.mxu1 %v8468_v50  ;;  %v10682_v38 = vld [vmem:[#allocation6 + $0x64] sm:$0xf0] }
 0x204   :  { %v7795_v41 = vld [vmem:[#allocation6 + $0x248] sm:$0xf]  ;;  %v7540_v50 = vor.u32 %v10682_v38, %v7539_v37 }
 0x205   :  { %v10746_v42 = vld [vmem:[#allocation6 + $0x264] sm:$0xf0] }
 0x206   :  { %4459 = vmatpush.bf16.msra.mxu2 %v7668_v59  ;;  %4472 = vmatpush.bf16.msra.mxu3 %v7924_v60  ;;  %v8051_v43 = vld [vmem:[#allocation6 + $0x448] sm:$0xf]  ;;  %v7796_v51 = vor.u32 %v10746_v42, %v7795_v41 }
 0x207   :  { %4485 = vmatpush.bf16.msrb.mxu0 %v8180_v63  ;;  %4498 = vmatpush.bf16.msrb.mxu1 %v8436_v2  ;;  %v10810_v44 = vld [vmem:[#allocation6 + $0x464] sm:$0xf0] }
 0x208   :  { %v8307_v45 = vld [vmem:[#allocation6 + $0x648] sm:$0xf]  ;;  %v8052_v57 = vor.u32 %v10810_v44, %v8051_v43 }
 0x209   :  { %v10874_v46 = vld [vmem:[#allocation6 + $0x664] sm:$0xf0] }
 0x20a   :  { %4460 = vmatpush.bf16.msra.mxu2 %v7636_v11  ;;  %4473 = vmatpush.bf16.msra.mxu3 %v7892_v12  ;;  %v7507_v49 = vld [vmem:[#allocation6 + $0x8] sm:$0xf]  ;;  %v8308_v58 = vor.u32 %v10874_v46, %v8307_v45 }
 0x20b   :  { %4486 = vmatpush.bf16.msrb.mxu0 %v8148_v15  ;;  %4499 = vmatpush.bf16.msrb.mxu1 %v8404_v16  ;;  %v10674_v52 = vld [vmem:[#allocation6 + $0x24] sm:$0xf0] }
 0x20c   :  { %v7763_v55 = vld [vmem:[#allocation6 + $0x208] sm:$0xf]  ;;  %v7508_v8 = vor.u32 %v10674_v52, %v7507_v49 }
 0x20d   :  { %v10738_v56 = vld [vmem:[#allocation6 + $0x224] sm:$0xf0] }
 0x20e   :  { %4461 = vmatpush.bf16.msra.mxu2 %v7604_v23  ;;  %4474 = vmatpush.bf16.msra.mxu3 %v7860_v24  ;;  %v8019_v59 = vld [vmem:[#allocation6 + $0x408] sm:$0xf]  ;;  %v7764_v9 = vor.u32 %v10738_v56, %v7763_v55 }
 0x20f   :  { %4487 = vmatpush.bf16.msrb.mxu0 %v8116_v27  ;;  %4500 = vmatpush.bf16.msrb.mxu1 %v8372_v28  ;;  %v10802_v60 = vld [vmem:[#allocation6 + $0x424] sm:$0xf0] }
 0x210   :  { %v10866_v62 = vld [vmem:[#allocation6 + $0x624] sm:$0xf0]  ;;  %v8020_v13 = vor.u32 %v10802_v60, %v8019_v59 }
 0x211   :  { %v8755_v63 = vld [vmem:[#allocation6 + $0x9c8] sm:$0xf]  ;;  %v8276_v14 = vor.u32 %v10866_v62, %v8275_v61 }
 0x212   :  { %4462 = vmatpush.bf16.msra.mxu2 %v7572_v35  ;;  %4475 = vmatpush.bf16.msra.mxu3 %v7828_v36  ;;  %v10986_v2 = vld [vmem:[#allocation6 + $0x9e4] sm:$0xf0] }
 0x213   :  { %4488 = vmatpush.bf16.msrb.mxu0 %v8084_v39  ;;  %4501 = vmatpush.bf16.msrb.mxu1 %v8340_v40  ;;  %v9011_v3 = vld [vmem:[#allocation6 + $0xbc8] sm:$0xf]  ;;  %v8756_v15 = vor.u32 %v10986_v2, %v8755_v63 }
 0x214   :  { %v11050_v4 = vld [vmem:[#allocation6 + $0xbe4] sm:$0xf0] }
 0x215   :  { %v9267_v5 = vld [vmem:[#allocation6 + $0xdc8] sm:$0xf]  ;;  %v9012_v16 = vor.u32 %v11050_v4, %v9011_v3 }
 0x216   :  { %4463 = vmatpush.bf16.msra.mxu2 %v7540_v50  ;;  %4476 = vmatpush.bf16.msra.mxu3 %v7796_v51  ;;  %v11114_v10 = vld [vmem:[#allocation6 + $0xde4] sm:$0xf0] }
 0x217   :  { %v9523_v11 = vld [vmem:[#allocation6 + $0xfc8] sm:$0xf]  ;;  %4489 = vmatpush.bf16.msrb.mxu0 %v8052_v57  ;;  %4502 = vmatpush.bf16.msrb.mxu1 %v8308_v58  ;;  %v9268_v19 = vor.u32 %v11114_v10, %v9267_v5 }
 0x218   :  { %v11178_v12 = vld [vmem:[#allocation6 + $0xfe4] sm:$0xf0] }
 0x219   :  { %v8723_v17 = vld [vmem:[#allocation6 + $0x988] sm:$0xf]  ;;  %v9524_v20 = vor.u32 %v11178_v12, %v9523_v11 }
 0x21a   :  { %v10978_v18 = vld [vmem:[#allocation6 + $0x9a4] sm:$0xf0]  ;;  %4464 = vmatpush.bf16.msra.mxu2 %v7508_v8  ;;  %4477 = vmatpush.bf16.msra.mxu3 %v7764_v9 }
 0x21b   :  { %v8979_v21 = vld [vmem:[#allocation6 + $0xb88] sm:$0xf]  ;;  %4490 = vmatpush.bf16.msrb.mxu0 %v8020_v13  ;;  %4503 = vmatpush.bf16.msrb.mxu1 %v8276_v14  ;;  %v8724_v27 = vor.u32 %v10978_v18, %v8723_v17 }
 0x21c   :  { %v11042_v22 = vld [vmem:[#allocation6 + $0xba4] sm:$0xf0] }
 0x21d   :  { %v9235_v23 = vld [vmem:[#allocation6 + $0xd88] sm:$0xf]  ;;  %v8980_v28 = vor.u32 %v11042_v22, %v8979_v21  ;;  %4465 = vmatmul.bf16.vlgmr.msra.gmra.mxu2 %v12019_v0  ;;  %4478 = vmatmul.bf16.vlgmr.msra.gmra.mxu3 %v12021_v1 }
 0x21e   :  { %v11106_v24 = vld [vmem:[#allocation6 + $0xda4] sm:$0xf0]  ;;  %4509 = vmatpush.bf16.msrb.mxu2 %v8756_v15  ;;  %4522 = vmatpush.bf16.msrb.mxu3 %v9012_v16 }
 0x21f   :  { %v9491_v25 = vld [vmem:[#allocation6 + $0xf88] sm:$0xf]  ;;  %4535 = vmatpush.bf16.msra.mxu0 %v9268_v19  ;;  %4548 = vmatpush.bf16.msra.mxu1 %v9524_v20  ;;  %v9236_v31 = vor.u32 %v11106_v24, %v9235_v23  ;;  %v12057_v19 = vld [vmem:[#allocation8] sm:$0xff] }
 0x220   :  { %v11170_v26 = vld [vmem:[#allocation6 + $0xfa4] sm:$0xf0]  ;;  %4491 = vmatmul.bf16.vlgmr.msrb.gmra.mxu0 %v12023_v6  ;;  %4504 = vmatmul.bf16.vlgmr.msrb.gmra.mxu1 %v12025_v7 }
 0x221   :  { %v8691_v29 = vld [vmem:[#allocation6 + $0x948] sm:$0xf]  ;;  %v9492_v32 = vor.u32 %v11170_v26, %v9491_v25 }
 0x222   :  { %v10970_v30 = vld [vmem:[#allocation6 + $0x964] sm:$0xf0]  ;;  %4510 = vmatpush.bf16.msrb.mxu2 %v8724_v27  ;;  %4523 = vmatpush.bf16.msrb.mxu3 %v8980_v28 }
 0x223   :  { %v8947_v33 = vld [vmem:[#allocation6 + $0xb48] sm:$0xf]  ;;  %v8692_v39 = vor.u32 %v10970_v30, %v8691_v29  ;;  %4536 = vmatpush.bf16.msra.mxu0 %v9236_v31  ;;  %4549 = vmatpush.bf16.msra.mxu1 %v9492_v32 }
 0x224   :  { %v11034_v34 = vld [vmem:[#allocation6 + $0xb64] sm:$0xf0] }
 0x225   :  { %v9203_v35 = vld [vmem:[#allocation6 + $0xd48] sm:$0xf]  ;;  %v8948_v40 = vor.u32 %v11034_v34, %v8947_v33  ;;  %v1673_v34 = vperm.slane %v12057_v19, 0 }
 0x226   :  { %v11098_v36 = vld [vmem:[#allocation6 + $0xd64] sm:$0xf0]  ;;  %4511 = vmatpush.bf16.msrb.mxu2 %v8692_v39 }
 0x227   :  { %v9459_v37 = vld [vmem:[#allocation6 + $0xf48] sm:$0xf]  ;;  %v9204_v43 = vor.u32 %v11098_v36, %v9203_v35  ;;  %4524 = vmatpush.bf16.msrb.mxu3 %v8948_v40 }
 0x228   :  { %v11162_v38 = vld [vmem:[#allocation6 + $0xf64] sm:$0xf0] }
 0x229   :  { %v8659_v41 = vld [vmem:[#allocation6 + $0x908] sm:$0xf]  ;;  %v9460_v44 = vor.u32 %v11162_v38, %v9459_v37  ;;  %4537 = vmatpush.bf16.msra.mxu0 %v9204_v43 }
 0x22a   :  { %v10962_v42 = vld [vmem:[#allocation6 + $0x924] sm:$0xf0]  ;;  %v4284_v20 = vpop.f32.mrf.mxu0  ;;  %v12059_v21 = vpop.f32.mrf.mxu1 }
 0x22b   :  { %v8915_v45 = vld [vmem:[#allocation6 + $0xb08] sm:$0xf]  ;;  %v8660_v55 = vor.u32 %v10962_v42, %v8659_v41  ;;  %4550 = vmatpush.bf16.msra.mxu1 %v9460_v44 }
 0x22c   :  { %v11026_v46 = vld [vmem:[#allocation6 + $0xb24] sm:$0xf0] }
 0x22d   :  { %v9171_v49 = vld [vmem:[#allocation6 + $0xd08] sm:$0xf]  ;;  %v8916_v56 = vor.u32 %v11026_v46, %v8915_v45  ;;  %4512 = vmatpush.bf16.msrb.mxu2 %v8660_v55  ;;  %v7733_v55 = vld [vmem:[#allocation6 + $0x1e8] sm:$0xf0] }
 0x22e   :  { %v11090_v50 = vld [vmem:[#allocation6 + $0xd24] sm:$0xf0] }
 0x22f   :  { %v9427_v51 = vld [vmem:[#allocation6 + $0xf08] sm:$0xf]  ;;  %v9172_v59 = vor.u32 %v11090_v50, %v9171_v49  ;;  %4525 = vmatpush.bf16.msrb.mxu3 %v8916_v56  ;;  %v4258_v43 = vpop.f32.mrf.mxu2  ;;  %v4271_v44 = vpop.f32.mrf.mxu3  ;;  %v10790_v56 = vld [vmem:[#allocation6 + $0x3cc] sm:$0xf] }
 0x230   :  { %v11154_v52 = vld [vmem:[#allocation6 + $0xf24] sm:$0xf0]  ;;  %v4259_v50 = vadd.f32 %v4258_v43, %v1673_v34  ;;  %v7925_v34 = vld [vmem:[#allocation6 + $0x368] sm:$0xf0] }
 0x231   :  { %v8627_v57 = vld [vmem:[#allocation6 + $0x8c8] sm:$0xf]  ;;  %v9428_v60 = vor.u32 %v11154_v52, %v9427_v51  ;;  %4538 = vmatpush.bf16.msra.mxu0 %v9172_v59  ;;  %v10726_v52 = vld [vmem:[#allocation6 + $0x1cc] sm:$0xf] }
 0x232   :  { %v10954_v58 = vld [vmem:[#allocation6 + $0x8e4] sm:$0xf0]  ;;  %v4272_v59 = vadd.f32 %v4271_v44, %v4259_v50  ;;  %v10766_v44 = vld [vmem:[#allocation6 + $0x30c] sm:$0xf] }
 0x233   :  { %v8883_v61 = vld [vmem:[#allocation6 + $0xac8] sm:$0xf]  ;;  %v8628_v5 = vor.u32 %v10954_v58, %v8627_v57  ;;  %4551 = vmatpush.bf16.msra.mxu1 %v9428_v60  ;;  %v7989_v57 = vld [vmem:[#allocation6 + $0x3e8] sm:$0xf0]  ;;  %v4286_v60 = vpop.f32.mrf.mxu0 }
 0x234   :  { %v11018_v62 = vld [vmem:[#allocation6 + $0xae4] sm:$0xf0]  ;;  %v10854_v58 = vld [vmem:[#allocation6 + $0x5cc] sm:$0xf] }
 0x235   :  { %v9139_v63 = vld [vmem:[#allocation6 + $0xcc8] sm:$0xf]  ;;  %v8884_v8 = vor.u32 %v11018_v62, %v8883_v61  ;;  %4513 = vmatpush.bf16.msrb.mxu2 %v8628_v5  ;;  %v4299_v61 = vpop.f32.mrf.mxu1  ;;  %v10894_v50 = vld [vmem:[#allocation6 + $0x70c] sm:$0xf] }
 0x236   :  { %v11082_v2 = vld [vmem:[#allocation6 + $0xce4] sm:$0xf0]  ;;  %v10758_v60 = vld [vmem:[#allocation6 + $0x2cc] sm:$0xf] }
 0x237   :  { %v9395_v3 = vld [vmem:[#allocation6 + $0xec8] sm:$0xf]  ;;  %v9140_v11 = vor.u32 %v11082_v2, %v9139_v63  ;;  %4526 = vmatpush.bf16.msrb.mxu3 %v8884_v8  ;;  %v8245_v2 = vld [vmem:[#allocation6 + $0x5e8] sm:$0xf0] }
 0x238   :  { %v11146_v4 = vld [vmem:[#allocation6 + $0xee4] sm:$0xf0]  ;;  %v7861_v61 = vld [vmem:[#allocation6 + $0x2e8] sm:$0xf0] }
 0x239   :  { %v8595_v9 = vld [vmem:[#allocation6 + $0x888] sm:$0xf]  ;;  %v9396_v12 = vor.u32 %v11146_v4, %v9395_v3  ;;  %4539 = vmatpush.bf16.msra.mxu0 %v9140_v11  ;;  %v10918_v3 = vld [vmem:[#allocation6 + $0x7cc] sm:$0xf]  ;;  %v7992_v11 = vor.u32 %v10790_v56, %v7989_v57 }
 0x23a   :  { %v10946_v10 = vld [vmem:[#allocation6 + $0x8a4] sm:$0xf0]  ;;  %v8501_v4 = vld [vmem:[#allocation6 + $0x7e8] sm:$0xf0] }
 0x23b   :  { %v8851_v13 = vld [vmem:[#allocation6 + $0xa88] sm:$0xf]  ;;  %v8596_v22 = vor.u32 %v10946_v10, %v8595_v9  ;;  %4552 = vmatpush.bf16.msra.mxu1 %v9396_v12  ;;  %v4285_v9 = vadd.f32 %v4284_v20, %v4272_v59  ;;  %v7736_v10 = vor.u32 %v10726_v52, %v7733_v55  ;;  %v10718_v12 = vld [vmem:[#allocation6 + $0x18c] sm:$0xf]  ;;  %v4260_v20 = vpop.f32.mrf.mxu2 }
 0x23c   :  { %v11010_v14 = vld [vmem:[#allocation6 + $0xaa4] sm:$0xf0]  ;;  %v10694_v56 = vld [vmem:[#allocation6 + $0xcc] sm:$0xf] }
 0x23d   :  { %v9107_v15 = vld [vmem:[#allocation6 + $0xc88] sm:$0xf]  ;;  %v8852_v23 = vor.u32 %v11010_v14, %v8851_v13  ;;  %4514 = vmatpush.bf16.msrb.mxu2 %v8596_v22  ;;  %v7701_v13 = vld [vmem:[#allocation6 + $0x1a8] sm:$0xf0]  ;;  %v8248_v14 = vor.u32 %v10854_v58, %v8245_v2 }
 0x23e   :  { %v11074_v16 = vld [vmem:[#allocation6 + $0xca4] sm:$0xf0]  ;;  %v8213_v22 = vld [vmem:[#allocation6 + $0x5a8] sm:$0xf0] }
 0x23f   :  { %v9363_v17 = vld [vmem:[#allocation6 + $0xe88] sm:$0xf]  ;;  %v9108_v27 = vor.u32 %v11074_v16, %v9107_v15  ;;  %4527 = vmatpush.bf16.msrb.mxu3 %v8852_v23  ;;  %v8504_v15 = vor.u32 %v10918_v3, %v8501_v4  ;;  %v10782_v16 = vld [vmem:[#allocation6 + $0x38c] sm:$0xf] }
 0x240   :  { %v11138_v18 = vld [vmem:[#allocation6 + $0xea4] sm:$0xf0]  ;;  %v10910_v23 = vld [vmem:[#allocation6 + $0x78c] sm:$0xf] }
 0x241   :  { %v8563_v24 = vld [vmem:[#allocation6 + $0x848] sm:$0xf]  ;;  %v9364_v28 = vor.u32 %v11138_v18, %v9363_v17  ;;  %4540 = vmatpush.bf16.msra.mxu0 %v9108_v27  ;;  %v7957_v17 = vld [vmem:[#allocation6 + $0x3a8] sm:$0xf0]  ;;  %v7704_v27 = vor.u32 %v10718_v12, %v7701_v13 }
 0x242   :  { %v10938_v25 = vld [vmem:[#allocation6 + $0x864] sm:$0xf0]  ;;  %v10846_v18 = vld [vmem:[#allocation6 + $0x58c] sm:$0xf] }
 0x243   :  { %v8819_v26 = vld [vmem:[#allocation6 + $0xa48] sm:$0xf]  ;;  %v8564_v36 = vor.u32 %v10938_v25, %v8563_v24  ;;  %4553 = vmatpush.bf16.msra.mxu1 %v9364_v28  ;;  %v8469_v24 = vld [vmem:[#allocation6 + $0x7a8] sm:$0xf0]  ;;  %v12063_v25 = vadd.f32 %v12059_v21, %v4285_v9  ;;  %v7960_v28 = vor.u32 %v10782_v16, %v7957_v17 }
 0x244   :  { %v11002_v29 = vld [vmem:[#allocation6 + $0xa64] sm:$0xf0]  ;;  %v8181_v21 = vld [vmem:[#allocation6 + $0x568] sm:$0xf0] }
 0x245   :  { %v9075_v30 = vld [vmem:[#allocation6 + $0xc48] sm:$0xf]  ;;  %v8820_v37 = vor.u32 %v11002_v29, %v8819_v26  ;;  %4515 = vmatpush.bf16.msrb.mxu2 %v8564_v36  ;;  %v4273_v26 = vpop.f32.mrf.mxu3  ;;  %v10710_v29 = vld [vmem:[#allocation6 + $0x14c] sm:$0xf] }
 0x246   :  { %v11066_v31 = vld [vmem:[#allocation6 + $0xc64] sm:$0xf0]  ;;  %v10902_v36 = vld [vmem:[#allocation6 + $0x74c] sm:$0xf] }
 0x247   :  { %v9331_v32 = vld [vmem:[#allocation6 + $0xe48] sm:$0xf]  ;;  %v9076_v41 = vor.u32 %v11066_v31, %v9075_v30  ;;  %4528 = vmatpush.bf16.msrb.mxu3 %v8820_v37  ;;  %v7669_v30 = vld [vmem:[#allocation6 + $0x168] sm:$0xf0]  ;;  %v8216_v31 = vor.u32 %v10846_v18, %v8213_v22 }
 0x248   :  { %v11130_v33 = vld [vmem:[#allocation6 + $0xe64] sm:$0xf0]  ;;  %v8437_v37 = vld [vmem:[#allocation6 + $0x768] sm:$0xf0] }
 0x249   :  { %v8531_v35 = vld [vmem:[#allocation6 + $0x808] sm:$0xf]  ;;  %v9332_v42 = vor.u32 %v11130_v33, %v9331_v32  ;;  %4541 = vmatpush.bf16.msra.mxu0 %v9076_v41  ;;  %v8472_v32 = vor.u32 %v10910_v23, %v8469_v24  ;;  %v10774_v33 = vld [vmem:[#allocation6 + $0x34c] sm:$0xf]  ;;  %v8440_v43 = vor.u32 %v10902_v36, %v8437_v37 }
 0x24a   :  { %v10930_v38 = vld [vmem:[#allocation6 + $0x824] sm:$0xf0]  ;;  %v7637_v41 = vld [vmem:[#allocation6 + $0x128] sm:$0xf0] }
 0x24b   :  { %v8787_v39 = vld [vmem:[#allocation6 + $0xa08] sm:$0xf]  ;;  %v8532_v62 = vor.u32 %v10930_v38, %v8531_v35  ;;  %4554 = vmatpush.bf16.msra.mxu1 %v9332_v42  ;;  %v10838_v35 = vld [vmem:[#allocation6 + $0x54c] sm:$0xf]  ;;  %v7672_v38 = vor.u32 %v10710_v29, %v7669_v30 }
 0x24c   :  { %v10994_v40 = vld [vmem:[#allocation6 + $0xa24] sm:$0xf0]  ;;  %v8184_v42 = vor.u32 %v10838_v35, %v8181_v21  ;;  %v7605_v57 = vld [vmem:[#allocation6 + $0xe8] sm:$0xf0] }
 0x24d   :  { %v9043_v45 = vld [vmem:[#allocation6 + $0xc08] sm:$0xf]  ;;  %v8788_v63 = vor.u32 %v10994_v40, %v8787_v39  ;;  %4516 = vmatpush.bf16.msrb.mxu2 %v8532_v62  ;;  %v7928_v39 = vor.u32 %v10774_v33, %v7925_v34  ;;  %v10702_v40 = vld [vmem:[#allocation6 + $0x10c] sm:$0xf]  ;;  %v7608_v4 = vor.u32 %v10694_v56, %v7605_v57 }
 0x24e   :  { %v11058_v46 = vld [vmem:[#allocation6 + $0xc24] sm:$0xf0]  ;;  %v7640_v52 = vor.u32 %v10702_v40, %v7637_v41  ;;  %v10822_v62 = vld [vmem:[#allocation6 + $0x4cc] sm:$0xf] }
 0x24f   :  { %v9299_v49 = vld [vmem:[#allocation6 + $0xe08] sm:$0xf]  ;;  %v9044_v5 = vor.u32 %v11058_v46, %v9043_v45  ;;  %4529 = vmatpush.bf16.msrb.mxu3 %v8788_v63  ;;  %v7893_v45 = vld [vmem:[#allocation6 + $0x328] sm:$0xf0] }
 0x250   :  { %v11122_v51 = vld [vmem:[#allocation6 + $0xe24] sm:$0xf0]  ;;  %4517 = vmatmul.bf16.vlgmr.msrb.gmra.mxu2 %v12033_v47  ;;  %v10830_v46 = vld [vmem:[#allocation6 + $0x50c] sm:$0xf]  ;;  %v7896_v55 = vor.u32 %v10766_v44, %v7893_v45 }
 0x251   :  { %v9300_v8 = vor.u32 %v11122_v51, %v9299_v49  ;;  %4542 = vmatpush.bf16.msra.mxu0 %v9044_v5  ;;  %4561 = vmatpush.bf16.msra.mxu2 %v7736_v10  ;;  %v8149_v49 = vld [vmem:[#allocation6 + $0x528] sm:$0xf0]  ;;  %v7864_v5 = vor.u32 %v10758_v60, %v7861_v61 }
 0x252   :  { %4530 = vmatmul.bf16.vlgmr.msrb.gmra.mxu3 %v12035_v48  ;;  %v8405_v51 = vld [vmem:[#allocation6 + $0x728] sm:$0xf0]  ;;  %v8152_v58 = vor.u32 %v10830_v46, %v8149_v49 }
 0x253   :  { %4555 = vmatpush.bf16.msra.mxu1 %v9300_v8  ;;  %4574 = vmatpush.bf16.msra.mxu3 %v7992_v11  ;;  %v8408_v59 = vor.u32 %v10894_v50, %v8405_v51  ;;  %v8117_v63 = vld [vmem:[#allocation6 + $0x4e8] sm:$0xf0] }
 0x254   :  { %4543 = vmatmul.bf16.vlgmr.msra.gmra.mxu0 %v12037_v53  ;;  %v10886_v2 = vld [vmem:[#allocation6 + $0x6cc] sm:$0xf]  ;;  %v8120_v10 = vor.u32 %v10822_v62, %v8117_v63 }
 0x255   :  { %4587 = vmatpush.bf16.msrb.mxu0 %v8248_v14  ;;  %4562 = vmatpush.bf16.msra.mxu2 %v7704_v27  ;;  %v8373_v3 = vld [vmem:[#allocation6 + $0x6e8] sm:$0xf0] }
 0x256   :  { %4556 = vmatmul.bf16.vlgmr.msra.gmra.mxu1 %v12039_v54  ;;  %v10686_v8 = vld [vmem:[#allocation6 + $0x8c] sm:$0xf]  ;;  %v8376_v11 = vor.u32 %v10886_v2, %v8373_v3 }
 0x257   :  { %4600 = vmatpush.bf16.msrb.mxu1 %v8504_v15  ;;  %4575 = vmatpush.bf16.msra.mxu3 %v7960_v28  ;;  %v7573_v9 = vld [vmem:[#allocation6 + $0xa8] sm:$0xf0] }
 0x258   :  { %v10750_v12 = vld [vmem:[#allocation6 + $0x28c] sm:$0xf]  ;;  %v7576_v18 = vor.u32 %v10686_v8, %v7573_v9 }
 0x259   :  { %4588 = vmatpush.bf16.msrb.mxu0 %v8216_v31  ;;  %4563 = vmatpush.bf16.msra.mxu2 %v7672_v38  ;;  %v7829_v13 = vld [vmem:[#allocation6 + $0x2a8] sm:$0xf0] }
 0x25a   :  { %v10814_v14 = vld [vmem:[#allocation6 + $0x48c] sm:$0xf]  ;;  %v7832_v22 = vor.u32 %v10750_v12, %v7829_v13 }
 0x25b   :  { %4601 = vmatpush.bf16.msrb.mxu1 %v8472_v32  ;;  %4576 = vmatpush.bf16.msra.mxu3 %v7928_v39  ;;  %v8085_v15 = vld [vmem:[#allocation6 + $0x4a8] sm:$0xf0] }
 0x25c   :  { %v10878_v16 = vld [vmem:[#allocation6 + $0x68c] sm:$0xf]  ;;  %v8088_v20 = vor.u32 %v10814_v14, %v8085_v15 }
 0x25d   :  { %4589 = vmatpush.bf16.msrb.mxu0 %v8184_v42  ;;  %4564 = vmatpush.bf16.msra.mxu2 %v7640_v52  ;;  %v8341_v17 = vld [vmem:[#allocation6 + $0x6a8] sm:$0xf0] }
 0x25e   :  { %v10678_v23 = vld [vmem:[#allocation6 + $0x4c] sm:$0xf]  ;;  %v8344_v26 = vor.u32 %v10878_v16, %v8341_v17 }
 0x25f   :  { %4602 = vmatpush.bf16.msrb.mxu1 %v8440_v43  ;;  %4577 = vmatpush.bf16.msra.mxu3 %v7896_v55  ;;  %v7541_v24 = vld [vmem:[#allocation6 + $0x68] sm:$0xf0] }
 0x260   :  { %v10742_v27 = vld [vmem:[#allocation6 + $0x24c] sm:$0xf]  ;;  %v7544_v34 = vor.u32 %v10678_v23, %v7541_v24 }
 0x261   :  { %4590 = vmatpush.bf16.msrb.mxu0 %v8152_v58  ;;  %4565 = vmatpush.bf16.msra.mxu2 %v7608_v4  ;;  %v7797_v28 = vld [vmem:[#allocation6 + $0x268] sm:$0xf0] }
 0x262   :  { %v10806_v29 = vld [vmem:[#allocation6 + $0x44c] sm:$0xf]  ;;  %v7800_v35 = vor.u32 %v10742_v27, %v7797_v28 }
 0x263   :  { %4603 = vmatpush.bf16.msrb.mxu1 %v8408_v59  ;;  %4578 = vmatpush.bf16.msra.mxu3 %v7864_v5  ;;  %v8053_v30 = vld [vmem:[#allocation6 + $0x468] sm:$0xf0] }
 0x264   :  { %v10870_v31 = vld [vmem:[#allocation6 + $0x64c] sm:$0xf]  ;;  %v8056_v38 = vor.u32 %v10806_v29, %v8053_v30  ;;  %v4336_v29 = vpop.f32.mrf.mxu0  ;;  %v4349_v30 = vpop.f32.mrf.mxu1 }
 0x265   :  { %4591 = vmatpush.bf16.msrb.mxu0 %v8120_v10  ;;  %v8309_v32 = vld [vmem:[#allocation6 + $0x668] sm:$0xf0]  ;;  %4566 = vmatpush.bf16.msra.mxu2 %v7576_v18 }
 0x266   :  { %v10670_v33 = vld [vmem:[#allocation6 + $0xc] sm:$0xf]  ;;  %v8312_v39 = vor.u32 %v10870_v31, %v8309_v32 }
 0x267   :  { %4604 = vmatpush.bf16.msrb.mxu1 %v8376_v11  ;;  %4579 = vmatpush.bf16.msra.mxu3 %v7832_v22  ;;  %v7509_v21 = vld [vmem:[#allocation6 + $0x28] sm:$0xf0] }
 0x268   :  { %v10734_v36 = vld [vmem:[#allocation6 + $0x20c] sm:$0xf]  ;;  %v7512_v51 = vor.u32 %v10670_v33, %v7509_v21 }
 0x269   :  { %v7765_v37 = vld [vmem:[#allocation6 + $0x228] sm:$0xf0]  ;;  %4592 = vmatpush.bf16.msrb.mxu0 %v8088_v20  ;;  %4567 = vmatpush.bf16.msra.mxu2 %v7544_v34 }
 0x26a   :  { %v10798_v40 = vld [vmem:[#allocation6 + $0x40c] sm:$0xf]  ;;  %v7768_v52 = vor.u32 %v10734_v36, %v7765_v37 }
 0x26b   :  { %4605 = vmatpush.bf16.msrb.mxu1 %v8344_v26  ;;  %v8021_v41 = vld [vmem:[#allocation6 + $0x428] sm:$0xf0]  ;;  %4580 = vmatpush.bf16.msra.mxu3 %v7800_v35 }
 0x26c   :  { %v10862_v42 = vld [vmem:[#allocation6 + $0x60c] sm:$0xf]  ;;  %v8024_v58 = vor.u32 %v10798_v40, %v8021_v41 }
 0x26d   :  { %v8277_v43 = vld [vmem:[#allocation6 + $0x628] sm:$0xf0]  ;;  %4593 = vmatpush.bf16.msrb.mxu0 %v8056_v38  ;;  %4568 = vmatpush.bf16.msra.mxu2 %v7512_v51 }
 0x26e   :  { %v10982_v44 = vld [vmem:[#allocation6 + $0x9cc] sm:$0xf]  ;;  %v8280_v59 = vor.u32 %v10862_v42, %v8277_v43 }
 0x26f   :  { %v8757_v45 = vld [vmem:[#allocation6 + $0x9e8] sm:$0xf0]  ;;  %4606 = vmatpush.bf16.msrb.mxu1 %v8312_v39  ;;  %4581 = vmatpush.bf16.msra.mxu3 %v7768_v52 }
 0x270   :  { %v11046_v46 = vld [vmem:[#allocation6 + $0xbcc] sm:$0xf]  ;;  %v8760_v60 = vor.u32 %v10982_v44, %v8757_v45  ;;  %4569 = vmatmul.bf16.vlgmr.msra.gmra.mxu2 %v12019_v0 }
 0x271   :  { %v9013_v49 = vld [vmem:[#allocation6 + $0xbe8] sm:$0xf0]  ;;  %4594 = vmatpush.bf16.msrb.mxu0 %v8024_v58 }
 0x272   :  { %v11110_v50 = vld [vmem:[#allocation6 + $0xdcc] sm:$0xf]  ;;  %v9016_v61 = vor.u32 %v11046_v46, %v9013_v49  ;;  %4613 = vmatpush.bf16.msrb.mxu2 %v8760_v60  ;;  %4582 = vmatmul.bf16.vlgmr.msra.gmra.mxu3 %v12021_v1  ;;  %v4310_v46 = vpop.f32.mrf.mxu2  ;;  %v4323_v49 = vpop.f32.mrf.mxu3 }
 0x273   :  { %v9269_v55 = vld [vmem:[#allocation6 + $0xde8] sm:$0xf0]  ;;  %4607 = vmatpush.bf16.msrb.mxu1 %v8280_v59 }
 0x274   :  { %v11174_v56 = vld [vmem:[#allocation6 + $0xfcc] sm:$0xf]  ;;  %v9272_v2 = vor.u32 %v11110_v50, %v9269_v55  ;;  %4626 = vmatpush.bf16.msrb.mxu3 %v9016_v61  ;;  %4595 = vmatmul.bf16.vlgmr.msrb.gmra.mxu0 %v12023_v6  ;;  %v4311_v55 = vadd.f32 %v4310_v46, %v12063_v25  ;;  %v10731_v46 = vld [vmem:[#allocation6 + $0x1ec] sm:$0xf0] }
 0x275   :  { %v9525_v57 = vld [vmem:[#allocation6 + $0xfe8] sm:$0xf0] }
 0x276   :  { %v10974_v62 = vld [vmem:[#allocation6 + $0x98c] sm:$0xf]  ;;  %v9528_v3 = vor.u32 %v11174_v56, %v9525_v57  ;;  %4639 = vmatpush.bf16.msra.mxu0 %v9272_v2  ;;  %4608 = vmatmul.bf16.vlgmr.msrb.gmra.mxu1 %v12025_v7  ;;  %v4324_v59 = vadd.f32 %v4323_v49, %v4311_v55  ;;  %v1674_v49 = vperm.slane %v12057_v19, 1  ;;  %v7707_v19 = vld [vmem:[#allocation6 + $0x190] sm:$0xf] }
 0x277   :  { %v8725_v63 = vld [vmem:[#allocation6 + $0x9a8] sm:$0xf0] }
 0x278   :  { %v11038_v4 = vld [vmem:[#allocation6 + $0xb8c] sm:$0xf]  ;;  %v8728_v12 = vor.u32 %v10974_v62, %v8725_v63  ;;  %4652 = vmatpush.bf16.msra.mxu1 %v9528_v3  ;;  %v4338_v62 = vpop.f32.mrf.mxu0  ;;  %v4351_v63 = vpop.f32.mrf.mxu1  ;;  %v4337_v25 = vadd.f32 %v4336_v29, %v4324_v59  ;;  %v10923_v59 = vld [vmem:[#allocation6 + $0x7ec] sm:$0xf0] }
 0x279   :  { %v8981_v5 = vld [vmem:[#allocation6 + $0xba8] sm:$0xf0] }
 0x27a   :  { %v11102_v8 = vld [vmem:[#allocation6 + $0xd8c] sm:$0xf]  ;;  %v8984_v13 = vor.u32 %v11038_v4, %v8981_v5  ;;  %4614 = vmatpush.bf16.msrb.mxu2 %v8728_v12 }
 0x27b   :  { %v9237_v9 = vld [vmem:[#allocation6 + $0xda8] sm:$0xf0] }
 0x27c   :  { %v11166_v10 = vld [vmem:[#allocation6 + $0xf8c] sm:$0xf]  ;;  %v9240_v16 = vor.u32 %v11102_v8, %v9237_v9  ;;  %4627 = vmatpush.bf16.msrb.mxu3 %v8984_v13 }
 0x27d   :  { %v9493_v11 = vld [vmem:[#allocation6 + $0xfa8] sm:$0xf0] }
 0x27e   :  { %v10966_v14 = vld [vmem:[#allocation6 + $0x94c] sm:$0xf]  ;;  %v9496_v17 = vor.u32 %v11166_v10, %v9493_v11  ;;  %4640 = vmatpush.bf16.msra.mxu0 %v9240_v16 }
 0x27f   :  { %v8693_v15 = vld [vmem:[#allocation6 + $0x968] sm:$0xf0] }
 0x280   :  { %v11030_v18 = vld [vmem:[#allocation6 + $0xb4c] sm:$0xf]  ;;  %v8696_v27 = vor.u32 %v10966_v14, %v8693_v15  ;;  %4653 = vmatpush.bf16.msra.mxu1 %v9496_v17  ;;  %v12074_v14 = vadd.f32 %v4349_v30, %v4337_v25  ;;  %v10787_v25 = vld [vmem:[#allocation6 + $0x3ac] sm:$0xf0] }
 0x281   :  { %v8949_v22 = vld [vmem:[#allocation6 + $0xb68] sm:$0xf0] }
 0x282   :  { %v11094_v23 = vld [vmem:[#allocation6 + $0xd4c] sm:$0xf]  ;;  %v8952_v28 = vor.u32 %v11030_v18, %v8949_v22  ;;  %4615 = vmatpush.bf16.msrb.mxu2 %v8696_v27 }
 0x283   :  { %v9205_v24 = vld [vmem:[#allocation6 + $0xd68] sm:$0xf0] }
 0x284   :  { %v11158_v20 = vld [vmem:[#allocation6 + $0xf4c] sm:$0xf]  ;;  %v9208_v33 = vor.u32 %v11094_v23, %v9205_v24  ;;  %4628 = vmatpush.bf16.msrb.mxu3 %v8952_v28  ;;  %v4312_v24 = vpop.f32.mrf.mxu2 }
 0x285   :  { %v9461_v26 = vld [vmem:[#allocation6 + $0xf68] sm:$0xf0] }
 0x286   :  { %v10958_v31 = vld [vmem:[#allocation6 + $0x90c] sm:$0xf]  ;;  %v9464_v34 = vor.u32 %v11158_v20, %v9461_v26  ;;  %4641 = vmatpush.bf16.msra.mxu0 %v9208_v33  ;;  %v4325_v20 = vpop.f32.mrf.mxu3 }
 0x287   :  { %v8661_v32 = vld [vmem:[#allocation6 + $0x928] sm:$0xf0]  ;;  %v7675_v20 = vld [vmem:[#allocation6 + $0x150] sm:$0xf] }
 0x288   :  { %v11022_v35 = vld [vmem:[#allocation6 + $0xb0c] sm:$0xf]  ;;  %v8664_v40 = vor.u32 %v10958_v31, %v8661_v32  ;;  %4654 = vmatpush.bf16.msra.mxu1 %v9464_v34 }
 0x289   :  { %v8917_v21 = vld [vmem:[#allocation6 + $0xb28] sm:$0xf0] }
 0x28a   :  { %v11086_v36 = vld [vmem:[#allocation6 + $0xd0c] sm:$0xf]  ;;  %v8920_v41 = vor.u32 %v11022_v35, %v8917_v21  ;;  %4616 = vmatpush.bf16.msrb.mxu2 %v8664_v40  ;;  %v4388_v21 = vpop.f32.mrf.mxu0 }
 0x28b   :  { %v9173_v37 = vld [vmem:[#allocation6 + $0xd28] sm:$0xf0] }
 0x28c   :  { %v11150_v38 = vld [vmem:[#allocation6 + $0xf0c] sm:$0xf]  ;;  %v9176_v44 = vor.u32 %v11086_v36, %v9173_v37  ;;  %4629 = vmatpush.bf16.msrb.mxu3 %v8920_v41  ;;  %v12076_v36 = vpop.f32.mrf.mxu1  ;;  %v4362_v62 = vpop.f32.mrf.mxu2 }
 0x28d   :  { %v9429_v39 = vld [vmem:[#allocation6 + $0xf28] sm:$0xf0] }
 0x28e   :  { %v10950_v42 = vld [vmem:[#allocation6 + $0x8cc] sm:$0xf]  ;;  %v9432_v45 = vor.u32 %v11150_v38, %v9429_v39  ;;  %4642 = vmatpush.bf16.msra.mxu0 %v9176_v44  ;;  %v4375_v63 = vpop.f32.mrf.mxu3 }
 0x28f   :  { %v8629_v43 = vld [vmem:[#allocation6 + $0x8e8] sm:$0xf0] }
 0x290   :  { %v11014_v50 = vld [vmem:[#allocation6 + $0xacc] sm:$0xf]  ;;  %v8632_v60 = vor.u32 %v10950_v42, %v8629_v43  ;;  %4655 = vmatpush.bf16.msra.mxu1 %v9432_v45  ;;  %v7739_v45 = vld [vmem:[#allocation6 + $0x1d0] sm:$0xf] }
 0x291   :  { %v8885_v51 = vld [vmem:[#allocation6 + $0xae8] sm:$0xf0] }
 0x292   :  { %v11078_v52 = vld [vmem:[#allocation6 + $0xccc] sm:$0xf]  ;;  %v8888_v61 = vor.u32 %v11014_v50, %v8885_v51  ;;  %4617 = vmatpush.bf16.msrb.mxu2 %v8632_v60  ;;  %v7995_v50 = vld [vmem:[#allocation6 + $0x3d0] sm:$0xf] }
 0x293   :  { %v9141_v56 = vld [vmem:[#allocation6 + $0xce8] sm:$0xf0]  ;;  %v10795_v51 = vld [vmem:[#allocation6 + $0x3ec] sm:$0xf0] }
 0x294   :  { %v11142_v57 = vld [vmem:[#allocation6 + $0xecc] sm:$0xf]  ;;  %v9144_v4 = vor.u32 %v11078_v52, %v9141_v56  ;;  %4630 = vmatpush.bf16.msrb.mxu3 %v8888_v61  ;;  %v8251_v52 = vld [vmem:[#allocation6 + $0x5d0] sm:$0xf] }
 0x295   :  { %v9397_v58 = vld [vmem:[#allocation6 + $0xee8] sm:$0xf0] }
 0x296   :  { %v10942_v2 = vld [vmem:[#allocation6 + $0x88c] sm:$0xf]  ;;  %v9400_v5 = vor.u32 %v11142_v57, %v9397_v58  ;;  %4643 = vmatpush.bf16.msra.mxu0 %v9144_v4  ;;  %v10859_v57 = vld [vmem:[#allocation6 + $0x5ec] sm:$0xf0]  ;;  %v4363_v4 = vadd.f32 %v4362_v62, %v1674_v49 }
 0x297   :  { %v8597_v3 = vld [vmem:[#allocation6 + $0x8a8] sm:$0xf0]  ;;  %v8507_v58 = vld [vmem:[#allocation6 + $0x7d0] sm:$0xf] }
 0x298   :  { %v11006_v8 = vld [vmem:[#allocation6 + $0xa8c] sm:$0xf]  ;;  %v8600_v15 = vor.u32 %v10942_v2, %v8597_v3  ;;  %4656 = vmatpush.bf16.msra.mxu1 %v9400_v5  ;;  %v7740_v2 = vor.u32 %v10731_v46, %v7739_v45  ;;  %v7996_v3 = vor.u32 %v10795_v51, %v7995_v50  ;;  %v10723_v5 = vld [vmem:[#allocation6 + $0x1ac] sm:$0xf0] }
 0x299   :  { %v8853_v9 = vld [vmem:[#allocation6 + $0xaa8] sm:$0xf0]  ;;  %v10771_v45 = vld [vmem:[#allocation6 + $0x32c] sm:$0xf0] }
 0x29a   :  { %v11070_v10 = vld [vmem:[#allocation6 + $0xc8c] sm:$0xf]  ;;  %v8856_v16 = vor.u32 %v11006_v8, %v8853_v9  ;;  %4618 = vmatpush.bf16.msrb.mxu2 %v8600_v15  ;;  %v8252_v8 = vor.u32 %v10859_v57, %v8251_v52  ;;  %v8508_v9 = vor.u32 %v10923_v59, %v8507_v58  ;;  %v4403_v15 = vpop.f32.mrf.mxu1  ;;  %v8155_v46 = vld [vmem:[#allocation6 + $0x510] sm:$0xf] }
 0x29b   :  { %v9109_v11 = vld [vmem:[#allocation6 + $0xca8] sm:$0xf0]  ;;  %v8411_v49 = vld [vmem:[#allocation6 + $0x710] sm:$0xf] }
 0x29c   :  { %v11134_v12 = vld [vmem:[#allocation6 + $0xe8c] sm:$0xf]  ;;  %v9112_v22 = vor.u32 %v11070_v10, %v9109_v11  ;;  %4631 = vmatpush.bf16.msrb.mxu3 %v8856_v16  ;;  %v7963_v10 = vld [vmem:[#allocation6 + $0x390] sm:$0xf] }
 0x29d   :  { %v9365_v13 = vld [vmem:[#allocation6 + $0xea8] sm:$0xf0]  ;;  %v8219_v11 = vld [vmem:[#allocation6 + $0x590] sm:$0xf]  ;;  %v7964_v24 = vor.u32 %v10787_v25, %v7963_v10 }
 0x29e   :  { %v10934_v17 = vld [vmem:[#allocation6 + $0x84c] sm:$0xf]  ;;  %v9368_v23 = vor.u32 %v11134_v12, %v9365_v13  ;;  %4644 = vmatpush.bf16.msra.mxu0 %v9112_v22  ;;  %v4376_v12 = vadd.f32 %v4375_v63, %v4363_v4  ;;  %v4390_v13 = vpop.f32.mrf.mxu0  ;;  %v10851_v16 = vld [vmem:[#allocation6 + $0x5ac] sm:$0xf0] }
 0x29f   :  { %v8565_v18 = vld [vmem:[#allocation6 + $0x868] sm:$0xf0]  ;;  %v10899_v50 = vld [vmem:[#allocation6 + $0x72c] sm:$0xf0] }
 0x2a0   :  { %v10998_v26 = vld [vmem:[#allocation6 + $0xa4c] sm:$0xf]  ;;  %v8568_v34 = vor.u32 %v10934_v17, %v8565_v18  ;;  %4657 = vmatpush.bf16.msra.mxu1 %v9368_v23  ;;  %v8475_v17 = vld [vmem:[#allocation6 + $0x790] sm:$0xf]  ;;  %v4389_v22 = vadd.f32 %v4388_v21, %v4376_v12  ;;  %v7708_v23 = vor.u32 %v10723_v5, %v7707_v19  ;;  %v4364_v21 = vpop.f32.mrf.mxu2 }
 0x2a1   :  { %v8821_v27 = vld [vmem:[#allocation6 + $0xa68] sm:$0xf0]  ;;  %v10915_v18 = vld [vmem:[#allocation6 + $0x7ac] sm:$0xf0] }
 0x2a2   :  { %v11062_v28 = vld [vmem:[#allocation6 + $0xc4c] sm:$0xf]  ;;  %v8824_v35 = vor.u32 %v10998_v26, %v8821_v27  ;;  %4619 = vmatpush.bf16.msrb.mxu2 %v8568_v34  ;;  %v10715_v26 = vld [vmem:[#allocation6 + $0x16c] sm:$0xf0]  ;;  %v8220_v27 = vor.u32 %v10851_v16, %v8219_v11  ;;  %v4453_v52 = vpop.f32.mrf.mxu1 }
 0x2a3   :  { %v9077_v29 = vld [vmem:[#allocation6 + $0xc68] sm:$0xf0]  ;;  %v10907_v34 = vld [vmem:[#allocation6 + $0x76c] sm:$0xf0] }
 0x2a4   :  { %v11126_v31 = vld [vmem:[#allocation6 + $0xe4c] sm:$0xf]  ;;  %v9080_v40 = vor.u32 %v11062_v28, %v9077_v29  ;;  %4632 = vmatpush.bf16.msrb.mxu3 %v8824_v35  ;;  %v8476_v28 = vor.u32 %v10915_v18, %v8475_v17  ;;  %v7931_v29 = vld [vmem:[#allocation6 + $0x350] sm:$0xf]  ;;  %v4402_v35 = vadd.f32 %v12076_v36, %v4389_v22 }
 0x2a5   :  { %v9333_v32 = vld [vmem:[#allocation6 + $0xe68] sm:$0xf0]  ;;  %v10835_v36 = vld [vmem:[#allocation6 + $0x52c] sm:$0xf0] }
 0x2a6   :  { %v10926_v30 = vld [vmem:[#allocation6 + $0x80c] sm:$0xf]  ;;  %v9336_v41 = vor.u32 %v11126_v31, %v9333_v32  ;;  %4645 = vmatpush.bf16.msra.mxu0 %v9080_v40  ;;  %v10779_v31 = vld [vmem:[#allocation6 + $0x36c] sm:$0xf0]  ;;  %v4440_v51 = vpop.f32.mrf.mxu0  ;;  %v8156_v59 = vor.u32 %v10835_v36, %v8155_v46 }
 0x2a7   :  { %v8533_v33 = vld [vmem:[#allocation6 + $0x828] sm:$0xf0]  ;;  %v8187_v32 = vld [vmem:[#allocation6 + $0x550] sm:$0xf] }
 0x2a8   :  { %v10990_v37 = vld [vmem:[#allocation6 + $0xa0c] sm:$0xf]  ;;  %v8536_v55 = vor.u32 %v10926_v30, %v8533_v33  ;;  %4658 = vmatpush.bf16.msra.mxu1 %v9336_v41  ;;  %v10843_v30 = vld [vmem:[#allocation6 + $0x56c] sm:$0xf0]  ;;  %v4414_v11 = vpop.f32.mrf.mxu2 }
 0x2a9   :  { %v8789_v38 = vld [vmem:[#allocation6 + $0xa28] sm:$0xf0]  ;;  %v8443_v33 = vld [vmem:[#allocation6 + $0x750] sm:$0xf]  ;;  %v4415_v17 = vadd.f32 %v4414_v11, %v4402_v35 }
 0x2aa   :  { %v11054_v39 = vld [vmem:[#allocation6 + $0xc0c] sm:$0xf]  ;;  %v8792_v56 = vor.u32 %v10990_v37, %v8789_v38  ;;  %4620 = vmatpush.bf16.msrb.mxu2 %v8536_v55  ;;  %v4377_v37 = vpop.f32.mrf.mxu3  ;;  %v7676_v38 = vor.u32 %v10715_v26, %v7675_v20  ;;  %v7643_v40 = vld [vmem:[#allocation6 + $0x110] sm:$0xf]  ;;  %v4455_v26 = vpop.f32.mrf.mxu1 }
 0x2ab   :  { %v9045_v42 = vld [vmem:[#allocation6 + $0xc28] sm:$0xf0]  ;;  %v10707_v41 = vld [vmem:[#allocation6 + $0x12c] sm:$0xf0] }
 0x2ac   :  { %v11118_v43 = vld [vmem:[#allocation6 + $0xe0c] sm:$0xf]  ;;  %v9048_v60 = vor.u32 %v11054_v39, %v9045_v42  ;;  %4633 = vmatpush.bf16.msrb.mxu3 %v8792_v56  ;;  %v7932_v39 = vor.u32 %v10779_v31, %v7931_v29  ;;  %v8188_v42 = vor.u32 %v10843_v30, %v8187_v32  ;;  %v7644_v55 = vor.u32 %v10707_v41, %v7643_v40  ;;  %v7611_v57 = vld [vmem:[#allocation6 + $0xd0] sm:$0xf] }
 0x2ad   :  { %v9301_v44 = vld [vmem:[#allocation6 + $0xe28] sm:$0xf0]  ;;  %4621 = vmatmul.bf16.vlgmr.msrb.gmra.mxu2 %v12033_v47  ;;  %v10699_v58 = vld [vmem:[#allocation6 + $0xec] sm:$0xf0] }
 0x2ae   :  { %v9304_v61 = vor.u32 %v11118_v43, %v9301_v44  ;;  %4646 = vmatpush.bf16.msra.mxu0 %v9048_v60  ;;  %4665 = vmatpush.bf16.msra.mxu2 %v7740_v2  ;;  %v8444_v43 = vor.u32 %v10907_v34, %v8443_v33  ;;  %v7899_v44 = vld [vmem:[#allocation6 + $0x310] sm:$0xf]  ;;  %v8412_v60 = vor.u32 %v10899_v50, %v8411_v49  ;;  %v4442_v20 = vpop.f32.mrf.mxu0 }
 0x2af   :  { %4634 = vmatmul.bf16.vlgmr.msrb.gmra.mxu3 %v12035_v48  ;;  %v7900_v56 = vor.u32 %v10771_v45, %v7899_v44  ;;  %v10763_v62 = vld [vmem:[#allocation6 + $0x2ec] sm:$0xf0]  ;;  %v7612_v19 = vor.u32 %v10699_v58, %v7611_v57 }
 0x2b0   :  { %4659 = vmatpush.bf16.msra.mxu1 %v9304_v61  ;;  %4678 = vmatpush.bf16.msra.mxu3 %v7996_v3  ;;  %v7867_v61 = vld [vmem:[#allocation6 + $0x2d0] sm:$0xf]  ;;  %v4416_v50 = vpop.f32.mrf.mxu2 }
 0x2b1   :  { %4647 = vmatmul.bf16.vlgmr.msra.gmra.mxu0 %v12037_v53  ;;  %v8123_v63 = vld [vmem:[#allocation6 + $0x4d0] sm:$0xf]  ;;  %v7868_v5 = vor.u32 %v10763_v62, %v7867_v61 }
 0x2b2   :  { %4691 = vmatpush.bf16.msrb.mxu0 %v8252_v8  ;;  %4666 = vmatpush.bf16.msra.mxu2 %v7708_v23  ;;  %v10827_v2 = vld [vmem:[#allocation6 + $0x4ec] sm:$0xf0]  ;;  %v4427_v12 = vpop.f32.mrf.mxu3 }
 0x2b3   :  { %4660 = vmatmul.bf16.vlgmr.msra.gmra.mxu1 %v12039_v54  ;;  %v8379_v3 = vld [vmem:[#allocation6 + $0x6d0] sm:$0xf]  ;;  %v8124_v10 = vor.u32 %v10827_v2, %v8123_v63 }
 0x2b4   :  { %4704 = vmatpush.bf16.msrb.mxu1 %v8508_v9  ;;  %4679 = vmatpush.bf16.msra.mxu3 %v7964_v24  ;;  %v10891_v4 = vld [vmem:[#allocation6 + $0x6ec] sm:$0xf0]  ;;  %v4428_v24 = vadd.f32 %v4427_v12, %v4415_v17 }
 0x2b5   :  { %v7579_v8 = vld [vmem:[#allocation6 + $0x90] sm:$0xf]  ;;  %v8380_v25 = vor.u32 %v10891_v4, %v8379_v3 }
 0x2b6   :  { %4692 = vmatpush.bf16.msrb.mxu0 %v8220_v27  ;;  %4667 = vmatpush.bf16.msra.mxu2 %v7676_v38  ;;  %v10691_v9 = vld [vmem:[#allocation6 + $0xac] sm:$0xf0]  ;;  %v4441_v35 = vadd.f32 %v4440_v51, %v4428_v24  ;;  %v4492_v50 = vpop.f32.mrf.mxu0 }
 0x2b7   :  { %v7835_v13 = vld [vmem:[#allocation6 + $0x290] sm:$0xf]  ;;  %v7580_v27 = vor.u32 %v10691_v9, %v7579_v8 }
 0x2b8   :  { %4705 = vmatpush.bf16.msrb.mxu1 %v8476_v28  ;;  %4680 = vmatpush.bf16.msra.mxu3 %v7932_v39  ;;  %v10755_v15 = vld [vmem:[#allocation6 + $0x2ac] sm:$0xf0]  ;;  %v12084_v41 = vadd.f32 %v4453_v52, %v4441_v35 }
 0x2b9   :  { %v8091_v16 = vld [vmem:[#allocation6 + $0x490] sm:$0xf]  ;;  %v7836_v28 = vor.u32 %v10755_v15, %v7835_v13 }
 0x2ba   :  { %4693 = vmatpush.bf16.msrb.mxu0 %v8188_v42  ;;  %4668 = vmatpush.bf16.msra.mxu2 %v7644_v55  ;;  %v10819_v18 = vld [vmem:[#allocation6 + $0x4ac] sm:$0xf0]  ;;  %v4429_v55 = vpop.f32.mrf.mxu3 }
 0x2bb   :  { %v8347_v22 = vld [vmem:[#allocation6 + $0x690] sm:$0xf]  ;;  %v8092_v32 = vor.u32 %v10819_v18, %v8091_v16  ;;  %v12090_v55 = vpop.f32.mrf.mxu1 }
 0x2bc   :  { %4706 = vmatpush.bf16.msrb.mxu1 %v8444_v43  ;;  %4681 = vmatpush.bf16.msra.mxu3 %v7900_v56  ;;  %v10883_v23 = vld [vmem:[#allocation6 + $0x6ac] sm:$0xf0] }
 0x2bd   :  { %v7547_v29 = vld [vmem:[#allocation6 + $0x50] sm:$0xf]  ;;  %v8348_v30 = vor.u32 %v10883_v23, %v8347_v22 }
 0x2be   :  { %4694 = vmatpush.bf16.msrb.mxu0 %v8156_v59  ;;  %4669 = vmatpush.bf16.msra.mxu2 %v7612_v19  ;;  %v10683_v31 = vld [vmem:[#allocation6 + $0x6c] sm:$0xf0] }
 0x2bf   :  { %v7803_v33 = vld [vmem:[#allocation6 + $0x250] sm:$0xf]  ;;  %v7548_v42 = vor.u32 %v10683_v31, %v7547_v29 }
 0x2c0   :  { %4707 = vmatpush.bf16.msrb.mxu1 %v8412_v60  ;;  %4682 = vmatpush.bf16.msra.mxu3 %v7868_v5  ;;  %v10747_v34 = vld [vmem:[#allocation6 + $0x26c] sm:$0xf0] }
 0x2c1   :  { %v8059_v21 = vld [vmem:[#allocation6 + $0x450] sm:$0xf]  ;;  %v7804_v43 = vor.u32 %v10747_v34, %v7803_v33 }
 0x2c2   :  { %4695 = vmatpush.bf16.msrb.mxu0 %v8124_v10  ;;  %v10811_v37 = vld [vmem:[#allocation6 + $0x46c] sm:$0xf0]  ;;  %4670 = vmatpush.bf16.msra.mxu2 %v7580_v27 }
 0x2c3   :  { %v8315_v38 = vld [vmem:[#allocation6 + $0x650] sm:$0xf]  ;;  %v8060_v36 = vor.u32 %v10811_v37, %v8059_v21 }
 0x2c4   :  { %4708 = vmatpush.bf16.msrb.mxu1 %v8380_v25  ;;  %v10875_v39 = vld [vmem:[#allocation6 + $0x66c] sm:$0xf0]  ;;  %4683 = vmatpush.bf16.msra.mxu3 %v7836_v28 }
 0x2c5   :  { %v7515_v40 = vld [vmem:[#allocation6 + $0x10] sm:$0xf]  ;;  %v8316_v49 = vor.u32 %v10875_v39, %v8315_v38 }
 0x2c6   :  { %v10675_v44 = vld [vmem:[#allocation6 + $0x2c] sm:$0xf0]  ;;  %4696 = vmatpush.bf16.msrb.mxu0 %v8092_v32  ;;  %4671 = vmatpush.bf16.msra.mxu2 %v7548_v42 }
 0x2c7   :  { %v7771_v45 = vld [vmem:[#allocation6 + $0x210] sm:$0xf]  ;;  %v7516_v63 = vor.u32 %v10675_v44, %v7515_v40 }
 0x2c8   :  { %v10739_v46 = vld [vmem:[#allocation6 + $0x22c] sm:$0xf0]  ;;  %4709 = vmatpush.bf16.msrb.mxu1 %v8348_v30  ;;  %4684 = vmatpush.bf16.msra.mxu3 %v7804_v43 }
 0x2c9   :  { %v8027_v51 = vld [vmem:[#allocation6 + $0x410] sm:$0xf]  ;;  %v7772_v2 = vor.u32 %v10739_v46, %v7771_v45 }
 0x2ca   :  { %v10803_v56 = vld [vmem:[#allocation6 + $0x42c] sm:$0xf0]  ;;  %4697 = vmatpush.bf16.msrb.mxu0 %v8060_v36  ;;  %4672 = vmatpush.bf16.msra.mxu2 %v7516_v63 }
 0x2cb   :  { %v8283_v57 = vld [vmem:[#allocation6 + $0x610] sm:$0xf]  ;;  %v8028_v5 = vor.u32 %v10803_v56, %v8027_v51 }
 0x2cc   :  { %v10867_v58 = vld [vmem:[#allocation6 + $0x62c] sm:$0xf0]  ;;  %4710 = vmatpush.bf16.msrb.mxu1 %v8316_v49  ;;  %4685 = vmatpush.bf16.msra.mxu3 %v7772_v2 }
 0x2cd   :  { %v8763_v59 = vld [vmem:[#allocation6 + $0x9d0] sm:$0xf]  ;;  %v8284_v8 = vor.u32 %v10867_v58, %v8283_v57  ;;  %4673 = vmatmul.bf16.vlgmr.msra.gmra.mxu2 %v12019_v0 }
 0x2ce   :  { %v10987_v52 = vld [vmem:[#allocation6 + $0x9ec] sm:$0xf0]  ;;  %4698 = vmatpush.bf16.msrb.mxu0 %v8028_v5 }
 0x2cf   :  { %v9019_v60 = vld [vmem:[#allocation6 + $0xbd0] sm:$0xf]  ;;  %v8764_v9 = vor.u32 %v10987_v52, %v8763_v59  ;;  %4686 = vmatmul.bf16.vlgmr.msra.gmra.mxu3 %v12021_v1 }
 0x2d0   :  { %v11051_v61 = vld [vmem:[#allocation6 + $0xbec] sm:$0xf0]  ;;  %4711 = vmatpush.bf16.msrb.mxu1 %v8284_v8 }
 0x2d1   :  { %v9275_v62 = vld [vmem:[#allocation6 + $0xdd0] sm:$0xf]  ;;  %v9020_v10 = vor.u32 %v11051_v61, %v9019_v60  ;;  %4717 = vmatpush.bf16.msrb.mxu2 %v8764_v9  ;;  %4699 = vmatmul.bf16.vlgmr.msrb.gmra.mxu0 %v12023_v6 }
 0x2d2   :  { %v11115_v3 = vld [vmem:[#allocation6 + $0xdec] sm:$0xf0] }
 0x2d3   :  { %v9531_v4 = vld [vmem:[#allocation6 + $0xfd0] sm:$0xf]  ;;  %v9276_v12 = vor.u32 %v11115_v3, %v9275_v62  ;;  %4730 = vmatpush.bf16.msrb.mxu3 %v9020_v10  ;;  %4712 = vmatmul.bf16.vlgmr.msrb.gmra.mxu1 %v12025_v7 }
 0x2d4   :  { %v11179_v19 = vld [vmem:[#allocation6 + $0xfec] sm:$0xf0] }
 0x2d5   :  { %v8731_v25 = vld [vmem:[#allocation6 + $0x990] sm:$0xf]  ;;  %v9532_v13 = vor.u32 %v11179_v19, %v9531_v4  ;;  %4743 = vmatpush.bf16.msra.mxu0 %v9276_v12  ;;  %v12092_v4 = vld [vmem:[#allocation8] sm:$0xff]  ;;  %v4466_v12 = vpop.f32.mrf.mxu2 }
 0x2d6   :  { %v10979_v11 = vld [vmem:[#allocation6 + $0x9ac] sm:$0xf0]  ;;  %v1675_v19 = vperm.slane %v12092_v4, 2 }
 0x2d7   :  { %v8987_v15 = vld [vmem:[#allocation6 + $0xb90] sm:$0xf]  ;;  %v8732_v24 = vor.u32 %v10979_v11, %v8731_v25  ;;  %4756 = vmatpush.bf16.msra.mxu1 %v9532_v13  ;;  %v4479_v13 = vpop.f32.mrf.mxu3 }
 0x2d8   :  { %v11043_v16 = vld [vmem:[#allocation6 + $0xbac] sm:$0xf0] }
 0x2d9   :  { %v9243_v17 = vld [vmem:[#allocation6 + $0xd90] sm:$0xf]  ;;  %v8988_v20 = vor.u32 %v11043_v16, %v8987_v15  ;;  %4718 = vmatpush.bf16.msrb.mxu2 %v8732_v24 }
 0x2da   :  { %v11107_v18 = vld [vmem:[#allocation6 + $0xdac] sm:$0xf0] }
 0x2db   :  { %v9499_v22 = vld [vmem:[#allocation6 + $0xf90] sm:$0xf]  ;;  %v9244_v28 = vor.u32 %v11107_v18, %v9243_v17  ;;  %4731 = vmatpush.bf16.msrb.mxu3 %v8988_v20  ;;  %v4467_v18 = vadd.f32 %v4466_v12, %v1675_v19 }
 0x2dc   :  { %v11171_v23 = vld [vmem:[#allocation6 + $0xfac] sm:$0xf0] }
 0x2dd   :  { %v8699_v26 = vld [vmem:[#allocation6 + $0x950] sm:$0xf]  ;;  %v9500_v29 = vor.u32 %v11171_v23, %v9499_v22  ;;  %4744 = vmatpush.bf16.msra.mxu0 %v9244_v28  ;;  %v4480_v20 = vadd.f32 %v4479_v13, %v4467_v18  ;;  %v10719_v13 = vld [vmem:[#allocation6 + $0x194] sm:$0xf] }
 0x2de   :  { %v10971_v27 = vld [vmem:[#allocation6 + $0x96c] sm:$0xf0]  ;;  %v10783_v18 = vld [vmem:[#allocation6 + $0x394] sm:$0xf] }
 0x2df   :  { %v8955_v31 = vld [vmem:[#allocation6 + $0xb50] sm:$0xf]  ;;  %v8700_v35 = vor.u32 %v10971_v27, %v8699_v26  ;;  %4757 = vmatpush.bf16.msra.mxu1 %v9500_v29  ;;  %v4494_v26 = vpop.f32.mrf.mxu0  ;;  %v4507_v27 = vpop.f32.mrf.mxu1 }
 0x2e0   :  { %v11035_v32 = vld [vmem:[#allocation6 + $0xb6c] sm:$0xf0]  ;;  %v8477_v26 = vld [vmem:[#allocation6 + $0x7b0] sm:$0xf0] }
 0x2e1   :  { %v9211_v30 = vld [vmem:[#allocation6 + $0xd50] sm:$0xf]  ;;  %v8956_v37 = vor.u32 %v11035_v32, %v8955_v31  ;;  %4719 = vmatpush.bf16.msrb.mxu2 %v8700_v35 }
 0x2e2   :  { %v11099_v33 = vld [vmem:[#allocation6 + $0xd6c] sm:$0xf0] }
 0x2e3   :  { %v9467_v34 = vld [vmem:[#allocation6 + $0xf50] sm:$0xf]  ;;  %v9212_v40 = vor.u32 %v11099_v33, %v9211_v30  ;;  %4732 = vmatpush.bf16.msrb.mxu3 %v8956_v37  ;;  %v4493_v37 = vadd.f32 %v4492_v50, %v4480_v20  ;;  %v4481_v50 = vpop.f32.mrf.mxu3  ;;  %v10911_v20 = vld [vmem:[#allocation6 + $0x794] sm:$0xf] }
 0x2e4   :  { %v11163_v21 = vld [vmem:[#allocation6 + $0xf6c] sm:$0xf0]  ;;  %v8413_v50 = vld [vmem:[#allocation6 + $0x730] sm:$0xf0] }
 0x2e5   :  { %v8667_v38 = vld [vmem:[#allocation6 + $0x910] sm:$0xf]  ;;  %v9468_v42 = vor.u32 %v11163_v21, %v9467_v34  ;;  %4745 = vmatpush.bf16.msra.mxu0 %v9212_v40 }
 0x2e6   :  { %v10963_v39 = vld [vmem:[#allocation6 + $0x92c] sm:$0xf0] }
 0x2e7   :  { %v8923_v43 = vld [vmem:[#allocation6 + $0xb10] sm:$0xf]  ;;  %v8668_v51 = vor.u32 %v10963_v39, %v8667_v38  ;;  %4758 = vmatpush.bf16.msra.mxu1 %v9468_v42 }
 0x2e8   :  { %v11027_v44 = vld [vmem:[#allocation6 + $0xb2c] sm:$0xf0] }
 0x2e9   :  { %v9179_v45 = vld [vmem:[#allocation6 + $0xd10] sm:$0xf]  ;;  %v8924_v56 = vor.u32 %v11027_v44, %v8923_v43  ;;  %4720 = vmatpush.bf16.msrb.mxu2 %v8668_v51 }
 0x2ea   :  { %v11091_v46 = vld [vmem:[#allocation6 + $0xd2c] sm:$0xf0] }
 0x2eb   :  { %v9435_v36 = vld [vmem:[#allocation6 + $0xf10] sm:$0xf]  ;;  %v9180_v52 = vor.u32 %v11091_v46, %v9179_v45  ;;  %4733 = vmatpush.bf16.msrb.mxu3 %v8924_v56 }
 0x2ec   :  { %v11155_v49 = vld [vmem:[#allocation6 + $0xf2c] sm:$0xf0] }
 0x2ed   :  { %v8635_v57 = vld [vmem:[#allocation6 + $0x8d0] sm:$0xf]  ;;  %v9436_v60 = vor.u32 %v11155_v49, %v9435_v36  ;;  %4746 = vmatpush.bf16.msra.mxu0 %v9180_v52  ;;  %v12096_v49 = vadd.f32 %v12090_v55, %v4493_v37  ;;  %v10903_v37 = vld [vmem:[#allocation6 + $0x754] sm:$0xf] }
 0x2ee   :  { %v10955_v58 = vld [vmem:[#allocation6 + $0x8ec] sm:$0xf0] }
 0x2ef   :  { %v8891_v59 = vld [vmem:[#allocation6 + $0xad0] sm:$0xf]  ;;  %v8636_v5 = vor.u32 %v10955_v58, %v8635_v57  ;;  %4759 = vmatpush.bf16.msra.mxu1 %v9436_v60  ;;  %v4468_v57 = vpop.f32.mrf.mxu2 }
 0x2f0   :  { %v11019_v61 = vld [vmem:[#allocation6 + $0xaec] sm:$0xf0]  ;;  %v10895_v57 = vld [vmem:[#allocation6 + $0x714] sm:$0xf] }
 0x2f1   :  { %v9147_v62 = vld [vmem:[#allocation6 + $0xcd0] sm:$0xf]  ;;  %v8892_v8 = vor.u32 %v11019_v61, %v8891_v59  ;;  %4721 = vmatpush.bf16.msrb.mxu2 %v8636_v5  ;;  %v10727_v61 = vld [vmem:[#allocation6 + $0x1d4] sm:$0xf] }
 0x2f2   :  { %v11083_v63 = vld [vmem:[#allocation6 + $0xcec] sm:$0xf0]  ;;  %v8253_v5 = vld [vmem:[#allocation6 + $0x5f0] sm:$0xf0] }
 0x2f3   :  { %v9403_v2 = vld [vmem:[#allocation6 + $0xed0] sm:$0xf]  ;;  %v9148_v25 = vor.u32 %v11083_v63, %v9147_v62  ;;  %4734 = vmatpush.bf16.msrb.mxu3 %v8892_v8  ;;  %v7741_v62 = vld [vmem:[#allocation6 + $0x1f0] sm:$0xf0] }
 0x2f4   :  { %v11147_v3 = vld [vmem:[#allocation6 + $0xeec] sm:$0xf0]  ;;  %v10791_v63 = vld [vmem:[#allocation6 + $0x3d4] sm:$0xf] }
 0x2f5   :  { %v8603_v9 = vld [vmem:[#allocation6 + $0x890] sm:$0xf]  ;;  %v9404_v11 = vor.u32 %v11147_v3, %v9403_v2  ;;  %4747 = vmatpush.bf16.msra.mxu0 %v9148_v25  ;;  %v7997_v2 = vld [vmem:[#allocation6 + $0x3f0] sm:$0xf0] }
 0x2f6   :  { %v10947_v10 = vld [vmem:[#allocation6 + $0x8ac] sm:$0xf0]  ;;  %v10855_v3 = vld [vmem:[#allocation6 + $0x5d4] sm:$0xf]  ;;  %v8000_v12 = vor.u32 %v10791_v63, %v7997_v2  ;;  %v8416_v2 = vor.u32 %v10895_v57, %v8413_v50 }
 0x2f7   :  { %v8859_v15 = vld [vmem:[#allocation6 + $0xa90] sm:$0xf]  ;;  %v8604_v28 = vor.u32 %v10947_v10, %v8603_v9  ;;  %4760 = vmatpush.bf16.msra.mxu1 %v9404_v11  ;;  %v10919_v8 = vld [vmem:[#allocation6 + $0x7d4] sm:$0xf]  ;;  %v7744_v11 = vor.u32 %v10727_v61, %v7741_v62 }
 0x2f8   :  { %v11011_v16 = vld [vmem:[#allocation6 + $0xaac] sm:$0xf0]  ;;  %v8509_v9 = vld [vmem:[#allocation6 + $0x7f0] sm:$0xf0] }
 0x2f9   :  { %v9115_v17 = vld [vmem:[#allocation6 + $0xc90] sm:$0xf]  ;;  %v8860_v29 = vor.u32 %v11011_v16, %v8859_v15  ;;  %4722 = vmatpush.bf16.msrb.mxu2 %v8604_v28  ;;  %v7709_v15 = vld [vmem:[#allocation6 + $0x1b0] sm:$0xf0]  ;;  %v8256_v16 = vor.u32 %v10855_v3, %v8253_v5 }
 0x2fa   :  { %v11075_v22 = vld [vmem:[#allocation6 + $0xcac] sm:$0xf0]  ;;  %v7712_v27 = vor.u32 %v10719_v13, %v7709_v15  ;;  %v10695_v61 = vld [vmem:[#allocation6 + $0xd4] sm:$0xf] }
 0x2fb   :  { %v9371_v23 = vld [vmem:[#allocation6 + $0xe90] sm:$0xf]  ;;  %v9116_v30 = vor.u32 %v11075_v22, %v9115_v17  ;;  %4735 = vmatpush.bf16.msrb.mxu3 %v8860_v29  ;;  %v8512_v17 = vor.u32 %v10919_v8, %v8509_v9  ;;  %v7965_v22 = vld [vmem:[#allocation6 + $0x3b0] sm:$0xf0] }
 0x2fc   :  { %v11139_v24 = vld [vmem:[#allocation6 + $0xeac] sm:$0xf0]  ;;  %v7968_v28 = vor.u32 %v10783_v18, %v7965_v22  ;;  %v10711_v29 = vld [vmem:[#allocation6 + $0x154] sm:$0xf] }
 0x2fd   :  { %v8571_v31 = vld [vmem:[#allocation6 + $0x850] sm:$0xf]  ;;  %v9372_v33 = vor.u32 %v11139_v24, %v9371_v23  ;;  %4748 = vmatpush.bf16.msra.mxu0 %v9116_v30  ;;  %v10847_v23 = vld [vmem:[#allocation6 + $0x594] sm:$0xf]  ;;  %v8480_v30 = vor.u32 %v10911_v20, %v8477_v26 }
 0x2fe   :  { %v10939_v32 = vld [vmem:[#allocation6 + $0x86c] sm:$0xf0]  ;;  %v8221_v24 = vld [vmem:[#allocation6 + $0x5b0] sm:$0xf0] }
 0x2ff   :  { %v8827_v34 = vld [vmem:[#allocation6 + $0xa50] sm:$0xf]  ;;  %v8572_v43 = vor.u32 %v10939_v32, %v8571_v31  ;;  %4761 = vmatpush.bf16.msra.mxu1 %v9372_v33  ;;  %v7677_v31 = vld [vmem:[#allocation6 + $0x170] sm:$0xf0]  ;;  %v8224_v32 = vor.u32 %v10847_v23, %v8221_v24 }
 0x300   :  { %v11003_v21 = vld [vmem:[#allocation6 + $0xa6c] sm:$0xf0]  ;;  %v10775_v33 = vld [vmem:[#allocation6 + $0x354] sm:$0xf] }
 0x301   :  { %v9083_v35 = vld [vmem:[#allocation6 + $0xc50] sm:$0xf]  ;;  %v8828_v44 = vor.u32 %v11003_v21, %v8827_v34  ;;  %4723 = vmatpush.bf16.msrb.mxu2 %v8572_v43  ;;  %v7933_v34 = vld [vmem:[#allocation6 + $0x370] sm:$0xf0] }
 0x302   :  { %v11067_v38 = vld [vmem:[#allocation6 + $0xc6c] sm:$0xf0]  ;;  %v10839_v21 = vld [vmem:[#allocation6 + $0x554] sm:$0xf] }
 0x303   :  { %v9339_v39 = vld [vmem:[#allocation6 + $0xe50] sm:$0xf]  ;;  %v9084_v51 = vor.u32 %v11067_v38, %v9083_v35  ;;  %4736 = vmatpush.bf16.msrb.mxu3 %v8828_v44  ;;  %v8189_v35 = vld [vmem:[#allocation6 + $0x570] sm:$0xf0] }
 0x304   :  { %v11131_v40 = vld [vmem:[#allocation6 + $0xe6c] sm:$0xf0]  ;;  %v8445_v38 = vld [vmem:[#allocation6 + $0x770] sm:$0xf0]  ;;  %v8192_v44 = vor.u32 %v10839_v21, %v8189_v35 }
 0x305   :  { %v8539_v42 = vld [vmem:[#allocation6 + $0x810] sm:$0xf]  ;;  %v9340_v56 = vor.u32 %v11131_v40, %v9339_v39  ;;  %4749 = vmatpush.bf16.msra.mxu0 %v9084_v51  ;;  %v7680_v39 = vor.u32 %v10711_v29, %v7677_v31  ;;  %v7936_v40 = vor.u32 %v10775_v33, %v7933_v34  ;;  %v7645_v43 = vld [vmem:[#allocation6 + $0x130] sm:$0xf0] }
 0x306   :  { %v10931_v45 = vld [vmem:[#allocation6 + $0x82c] sm:$0xf0]  ;;  %v10831_v51 = vld [vmem:[#allocation6 + $0x514] sm:$0xf] }
 0x307   :  { %v8795_v46 = vld [vmem:[#allocation6 + $0xa10] sm:$0xf]  ;;  %v8540_v19 = vor.u32 %v10931_v45, %v8539_v42  ;;  %4762 = vmatpush.bf16.msra.mxu1 %v9340_v56  ;;  %v10703_v42 = vld [vmem:[#allocation6 + $0x114] sm:$0xf]  ;;  %v8448_v45 = vor.u32 %v10903_v37, %v8445_v38 }
 0x308   :  { %v10995_v36 = vld [vmem:[#allocation6 + $0xa2c] sm:$0xf0]  ;;  %v8157_v56 = vld [vmem:[#allocation6 + $0x530] sm:$0xf0] }
 0x309   :  { %v9051_v58 = vld [vmem:[#allocation6 + $0xc10] sm:$0xf]  ;;  %v8796_v55 = vor.u32 %v10995_v36, %v8795_v46  ;;  %4724 = vmatpush.bf16.msrb.mxu2 %v8540_v19  ;;  %v10767_v46 = vld [vmem:[#allocation6 + $0x314] sm:$0xf]  ;;  %v8160_v63 = vor.u32 %v10831_v51, %v8157_v56 }
 0x30a   :  { %v11059_v59 = vld [vmem:[#allocation6 + $0xc2c] sm:$0xf0]  ;;  %v7901_v36 = vld [vmem:[#allocation6 + $0x330] sm:$0xf0] }
 0x30b   :  { %v9307_v52 = vld [vmem:[#allocation6 + $0xe10] sm:$0xf]  ;;  %v9052_v10 = vor.u32 %v11059_v59, %v9051_v58  ;;  %4737 = vmatpush.bf16.msrb.mxu3 %v8796_v55  ;;  %v4544_v58 = vpop.f32.mrf.mxu0  ;;  %v4557_v59 = vpop.f32.mrf.mxu1  ;;  %v7613_v62 = vld [vmem:[#allocation6 + $0xf0] sm:$0xf0] }
 0x30c   :  { %v11123_v60 = vld [vmem:[#allocation6 + $0xe2c] sm:$0xf0]  ;;  %4725 = vmatmul.bf16.vlgmr.msrb.gmra.mxu2 %v12033_v47  ;;  %v10759_v3 = vld [vmem:[#allocation6 + $0x2d4] sm:$0xf] }
 0x30d   :  { %v9308_v25 = vor.u32 %v11123_v60, %v9307_v52  ;;  %4750 = vmatpush.bf16.msra.mxu0 %v9052_v10  ;;  %4769 = vmatpush.bf16.msra.mxu2 %v7744_v11  ;;  %v7648_v52 = vor.u32 %v10703_v42, %v7645_v43  ;;  %v7904_v60 = vor.u32 %v10767_v46, %v7901_v36  ;;  %v7869_v19 = vld [vmem:[#allocation6 + $0x2f0] sm:$0xf0] }
 0x30e   :  { %4738 = vmatmul.bf16.vlgmr.msrb.gmra.mxu3 %v12035_v48  ;;  %v10823_v55 = vld [vmem:[#allocation6 + $0x4d4] sm:$0xf]  ;;  %v7616_v10 = vor.u32 %v10695_v61, %v7613_v62 }
 0x30f   :  { %4763 = vmatpush.bf16.msra.mxu1 %v9308_v25  ;;  %4782 = vmatpush.bf16.msra.mxu3 %v8000_v12  ;;  %v8125_v5 = vld [vmem:[#allocation6 + $0x4f0] sm:$0xf0]  ;;  %v7872_v25 = vor.u32 %v10759_v3, %v7869_v19 }
 0x310   :  { %4751 = vmatmul.bf16.vlgmr.msra.gmra.mxu0 %v12037_v53  ;;  %v10887_v8 = vld [vmem:[#allocation6 + $0x6d4] sm:$0xf]  ;;  %v8128_v13 = vor.u32 %v10823_v55, %v8125_v5 }
 0x311   :  { %4795 = vmatpush.bf16.msrb.mxu0 %v8256_v16  ;;  %4770 = vmatpush.bf16.msra.mxu2 %v7712_v27  ;;  %v8381_v9 = vld [vmem:[#allocation6 + $0x6f0] sm:$0xf0]  ;;  %v4518_v16 = vpop.f32.mrf.mxu2 }
 0x312   :  { %4764 = vmatmul.bf16.vlgmr.msra.gmra.mxu1 %v12039_v54  ;;  %v10687_v11 = vld [vmem:[#allocation6 + $0x94] sm:$0xf]  ;;  %v8384_v15 = vor.u32 %v10887_v8, %v8381_v9  ;;  %v4519_v24 = vadd.f32 %v4518_v16, %v12096_v49 }
 0x313   :  { %4808 = vmatpush.bf16.msrb.mxu1 %v8512_v17  ;;  %4783 = vmatpush.bf16.msra.mxu3 %v7968_v28  ;;  %v7581_v12 = vld [vmem:[#allocation6 + $0xb0] sm:$0xf0]  ;;  %v4531_v17 = vpop.f32.mrf.mxu3  ;;  %v4546_v29 = vpop.f32.mrf.mxu0 }
 0x314   :  { %v10751_v18 = vld [vmem:[#allocation6 + $0x294] sm:$0xf]  ;;  %v4532_v28 = vadd.f32 %v4531_v17, %v4519_v24  ;;  %v4559_v31 = vpop.f32.mrf.mxu1 }
 0x315   :  { %4796 = vmatpush.bf16.msrb.mxu0 %v8224_v32  ;;  %4771 = vmatpush.bf16.msra.mxu2 %v7680_v39  ;;  %v7837_v22 = vld [vmem:[#allocation6 + $0x2b0] sm:$0xf0]  ;;  %v7584_v32 = vor.u32 %v10687_v11, %v7581_v12 }
 0x316   :  { %v10815_v23 = vld [vmem:[#allocation6 + $0x494] sm:$0xf]  ;;  %v4545_v49 = vadd.f32 %v4544_v58, %v4532_v28 }
 0x317   :  { %4809 = vmatpush.bf16.msrb.mxu1 %v8480_v30  ;;  %4784 = vmatpush.bf16.msra.mxu3 %v7936_v40  ;;  %v8093_v20 = vld [vmem:[#allocation6 + $0x4b0] sm:$0xf0]  ;;  %v7840_v30 = vor.u32 %v10751_v18, %v7837_v22 }
 0x318   :  { %v10879_v26 = vld [vmem:[#allocation6 + $0x694] sm:$0xf]  ;;  %v8096_v21 = vor.u32 %v10815_v23, %v8093_v20 }
 0x319   :  { %4797 = vmatpush.bf16.msrb.mxu0 %v8192_v44  ;;  %4772 = vmatpush.bf16.msra.mxu2 %v7648_v52  ;;  %v8349_v27 = vld [vmem:[#allocation6 + $0x6b0] sm:$0xf0] }
 0x31a   :  { %v10679_v33 = vld [vmem:[#allocation6 + $0x54] sm:$0xf]  ;;  %v8352_v35 = vor.u32 %v10879_v26, %v8349_v27 }
 0x31b   :  { %4810 = vmatpush.bf16.msrb.mxu1 %v8448_v45  ;;  %4785 = vmatpush.bf16.msra.mxu3 %v7904_v60  ;;  %v7549_v34 = vld [vmem:[#allocation6 + $0x70] sm:$0xf0]  ;;  %v12103_v45 = vadd.f32 %v4557_v59, %v4545_v49  ;;  %v4520_v60 = vpop.f32.mrf.mxu2  ;;  %v4533_v61 = vpop.f32.mrf.mxu3 }
 0x31c   :  { %v10743_v37 = vld [vmem:[#allocation6 + $0x254] sm:$0xf]  ;;  %v7552_v46 = vor.u32 %v10679_v33, %v7549_v34 }
 0x31d   :  { %4798 = vmatpush.bf16.msrb.mxu0 %v8160_v63  ;;  %4773 = vmatpush.bf16.msra.mxu2 %v7616_v10  ;;  %v7805_v38 = vld [vmem:[#allocation6 + $0x270] sm:$0xf0] }
 0x31e   :  { %v10807_v39 = vld [vmem:[#allocation6 + $0x454] sm:$0xf]  ;;  %v7808_v36 = vor.u32 %v10743_v37, %v7805_v38 }
 0x31f   :  { %4811 = vmatpush.bf16.msrb.mxu1 %v8416_v2  ;;  %4786 = vmatpush.bf16.msra.mxu3 %v7872_v25  ;;  %v8061_v40 = vld [vmem:[#allocation6 + $0x470] sm:$0xf0] }
 0x320   :  { %v10871_v42 = vld [vmem:[#allocation6 + $0x654] sm:$0xf]  ;;  %v8064_v50 = vor.u32 %v10807_v39, %v8061_v40 }
 0x321   :  { %4799 = vmatpush.bf16.msrb.mxu0 %v8128_v13  ;;  %v8317_v43 = vld [vmem:[#allocation6 + $0x670] sm:$0xf0]  ;;  %4774 = vmatpush.bf16.msra.mxu2 %v7584_v32 }
 0x322   :  { %v10671_v44 = vld [vmem:[#allocation6 + $0x14] sm:$0xf]  ;;  %v8320_v52 = vor.u32 %v10871_v42, %v8317_v43 }
 0x323   :  { %4812 = vmatpush.bf16.msrb.mxu1 %v8384_v15  ;;  %4787 = vmatpush.bf16.msra.mxu3 %v7840_v30  ;;  %v7517_v51 = vld [vmem:[#allocation6 + $0x30] sm:$0xf0] }
 0x324   :  { %v10735_v56 = vld [vmem:[#allocation6 + $0x214] sm:$0xf]  ;;  %v7520_v8 = vor.u32 %v10671_v44, %v7517_v51 }
 0x325   :  { %v7773_v57 = vld [vmem:[#allocation6 + $0x230] sm:$0xf0]  ;;  %4800 = vmatpush.bf16.msrb.mxu0 %v8096_v21  ;;  %4775 = vmatpush.bf16.msra.mxu2 %v7552_v46 }
 0x326   :  { %v10799_v58 = vld [vmem:[#allocation6 + $0x414] sm:$0xf]  ;;  %v7776_v9 = vor.u32 %v10735_v56, %v7773_v57 }
 0x327   :  { %4813 = vmatpush.bf16.msrb.mxu1 %v8352_v35  ;;  %v8029_v62 = vld [vmem:[#allocation6 + $0x430] sm:$0xf0]  ;;  %4788 = vmatpush.bf16.msra.mxu3 %v7808_v36 }
 0x328   :  { %v10863_v63 = vld [vmem:[#allocation6 + $0x614] sm:$0xf]  ;;  %v8032_v12 = vor.u32 %v10799_v58, %v8029_v62  ;;  %v4596_v58 = vpop.f32.mrf.mxu0  ;;  %v12109_v62 = vpop.f32.mrf.mxu1 }
 0x329   :  { %v8285_v2 = vld [vmem:[#allocation6 + $0x630] sm:$0xf0]  ;;  %4801 = vmatpush.bf16.msrb.mxu0 %v8064_v50  ;;  %4776 = vmatpush.bf16.msra.mxu2 %v7520_v8 }
 0x32a   :  { %v10983_v3 = vld [vmem:[#allocation6 + $0x9d4] sm:$0xf]  ;;  %v8288_v13 = vor.u32 %v10863_v63, %v8285_v2 }
 0x32b   :  { %v8765_v59 = vld [vmem:[#allocation6 + $0x9f0] sm:$0xf0]  ;;  %4814 = vmatpush.bf16.msrb.mxu1 %v8320_v52  ;;  %4789 = vmatpush.bf16.msra.mxu3 %v7776_v9 }
 0x32c   :  { %v11047_v19 = vld [vmem:[#allocation6 + $0xbd4] sm:$0xf]  ;;  %v8768_v15 = vor.u32 %v10983_v3, %v8765_v59  ;;  %4777 = vmatmul.bf16.vlgmr.msra.gmra.mxu2 %v12019_v0 }
 0x32d   :  { %v9021_v55 = vld [vmem:[#allocation6 + $0xbf0] sm:$0xf0]  ;;  %4802 = vmatpush.bf16.msrb.mxu0 %v8032_v12  ;;  %v1676_v12 = vperm.slane %v12092_v4, 3 }
 0x32e   :  { %v11111_v5 = vld [vmem:[#allocation6 + $0xdd4] sm:$0xf]  ;;  %v9024_v16 = vor.u32 %v11047_v19, %v9021_v55  ;;  %4821 = vmatpush.bf16.msrb.mxu2 %v8768_v15  ;;  %4790 = vmatmul.bf16.vlgmr.msra.gmra.mxu3 %v12021_v1 }
 0x32f   :  { %v9277_v10 = vld [vmem:[#allocation6 + $0xdf0] sm:$0xf0]  ;;  %4815 = vmatpush.bf16.msrb.mxu1 %v8288_v13 }
 0x330   :  { %v11175_v25 = vld [vmem:[#allocation6 + $0xfd4] sm:$0xf]  ;;  %v9280_v22 = vor.u32 %v11111_v5, %v9277_v10  ;;  %4834 = vmatpush.bf16.msrb.mxu3 %v9024_v16  ;;  %4803 = vmatmul.bf16.vlgmr.msrb.gmra.mxu0 %v12023_v6 }
 0x331   :  { %v9533_v11 = vld [vmem:[#allocation6 + $0xff0] sm:$0xf0] }
 0x332   :  { %v10975_v17 = vld [vmem:[#allocation6 + $0x994] sm:$0xf]  ;;  %v9536_v23 = vor.u32 %v11175_v25, %v9533_v11  ;;  %4847 = vmatpush.bf16.msra.mxu0 %v9280_v22  ;;  %4816 = vmatmul.bf16.vlgmr.msrb.gmra.mxu1 %v12025_v7 }
 0x333   :  { %v8733_v18 = vld [vmem:[#allocation6 + $0x9b0] sm:$0xf0] }
 0x334   :  { %v11039_v24 = vld [vmem:[#allocation6 + $0xb94] sm:$0xf]  ;;  %v8736_v31 = vor.u32 %v10975_v17, %v8733_v18  ;;  %4860 = vmatpush.bf16.msra.mxu1 %v9536_v23  ;;  %v4570_v23 = vpop.f32.mrf.mxu2 }
 0x335   :  { %v8989_v20 = vld [vmem:[#allocation6 + $0xbb0] sm:$0xf0] }
 0x336   :  { %v11103_v26 = vld [vmem:[#allocation6 + $0xd94] sm:$0xf]  ;;  %v8992_v32 = vor.u32 %v11039_v24, %v8989_v20  ;;  %4822 = vmatpush.bf16.msrb.mxu2 %v8736_v31  ;;  %v4583_v24 = vpop.f32.mrf.mxu3 }
 0x337   :  { %v9245_v27 = vld [vmem:[#allocation6 + $0xdb0] sm:$0xf0] }
 0x338   :  { %v11167_v28 = vld [vmem:[#allocation6 + $0xf94] sm:$0xf]  ;;  %v9248_v34 = vor.u32 %v11103_v26, %v9245_v27  ;;  %4835 = vmatpush.bf16.msrb.mxu3 %v8992_v32 }
 0x339   :  { %v9501_v29 = vld [vmem:[#allocation6 + $0xfb0] sm:$0xf0] }
 0x33a   :  { %v10967_v30 = vld [vmem:[#allocation6 + $0x954] sm:$0xf]  ;;  %v9504_v21 = vor.u32 %v11167_v28, %v9501_v29  ;;  %4848 = vmatpush.bf16.msra.mxu0 %v9248_v34  ;;  %v4571_v28 = vadd.f32 %v4570_v23, %v1676_v12 }
 0x33b   :  { %v8701_v33 = vld [vmem:[#allocation6 + $0x970] sm:$0xf0] }
 0x33c   :  { %v11031_v35 = vld [vmem:[#allocation6 + $0xb54] sm:$0xf]  ;;  %v8704_v42 = vor.u32 %v10967_v30, %v8701_v33  ;;  %4861 = vmatpush.bf16.msra.mxu1 %v9504_v21  ;;  %v4584_v4 = vadd.f32 %v4583_v24, %v4571_v28  ;;  %v4598_v30 = vpop.f32.mrf.mxu0  ;;  %v4611_v33 = vpop.f32.mrf.mxu1  ;;  %v7715_v24 = vld [vmem:[#allocation6 + $0x198] sm:$0xf] }
 0x33d   :  { %v8957_v37 = vld [vmem:[#allocation6 + $0xb70] sm:$0xf0]  ;;  %v7971_v28 = vld [vmem:[#allocation6 + $0x398] sm:$0xf] }
 0x33e   :  { %v11095_v38 = vld [vmem:[#allocation6 + $0xd54] sm:$0xf]  ;;  %v8960_v43 = vor.u32 %v11031_v35, %v8957_v37  ;;  %4823 = vmatpush.bf16.msrb.mxu2 %v8704_v42  ;;  %v10916_v30 = vld [vmem:[#allocation6 + $0x7b4] sm:$0xf0] }
 0x33f   :  { %v9213_v39 = vld [vmem:[#allocation6 + $0xd70] sm:$0xf0] }
 0x340   :  { %v11159_v49 = vld [vmem:[#allocation6 + $0xf54] sm:$0xf]  ;;  %v9216_v36 = vor.u32 %v11095_v38, %v9213_v39  ;;  %4836 = vmatpush.bf16.msrb.mxu3 %v8960_v43  ;;  %v4597_v43 = vadd.f32 %v4596_v58, %v4584_v4  ;;  %v4585_v58 = vpop.f32.mrf.mxu3  ;;  %v8483_v4 = vld [vmem:[#allocation6 + $0x798] sm:$0xf] }
 0x341   :  { %v9469_v40 = vld [vmem:[#allocation6 + $0xf70] sm:$0xf0]  ;;  %v10900_v58 = vld [vmem:[#allocation6 + $0x734] sm:$0xf0] }
 0x342   :  { %v10959_v44 = vld [vmem:[#allocation6 + $0x914] sm:$0xf]  ;;  %v9472_v51 = vor.u32 %v11159_v49, %v9469_v40  ;;  %4849 = vmatpush.bf16.msra.mxu0 %v9216_v36 }
 0x343   :  { %v8669_v46 = vld [vmem:[#allocation6 + $0x930] sm:$0xf0] }
 0x344   :  { %v11023_v56 = vld [vmem:[#allocation6 + $0xb14] sm:$0xf]  ;;  %v8672_v63 = vor.u32 %v10959_v44, %v8669_v46  ;;  %4862 = vmatpush.bf16.msra.mxu1 %v9472_v51 }
 0x345   :  { %v8925_v57 = vld [vmem:[#allocation6 + $0xb30] sm:$0xf0] }
 0x346   :  { %v11087_v50 = vld [vmem:[#allocation6 + $0xd14] sm:$0xf]  ;;  %v8928_v2 = vor.u32 %v11023_v56, %v8925_v57  ;;  %4824 = vmatpush.bf16.msrb.mxu2 %v8672_v63 }
 0x347   :  { %v9181_v52 = vld [vmem:[#allocation6 + $0xd30] sm:$0xf0] }
 0x348   :  { %v11151_v60 = vld [vmem:[#allocation6 + $0xf14] sm:$0xf]  ;;  %v9184_v55 = vor.u32 %v11087_v50, %v9181_v52  ;;  %4837 = vmatpush.bf16.msrb.mxu3 %v8928_v2 }
 0x349   :  { %v9437_v61 = vld [vmem:[#allocation6 + $0xf30] sm:$0xf0] }
 0x34a   :  { %v10951_v3 = vld [vmem:[#allocation6 + $0x8d4] sm:$0xf]  ;;  %v9440_v5 = vor.u32 %v11151_v60, %v9437_v61  ;;  %4850 = vmatpush.bf16.msra.mxu0 %v9184_v55  ;;  %v12113_v61 = vadd.f32 %v12109_v62, %v4597_v43  ;;  %v8451_v43 = vld [vmem:[#allocation6 + $0x758] sm:$0xf] }
 0x34b   :  { %v8637_v59 = vld [vmem:[#allocation6 + $0x8f0] sm:$0xf0] }
 0x34c   :  { %v11015_v19 = vld [vmem:[#allocation6 + $0xad4] sm:$0xf]  ;;  %v8640_v13 = vor.u32 %v10951_v3, %v8637_v59  ;;  %4863 = vmatpush.bf16.msra.mxu1 %v9440_v5  ;;  %v4572_v3 = vpop.f32.mrf.mxu2 }
 0x34d   :  { %v8893_v8 = vld [vmem:[#allocation6 + $0xaf0] sm:$0xf0]  ;;  %v8419_v3 = vld [vmem:[#allocation6 + $0x718] sm:$0xf] }
 0x34e   :  { %v11079_v9 = vld [vmem:[#allocation6 + $0xcd4] sm:$0xf]  ;;  %v8896_v15 = vor.u32 %v11015_v19, %v8893_v8  ;;  %4825 = vmatpush.bf16.msrb.mxu2 %v8640_v13  ;;  %v7747_v8 = vld [vmem:[#allocation6 + $0x1d8] sm:$0xf] }
 0x34f   :  { %v9149_v10 = vld [vmem:[#allocation6 + $0xcf0] sm:$0xf0]  ;;  %v10860_v13 = vld [vmem:[#allocation6 + $0x5f4] sm:$0xf0] }
 0x350   :  { %v11143_v25 = vld [vmem:[#allocation6 + $0xed4] sm:$0xf]  ;;  %v9152_v18 = vor.u32 %v11079_v9, %v9149_v10  ;;  %4838 = vmatpush.bf16.msrb.mxu3 %v8896_v15  ;;  %v10732_v9 = vld [vmem:[#allocation6 + $0x1f4] sm:$0xf0] }
 0x351   :  { %v9405_v11 = vld [vmem:[#allocation6 + $0xef0] sm:$0xf0]  ;;  %v8003_v10 = vld [vmem:[#allocation6 + $0x3d8] sm:$0xf] }
 0x352   :  { %v10943_v16 = vld [vmem:[#allocation6 + $0x894] sm:$0xf]  ;;  %v9408_v22 = vor.u32 %v11143_v25, %v9405_v11  ;;  %4851 = vmatpush.bf16.msra.mxu0 %v9152_v18  ;;  %v10796_v25 = vld [vmem:[#allocation6 + $0x3f4] sm:$0xf0] }
 0x353   :  { %v8605_v17 = vld [vmem:[#allocation6 + $0x8b0] sm:$0xf0]  ;;  %v8259_v11 = vld [vmem:[#allocation6 + $0x5d8] sm:$0xf]  ;;  %v8004_v23 = vor.u32 %v10796_v25, %v8003_v10  ;;  %v8420_v25 = vor.u32 %v10900_v58, %v8419_v3 }
 0x354   :  { %v11007_v20 = vld [vmem:[#allocation6 + $0xa94] sm:$0xf]  ;;  %v8608_v34 = vor.u32 %v10943_v16, %v8605_v17  ;;  %4864 = vmatpush.bf16.msra.mxu1 %v9408_v22  ;;  %v8515_v15 = vld [vmem:[#allocation6 + $0x7d8] sm:$0xf]  ;;  %v7748_v22 = vor.u32 %v10732_v9, %v7747_v8 }
 0x355   :  { %v8861_v26 = vld [vmem:[#allocation6 + $0xab0] sm:$0xf0]  ;;  %v10924_v16 = vld [vmem:[#allocation6 + $0x7f4] sm:$0xf0] }
 0x356   :  { %v11071_v27 = vld [vmem:[#allocation6 + $0xc94] sm:$0xf]  ;;  %v8864_v21 = vor.u32 %v11007_v20, %v8861_v26  ;;  %4826 = vmatpush.bf16.msrb.mxu2 %v8608_v34  ;;  %v10724_v20 = vld [vmem:[#allocation6 + $0x1b4] sm:$0xf0]  ;;  %v8260_v26 = vor.u32 %v10860_v13, %v8259_v11 }
 0x357   :  { %v9117_v29 = vld [vmem:[#allocation6 + $0xcb0] sm:$0xf0]  ;;  %v7716_v33 = vor.u32 %v10724_v20, %v7715_v24  ;;  %v7619_v8 = vld [vmem:[#allocation6 + $0xd8] sm:$0xf] }
 0x358   :  { %v11135_v31 = vld [vmem:[#allocation6 + $0xe94] sm:$0xf]  ;;  %v9120_v38 = vor.u32 %v11071_v27, %v9117_v29  ;;  %4839 = vmatpush.bf16.msrb.mxu3 %v8864_v21  ;;  %v8516_v27 = vor.u32 %v10924_v16, %v8515_v15  ;;  %v10788_v29 = vld [vmem:[#allocation6 + $0x3b4] sm:$0xf0] }
 0x359   :  { %v9373_v32 = vld [vmem:[#allocation6 + $0xeb0] sm:$0xf0]  ;;  %v7972_v34 = vor.u32 %v10788_v29, %v7971_v28  ;;  %v7683_v21 = vld [vmem:[#allocation6 + $0x158] sm:$0xf] }
 0x35a   :  { %v10935_v35 = vld [vmem:[#allocation6 + $0x854] sm:$0xf]  ;;  %v9376_v39 = vor.u32 %v11135_v31, %v9373_v32  ;;  %4852 = vmatpush.bf16.msra.mxu0 %v9120_v38  ;;  %v8227_v31 = vld [vmem:[#allocation6 + $0x598] sm:$0xf]  ;;  %v8484_v38 = vor.u32 %v10916_v30, %v8483_v4 }
 0x35b   :  { %v8573_v37 = vld [vmem:[#allocation6 + $0x870] sm:$0xf0]  ;;  %v10852_v32 = vld [vmem:[#allocation6 + $0x5b4] sm:$0xf0] }
 0x35c   :  { %v10999_v49 = vld [vmem:[#allocation6 + $0xa54] sm:$0xf]  ;;  %v8576_v56 = vor.u32 %v10935_v35, %v8573_v37  ;;  %4865 = vmatpush.bf16.msra.mxu1 %v9376_v39  ;;  %v10716_v35 = vld [vmem:[#allocation6 + $0x174] sm:$0xf0]  ;;  %v8228_v37 = vor.u32 %v10852_v32, %v8227_v31 }
 0x35d   :  { %v8829_v40 = vld [vmem:[#allocation6 + $0xa70] sm:$0xf0]  ;;  %v7939_v39 = vld [vmem:[#allocation6 + $0x358] sm:$0xf] }
 0x35e   :  { %v11063_v42 = vld [vmem:[#allocation6 + $0xc54] sm:$0xf]  ;;  %v8832_v57 = vor.u32 %v10999_v49, %v8829_v40  ;;  %4827 = vmatpush.bf16.msrb.mxu2 %v8576_v56  ;;  %v10780_v49 = vld [vmem:[#allocation6 + $0x374] sm:$0xf0] }
 0x35f   :  { %v9085_v44 = vld [vmem:[#allocation6 + $0xc70] sm:$0xf0]  ;;  %v8195_v40 = vld [vmem:[#allocation6 + $0x558] sm:$0xf] }
 0x360   :  { %v11127_v46 = vld [vmem:[#allocation6 + $0xe54] sm:$0xf]  ;;  %v9088_v63 = vor.u32 %v11063_v42, %v9085_v44  ;;  %4840 = vmatpush.bf16.msrb.mxu3 %v8832_v57  ;;  %v10844_v42 = vld [vmem:[#allocation6 + $0x574] sm:$0xf0] }
 0x361   :  { %v9341_v36 = vld [vmem:[#allocation6 + $0xe70] sm:$0xf0]  ;;  %v10908_v44 = vld [vmem:[#allocation6 + $0x774] sm:$0xf0]  ;;  %v8196_v57 = vor.u32 %v10844_v42, %v8195_v40 }
 0x362   :  { %v10927_v51 = vld [vmem:[#allocation6 + $0x814] sm:$0xf]  ;;  %v9344_v2 = vor.u32 %v11127_v46, %v9341_v36  ;;  %4853 = vmatpush.bf16.msra.mxu0 %v9088_v63  ;;  %v7684_v46 = vor.u32 %v10716_v35, %v7683_v21  ;;  %v7940_v36 = vor.u32 %v10780_v49, %v7939_v39  ;;  %v10708_v56 = vld [vmem:[#allocation6 + $0x134] sm:$0xf0] }
 0x363   :  { %v8541_v50 = vld [vmem:[#allocation6 + $0x830] sm:$0xf0]  ;;  %v8163_v63 = vld [vmem:[#allocation6 + $0x518] sm:$0xf] }
 0x364   :  { %v10991_v52 = vld [vmem:[#allocation6 + $0xa14] sm:$0xf]  ;;  %v8544_v12 = vor.u32 %v10927_v51, %v8541_v50  ;;  %4866 = vmatpush.bf16.msra.mxu1 %v9344_v2  ;;  %v7651_v51 = vld [vmem:[#allocation6 + $0x118] sm:$0xf]  ;;  %v8452_v50 = vor.u32 %v10908_v44, %v8451_v43 }
 0x365   :  { %v8797_v60 = vld [vmem:[#allocation6 + $0xa30] sm:$0xf0]  ;;  %v10836_v2 = vld [vmem:[#allocation6 + $0x534] sm:$0xf0] }
 0x366   :  { %v11055_v59 = vld [vmem:[#allocation6 + $0xc14] sm:$0xf]  ;;  %v8800_v62 = vor.u32 %v10991_v52, %v8797_v60  ;;  %4828 = vmatpush.bf16.msrb.mxu2 %v8544_v12  ;;  %v7907_v52 = vld [vmem:[#allocation6 + $0x318] sm:$0xf]  ;;  %v8164_v10 = vor.u32 %v10836_v2, %v8163_v63 }
 0x367   :  { %v9053_v19 = vld [vmem:[#allocation6 + $0xc30] sm:$0xf0]  ;;  %v10772_v60 = vld [vmem:[#allocation6 + $0x334] sm:$0xf0] }
 0x368   :  { %v11119_v55 = vld [vmem:[#allocation6 + $0xe14] sm:$0xf]  ;;  %v9056_v17 = vor.u32 %v11055_v59, %v9053_v19  ;;  %4841 = vmatpush.bf16.msrb.mxu3 %v8800_v62  ;;  %v4648_v59 = vpop.f32.mrf.mxu0  ;;  %v4661_v19 = vpop.f32.mrf.mxu1  ;;  %v10700_v9 = vld [vmem:[#allocation6 + $0xf4] sm:$0xf0] }
 0x369   :  { %v9309_v5 = vld [vmem:[#allocation6 + $0xe30] sm:$0xf0]  ;;  %4829 = vmatmul.bf16.vlgmr.msrb.gmra.mxu2 %v12033_v47  ;;  %v7875_v11 = vld [vmem:[#allocation6 + $0x2d8] sm:$0xf] }
 0x36a   :  { %v9312_v18 = vor.u32 %v11119_v55, %v9309_v5  ;;  %4854 = vmatpush.bf16.msra.mxu0 %v9056_v17  ;;  %4873 = vmatpush.bf16.msra.mxu2 %v7748_v22  ;;  %v7652_v55 = vor.u32 %v10708_v56, %v7651_v51  ;;  %v7908_v5 = vor.u32 %v10772_v60, %v7907_v52  ;;  %v10764_v12 = vld [vmem:[#allocation6 + $0x2f4] sm:$0xf0] }
 0x36b   :  { %4842 = vmatmul.bf16.vlgmr.msrb.gmra.mxu3 %v12035_v48  ;;  %v8131_v62 = vld [vmem:[#allocation6 + $0x4d8] sm:$0xf]  ;;  %v7620_v17 = vor.u32 %v10700_v9, %v7619_v8 }
 0x36c   :  { %4867 = vmatpush.bf16.msra.mxu1 %v9312_v18  ;;  %4886 = vmatpush.bf16.msra.mxu3 %v8004_v23  ;;  %v10828_v13 = vld [vmem:[#allocation6 + $0x4f4] sm:$0xf0]  ;;  %v7876_v18 = vor.u32 %v10764_v12, %v7875_v11 }
 0x36d   :  { %4855 = vmatmul.bf16.vlgmr.msra.gmra.mxu0 %v12037_v53  ;;  %v8387_v15 = vld [vmem:[#allocation6 + $0x6d8] sm:$0xf]  ;;  %v8132_v24 = vor.u32 %v10828_v13, %v8131_v62 }
 0x36e   :  { %4899 = vmatpush.bf16.msrb.mxu0 %v8260_v26  ;;  %4874 = vmatpush.bf16.msra.mxu2 %v7716_v33  ;;  %v10892_v16 = vld [vmem:[#allocation6 + $0x6f4] sm:$0xf0]  ;;  %v4622_v26 = vpop.f32.mrf.mxu2 }
 0x36f   :  { %4868 = vmatmul.bf16.vlgmr.msra.gmra.mxu1 %v12039_v54  ;;  %v7587_v22 = vld [vmem:[#allocation6 + $0x98] sm:$0xf]  ;;  %v8388_v20 = vor.u32 %v10892_v16, %v8387_v15  ;;  %v4623_v32 = vadd.f32 %v4622_v26, %v12113_v61 }
 0x370   :  { %4912 = vmatpush.bf16.msrb.mxu1 %v8516_v27  ;;  %4887 = vmatpush.bf16.msra.mxu3 %v7972_v34  ;;  %v10692_v23 = vld [vmem:[#allocation6 + $0xb4] sm:$0xf0]  ;;  %v4635_v27 = vpop.f32.mrf.mxu3  ;;  %v4650_v21 = vpop.f32.mrf.mxu0 }
 0x371   :  { %v7843_v28 = vld [vmem:[#allocation6 + $0x298] sm:$0xf]  ;;  %v4636_v34 = vadd.f32 %v4635_v27, %v4623_v32  ;;  %v4663_v35 = vpop.f32.mrf.mxu1 }
 0x372   :  { %4900 = vmatpush.bf16.msrb.mxu0 %v8228_v37  ;;  %4875 = vmatpush.bf16.msra.mxu2 %v7684_v46  ;;  %v10756_v29 = vld [vmem:[#allocation6 + $0x2b4] sm:$0xf0]  ;;  %v7588_v37 = vor.u32 %v10692_v23, %v7587_v22 }
 0x373   :  { %v8099_v31 = vld [vmem:[#allocation6 + $0x498] sm:$0xf]  ;;  %v4649_v61 = vadd.f32 %v4648_v59, %v4636_v34 }
 0x374   :  { %4913 = vmatpush.bf16.msrb.mxu1 %v8484_v38  ;;  %4888 = vmatpush.bf16.msra.mxu3 %v7940_v36  ;;  %v10820_v4 = vld [vmem:[#allocation6 + $0x4b4] sm:$0xf0]  ;;  %v7844_v38 = vor.u32 %v10756_v29, %v7843_v28 }
 0x375   :  { %v8355_v30 = vld [vmem:[#allocation6 + $0x698] sm:$0xf]  ;;  %v8100_v40 = vor.u32 %v10820_v4, %v8099_v31 }
 0x376   :  { %4901 = vmatpush.bf16.msrb.mxu0 %v8196_v57  ;;  %4876 = vmatpush.bf16.msra.mxu2 %v7652_v55  ;;  %v10884_v33 = vld [vmem:[#allocation6 + $0x6b4] sm:$0xf0] }
 0x377   :  { %v7555_v39 = vld [vmem:[#allocation6 + $0x58] sm:$0xf]  ;;  %v8356_v42 = vor.u32 %v10884_v33, %v8355_v30 }
 0x378   :  { %4914 = vmatpush.bf16.msrb.mxu1 %v8452_v50  ;;  %4889 = vmatpush.bf16.msra.mxu3 %v7908_v5  ;;  %v10684_v49 = vld [vmem:[#allocation6 + $0x74] sm:$0xf0]  ;;  %v12120_v50 = vadd.f32 %v4661_v19, %v4649_v61  ;;  %v4624_v5 = vpop.f32.mrf.mxu2  ;;  %v4637_v8 = vpop.f32.mrf.mxu3 }
 0x379   :  { %v7811_v43 = vld [vmem:[#allocation6 + $0x258] sm:$0xf]  ;;  %v7556_v52 = vor.u32 %v10684_v49, %v7555_v39 }
 0x37a   :  { %4902 = vmatpush.bf16.msrb.mxu0 %v8164_v10  ;;  %4877 = vmatpush.bf16.msra.mxu2 %v7620_v17  ;;  %v10748_v44 = vld [vmem:[#allocation6 + $0x274] sm:$0xf0] }
 0x37b   :  { %v8067_v46 = vld [vmem:[#allocation6 + $0x458] sm:$0xf]  ;;  %v7812_v60 = vor.u32 %v10748_v44, %v7811_v43 }
 0x37c   :  { %4915 = vmatpush.bf16.msrb.mxu1 %v8420_v25  ;;  %4890 = vmatpush.bf16.msra.mxu3 %v7876_v18  ;;  %v10812_v36 = vld [vmem:[#allocation6 + $0x474] sm:$0xf0] }
 0x37d   :  { %v8323_v51 = vld [vmem:[#allocation6 + $0x658] sm:$0xf]  ;;  %v8068_v58 = vor.u32 %v10812_v36, %v8067_v46 }
 0x37e   :  { %4903 = vmatpush.bf16.msrb.mxu0 %v8132_v24  ;;  %v10876_v56 = vld [vmem:[#allocation6 + $0x674] sm:$0xf0]  ;;  %4878 = vmatpush.bf16.msra.mxu2 %v7588_v37 }
 0x37f   :  { %v7523_v57 = vld [vmem:[#allocation6 + $0x18] sm:$0xf]  ;;  %v8324_v55 = vor.u32 %v10876_v56, %v8323_v51 }
 0x380   :  { %4916 = vmatpush.bf16.msrb.mxu1 %v8388_v20  ;;  %4891 = vmatpush.bf16.msra.mxu3 %v7844_v38  ;;  %v10676_v63 = vld [vmem:[#allocation6 + $0x34] sm:$0xf0] }
 0x381   :  { %v7779_v2 = vld [vmem:[#allocation6 + $0x218] sm:$0xf]  ;;  %v7524_v15 = vor.u32 %v10676_v63, %v7523_v57 }
 0x382   :  { %v10740_v3 = vld [vmem:[#allocation6 + $0x234] sm:$0xf0]  ;;  %4904 = vmatpush.bf16.msrb.mxu0 %v8100_v40  ;;  %4879 = vmatpush.bf16.msra.mxu2 %v7556_v52 }
 0x383   :  { %v8035_v59 = vld [vmem:[#allocation6 + $0x418] sm:$0xf]  ;;  %v7780_v16 = vor.u32 %v10740_v3, %v7779_v2 }
 0x384   :  { %4917 = vmatpush.bf16.msrb.mxu1 %v8356_v42  ;;  %v10804_v9 = vld [vmem:[#allocation6 + $0x434] sm:$0xf0]  ;;  %4892 = vmatpush.bf16.msra.mxu3 %v7812_v60 }
 0x385   :  { %v8291_v10 = vld [vmem:[#allocation6 + $0x618] sm:$0xf]  ;;  %v8036_v23 = vor.u32 %v10804_v9, %v8035_v59  ;;  %v4700_v59 = vpop.f32.mrf.mxu0  ;;  %v12126_v9 = vpop.f32.mrf.mxu1 }
 0x386   :  { %v10868_v25 = vld [vmem:[#allocation6 + $0x634] sm:$0xf0]  ;;  %4905 = vmatpush.bf16.msrb.mxu0 %v8068_v58  ;;  %4880 = vmatpush.bf16.msra.mxu2 %v7524_v15 }
 0x387   :  { %v8771_v11 = vld [vmem:[#allocation6 + $0x9d8] sm:$0xf]  ;;  %v8292_v24 = vor.u32 %v10868_v25, %v8291_v10 }
 0x388   :  { %v10988_v19 = vld [vmem:[#allocation6 + $0x9f4] sm:$0xf0]  ;;  %4918 = vmatpush.bf16.msrb.mxu1 %v8324_v55  ;;  %4893 = vmatpush.bf16.msra.mxu3 %v7780_v16 }
 0x389   :  { %v9027_v12 = vld [vmem:[#allocation6 + $0xbd8] sm:$0xf]  ;;  %v8772_v20 = vor.u32 %v10988_v19, %v8771_v11  ;;  %4881 = vmatmul.bf16.vlgmr.msra.gmra.mxu2 %v12019_v0 }
 0x38a   :  { %v11052_v62 = vld [vmem:[#allocation6 + $0xbf4] sm:$0xf0]  ;;  %4906 = vmatpush.bf16.msrb.mxu0 %v8036_v23  ;;  %v12128_v23 = vld [vmem:[#allocation8] sm:$0xff] }
 0x38b   :  { %v9283_v13 = vld [vmem:[#allocation6 + $0xdd8] sm:$0xf]  ;;  %v9028_v26 = vor.u32 %v11052_v62, %v9027_v12  ;;  %4925 = vmatpush.bf16.msrb.mxu2 %v8772_v20  ;;  %4894 = vmatmul.bf16.vlgmr.msra.gmra.mxu3 %v12021_v1 }
 0x38c   :  { %v11116_v17 = vld [vmem:[#allocation6 + $0xdf4] sm:$0xf0]  ;;  %4919 = vmatpush.bf16.msrb.mxu1 %v8292_v24  ;;  %v1677_v24 = vperm.slane %v12128_v23, 4 }
 0x38d   :  { %v9539_v18 = vld [vmem:[#allocation6 + $0xfd8] sm:$0xf]  ;;  %v9284_v29 = vor.u32 %v11116_v17, %v9283_v13  ;;  %4938 = vmatpush.bf16.msrb.mxu3 %v9028_v26  ;;  %4907 = vmatmul.bf16.vlgmr.msrb.gmra.mxu0 %v12023_v6 }
 0x38e   :  { %v11180_v22 = vld [vmem:[#allocation6 + $0xff4] sm:$0xf0] }
 0x38f   :  { %v8739_v27 = vld [vmem:[#allocation6 + $0x998] sm:$0xf]  ;;  %v9540_v31 = vor.u32 %v11180_v22, %v9539_v18  ;;  %4951 = vmatpush.bf16.msra.mxu0 %v9284_v29  ;;  %4920 = vmatmul.bf16.vlgmr.msrb.gmra.mxu1 %v12025_v7 }
 0x390   :  { %v10980_v28 = vld [vmem:[#allocation6 + $0x9b4] sm:$0xf0] }
 0x391   :  { %v8995_v32 = vld [vmem:[#allocation6 + $0xb98] sm:$0xf]  ;;  %v8740_v35 = vor.u32 %v10980_v28, %v8739_v27  ;;  %4964 = vmatpush.bf16.msra.mxu1 %v9540_v31 }
 0x392   :  { %v11044_v4 = vld [vmem:[#allocation6 + $0xbb4] sm:$0xf0] }
 0x393   :  { %v9251_v30 = vld [vmem:[#allocation6 + $0xd98] sm:$0xf]  ;;  %v8996_v37 = vor.u32 %v11044_v4, %v8995_v32  ;;  %4926 = vmatpush.bf16.msrb.mxu2 %v8740_v35  ;;  %v4674_v32 = vpop.f32.mrf.mxu2  ;;  %v4687_v4 = vpop.f32.mrf.mxu3 }
 0x394   :  { %v11108_v33 = vld [vmem:[#allocation6 + $0xdb4] sm:$0xf0] }
 0x395   :  { %v9507_v34 = vld [vmem:[#allocation6 + $0xf98] sm:$0xf]  ;;  %v9252_v49 = vor.u32 %v11108_v33, %v9251_v30  ;;  %4939 = vmatpush.bf16.msrb.mxu3 %v8996_v37 }
 0x396   :  { %v11172_v21 = vld [vmem:[#allocation6 + $0xfb4] sm:$0xf0] }
 0x397   :  { %v8707_v38 = vld [vmem:[#allocation6 + $0x958] sm:$0xf]  ;;  %v9508_v40 = vor.u32 %v11172_v21, %v9507_v34  ;;  %4952 = vmatpush.bf16.msra.mxu0 %v9252_v49  ;;  %v4675_v21 = vadd.f32 %v4674_v32, %v1677_v24  ;;  %v4702_v49 = vpop.f32.mrf.mxu0  ;;  %v8005_v24 = vld [vmem:[#allocation6 + $0x3f8] sm:$0xf0] }
 0x398   :  { %v10972_v39 = vld [vmem:[#allocation6 + $0x974] sm:$0xf0]  ;;  %v8229_v49 = vld [vmem:[#allocation6 + $0x5b8] sm:$0xf0] }
 0x399   :  { %v8963_v42 = vld [vmem:[#allocation6 + $0xb58] sm:$0xf]  ;;  %v8708_v51 = vor.u32 %v10972_v39, %v8707_v38  ;;  %4965 = vmatpush.bf16.msra.mxu1 %v9508_v40  ;;  %v4688_v39 = vadd.f32 %v4687_v4, %v4675_v21  ;;  %v4715_v40 = vpop.f32.mrf.mxu1 }
 0x39a   :  { %v11036_v43 = vld [vmem:[#allocation6 + $0xb74] sm:$0xf0]  ;;  %v10912_v40 = vld [vmem:[#allocation6 + $0x79c] sm:$0xf] }
 0x39b   :  { %v9219_v44 = vld [vmem:[#allocation6 + $0xd58] sm:$0xf]  ;;  %v8964_v56 = vor.u32 %v11036_v43, %v8963_v42  ;;  %4927 = vmatpush.bf16.msrb.mxu2 %v8708_v51 }
 0x39c   :  { %v11100_v46 = vld [vmem:[#allocation6 + $0xd74] sm:$0xf0] }
 0x39d   :  { %v9475_v61 = vld [vmem:[#allocation6 + $0xf58] sm:$0xf]  ;;  %v9220_v60 = vor.u32 %v11100_v46, %v9219_v44  ;;  %4940 = vmatpush.bf16.msrb.mxu3 %v8964_v56 }
 0x39e   :  { %v11164_v36 = vld [vmem:[#allocation6 + $0xf74] sm:$0xf0] }
 0x39f   :  { %v8675_v57 = vld [vmem:[#allocation6 + $0x918] sm:$0xf]  ;;  %v9476_v63 = vor.u32 %v11164_v36, %v9475_v61  ;;  %4953 = vmatpush.bf16.msra.mxu0 %v9220_v60 }
 0x3a0   :  { %v10964_v52 = vld [vmem:[#allocation6 + $0x934] sm:$0xf0] }
 0x3a1   :  { %v8931_v2 = vld [vmem:[#allocation6 + $0xb18] sm:$0xf]  ;;  %v8676_v10 = vor.u32 %v10964_v52, %v8675_v57  ;;  %4966 = vmatpush.bf16.msra.mxu1 %v9476_v63  ;;  %v4701_v52 = vadd.f32 %v4700_v59, %v4688_v39  ;;  %v4689_v59 = vpop.f32.mrf.mxu3  ;;  %v10848_v39 = vld [vmem:[#allocation6 + $0x59c] sm:$0xf] }
 0x3a2   :  { %v11028_v3 = vld [vmem:[#allocation6 + $0xb34] sm:$0xf0]  ;;  %v8165_v59 = vld [vmem:[#allocation6 + $0x538] sm:$0xf0] }
 0x3a3   :  { %v9187_v58 = vld [vmem:[#allocation6 + $0xd18] sm:$0xf]  ;;  %v8932_v25 = vor.u32 %v11028_v3, %v8931_v2  ;;  %4928 = vmatpush.bf16.msrb.mxu2 %v8676_v10 }
 0x3a4   :  { %v11092_v55 = vld [vmem:[#allocation6 + $0xd34] sm:$0xf0] }
 0x3a5   :  { %v9443_v5 = vld [vmem:[#allocation6 + $0xf18] sm:$0xf]  ;;  %v9188_v62 = vor.u32 %v11092_v55, %v9187_v58  ;;  %4941 = vmatpush.bf16.msrb.mxu3 %v8932_v25  ;;  %v12132_v25 = vadd.f32 %v12126_v9, %v4701_v52  ;;  %v10840_v52 = vld [vmem:[#allocation6 + $0x55c] sm:$0xf] }
 0x3a6   :  { %v11156_v8 = vld [vmem:[#allocation6 + $0xf34] sm:$0xf0] }
 0x3a7   :  { %v8643_v11 = vld [vmem:[#allocation6 + $0x8d8] sm:$0xf]  ;;  %v9444_v13 = vor.u32 %v11156_v8, %v9443_v5  ;;  %4954 = vmatpush.bf16.msra.mxu0 %v9188_v62 }
 0x3a8   :  { %v10956_v19 = vld [vmem:[#allocation6 + $0x8f4] sm:$0xf0] }
 0x3a9   :  { %v8899_v12 = vld [vmem:[#allocation6 + $0xad8] sm:$0xf]  ;;  %v8644_v20 = vor.u32 %v10956_v19, %v8643_v11  ;;  %4967 = vmatpush.bf16.msra.mxu1 %v9444_v13 }
 0x3aa   :  { %v11020_v15 = vld [vmem:[#allocation6 + $0xaf4] sm:$0xf0] }
 0x3ab   :  { %v9155_v16 = vld [vmem:[#allocation6 + $0xcd8] sm:$0xf]  ;;  %v8900_v26 = vor.u32 %v11020_v15, %v8899_v12  ;;  %4929 = vmatpush.bf16.msrb.mxu2 %v8644_v20  ;;  %v4676_v12 = vpop.f32.mrf.mxu2  ;;  %v10856_v20 = vld [vmem:[#allocation6 + $0x5dc] sm:$0xf] }
 0x3ac   :  { %v11084_v17 = vld [vmem:[#allocation6 + $0xcf4] sm:$0xf0]  ;;  %v10832_v12 = vld [vmem:[#allocation6 + $0x51c] sm:$0xf] }
 0x3ad   :  { %v9411_v18 = vld [vmem:[#allocation6 + $0xed8] sm:$0xf]  ;;  %v9156_v29 = vor.u32 %v11084_v17, %v9155_v16  ;;  %4942 = vmatpush.bf16.msrb.mxu3 %v8900_v26  ;;  %v10728_v17 = vld [vmem:[#allocation6 + $0x1dc] sm:$0xf] }
 0x3ae   :  { %v11148_v22 = vld [vmem:[#allocation6 + $0xef4] sm:$0xf0] }
 0x3af   :  { %v8611_v27 = vld [vmem:[#allocation6 + $0x898] sm:$0xf]  ;;  %v9412_v31 = vor.u32 %v11148_v22, %v9411_v18  ;;  %4955 = vmatpush.bf16.msra.mxu0 %v9156_v29  ;;  %v7749_v18 = vld [vmem:[#allocation6 + $0x1f8] sm:$0xf0] }
 0x3b0   :  { %v10948_v28 = vld [vmem:[#allocation6 + $0x8b4] sm:$0xf0]  ;;  %v10792_v22 = vld [vmem:[#allocation6 + $0x3dc] sm:$0xf]  ;;  %v7752_v4 = vor.u32 %v10728_v17, %v7749_v18 }
 0x3b1   :  { %v8867_v30 = vld [vmem:[#allocation6 + $0xa98] sm:$0xf]  ;;  %v8612_v42 = vor.u32 %v10948_v28, %v8611_v27  ;;  %4968 = vmatpush.bf16.msra.mxu1 %v9412_v31  ;;  %v8261_v27 = vld [vmem:[#allocation6 + $0x5f8] sm:$0xf0] }
 0x3b2   :  { %v11012_v33 = vld [vmem:[#allocation6 + $0xab4] sm:$0xf0]  ;;  %v10920_v28 = vld [vmem:[#allocation6 + $0x7dc] sm:$0xf]  ;;  %v8264_v21 = vor.u32 %v10856_v20, %v8261_v27  ;;  %v8168_v20 = vor.u32 %v10832_v12, %v8165_v59 }
 0x3b3   :  { %v9123_v34 = vld [vmem:[#allocation6 + $0xc98] sm:$0xf]  ;;  %v8868_v43 = vor.u32 %v11012_v33, %v8867_v30  ;;  %4930 = vmatpush.bf16.msrb.mxu2 %v8612_v42  ;;  %v8517_v29 = vld [vmem:[#allocation6 + $0x7f8] sm:$0xf0]  ;;  %v8008_v30 = vor.u32 %v10792_v22, %v8005_v24 }
 0x3b4   :  { %v11076_v35 = vld [vmem:[#allocation6 + $0xcb4] sm:$0xf0]  ;;  %v10720_v33 = vld [vmem:[#allocation6 + $0x19c] sm:$0xf] }
 0x3b5   :  { %v9379_v37 = vld [vmem:[#allocation6 + $0xe98] sm:$0xf]  ;;  %v9124_v61 = vor.u32 %v11076_v35, %v9123_v34  ;;  %4943 = vmatpush.bf16.msrb.mxu3 %v8868_v43  ;;  %v7717_v34 = vld [vmem:[#allocation6 + $0x1b8] sm:$0xf0]  ;;  %v8520_v35 = vor.u32 %v10920_v28, %v8517_v29 }
 0x3b6   :  { %v11140_v38 = vld [vmem:[#allocation6 + $0xeb4] sm:$0xf0]  ;;  %v8485_v42 = vld [vmem:[#allocation6 + $0x7b8] sm:$0xf0]  ;;  %v7720_v43 = vor.u32 %v10720_v33, %v7717_v34 }
 0x3b7   :  { %v8579_v44 = vld [vmem:[#allocation6 + $0x858] sm:$0xf]  ;;  %v9380_v36 = vor.u32 %v11140_v38, %v9379_v37  ;;  %4956 = vmatpush.bf16.msra.mxu0 %v9124_v61  ;;  %v10784_v37 = vld [vmem:[#allocation6 + $0x39c] sm:$0xf] }
 0x3b8   :  { %v10940_v46 = vld [vmem:[#allocation6 + $0x874] sm:$0xf0]  ;;  %v7973_v38 = vld [vmem:[#allocation6 + $0x3b8] sm:$0xf0] }
 0x3b9   :  { %v8835_v51 = vld [vmem:[#allocation6 + $0xa58] sm:$0xf]  ;;  %v8580_v58 = vor.u32 %v10940_v46, %v8579_v44  ;;  %4969 = vmatpush.bf16.msra.mxu1 %v9380_v36  ;;  %v7976_v44 = vor.u32 %v10784_v37, %v7973_v38  ;;  %v10712_v46 = vld [vmem:[#allocation6 + $0x15c] sm:$0xf]  ;;  %v8232_v36 = vor.u32 %v10848_v39, %v8229_v49  ;;  %v4726_v37 = vpop.f32.mrf.mxu2  ;;  %v4739_v38 = vpop.f32.mrf.mxu3 }
 0x3ba   :  { %v11004_v56 = vld [vmem:[#allocation6 + $0xa74] sm:$0xf0]  ;;  %v7685_v61 = vld [vmem:[#allocation6 + $0x178] sm:$0xf0] }
 0x3bb   :  { %v9091_v57 = vld [vmem:[#allocation6 + $0xc58] sm:$0xf]  ;;  %v8836_v55 = vor.u32 %v11004_v56, %v8835_v51  ;;  %4931 = vmatpush.bf16.msrb.mxu2 %v8580_v58  ;;  %v8488_v51 = vor.u32 %v10912_v40, %v8485_v42  ;;  %v10776_v56 = vld [vmem:[#allocation6 + $0x35c] sm:$0xf]  ;;  %v4727_v42 = vadd.f32 %v4726_v37, %v12132_v25 }
 0x3bc   :  { %v11068_v60 = vld [vmem:[#allocation6 + $0xc74] sm:$0xf0]  ;;  %v10696_v22 = vld [vmem:[#allocation6 + $0xdc] sm:$0xf] }
 0x3bd   :  { %v9347_v63 = vld [vmem:[#allocation6 + $0xe58] sm:$0xf]  ;;  %v9092_v11 = vor.u32 %v11068_v60, %v9091_v57  ;;  %4944 = vmatpush.bf16.msrb.mxu3 %v8836_v55  ;;  %v7941_v57 = vld [vmem:[#allocation6 + $0x378] sm:$0xf0] }
 0x3be   :  { %v11132_v2 = vld [vmem:[#allocation6 + $0xe74] sm:$0xf0]  ;;  %v8197_v60 = vld [vmem:[#allocation6 + $0x578] sm:$0xf0]  ;;  %v7944_v58 = vor.u32 %v10776_v56, %v7941_v57 }
 0x3bf   :  { %v8547_v3 = vld [vmem:[#allocation6 + $0x818] sm:$0xf]  ;;  %v9348_v19 = vor.u32 %v11132_v2, %v9347_v63  ;;  %4957 = vmatpush.bf16.msra.mxu0 %v9092_v11  ;;  %v10904_v63 = vld [vmem:[#allocation6 + $0x75c] sm:$0xf] }
 0x3c0   :  { %v10932_v5 = vld [vmem:[#allocation6 + $0x834] sm:$0xf0]  ;;  %v8453_v2 = vld [vmem:[#allocation6 + $0x778] sm:$0xf0] }
 0x3c1   :  { %v8803_v8 = vld [vmem:[#allocation6 + $0xa18] sm:$0xf]  ;;  %v8548_v26 = vor.u32 %v10932_v5, %v8547_v3  ;;  %4970 = vmatpush.bf16.msra.mxu1 %v9348_v19  ;;  %v7688_v3 = vor.u32 %v10712_v46, %v7685_v61  ;;  %v10704_v55 = vld [vmem:[#allocation6 + $0x11c] sm:$0xf]  ;;  %v4740_v61 = vadd.f32 %v4739_v38, %v4727_v42 }
 0x3c2   :  { %v10996_v10 = vld [vmem:[#allocation6 + $0xa34] sm:$0xf0]  ;;  %v7653_v5 = vld [vmem:[#allocation6 + $0x138] sm:$0xf0] }
 0x3c3   :  { %v9059_v62 = vld [vmem:[#allocation6 + $0xc18] sm:$0xf]  ;;  %v8804_v9 = vor.u32 %v10996_v10, %v8803_v8  ;;  %4932 = vmatpush.bf16.msrb.mxu2 %v8548_v26  ;;  %v8200_v8 = vor.u32 %v10840_v52, %v8197_v60  ;;  %v8456_v10 = vor.u32 %v10904_v63, %v8453_v2  ;;  %v10768_v11 = vld [vmem:[#allocation6 + $0x31c] sm:$0xf]  ;;  %v7656_v17 = vor.u32 %v10704_v55, %v7653_v5 }
 0x3c4   :  { %v11060_v13 = vld [vmem:[#allocation6 + $0xc34] sm:$0xf0]  ;;  %v7909_v19 = vld [vmem:[#allocation6 + $0x338] sm:$0xf0] }
 0x3c5   :  { %v9315_v15 = vld [vmem:[#allocation6 + $0xe18] sm:$0xf]  ;;  %v9060_v31 = vor.u32 %v11060_v13, %v9059_v62  ;;  %4945 = vmatpush.bf16.msrb.mxu3 %v8804_v9  ;;  %v10896_v62 = vld [vmem:[#allocation6 + $0x71c] sm:$0xf]  ;;  %v7912_v18 = vor.u32 %v10768_v11, %v7909_v19 }
 0x3c6   :  { %v11124_v16 = vld [vmem:[#allocation6 + $0xe34] sm:$0xf0]  ;;  %4933 = vmatmul.bf16.vlgmr.msrb.gmra.mxu2 %v12033_v47  ;;  %v8421_v13 = vld [vmem:[#allocation6 + $0x738] sm:$0xf0] }
 0x3c7   :  { %v9316_v32 = vor.u32 %v11124_v16, %v9315_v15  ;;  %4958 = vmatpush.bf16.msra.mxu0 %v9060_v31  ;;  %4977 = vmatpush.bf16.msra.mxu2 %v7752_v4  ;;  %v4752_v15 = vpop.f32.mrf.mxu0  ;;  %v4765_v16 = vpop.f32.mrf.mxu1  ;;  %v7621_v24 = vld [vmem:[#allocation6 + $0xf8] sm:$0xf0]  ;;  %v8424_v26 = vor.u32 %v10896_v62, %v8421_v13 }
 0x3c8   :  { %4946 = vmatmul.bf16.vlgmr.msrb.gmra.mxu3 %v12035_v48  ;;  %v10760_v9 = vld [vmem:[#allocation6 + $0x2dc] sm:$0xf]  ;;  %v7624_v4 = vor.u32 %v10696_v22, %v7621_v24  ;;  %v4753_v25 = vadd.f32 %v4752_v15, %v4740_v61  ;;  %v4728_v24 = vpop.f32.mrf.mxu2 }
 0x3c9   :  { %4971 = vmatpush.bf16.msra.mxu1 %v9316_v32  ;;  %4990 = vmatpush.bf16.msra.mxu3 %v8008_v30  ;;  %v7877_v27 = vld [vmem:[#allocation6 + $0x2f8] sm:$0xf0] }
 0x3ca   :  { %4959 = vmatmul.bf16.vlgmr.msra.gmra.mxu0 %v12037_v53  ;;  %v10824_v28 = vld [vmem:[#allocation6 + $0x4dc] sm:$0xf]  ;;  %v7880_v30 = vor.u32 %v10760_v9, %v7877_v27  ;;  %v12139_v19 = vadd.f32 %v4765_v16, %v4753_v25 }
 0x3cb   :  { %5003 = vmatpush.bf16.msrb.mxu0 %v8264_v21  ;;  %4978 = vmatpush.bf16.msra.mxu2 %v7720_v43  ;;  %v8133_v29 = vld [vmem:[#allocation6 + $0x4f8] sm:$0xf0] }
 0x3cc   :  { %4972 = vmatmul.bf16.vlgmr.msra.gmra.mxu1 %v12039_v54  ;;  %v10888_v31 = vld [vmem:[#allocation6 + $0x6dc] sm:$0xf]  ;;  %v8136_v21 = vor.u32 %v10824_v28, %v8133_v29 }
 0x3cd   :  { %5016 = vmatpush.bf16.msrb.mxu1 %v8520_v35  ;;  %4991 = vmatpush.bf16.msra.mxu3 %v7976_v44  ;;  %v8389_v32 = vld [vmem:[#allocation6 + $0x6f8] sm:$0xf0] }
 0x3ce   :  { %v10688_v33 = vld [vmem:[#allocation6 + $0x9c] sm:$0xf]  ;;  %v8392_v35 = vor.u32 %v10888_v31, %v8389_v32 }
 0x3cf   :  { %5004 = vmatpush.bf16.msrb.mxu0 %v8232_v36  ;;  %4979 = vmatpush.bf16.msra.mxu2 %v7688_v3  ;;  %v7589_v34 = vld [vmem:[#allocation6 + $0xb8] sm:$0xf0]  ;;  %v4754_v36 = vpop.f32.mrf.mxu0 }
 0x3d0   :  { %v10752_v39 = vld [vmem:[#allocation6 + $0x29c] sm:$0xf]  ;;  %v7592_v56 = vor.u32 %v10688_v33, %v7589_v34 }
 0x3d1   :  { %5017 = vmatpush.bf16.msrb.mxu1 %v8488_v51  ;;  %4992 = vmatpush.bf16.msra.mxu3 %v7944_v58  ;;  %v7845_v49 = vld [vmem:[#allocation6 + $0x2b8] sm:$0xf0]  ;;  %v4767_v51 = vpop.f32.mrf.mxu1 }
 0x3d2   :  { %v10816_v40 = vld [vmem:[#allocation6 + $0x49c] sm:$0xf]  ;;  %v7848_v57 = vor.u32 %v10752_v39, %v7845_v49 }
 0x3d3   :  { %5005 = vmatpush.bf16.msrb.mxu0 %v8200_v8  ;;  %4980 = vmatpush.bf16.msra.mxu2 %v7656_v17  ;;  %v8101_v43 = vld [vmem:[#allocation6 + $0x4b8] sm:$0xf0] }
 0x3d4   :  { %v10880_v44 = vld [vmem:[#allocation6 + $0x69c] sm:$0xf]  ;;  %v8104_v63 = vor.u32 %v10816_v40, %v8101_v43 }
 0x3d5   :  { %5018 = vmatpush.bf16.msrb.mxu1 %v8456_v10  ;;  %4993 = vmatpush.bf16.msra.mxu3 %v7912_v18  ;;  %v8357_v46 = vld [vmem:[#allocation6 + $0x6b8] sm:$0xf0] }
 0x3d6   :  { %v10680_v52 = vld [vmem:[#allocation6 + $0x5c] sm:$0xf]  ;;  %v8360_v2 = vor.u32 %v10880_v44, %v8357_v46 }
 0x3d7   :  { %5006 = vmatpush.bf16.msrb.mxu0 %v8168_v20  ;;  %4981 = vmatpush.bf16.msra.mxu2 %v7624_v4  ;;  %v7557_v60 = vld [vmem:[#allocation6 + $0x78] sm:$0xf0]  ;;  %v4741_v20 = vpop.f32.mrf.mxu3 }
 0x3d8   :  { %v10744_v3 = vld [vmem:[#allocation6 + $0x25c] sm:$0xf]  ;;  %v7560_v12 = vor.u32 %v10680_v52, %v7557_v60 }
 0x3d9   :  { %5019 = vmatpush.bf16.msrb.mxu1 %v8424_v26  ;;  %4994 = vmatpush.bf16.msra.mxu3 %v7880_v30  ;;  %v7813_v58 = vld [vmem:[#allocation6 + $0x278] sm:$0xf0] }
 0x3da   :  { %v10808_v55 = vld [vmem:[#allocation6 + $0x45c] sm:$0xf]  ;;  %v7816_v59 = vor.u32 %v10744_v3, %v7813_v58 }
 0x3db   :  { %5007 = vmatpush.bf16.msrb.mxu0 %v8136_v21  ;;  %v8069_v5 = vld [vmem:[#allocation6 + $0x478] sm:$0xf0]  ;;  %4982 = vmatpush.bf16.msra.mxu2 %v7592_v56 }
 0x3dc   :  { %v10872_v8 = vld [vmem:[#allocation6 + $0x65c] sm:$0xf]  ;;  %v8072_v18 = vor.u32 %v10808_v55, %v8069_v5 }
 0x3dd   :  { %5020 = vmatpush.bf16.msrb.mxu1 %v8392_v35  ;;  %v8325_v10 = vld [vmem:[#allocation6 + $0x678] sm:$0xf0]  ;;  %4995 = vmatpush.bf16.msra.mxu3 %v7848_v57 }
 0x3de   :  { %v10672_v11 = vld [vmem:[#allocation6 + $0x1c] sm:$0xf]  ;;  %v8328_v22 = vor.u32 %v10872_v8, %v8325_v10 }
 0x3df   :  { %v7525_v62 = vld [vmem:[#allocation6 + $0x38] sm:$0xf0]  ;;  %5008 = vmatpush.bf16.msrb.mxu0 %v8104_v63  ;;  %4983 = vmatpush.bf16.msra.mxu2 %v7560_v12 }
 0x3e0   :  { %v10736_v13 = vld [vmem:[#allocation6 + $0x21c] sm:$0xf]  ;;  %v7528_v4 = vor.u32 %v10672_v11, %v7525_v62 }
 0x3e1   :  { %v7781_v17 = vld [vmem:[#allocation6 + $0x238] sm:$0xf0]  ;;  %5021 = vmatpush.bf16.msrb.mxu1 %v8360_v2  ;;  %4996 = vmatpush.bf16.msra.mxu3 %v7816_v59 }
 0x3e2   :  { %v10800_v15 = vld [vmem:[#allocation6 + $0x41c] sm:$0xf]  ;;  %v7784_v30 = vor.u32 %v10736_v13, %v7781_v17 }
 0x3e3   :  { %v8037_v26 = vld [vmem:[#allocation6 + $0x438] sm:$0xf0]  ;;  %5009 = vmatpush.bf16.msrb.mxu0 %v8072_v18  ;;  %4984 = vmatpush.bf16.msra.mxu2 %v7528_v4 }
 0x3e4   :  { %v10864_v9 = vld [vmem:[#allocation6 + $0x61c] sm:$0xf]  ;;  %v8040_v35 = vor.u32 %v10800_v15, %v8037_v26 }
 0x3e5   :  { %v8293_v27 = vld [vmem:[#allocation6 + $0x638] sm:$0xf0]  ;;  %5022 = vmatpush.bf16.msrb.mxu1 %v8328_v22  ;;  %4997 = vmatpush.bf16.msra.mxu3 %v7784_v30 }
 0x3e6   :  { %v10984_v28 = vld [vmem:[#allocation6 + $0x9dc] sm:$0xf]  ;;  %v8296_v37 = vor.u32 %v10864_v9, %v8293_v27  ;;  %4985 = vmatmul.bf16.vlgmr.msra.gmra.mxu2 %v12019_v0 }
 0x3e7   :  { %v8773_v16 = vld [vmem:[#allocation6 + $0x9f8] sm:$0xf0]  ;;  %5010 = vmatpush.bf16.msrb.mxu0 %v8040_v35 }
 0x3e8   :  { %v11048_v29 = vld [vmem:[#allocation6 + $0xbdc] sm:$0xf]  ;;  %v8776_v38 = vor.u32 %v10984_v28, %v8773_v16  ;;  %4998 = vmatmul.bf16.vlgmr.msra.gmra.mxu3 %v12021_v1 }
 0x3e9   :  { %v9029_v31 = vld [vmem:[#allocation6 + $0xbf8] sm:$0xf0]  ;;  %5023 = vmatpush.bf16.msrb.mxu1 %v8296_v37 }
 0x3ea   :  { %v11112_v32 = vld [vmem:[#allocation6 + $0xddc] sm:$0xf]  ;;  %v9032_v39 = vor.u32 %v11048_v29, %v9029_v31  ;;  %5029 = vmatpush.bf16.msrb.mxu2 %v8776_v38  ;;  %5011 = vmatmul.bf16.vlgmr.msrb.gmra.mxu0 %v12023_v6  ;;  %v4804_v6 = vpop.f32.mrf.mxu0 }
 0x3eb   :  { %v9285_v33 = vld [vmem:[#allocation6 + $0xdf8] sm:$0xf0] }
 0x3ec   :  { %v11176_v34 = vld [vmem:[#allocation6 + $0xfdc] sm:$0xf]  ;;  %v9288_v42 = vor.u32 %v11112_v32, %v9285_v33  ;;  %5042 = vmatpush.bf16.msrb.mxu3 %v9032_v39  ;;  %5024 = vmatmul.bf16.vlgmr.msrb.gmra.mxu1 %v12025_v7  ;;  %v12145_v7 = vpop.f32.mrf.mxu1 }
 0x3ed   :  { %v9541_v21 = vld [vmem:[#allocation6 + $0xff8] sm:$0xf0] }
 0x3ee   :  { %v10976_v49 = vld [vmem:[#allocation6 + $0x99c] sm:$0xf]  ;;  %v9544_v43 = vor.u32 %v11176_v34, %v9541_v21  ;;  %5055 = vmatpush.bf16.msra.mxu0 %v9288_v42  ;;  %v1678_v34 = vperm.slane %v12128_v23, 5  ;;  %v4791_v42 = vpop.f32.mrf.mxu3 }
 0x3ef   :  { %v8741_v40 = vld [vmem:[#allocation6 + $0x9b8] sm:$0xf0] }
 0x3f0   :  { %v11040_v44 = vld [vmem:[#allocation6 + $0xb9c] sm:$0xf]  ;;  %v8744_v57 = vor.u32 %v10976_v49, %v8741_v40  ;;  %5068 = vmatpush.bf16.msra.mxu1 %v9544_v43  ;;  %v4778_v40 = vpop.f32.mrf.mxu2 }
 0x3f1   :  { %v8997_v46 = vld [vmem:[#allocation6 + $0xbb8] sm:$0xf0] }
 0x3f2   :  { %v11104_v61 = vld [vmem:[#allocation6 + $0xd9c] sm:$0xf]  ;;  %v9000_v52 = vor.u32 %v11040_v44, %v8997_v46  ;;  %5030 = vmatpush.bf16.msrb.mxu2 %v8744_v57  ;;  %v4806_v57 = vpop.f32.mrf.mxu0 }
 0x3f3   :  { %v9253_v36 = vld [vmem:[#allocation6 + $0xdb8] sm:$0xf0] }
 0x3f4   :  { %v11168_v51 = vld [vmem:[#allocation6 + $0xf9c] sm:$0xf]  ;;  %v9256_v2 = vor.u32 %v11104_v61, %v9253_v36  ;;  %5043 = vmatpush.bf16.msrb.mxu3 %v9000_v52  ;;  %v4779_v61 = vadd.f32 %v4778_v40, %v1678_v34  ;;  %v4819_v52 = vpop.f32.mrf.mxu1  ;;  %v10043_v34 = vld [vmem:[%s13820_s5 + $0x3e0] sm:$0xf]  ;;  %v11207_v40 = vld [vmem:[%s13820_s5 + $0xcc] sm:$0xf0] }
 0x3f5   :  { %v9509_v56 = vld [vmem:[#allocation6 + $0xfb8] sm:$0xf0]  ;;  %v9627_v52 = vld [vmem:[%s13820_s5 + $0xa0] sm:$0xf] }
 0x3f6   :  { %v10968_v60 = vld [vmem:[#allocation6 + $0x95c] sm:$0xf]  ;;  %v9512_v3 = vor.u32 %v11168_v51, %v9509_v56  ;;  %5056 = vmatpush.bf16.msra.mxu0 %v9256_v2  ;;  %v4792_v23 = vadd.f32 %v4791_v42, %v4779_v61  ;;  %v9899_v61 = vld [vmem:[%s13820_s5 + $0x2c0] sm:$0xf] }
 0x3f7   :  { %v8709_v63 = vld [vmem:[#allocation6 + $0x978] sm:$0xf0] }
 0x3f8   :  { %v11032_v58 = vld [vmem:[#allocation6 + $0xb5c] sm:$0xf]  ;;  %v8712_v11 = vor.u32 %v10968_v60, %v8709_v63  ;;  %5069 = vmatpush.bf16.msra.mxu1 %v9512_v3 }
 0x3f9   :  { %v8965_v55 = vld [vmem:[#allocation6 + $0xb78] sm:$0xf0] }
 0x3fa   :  { %v11096_v25 = vld [vmem:[#allocation6 + $0xd5c] sm:$0xf]  ;;  %v8968_v12 = vor.u32 %v11032_v58, %v8965_v55  ;;  %5031 = vmatpush.bf16.msrb.mxu2 %v8712_v11 }
 0x3fb   :  { %v9221_v5 = vld [vmem:[#allocation6 + $0xd78] sm:$0xf0] }
 0x3fc   :  { %v11160_v8 = vld [vmem:[#allocation6 + $0xf5c] sm:$0xf]  ;;  %v9224_v13 = vor.u32 %v11096_v25, %v9221_v5  ;;  %5044 = vmatpush.bf16.msrb.mxu3 %v8968_v12 }
 0x3fd   :  { %v9477_v10 = vld [vmem:[#allocation6 + $0xf78] sm:$0xf0] }
 0x3fe   :  { %v10960_v59 = vld [vmem:[#allocation6 + $0x91c] sm:$0xf]  ;;  %v9480_v17 = vor.u32 %v11160_v8, %v9477_v10  ;;  %5057 = vmatpush.bf16.msra.mxu0 %v9224_v13  ;;  %v4805_v10 = vadd.f32 %v4804_v6, %v4792_v23  ;;  %v4793_v6 = vpop.f32.mrf.mxu3 }
 0x3ff   :  { %v8677_v62 = vld [vmem:[#allocation6 + $0x938] sm:$0xf0]  ;;  %v11195_v6 = vld [vmem:[%s13820_s5 + $0x6c] sm:$0xf0] }
 0x400   :  { %v11024_v0 = vld [vmem:[#allocation6 + $0xb1c] sm:$0xf]  ;;  %v8680_v15 = vor.u32 %v10960_v59, %v8677_v62  ;;  %5070 = vmatpush.bf16.msra.mxu1 %v9480_v17 }
 0x401   :  { %v8933_v18 = vld [vmem:[#allocation6 + $0xb38] sm:$0xf0] }
 0x402   :  { %v11088_v1 = vld [vmem:[#allocation6 + $0xd1c] sm:$0xf]  ;;  %v8936_v26 = vor.u32 %v11024_v0, %v8933_v18  ;;  %5032 = vmatpush.bf16.msrb.mxu2 %v8680_v15  ;;  %v4780_v15 = vpop.f32.mrf.mxu2 }
 0x403   :  { %v9189_v22 = vld [vmem:[#allocation6 + $0xd38] sm:$0xf0]  ;;  %v9595_v15 = vld [vmem:[%s13820_s5 + $0x60] sm:$0xf] }
 0x404   :  { %v11152_v24 = vld [vmem:[#allocation6 + $0xf1c] sm:$0xf]  ;;  %v9192_v16 = vor.u32 %v11088_v1, %v9189_v22  ;;  %5045 = vmatpush.bf16.msrb.mxu3 %v8936_v26  ;;  %v12149_v22 = vadd.f32 %v12145_v7, %v4805_v10  ;;  %v9787_v7 = vld [vmem:[%s13820_s5 + $0x1e0] sm:$0xf] }
 0x405   :  { %v9445_v20 = vld [vmem:[#allocation6 + $0xf38] sm:$0xf0]  ;;  %v9611_v10 = vld [vmem:[%s13820_s5 + $0x80] sm:$0xf] }
 0x406   :  { %v10952_v9 = vld [vmem:[#allocation6 + $0x8dc] sm:$0xf]  ;;  %v9448_v29 = vor.u32 %v11152_v24, %v9445_v20  ;;  %5058 = vmatpush.bf16.msra.mxu0 %v9192_v16  ;;  %v9659_v16 = vld [vmem:[%s13820_s5 + $0xe0] sm:$0xf] }
 0x407   :  { %v8645_v27 = vld [vmem:[#allocation6 + $0x8f8] sm:$0xf0] }
 0x408   :  { %v11016_v28 = vld [vmem:[#allocation6 + $0xadc] sm:$0xf]  ;;  %v8648_v21 = vor.u32 %v10952_v9, %v8645_v27  ;;  %5071 = vmatpush.bf16.msra.mxu1 %v9448_v29  ;;  %v11211_v29 = vld [vmem:[%s13820_s5 + $0xec] sm:$0xf0] }
 0x409   :  { %v8901_v31 = vld [vmem:[#allocation6 + $0xaf8] sm:$0xf0] }
 0x40a   :  { %v11080_v32 = vld [vmem:[#allocation6 + $0xcdc] sm:$0xf]  ;;  %v8904_v35 = vor.u32 %v11016_v28, %v8901_v31  ;;  %5033 = vmatpush.bf16.msrb.mxu2 %v8648_v21  ;;  %v11243_v31 = vld [vmem:[%s13820_s5 + $0x1ec] sm:$0xf0] }
 0x40b   :  { %v9157_v4 = vld [vmem:[#allocation6 + $0xcf8] sm:$0xf0]  ;;  %v11307_v21 = vld [vmem:[%s13820_s5 + $0x3ec] sm:$0xf0] }
 0x40c   :  { %v11144_v30 = vld [vmem:[#allocation6 + $0xedc] sm:$0xf]  ;;  %v9160_v39 = vor.u32 %v11080_v32, %v9157_v4  ;;  %5046 = vmatpush.bf16.msrb.mxu3 %v8904_v35  ;;  %v9915_v32 = vld [vmem:[%s13820_s5 + $0x2e0] sm:$0xf] }
 0x40d   :  { %v9413_v33 = vld [vmem:[#allocation6 + $0xef8] sm:$0xf0] }
 0x40e   :  { %v10944_v37 = vld [vmem:[#allocation6 + $0x89c] sm:$0xf]  ;;  %v9416_v49 = vor.u32 %v11144_v30, %v9413_v33  ;;  %5059 = vmatpush.bf16.msra.mxu0 %v9160_v39  ;;  %v11275_v33 = vld [vmem:[%s13820_s5 + $0x2ec] sm:$0xf0]  ;;  %v9788_v39 = vor.u32 %v11243_v31, %v9787_v7  ;;  %v9979_v7 = vld [vmem:[%s13820_s5 + $0x360] sm:$0xf] }
 0x40f   :  { %v8613_v38 = vld [vmem:[#allocation6 + $0x8b8] sm:$0xf0]  ;;  %v9916_v42 = vor.u32 %v11275_v33, %v9915_v32  ;;  %v11291_v31 = vld [vmem:[%s13820_s5 + $0x36c] sm:$0xf0]  ;;  %v9596_v32 = vor.u32 %v11195_v6, %v9595_v15 }
 0x410   :  { %v11008_v43 = vld [vmem:[#allocation6 + $0xa9c] sm:$0xf]  ;;  %v8616_v60 = vor.u32 %v10944_v37, %v8613_v38  ;;  %5072 = vmatpush.bf16.msra.mxu1 %v9416_v49  ;;  %v9660_v38 = vor.u32 %v11211_v29, %v9659_v16  ;;  %v9643_v49 = vld [vmem:[%s13820_s5 + $0xc0] sm:$0xf]  ;;  %v11259_v29 = vld [vmem:[%s13820_s5 + $0x26c] sm:$0xf0] }
 0x411   :  { %v8869_v44 = vld [vmem:[#allocation6 + $0xab8] sm:$0xf0]  ;;  %v9644_v23 = vor.u32 %v11207_v40, %v9643_v49  ;;  %v9851_v16 = vld [vmem:[%s13820_s5 + $0x260] sm:$0xf]  ;;  %v11191_v33 = vld [vmem:[%s13820_s5 + $0x4c] sm:$0xf0] }
 0x412   :  { %v11072_v46 = vld [vmem:[#allocation6 + $0xc9c] sm:$0xf]  ;;  %v8872_v63 = vor.u32 %v11008_v43, %v8869_v44  ;;  %5034 = vmatpush.bf16.msrb.mxu2 %v8616_v60  ;;  %v10044_v43 = vor.u32 %v11307_v21, %v10043_v34  ;;  %v9771_v44 = vld [vmem:[%s13820_s5 + $0x1c0] sm:$0xf]  ;;  %v11203_v60 = vld [vmem:[%s13820_s5 + $0xac] sm:$0xf0]  ;;  %v9852_v34 = vor.u32 %v11259_v29, %v9851_v16  ;;  %v9980_v21 = vor.u32 %v11291_v31, %v9979_v7 }
 0x413   :  { %v9125_v36 = vld [vmem:[#allocation6 + $0xcb8] sm:$0xf0]  ;;  %v9835_v49 = vld [vmem:[%s13820_s5 + $0x240] sm:$0xf]  ;;  %v11255_v40 = vld [vmem:[%s13820_s5 + $0x24c] sm:$0xf0] }
 0x414   :  { %v11136_v51 = vld [vmem:[#allocation6 + $0xe9c] sm:$0xf]  ;;  %v9128_v58 = vor.u32 %v11072_v46, %v9125_v36  ;;  %5047 = vmatpush.bf16.msrb.mxu3 %v8872_v63  ;;  %v11239_v46 = vld [vmem:[%s13820_s5 + $0x1cc] sm:$0xf0]  ;;  %v5083_v7 = vmax.f32 %v12103_v45, 0.0  ;;  %v5084_v31 = vmax.f32 %v12120_v50, 0.0 }
 0x415   :  { %v9381_v56 = vld [vmem:[#allocation6 + $0xeb8] sm:$0xf0]  ;;  %v11271_v36 = vld [vmem:[%s13820_s5 + $0x2cc] sm:$0xf0]  ;;  %v9772_v57 = vor.u32 %v11239_v46, %v9771_v44  ;;  %v10411_v50 = vld [vmem:[%s13820_s5 + $0x6c0] sm:$0xf] }
 0x416   :  { %v10936_v2 = vld [vmem:[#allocation6 + $0x85c] sm:$0xf]  ;;  %v9384_v55 = vor.u32 %v11136_v51, %v9381_v56  ;;  %5060 = vmatpush.bf16.msra.mxu0 %v9128_v58  ;;  %v10027_v51 = vld [vmem:[%s13820_s5 + $0x3c0] sm:$0xf]  ;;  %v11303_v56 = vld [vmem:[%s13820_s5 + $0x3cc] sm:$0xf0]  ;;  %v9900_v63 = vor.u32 %v11271_v36, %v9899_v61 }
 0x417   :  { %v8581_v3 = vld [vmem:[#allocation6 + $0x878] sm:$0xf0]  ;;  %v11235_v58 = vld [vmem:[%s13820_s5 + $0x1ac] sm:$0xf0] }
 0x418   :  { %v11000_v25 = vld [vmem:[#allocation6 + $0xa5c] sm:$0xf]  ;;  %v8584_v13 = vor.u32 %v10936_v2, %v8581_v3  ;;  %5073 = vmatpush.bf16.msra.mxu1 %v9384_v55  ;;  %v10028_v2 = vor.u32 %v11303_v56, %v10027_v51  ;;  %v9755_v3 = vld [vmem:[%s13820_s5 + $0x1a0] sm:$0xf]  ;;  %v11187_v56 = vld [vmem:[%s13820_s5 + $0x2c] sm:$0xf0] }
 0x419   :  { %v8837_v5 = vld [vmem:[#allocation6 + $0xa78] sm:$0xf0]  ;;  %v9883_v55 = vld [vmem:[%s13820_s5 + $0x2a0] sm:$0xf]  ;;  %v11367_v45 = vld [vmem:[%s13820_s5 + $0x5cc] sm:$0xf0] }
 0x41a   :  { %v11064_v8 = vld [vmem:[#allocation6 + $0xc5c] sm:$0xf]  ;;  %v8840_v17 = vor.u32 %v11000_v25, %v8837_v5  ;;  %5035 = vmatpush.bf16.msrb.mxu2 %v8584_v13  ;;  %v11267_v25 = vld [vmem:[%s13820_s5 + $0x2ac] sm:$0xf0]  ;;  %v10011_v5 = vld [vmem:[%s13820_s5 + $0x3a0] sm:$0xf] }
 0x41b   :  { %v9093_v11 = vld [vmem:[#allocation6 + $0xc78] sm:$0xf0]  ;;  %v11263_v13 = vld [vmem:[%s13820_s5 + $0x28c] sm:$0xf0]  ;;  %v9563_v51 = vld [vmem:[%s13820_s5 + $0x20] sm:$0xf] }
 0x41c   :  { %v11128_v12 = vld [vmem:[#allocation6 + $0xe5c] sm:$0xf]  ;;  %v9096_v24 = vor.u32 %v11064_v8, %v9093_v11  ;;  %5048 = vmatpush.bf16.msrb.mxu3 %v8840_v17  ;;  %v11299_v8 = vld [vmem:[%s13820_s5 + $0x3ac] sm:$0xf0]  ;;  %v9995_v17 = vld [vmem:[%s13820_s5 + $0x380] sm:$0xf] }
 0x41d   :  { %v9349_v59 = vld [vmem:[#allocation6 + $0xe78] sm:$0xf0]  ;;  %v11199_v11 = vld [vmem:[%s13820_s5 + $0x8c] sm:$0xf0] }
 0x41e   :  { %v10928_v62 = vld [vmem:[#allocation6 + $0x81c] sm:$0xf]  ;;  %v9352_v20 = vor.u32 %v11128_v12, %v9349_v59  ;;  %5061 = vmatpush.bf16.msra.mxu0 %v9096_v24  ;;  %v9884_v12 = vor.u32 %v11267_v25, %v9883_v55  ;;  %v10012_v59 = vor.u32 %v11299_v8, %v10011_v5  ;;  %v9612_v24 = vor.u32 %v11199_v11, %v9611_v10  ;;  %v9547_v5 = vld [vmem:[%s13820_s5] sm:$0xf]  ;;  %v11183_v8 = vld [vmem:[%s13820_s5 + $0xc] sm:$0xf0] }
 0x41f   :  { %v8549_v0 = vld [vmem:[#allocation6 + $0x838] sm:$0xf0]  ;;  %v9564_v55 = vor.u32 %v11187_v56, %v9563_v51  ;;  %v9548_v15 = vor.u32 %v11183_v8, %v9547_v5  ;;  %v10395_v51 = vld [vmem:[%s13820_s5 + $0x6a0] sm:$0xf]  ;;  %v11395_v56 = vld [vmem:[%s13820_s5 + $0x6ac] sm:$0xf0] }
 0x420   :  { %v10992_v18 = vld [vmem:[#allocation6 + $0xa1c] sm:$0xf]  ;;  %v8552_v4 = vor.u32 %v10928_v62, %v8549_v0  ;;  %5074 = vmatpush.bf16.msra.mxu1 %v9352_v20  ;;  %v9867_v62 = vld [vmem:[%s13820_s5 + $0x280] sm:$0xf]  ;;  %v11295_v0 = vld [vmem:[%s13820_s5 + $0x38c] sm:$0xf0] }
 0x421   :  { %v8805_v1 = vld [vmem:[#allocation6 + $0xa38] sm:$0xf0] }
 0x422   :  { %v11056_v26 = vld [vmem:[#allocation6 + $0xc1c] sm:$0xf]  ;;  %v8808_v30 = vor.u32 %v10992_v18, %v8805_v1  ;;  %5036 = vmatpush.bf16.msrb.mxu2 %v8552_v4  ;;  %v12251_v18 = vpop.f32.mrf.mxu0  ;;  %v12253_v1 = vpop.f32.mrf.mxu1 }
 0x423   :  { %v9061_v9 = vld [vmem:[#allocation6 + $0xc38] sm:$0xf0] }
 0x424   :  { %v11120_v27 = vld [vmem:[#allocation6 + $0xe1c] sm:$0xf]  ;;  %v9064_v35 = vor.u32 %v11056_v26, %v9061_v9  ;;  %5049 = vmatpush.bf16.msrb.mxu3 %v8808_v30  ;;  %v9868_v26 = vor.u32 %v11263_v13, %v9867_v62  ;;  %v9996_v9 = vor.u32 %v11295_v0, %v9995_v17  ;;  %v9579_v30 = vld [vmem:[%s13820_s5 + $0x40] sm:$0xf]  ;;  %v11279_v13 = vld [vmem:[%s13820_s5 + $0x30c] sm:$0xf0] }
 0x425   :  { %v9317_v28 = vld [vmem:[#allocation6 + $0xe38] sm:$0xf0]  ;;  %5037 = vmatmul.bf16.vlgmr.msrb.gmra.mxu2 %v12033_v47  ;;  %v9628_v47 = vor.u32 %v11203_v60, %v9627_v52  ;;  %v9580_v61 = vor.u32 %v11191_v33, %v9579_v30  ;;  %v9691_v52 = vld [vmem:[%s13820_s5 + $0x120] sm:$0xf]  ;;  %v11219_v60 = vld [vmem:[%s13820_s5 + $0x12c] sm:$0xf0] }
 0x426   :  { %v9320_v37 = vor.u32 %v11120_v27, %v9317_v28  ;;  %5062 = vmatpush.bf16.msra.mxu0 %v9064_v35  ;;  %6643 = vmatpush.bf16.msra.mxu2 %v9660_v38  ;;  %v9723_v27 = vld [vmem:[%s13820_s5 + $0x160] sm:$0xf]  ;;  %v11227_v28 = vld [vmem:[%s13820_s5 + $0x16c] sm:$0xf0]  ;;  %v12285_v35 = vpop.f32.mrf.mxu2  ;;  %v9692_v25 = vor.u32 %v11219_v60, %v9691_v52  ;;  %v10396_v60 = vor.u32 %v11395_v56, %v10395_v51  ;;  %v9661_v56 = vld [vmem:[%s13820_s5 + $0xf0] sm:$0xf0] }
 0x427   :  { %5050 = vmatmul.bf16.vlgmr.msrb.gmra.mxu3 %v12035_v48  ;;  %v9756_v48 = vor.u32 %v11235_v58, %v9755_v3  ;;  %v9724_v4 = vor.u32 %v11227_v28, %v9723_v27  ;;  %v9707_v38 = vld [vmem:[%s13820_s5 + $0x140] sm:$0xf]  ;;  %v11283_v58 = vld [vmem:[%s13820_s5 + $0x32c] sm:$0xf0]  ;;  %v5081_v27 = vmax.f32 %v12074_v14, 0.0  ;;  %v5082_v28 = vmax.f32 %v12084_v41, 0.0 }
 0x428   :  { %5075 = vmatpush.bf16.msra.mxu1 %v9320_v37  ;;  %6656 = vmatpush.bf16.msra.mxu3 %v9788_v39  ;;  %v12287_v37 = vpop.f32.mrf.mxu3  ;;  %v11223_v39 = vld [vmem:[%s13820_s5 + $0x14c] sm:$0xf0]  ;;  %v9947_v3 = vld [vmem:[%s13820_s5 + $0x320] sm:$0xf] }
 0x429   :  { %5063 = vmatmul.bf16.vlgmr.msra.gmra.mxu0 %v12037_v53  ;;  %v9739_v53 = vld [vmem:[%s13820_s5 + $0x180] sm:$0xf]  ;;  %v9708_v36 = vor.u32 %v11223_v39, %v9707_v38  ;;  %v9948_v10 = vor.u32 %v11283_v58, %v9947_v3  ;;  %v11339_v0 = vld [vmem:[%s13820_s5 + $0x4ec] sm:$0xf0]  ;;  %v12397_v38 = vpack.c.bf16 %v5082_v28, %v5082_v28  ;;  %v12399_v39 = vpack.c.bf16 %v5083_v7, %v5083_v7 }
 0x42a   :  { %6669 = vmatpush.bf16.msrb.mxu0 %v9916_v42  ;;  %6644 = vmatpush.bf16.msra.mxu2 %v9644_v23  ;;  %v9963_v42 = vld [vmem:[%s13820_s5 + $0x340] sm:$0xf]  ;;  %v4858_v44 = vpop.f32.mrf.mxu0  ;;  %v4871_v46 = vpop.f32.mrf.mxu1  ;;  %v9836_v23 = vor.u32 %v11255_v40, %v9835_v49  ;;  %v11335_v14 = vld [vmem:[%s13820_s5 + $0x4cc] sm:$0xf0] }
 0x42b   :  { %5076 = vmatmul.bf16.vlgmr.msra.gmra.mxu1 %v12039_v54  ;;  %v11231_v54 = vld [vmem:[%s13820_s5 + $0x18c] sm:$0xf0]  ;;  %v9931_v62 = vld [vmem:[%s13820_s5 + $0x300] sm:$0xf] }
 0x42c   :  { %6682 = vmatpush.bf16.msrb.mxu1 %v10044_v43  ;;  %6657 = vmatpush.bf16.msra.mxu3 %v9772_v57  ;;  %v9740_v20 = vor.u32 %v11231_v54, %v9739_v53  ;;  %v11287_v43 = vld [vmem:[%s13820_s5 + $0x34c] sm:$0xf0]  ;;  %v9803_v53 = vld [vmem:[%s13820_s5 + $0x200] sm:$0xf]  ;;  %v9932_v29 = vor.u32 %v11279_v13, %v9931_v62 }
 0x42d   :  { %v9964_v57 = vor.u32 %v11287_v43, %v9963_v42  ;;  %v11247_v54 = vld [vmem:[%s13820_s5 + $0x20c] sm:$0xf0]  ;;  %v10171_v17 = vld [vmem:[%s13820_s5 + $0x4e0] sm:$0xf]  ;;  %v12404_v43 = vpack.c.bf16 %v5084_v31, %v5084_v31 }
 0x42e   :  { %6670 = vmatpush.bf16.msrb.mxu0 %v9900_v63  ;;  %6645 = vmatpush.bf16.msra.mxu2 %v9628_v47  ;;  %v9819_v63 = vld [vmem:[%s13820_s5 + $0x220] sm:$0xf]  ;;  %v4832_v11 = vpop.f32.mrf.mxu2  ;;  %v9804_v16 = vor.u32 %v11247_v54, %v9803_v53  ;;  %v11331_v46 = vld [vmem:[%s13820_s5 + $0x4ac] sm:$0xf0] }
 0x42f   :  { %v9675_v47 = vld [vmem:[%s13820_s5 + $0x100] sm:$0xf]  ;;  %v11359_v3 = vld [vmem:[%s13820_s5 + $0x58c] sm:$0xf0] }
 0x430   :  { %6683 = vmatpush.bf16.msrb.mxu1 %v10028_v2  ;;  %6658 = vmatpush.bf16.msra.mxu3 %v9756_v48  ;;  %v11251_v2 = vld [vmem:[%s13820_s5 + $0x22c] sm:$0xf0]  ;;  %v10155_v30 = vld [vmem:[%s13820_s5 + $0x4c0] sm:$0xf] }
 0x431   :  { %v9820_v48 = vor.u32 %v11251_v2, %v9819_v63  ;;  %v10283_v41 = vld [vmem:[%s13820_s5 + $0x5c0] sm:$0xf]  ;;  %v10156_v49 = vor.u32 %v11335_v14, %v10155_v30  ;;  %v11327_v63 = vld [vmem:[%s13820_s5 + $0x48c] sm:$0xf0] }
 0x432   :  { %6671 = vmatpush.bf16.msrb.mxu0 %v9884_v12  ;;  %6646 = vmatpush.bf16.msra.mxu2 %v9612_v24  ;;  %v4845_v12 = vpop.f32.mrf.mxu3  ;;  %v10299_v24 = vld [vmem:[%s13820_s5 + $0x5e0] sm:$0xf]  ;;  %v10284_v40 = vor.u32 %v11367_v45, %v10283_v41  ;;  %v12445_v5 = vpop.f32.mrf.mxu1  ;;  %v11355_v53 = vld [vmem:[%s13820_s5 + $0x56c] sm:$0xf0] }
 0x433   :  { %v10139_v42 = vld [vmem:[%s13820_s5 + $0x4a0] sm:$0xf]  ;;  %v11323_v12 = vld [vmem:[%s13820_s5 + $0x46c] sm:$0xf0] }
 0x434   :  { %6684 = vmatpush.bf16.msrb.mxu1 %v10012_v59  ;;  %6659 = vmatpush.bf16.msra.mxu3 %v9740_v20  ;;  %v11215_v59 = vld [vmem:[%s13820_s5 + $0x10c] sm:$0xf0]  ;;  %v10123_v52 = vld [vmem:[%s13820_s5 + $0x480] sm:$0xf] }
 0x435   :  { %v11371_v20 = vld [vmem:[%s13820_s5 + $0x5ec] sm:$0xf0]  ;;  %v9676_v6 = vor.u32 %v11215_v59, %v9675_v47  ;;  %v10251_v2 = vld [vmem:[%s13820_s5 + $0x580] sm:$0xf]  ;;  %v10124_v8 = vor.u32 %v11327_v63, %v10123_v52  ;;  %v11273_v52 = vld [vmem:[%s13820_s5 + $0x2e4] sm:$0xf] }
 0x436   :  { %6672 = vmatpush.bf16.msrb.mxu0 %v9868_v26  ;;  %6647 = vmatpush.bf16.msra.mxu2 %v9596_v32  ;;  %v10427_v26 = vld [vmem:[%s13820_s5 + $0x6e0] sm:$0xf]  ;;  %v10172_v32 = vor.u32 %v11339_v0, %v10171_v17  ;;  %v10252_v47 = vor.u32 %v11359_v3, %v10251_v2  ;;  %v12471_v0 = vpop.f32.mrf.mxu2  ;;  %v11375_v51 = vld [vmem:[%s13820_s5 + $0x60c] sm:$0xf0]  ;;  %v5085_v63 = vmax.f32 %v12139_v19, 0.0 }
 0x437   :  { %v10379_v58 = vld [vmem:[%s13820_s5 + $0x680] sm:$0xf]  ;;  %v9645_v19 = vld [vmem:[%s13820_s5 + $0xd0] sm:$0xf0] }
 0x438   :  { %6685 = vmatpush.bf16.msrb.mxu1 %v9996_v9  ;;  %6660 = vmatpush.bf16.msra.mxu3 %v9724_v4  ;;  %v11403_v9 = vld [vmem:[%s13820_s5 + $0x6ec] sm:$0xf0]  ;;  %v10300_v4 = vor.u32 %v11371_v20, %v10299_v24  ;;  %v10235_v59 = vld [vmem:[%s13820_s5 + $0x560] sm:$0xf] }
 0x439   :  { %v10428_v33 = vor.u32 %v11403_v9, %v10427_v26  ;;  %v10363_v54 = vld [vmem:[%s13820_s5 + $0x660] sm:$0xf]  ;;  %v10236_v62 = vor.u32 %v11355_v53, %v10235_v59  ;;  %v11351_v26 = vld [vmem:[%s13820_s5 + $0x54c] sm:$0xf0]  ;;  %v11237_v59 = vld [vmem:[%s13820_s5 + $0x1c4] sm:$0xf] }
 0x43a   :  { %6673 = vmatpush.bf16.msrb.mxu0 %v9852_v34  ;;  %6648 = vmatpush.bf16.msra.mxu2 %v9580_v61  ;;  %v11399_v34 = vld [vmem:[%s13820_s5 + $0x6cc] sm:$0xf0]  ;;  %v10267_v61 = vld [vmem:[%s13820_s5 + $0x5a0] sm:$0xf]  ;;  %v12473_v24 = vpop.f32.mrf.mxu3  ;;  %v4923_v28 = vpop.f32.mrf.mxu1 }
 0x43b   :  { %v10412_v44 = vor.u32 %v11399_v34, %v10411_v50  ;;  %v10091_v13 = vld [vmem:[%s13820_s5 + $0x440] sm:$0xf]  ;;  %v11383_v9 = vld [vmem:[%s13820_s5 + $0x64c] sm:$0xf0]  ;;  %v11201_v28 = vld [vmem:[%s13820_s5 + $0xa4] sm:$0xf] }
 0x43c   :  { %6686 = vmatpush.bf16.msrb.mxu1 %v9980_v21  ;;  %6661 = vmatpush.bf16.msra.mxu3 %v9708_v36  ;;  %v12395_v21 = vpack.c.bf16 %v5081_v27, %v5081_v27  ;;  %v11363_v36 = vld [vmem:[%s13820_s5 + $0x5ac] sm:$0xf0]  ;;  %v10075_v7 = vld [vmem:[%s13820_s5 + $0x420] sm:$0xf] }
 0x43d   :  { %v10203_v30 = vld [vmem:[%s13820_s5 + $0x520] sm:$0xf]  ;;  %v11311_v34 = vld [vmem:[%s13820_s5 + $0x40c] sm:$0xf0] }
 0x43e   :  { %6674 = vmatpush.bf16.msrb.mxu0 %v9836_v23  ;;  %6649 = vmatpush.bf16.msra.mxu2 %v9564_v55  ;;  %v10140_v23 = vor.u32 %v11331_v46, %v10139_v42  ;;  %v11391_v55 = vld [vmem:[%s13820_s5 + $0x68c] sm:$0xf0]  ;;  %v10331_v14 = vld [vmem:[%s13820_s5 + $0x620] sm:$0xf]  ;;  %v4884_v42 = vpop.f32.mrf.mxu2 }
 0x43f   :  { %v10380_v11 = vor.u32 %v11391_v55, %v10379_v58  ;;  %v10059_v50 = vld [vmem:[%s13820_s5 + $0x400] sm:$0xf] }
 0x440   :  { %6687 = vmatpush.bf16.msrb.mxu1 %v9964_v57  ;;  %6662 = vmatpush.bf16.msra.mxu3 %v9692_v25  ;;  %v10268_v57 = vor.u32 %v11363_v36, %v10267_v61  ;;  %v12443_v25 = vpop.f32.mrf.mxu0  ;;  %v11343_v61 = vld [vmem:[%s13820_s5 + $0x50c] sm:$0xf0]  ;;  %v10315_v36 = vld [vmem:[%s13820_s5 + $0x600] sm:$0xf]  ;;  %v10060_v2 = vor.u32 %v11311_v34, %v10059_v50  ;;  %v9613_v50 = vld [vmem:[%s13820_s5 + $0x90] sm:$0xf0] }
 0x441   :  { %v12547_v55 = vld [vmem:[#allocation8] sm:$0xff]  ;;  %v11229_v34 = vld [vmem:[%s13820_s5 + $0x184] sm:$0xf] }
 0x442   :  { %6675 = vmatpush.bf16.msrb.mxu0 %v9820_v48  ;;  %6650 = vmatpush.bf16.msra.mxu2 %v9548_v15  ;;  %v10107_v48 = vld [vmem:[%s13820_s5 + $0x460] sm:$0xf]  ;;  %v11319_v15 = vld [vmem:[%s13820_s5 + $0x44c] sm:$0xf0] }
 0x443   :  { %v10555_v53 = vld [vmem:[%s13820_s5 + $0x7e0] sm:$0xf] }
 0x444   :  { %6688 = vmatpush.bf16.msrb.mxu1 %v9948_v10  ;;  %6663 = vmatpush.bf16.msra.mxu3 %v9676_v6  ;;  %v4831_v10 = vadd.f32 %v12285_v35, %v12149_v22  ;;  %v11387_v22 = vld [vmem:[%s13820_s5 + $0x66c] sm:$0xf0]  ;;  %v10108_v35 = vor.u32 %v11323_v12, %v10107_v48  ;;  %v10219_v6 = vld [vmem:[%s13820_s5 + $0x540] sm:$0xf] }
 0x445   :  { %6651 = vmatmul.bf16.vlgmr.msra.gmra.mxu2 %v12395_v21  ;;  %v10364_v20 = vor.u32 %v11387_v22, %v10363_v54  ;;  %v11435_v54 = vld [vmem:[%s13820_s5 + $0x7ec] sm:$0xf0]  ;;  %v9773_v22 = vld [vmem:[%s13820_s5 + $0x1d0] sm:$0xf0] }
 0x446   :  { %6676 = vmatpush.bf16.msrb.mxu0 %v9804_v16  ;;  %6695 = vmatpush.bf16.msrb.mxu2 %v10172_v32  ;;  %v4844_v17 = vadd.f32 %v12287_v37, %v4831_v10  ;;  %v10347_v37 = vld [vmem:[%s13820_s5 + $0x640] sm:$0xf]  ;;  %v10092_v16 = vor.u32 %v11319_v15, %v10091_v13  ;;  %v11205_v10 = vld [vmem:[%s13820_s5 + $0xc4] sm:$0xf]  ;;  %v10556_v13 = vor.u32 %v11435_v54, %v10555_v53 }
 0x447   :  { %6664 = vmatmul.bf16.vlgmr.msra.gmra.mxu3 %v12397_v38  ;;  %v10348_v32 = vor.u32 %v11383_v9, %v10347_v37  ;;  %v9648_v15 = vor.u32 %v11205_v10, %v9645_v19  ;;  %v9776_v9 = vor.u32 %v11237_v59, %v9773_v22  ;;  %v11221_v59 = vld [vmem:[%s13820_s5 + $0x144] sm:$0xf]  ;;  %v9709_v22 = vld [vmem:[%s13820_s5 + $0x150] sm:$0xf0] }
 0x448   :  { %6689 = vmatpush.bf16.msrb.mxu1 %v9932_v29  ;;  %6708 = vmatpush.bf16.msrb.mxu3 %v10300_v4  ;;  %v4910_v27 = vpop.f32.mrf.mxu0  ;;  %v10220_v29 = vor.u32 %v11351_v26, %v10219_v6  ;;  %v4857_v31 = vadd.f32 %v12251_v18, %v4844_v17  ;;  %v11315_v4 = vld [vmem:[%s13820_s5 + $0x42c] sm:$0xf0]  ;;  %v12574_v17 = vpack.c.bf16 %v5085_v63, %v5085_v63  ;;  %v10539_v6 = vld [vmem:[%s13820_s5 + $0x7c0] sm:$0xf]  ;;  %v11257_v63 = vld [vmem:[%s13820_s5 + $0x264] sm:$0xf] }
 0x449   :  { %6677 = vmatmul.bf16.vlgmr.msrb.gmra.mxu0 %v12399_v39  ;;  %v11379_v18 = vld [vmem:[%s13820_s5 + $0x62c] sm:$0xf0]  ;;  %v10076_v41 = vor.u32 %v11315_v4, %v10075_v7  ;;  %v11265_v7 = vld [vmem:[%s13820_s5 + $0x2a4] sm:$0xf]  ;;  %v4934_v53 = vpop.f32.mrf.mxu2 }
 0x44a   :  { %6721 = vmatpush.bf16.msra.mxu0 %v10428_v33  ;;  %6696 = vmatpush.bf16.msrb.mxu2 %v10156_v49  ;;  %v11347_v33 = vld [vmem:[%s13820_s5 + $0x52c] sm:$0xf0]  ;;  %v10187_v49 = vld [vmem:[%s13820_s5 + $0x500] sm:$0xf]  ;;  %v10332_v46 = vor.u32 %v11379_v18, %v10331_v14 }
 0x44b   :  { %6690 = vmatmul.bf16.vlgmr.msrb.gmra.mxu1 %v12404_v43  ;;  %v10204_v45 = vor.u32 %v11347_v33, %v10203_v30  ;;  %v10188_v3 = vor.u32 %v11343_v61, %v10187_v49  ;;  %v11431_v26 = vld [vmem:[%s13820_s5 + $0x7cc] sm:$0xf0]  ;;  %v10523_v30 = vld [vmem:[%s13820_s5 + $0x7a0] sm:$0xf]  ;;  %v11261_v49 = vld [vmem:[%s13820_s5 + $0x284] sm:$0xf] }
 0x44c   :  { %6709 = vmatpush.bf16.msrb.mxu3 %v10284_v40  ;;  %v4870_v40 = vadd.f32 %v12253_v1, %v4857_v31  ;;  %v11209_v1 = vld [vmem:[%s13820_s5 + $0xe4] sm:$0xf]  ;;  %v9885_v31 = vld [vmem:[%s13820_s5 + $0x2b0] sm:$0xf0]  ;;  %6734 = vmatpush.bf16.msra.mxu1 %v10556_v13  ;;  %v11427_v33 = vld [vmem:[%s13820_s5 + $0x7ac] sm:$0xf0] }
 0x44d   :  { %v9664_v48 = vor.u32 %v11209_v1, %v9661_v56  ;;  %v10524_v42 = vor.u32 %v11427_v33, %v10523_v30  ;;  %v11423_v61 = vld [vmem:[%s13820_s5 + $0x78c] sm:$0xf0]  ;;  %v4973_v1 = vpop.f32.mrf.mxu1  ;;  %v11181_v33 = vld [vmem:[%s13820_s5 + $0x4] sm:$0xf] }
 0x44e   :  { %6722 = vmatpush.bf16.msra.mxu0 %v10412_v44  ;;  %6697 = vmatpush.bf16.msrb.mxu2 %v10140_v23  ;;  %v4897_v44 = vpop.f32.mrf.mxu3  ;;  %v11241_v23 = vld [vmem:[%s13820_s5 + $0x1e4] sm:$0xf]  ;;  %v5086_v58 = vmax.f32 %v4870_v40, 0.0  ;;  %v9869_v40 = vld [vmem:[%s13820_s5 + $0x290] sm:$0xf0] }
 0x450   :  { %6710 = vmatpush.bf16.msrb.mxu3 %v10268_v57  ;;  %v9789_v57 = vld [vmem:[%s13820_s5 + $0x1f0] sm:$0xf0] }
 0x452   :  { %6723 = vmatpush.bf16.msra.mxu0 %v10396_v60  ;;  %6698 = vmatpush.bf16.msrb.mxu2 %v10124_v8  ;;  %v9917_v60 = vld [vmem:[%s13820_s5 + $0x2f0] sm:$0xf0]  ;;  %v1679_v8 = vperm.slane %v12547_v55, 6 }
 0x453   :  { %v9920_v12 = vor.u32 %v11273_v52, %v9917_v60  ;;  %v9597_v52 = vld [vmem:[%s13820_s5 + $0x70] sm:$0xf0]  ;;  %v11225_v60 = vld [vmem:[%s13820_s5 + $0x164] sm:$0xf] }
 0x454   :  { %6711 = vmatpush.bf16.msrb.mxu3 %v10252_v47  ;;  %v10316_v47 = vor.u32 %v11375_v51, %v10315_v36  ;;  %v4883_v37 = vadd.f32 %v12471_v0, %v1679_v8  ;;  %v9757_v0 = vld [vmem:[%s13820_s5 + $0x1b0] sm:$0xf0]  ;;  %v4960_v51 = vpop.f32.mrf.mxu0  ;;  %v10491_v8 = vld [vmem:[%s13820_s5 + $0x760] sm:$0xf] }
 0x456   :  { %6724 = vmatpush.bf16.msra.mxu0 %v10380_v11  ;;  %6699 = vmatpush.bf16.msrb.mxu2 %v10108_v35  ;;  %v9792_v11 = vor.u32 %v11241_v23, %v9789_v57  ;;  %v11269_v35 = vld [vmem:[%s13820_s5 + $0x2c4] sm:$0xf]  ;;  %v4896_v14 = vadd.f32 %v12473_v24, %v4883_v37  ;;  %v9741_v24 = vld [vmem:[%s13820_s5 + $0x190] sm:$0xf0]  ;;  %v9872_v23 = vor.u32 %v11261_v49, %v9869_v40  ;;  %v4947_v54 = vpop.f32.mrf.mxu3 }
 0x457   :  { %v9744_v56 = vor.u32 %v11229_v34, %v9741_v24  ;;  %v11193_v57 = vld [vmem:[%s13820_s5 + $0x64] sm:$0xf] }
 0x458   :  { %6712 = vmatpush.bf16.msrb.mxu3 %v10236_v62  ;;  %v9901_v62 = vld [vmem:[%s13820_s5 + $0x2d0] sm:$0xf0]  ;;  %v4909_v36 = vadd.f32 %v12443_v25, %v4896_v14  ;;  %v11213_v40 = vld [vmem:[%s13820_s5 + $0x104] sm:$0xf] }
 0x459   :  { %v9904_v27 = vor.u32 %v11269_v35, %v9901_v62  ;;  %v9725_v25 = vld [vmem:[%s13820_s5 + $0x170] sm:$0xf0] }
 0x45a   :  { %6725 = vmatpush.bf16.msra.mxu0 %v10364_v20  ;;  %6700 = vmatpush.bf16.msrb.mxu2 %v10092_v16  ;;  %v12576_v20 = vpack.c.bf16 %v5086_v58, %v5086_v58  ;;  %v9629_v16 = vld [vmem:[%s13820_s5 + $0xb0] sm:$0xf0]  ;;  %v9600_v58 = vor.u32 %v11193_v57, %v9597_v52  ;;  %v4922_v10 = vadd.f32 %v12445_v5, %v4909_v36  ;;  %v11253_v5 = vld [vmem:[%s13820_s5 + $0x244] sm:$0xf] }
 0x45b   :  { %v9632_v4 = vor.u32 %v11201_v28, %v9629_v16  ;;  %v9837_v35 = vld [vmem:[%s13820_s5 + $0x250] sm:$0xf0]  ;;  %v9712_v28 = vor.u32 %v11221_v59, %v9709_v22 }
 0x45c   :  { %6713 = vmatpush.bf16.msrb.mxu3 %v10220_v29  ;;  %v11233_v29 = vld [vmem:[%s13820_s5 + $0x1a4] sm:$0xf]  ;;  %v4935_v62 = vadd.f32 %v4934_v53, %v4922_v10  ;;  %v9840_v16 = vor.u32 %v11253_v5, %v9837_v35  ;;  %v9805_v36 = vld [vmem:[%s13820_s5 + $0x210] sm:$0xf0] }
 0x45d   :  { %v9760_v18 = vor.u32 %v11233_v29, %v9757_v0  ;;  %v11185_v29 = vld [vmem:[%s13820_s5 + $0x24] sm:$0xf]  ;;  %v9565_v0 = vld [vmem:[%s13820_s5 + $0x30] sm:$0xf0] }
 0x45e   :  { %6726 = vmatpush.bf16.msra.mxu0 %v10348_v32  ;;  %6701 = vmatpush.bf16.msrb.mxu2 %v10076_v41  ;;  %v10540_v32 = vor.u32 %v11431_v26, %v10539_v6  ;;  %v9888_v41 = vor.u32 %v11265_v7, %v9885_v31  ;;  %v10475_v6 = vld [vmem:[%s13820_s5 + $0x740] sm:$0xf]  ;;  %v11415_v26 = vld [vmem:[%s13820_s5 + $0x74c] sm:$0xf0]  ;;  %v4948_v37 = vadd.f32 %v4947_v54, %v4935_v62  ;;  %v11217_v7 = vld [vmem:[%s13820_s5 + $0x124] sm:$0xf] }
 0x45f   :  { %v9693_v31 = vld [vmem:[%s13820_s5 + $0x130] sm:$0xf0]  ;;  %v10476_v14 = vor.u32 %v11415_v26, %v10475_v6  ;;  %v11305_v54 = vld [vmem:[%s13820_s5 + $0x3e4] sm:$0xf] }
 0x460   :  { %6714 = vmatpush.bf16.msrb.mxu3 %v10204_v45  ;;  %v11197_v45 = vld [vmem:[%s13820_s5 + $0x84] sm:$0xf]  ;;  %6735 = vmatpush.bf16.msra.mxu1 %v10540_v32  ;;  %v4961_v30 = vadd.f32 %v4960_v51, %v4948_v37  ;;  %v9696_v24 = vor.u32 %v11217_v7, %v9693_v31  ;;  %v10301_v57 = vld [vmem:[%s13820_s5 + $0x5f0] sm:$0xf0] }
 0x461   :  { %v9616_v44 = vor.u32 %v11197_v45, %v9613_v50  ;;  %v11249_v32 = vld [vmem:[%s13820_s5 + $0x224] sm:$0xf]  ;;  %v10459_v45 = vld [vmem:[%s13820_s5 + $0x720] sm:$0xf]  ;;  %v11411_v50 = vld [vmem:[%s13820_s5 + $0x72c] sm:$0xf0] }
 0x462   :  { %6727 = vmatpush.bf16.msra.mxu0 %v10332_v46  ;;  %6702 = vmatpush.bf16.msrb.mxu2 %v10060_v2  ;;  %v10507_v46 = vld [vmem:[%s13820_s5 + $0x780] sm:$0xf]  ;;  %v9853_v2 = vld [vmem:[%s13820_s5 + $0x270] sm:$0xf0]  ;;  %v4974_v34 = vadd.f32 %v4973_v1, %v4961_v30  ;;  %v11337_v51 = vld [vmem:[%s13820_s5 + $0x4e4] sm:$0xf]  ;;  %v10460_v52 = vor.u32 %v11411_v50, %v10459_v45 }
 0x463   :  { %v9856_v19 = vor.u32 %v11257_v63, %v9853_v2  ;;  %v10173_v1 = vld [vmem:[%s13820_s5 + $0x4f0] sm:$0xf0]  ;;  %v11397_v5 = vld [vmem:[%s13820_s5 + $0x6c4] sm:$0xf] }
 0x464   :  { %6715 = vmatpush.bf16.msrb.mxu3 %v10188_v3  ;;  %6736 = vmatpush.bf16.msra.mxu1 %v10524_v42  ;;  %v10508_v3 = vor.u32 %v11423_v61, %v10507_v46  ;;  %v9677_v42 = vld [vmem:[%s13820_s5 + $0x110] sm:$0xf0]  ;;  %v4936_v46 = vpop.f32.mrf.mxu2  ;;  %v4949_v61 = vpop.f32.mrf.mxu3  ;;  %v11329_v26 = vld [vmem:[%s13820_s5 + $0x4a4] sm:$0xf] }
 0x465   :  { %6703 = vmatmul.bf16.vlgmr.msrb.gmra.mxu2 %v12574_v17  ;;  %v10429_v63 = vld [vmem:[%s13820_s5 + $0x6f0] sm:$0xf0]  ;;  %v11301_v37 = vld [vmem:[%s13820_s5 + $0x3c4] sm:$0xf] }
 0x466   :  { %6728 = vmatpush.bf16.msra.mxu0 %v10316_v47  ;;  %6747 = vmatpush.bf16.msra.mxu2 %v9664_v48  ;;  %v11419_v47 = vld [vmem:[%s13820_s5 + $0x76c] sm:$0xf0]  ;;  %v9728_v48 = vor.u32 %v11225_v60, %v9725_v25  ;;  %v11401_v25 = vld [vmem:[%s13820_s5 + $0x6e4] sm:$0xf]  ;;  %v10285_v53 = vld [vmem:[%s13820_s5 + $0x5d0] sm:$0xf0] }
 0x467   :  { %6716 = vmatmul.bf16.vlgmr.msrb.gmra.mxu3 %v12576_v20  ;;  %v10492_v13 = vor.u32 %v11419_v47, %v10491_v8  ;;  %v10443_v8 = vld [vmem:[%s13820_s5 + $0x700] sm:$0xf]  ;;  %v11407_v47 = vld [vmem:[%s13820_s5 + $0x70c] sm:$0xf0]  ;;  %v10432_v59 = vor.u32 %v11401_v25, %v10429_v63  ;;  %v10045_v22 = vld [vmem:[%s13820_s5 + $0x3f0] sm:$0xf0] }
 0x468   :  { %6760 = vmatpush.bf16.msra.mxu3 %v9792_v11  ;;  %v11189_v11 = vld [vmem:[%s13820_s5 + $0x44] sm:$0xf]  ;;  %6737 = vmatpush.bf16.msra.mxu1 %v10508_v3  ;;  %v9680_v3 = vor.u32 %v11213_v40, %v9677_v42  ;;  %v10413_v35 = vld [vmem:[%s13820_s5 + $0x6d0] sm:$0xf0]  ;;  %v10444_v62 = vor.u32 %v11407_v47, %v10443_v8 }
 0x469   :  { %v10397_v7 = vld [vmem:[%s13820_s5 + $0x6b0] sm:$0xf0]  ;;  %v11325_v30 = vld [vmem:[%s13820_s5 + $0x484] sm:$0xf] }
 0x46a   :  { %6773 = vmatpush.bf16.msrb.mxu0 %v9920_v12  ;;  %6748 = vmatpush.bf16.msra.mxu2 %v9648_v15  ;;  %v9581_v12 = vld [vmem:[%s13820_s5 + $0x50] sm:$0xf0]  ;;  %v11357_v45 = vld [vmem:[%s13820_s5 + $0x584] sm:$0xf] }
 0x46b   :  { %v9584_v15 = vor.u32 %v11189_v11, %v9581_v12  ;;  %v10157_v11 = vld [vmem:[%s13820_s5 + $0x4d0] sm:$0xf0]  ;;  %v11365_v12 = vld [vmem:[%s13820_s5 + $0x5c4] sm:$0xf] }
 0x46c   :  { %6761 = vmatpush.bf16.msra.mxu3 %v9776_v9  ;;  %v4962_v9 = vpop.f32.mrf.mxu0  ;;  %6738 = vmatpush.bf16.msra.mxu1 %v10492_v13  ;;  %v10048_v13 = vor.u32 %v11305_v54, %v10045_v22  ;;  %v10288_v6 = vor.u32 %v11365_v12, %v10285_v53  ;;  %v10253_v50 = vld [vmem:[%s13820_s5 + $0x590] sm:$0xf0]  ;;  %v11293_v46 = vld [vmem:[%s13820_s5 + $0x384] sm:$0xf]  ;;  %v12875_v12 = vpop.f32.mrf.mxu2 }
 0x46d   :  { %v10029_v9 = vld [vmem:[%s13820_s5 + $0x3d0] sm:$0xf0]  ;;  %v10256_v42 = vor.u32 %v11357_v45, %v10253_v50  ;;  %v11289_v8 = vld [vmem:[%s13820_s5 + $0x364] sm:$0xf] }
 0x46e   :  { %6774 = vmatpush.bf16.msrb.mxu0 %v9904_v27  ;;  %6749 = vmatpush.bf16.msra.mxu2 %v9632_v4  ;;  %v4975_v27 = vpop.f32.mrf.mxu1  ;;  %v9821_v4 = vld [vmem:[%s13820_s5 + $0x230] sm:$0xf0]  ;;  %v10032_v31 = vor.u32 %v11301_v37, %v10029_v9  ;;  %v11381_v53 = vld [vmem:[%s13820_s5 + $0x644] sm:$0xf] }
 0x46f   :  { %v9824_v49 = vor.u32 %v11249_v32, %v9821_v4  ;;  %v10416_v27 = vor.u32 %v11397_v5, %v10413_v35  ;;  %v9997_v61 = vld [vmem:[%s13820_s5 + $0x390] sm:$0xf0]  ;;  %v11373_v45 = vld [vmem:[%s13820_s5 + $0x604] sm:$0xf] }
 0x470   :  { %6762 = vmatpush.bf16.msra.mxu3 %v9760_v18  ;;  %v9568_v18 = vor.u32 %v11185_v29, %v9565_v0  ;;  %6739 = vmatpush.bf16.msra.mxu1 %v10476_v14  ;;  %v10269_v29 = vld [vmem:[%s13820_s5 + $0x5b0] sm:$0xf0]  ;;  %v11393_v0 = vld [vmem:[%s13820_s5 + $0x6a4] sm:$0xf]  ;;  %v10000_v25 = vor.u32 %v11293_v46, %v9997_v61  ;;  %v9923_v46 = vld [vmem:[%s13820_s5 + $0x2e8] sm:$0xf] }
 0x471   :  { %v10013_v14 = vld [vmem:[%s13820_s5 + $0x3b0] sm:$0xf0]  ;;  %v11276_v61 = vld [vmem:[%s13820_s5 + $0x2f4] sm:$0xf0] }
 0x472   :  { %6775 = vmatpush.bf16.msrb.mxu0 %v9888_v41  ;;  %6750 = vmatpush.bf16.msra.mxu2 %v9616_v44  ;;  %v9549_v41 = vld [vmem:[%s13820_s5 + $0x10] sm:$0xf0]  ;;  %v11245_v44 = vld [vmem:[%s13820_s5 + $0x204] sm:$0xf] }
 0x473   :  { %v9552_v60 = vor.u32 %v11181_v33, %v9549_v41  ;;  %v11297_v33 = vld [vmem:[%s13820_s5 + $0x3a4] sm:$0xf]  ;;  %v10125_v41 = vld [vmem:[%s13820_s5 + $0x490] sm:$0xf0] }
 0x474   :  { %6763 = vmatpush.bf16.msra.mxu3 %v9744_v56  ;;  %v5087_v56 = vmax.f32 %v4974_v34, 0.0  ;;  %6740 = vmatpush.bf16.msra.mxu1 %v10460_v52  ;;  %v11389_v34 = vld [vmem:[%s13820_s5 + $0x684] sm:$0xf]  ;;  %v10128_v40 = vor.u32 %v11325_v30, %v10125_v41  ;;  %v9981_v47 = vld [vmem:[%s13820_s5 + $0x370] sm:$0xf0] }
 0x475   :  { %v11385_v52 = vld [vmem:[%s13820_s5 + $0x664] sm:$0xf]  ;;  %v10349_v54 = vld [vmem:[%s13820_s5 + $0x650] sm:$0xf0]  ;;  %v9984_v22 = vor.u32 %v11289_v8, %v9981_v47  ;;  %v9651_v8 = vld [vmem:[%s13820_s5 + $0xc8] sm:$0xf] }
 0x476   :  { %6776 = vmatpush.bf16.msrb.mxu0 %v9872_v23  ;;  %6751 = vmatpush.bf16.msra.mxu2 %v9600_v58  ;;  %v11369_v23 = vld [vmem:[%s13820_s5 + $0x5e4] sm:$0xf]  ;;  %v12746_v2 = vpack.c.bf16 %v5087_v56, %v5087_v56  ;;  %v9808_v58 = vor.u32 %v11245_v44, %v9805_v36  ;;  %v12838_v36 = vpop.f32.mrf.mxu0  ;;  %v10109_v56 = vld [vmem:[%s13820_s5 + $0x470] sm:$0xf0]  ;;  %v10352_v37 = vor.u32 %v11381_v53, %v10349_v54  ;;  %v9779_v47 = vld [vmem:[%s13820_s5 + $0x1c8] sm:$0xf] }
 0x477   :  { %v10304_v10 = vor.u32 %v11369_v23, %v10301_v57  ;;  %v11321_v44 = vld [vmem:[%s13820_s5 + $0x464] sm:$0xf]  ;;  %v10237_v57 = vld [vmem:[%s13820_s5 + $0x570] sm:$0xf0] }
 0x478   :  { %6764 = vmatpush.bf16.msra.mxu3 %v9728_v48  ;;  %v10176_v48 = vor.u32 %v11337_v51, %v10173_v1  ;;  %6729 = vmatmul.bf16.vlgmr.msra.gmra.mxu0 %v12746_v2  ;;  %v12840_v51 = vpop.f32.mrf.mxu1  ;;  %v11353_v23 = vld [vmem:[%s13820_s5 + $0x564] sm:$0xf]  ;;  %v10112_v63 = vor.u32 %v11321_v44, %v10109_v56  ;;  %v10077_v9 = vld [vmem:[%s13820_s5 + $0x430] sm:$0xf0]  ;;  %v11244_v44 = vld [vmem:[%s13820_s5 + $0x1f4] sm:$0xf0] }
 0x479   :  { %6741 = vmatpush.bf16.msra.mxu1 %v10444_v62  ;;  %v11313_v62 = vld [vmem:[%s13820_s5 + $0x424] sm:$0xf]  ;;  %v10189_v41 = vld [vmem:[%s13820_s5 + $0x510] sm:$0xf0] }
 0x47a   :  { %6777 = vmatpush.bf16.msrb.mxu0 %v9856_v19  ;;  %6752 = vmatpush.bf16.msra.mxu2 %v9584_v15  ;;  %v11333_v19 = vld [vmem:[%s13820_s5 + $0x4c4] sm:$0xf]  ;;  %v10317_v50 = vld [vmem:[%s13820_s5 + $0x610] sm:$0xf0] }
 0x47b   :  { %v10160_v15 = vor.u32 %v11333_v19, %v10157_v11  ;;  %v11349_v19 = vld [vmem:[%s13820_s5 + $0x544] sm:$0xf]  ;;  %v10221_v11 = vld [vmem:[%s13820_s5 + $0x550] sm:$0xf0] }
 0x47c   :  { %6765 = vmatpush.bf16.msra.mxu3 %v9712_v28  ;;  %v10141_v28 = vld [vmem:[%s13820_s5 + $0x4b0] sm:$0xf0]  ;;  %v10224_v35 = vor.u32 %v11349_v19, %v10221_v11  ;;  %v11341_v30 = vld [vmem:[%s13820_s5 + $0x504] sm:$0xf]  ;;  %v11272_v19 = vld [vmem:[%s13820_s5 + $0x2d4] sm:$0xf0] }
 0x47d   :  { %6786 = vmatpush.bf16.msrb.mxu1 %v10048_v13  ;;  %v10144_v32 = vor.u32 %v11329_v26, %v10141_v28  ;;  %v11285_v13 = vld [vmem:[%s13820_s5 + $0x344] sm:$0xf]  ;;  %v10205_v28 = vld [vmem:[%s13820_s5 + $0x530] sm:$0xf0] }
 0x47e   :  { %6778 = vmatpush.bf16.msrb.mxu0 %v9840_v16  ;;  %6753 = vmatpush.bf16.msra.mxu2 %v9568_v18  ;;  %v11361_v16 = vld [vmem:[%s13820_s5 + $0x5a4] sm:$0xf]  ;;  %v10400_v18 = vor.u32 %v11393_v0, %v10397_v7  ;;  %v10061_v7 = vld [vmem:[%s13820_s5 + $0x410] sm:$0xf0] }
 0x47f   :  { %v10272_v4 = vor.u32 %v11361_v16, %v10269_v29  ;;  %v11377_v16 = vld [vmem:[%s13820_s5 + $0x624] sm:$0xf]  ;;  %v10333_v29 = vld [vmem:[%s13820_s5 + $0x630] sm:$0xf0] }
 0x480   :  { %6766 = vmatpush.bf16.msra.mxu3 %v9696_v24  ;;  %v10381_v24 = vld [vmem:[%s13820_s5 + $0x690] sm:$0xf0]  ;;  %v5027_v26 = vpop.f32.mrf.mxu1  ;;  %v11309_v0 = vld [vmem:[%s13820_s5 + $0x404] sm:$0xf] }
 0x481   :  { %6787 = vmatpush.bf16.msrb.mxu1 %v10032_v31  ;;  %v10384_v1 = vor.u32 %v11389_v34, %v10381_v24  ;;  %v4988_v34 = vpop.f32.mrf.mxu2  ;;  %v10064_v56 = vor.u32 %v11309_v0, %v10061_v7  ;;  %v11268_v26 = vld [vmem:[%s13820_s5 + $0x2b4] sm:$0xf0]  ;;  %v9875_v7 = vld [vmem:[%s13820_s5 + $0x288] sm:$0xf] }
 0x482   :  { %6779 = vmatpush.bf16.msrb.mxu0 %v9824_v49  ;;  %6754 = vmatpush.bf16.msra.mxu2 %v9552_v60  ;;  %v10016_v49 = vor.u32 %v11297_v33, %v10013_v14  ;;  %v10365_v60 = vld [vmem:[%s13820_s5 + $0x670] sm:$0xf0]  ;;  %v11281_v33 = vld [vmem:[%s13820_s5 + $0x324] sm:$0xf]  ;;  %v11232_v0 = vld [vmem:[%s13820_s5 + $0x194] sm:$0xf0] }
 0x483   :  { %v9949_v14 = vld [vmem:[%s13820_s5 + $0x330] sm:$0xf0]  ;;  %v9859_v34 = vld [vmem:[%s13820_s5 + $0x268] sm:$0xf] }
 0x484   :  { %6767 = vmatpush.bf16.msra.mxu3 %v9680_v3  ;;  %v10240_v3 = vor.u32 %v11353_v23, %v10237_v57  ;;  %v10192_v23 = vor.u32 %v11341_v30, %v10189_v41  ;;  %v1680_v57 = vperm.slane %v12547_v55, 7  ;;  %v11208_v55 = vld [vmem:[%s13820_s5 + $0xd4] sm:$0xf0] }
 0x485   :  { %6755 = vmatmul.bf16.vlgmr.msra.gmra.mxu2 %v12395_v21  ;;  %6788 = vmatpush.bf16.msrb.mxu1 %v10016_v49  ;;  %v9667_v49 = vld [vmem:[%s13820_s5 + $0xe8] sm:$0xf]  ;;  %v9652_v53 = vor.u32 %v11208_v55, %v9651_v8 }
 0x486   :  { %6780 = vmatpush.bf16.msrb.mxu0 %v9808_v58  ;;  %6799 = vmatpush.bf16.msrb.mxu2 %v10176_v48  ;;  %v11317_v58 = vld [vmem:[%s13820_s5 + $0x444] sm:$0xf]  ;;  %v10368_v48 = vor.u32 %v11385_v52, %v10365_v60  ;;  %v10320_v52 = vor.u32 %v11373_v45, %v10317_v50  ;;  %v11228_v50 = vld [vmem:[%s13820_s5 + $0x174] sm:$0xf0]  ;;  %v9699_v8 = vld [vmem:[%s13820_s5 + $0x128] sm:$0xf] }
 0x487   :  { %6768 = vmatmul.bf16.vlgmr.msra.gmra.mxu3 %v12397_v38 }
 0x488   :  { %6812 = vmatpush.bf16.msrb.mxu3 %v10304_v10  ;;  %v10093_v10 = vld [vmem:[%s13820_s5 + $0x450] sm:$0xf0] }
 0x489   :  { %6781 = vmatmul.bf16.vlgmr.msrb.gmra.mxu0 %v12399_v39  ;;  %6789 = vmatpush.bf16.msrb.mxu1 %v10000_v25  ;;  %v10096_v5 = vor.u32 %v11317_v58, %v10093_v10  ;;  %v11277_v25 = vld [vmem:[%s13820_s5 + $0x304] sm:$0xf]  ;;  %v9924_v58 = vor.u32 %v11276_v61, %v9923_v46  ;;  %v9907_v10 = vld [vmem:[%s13820_s5 + $0x2c8] sm:$0xf] }
 0x48a   :  { %6825 = vmatpush.bf16.msra.mxu0 %v10432_v59  ;;  %6800 = vmatpush.bf16.msrb.mxu2 %v10160_v15  ;;  %v12877_v59 = vpop.f32.mrf.mxu3  ;;  %v9965_v15 = vld [vmem:[%s13820_s5 + $0x350] sm:$0xf0]  ;;  %v9715_v46 = vld [vmem:[%s13820_s5 + $0x148] sm:$0xf] }
 0x48b   :  { %v9968_v31 = vor.u32 %v11285_v13, %v9965_v15  ;;  %v4987_v13 = vadd.f32 %v12875_v12, %v1680_v57  ;;  %v11236_v15 = vld [vmem:[%s13820_s5 + $0x1b4] sm:$0xf0] }
 0x48c   :  { %6813 = vmatpush.bf16.msrb.mxu3 %v10288_v6  ;;  %v5014_v6 = vpop.f32.mrf.mxu0 }
 0x48d   :  { %6790 = vmatpush.bf16.msrb.mxu1 %v9984_v22  ;;  %v9908_v22 = vor.u32 %v11272_v19, %v9907_v10  ;;  %v9891_v6 = vld [vmem:[%s13820_s5 + $0x2a8] sm:$0xf]  ;;  %v11220_v10 = vld [vmem:[%s13820_s5 + $0x134] sm:$0xf0] }
 0x48e   :  { %6826 = vmatpush.bf16.msra.mxu0 %v10416_v27  ;;  %6801 = vmatpush.bf16.msrb.mxu2 %v10144_v32  ;;  %v11345_v27 = vld [vmem:[%s13820_s5 + $0x524] sm:$0xf]  ;;  %v10080_v32 = vor.u32 %v11313_v62, %v10077_v9  ;;  %v9763_v62 = vld [vmem:[%s13820_s5 + $0x1a8] sm:$0xf]  ;;  %v9892_v9 = vor.u32 %v11268_v26, %v9891_v6  ;;  %v11248_v26 = vld [vmem:[%s13820_s5 + $0x214] sm:$0xf0] }
 0x48f   :  { %v9827_v19 = vld [vmem:[%s13820_s5 + $0x228] sm:$0xf] }
 0x490   :  { %6814 = vmatpush.bf16.msrb.mxu3 %v10272_v4  ;;  %v10208_v4 = vor.u32 %v11345_v27, %v10205_v28  ;;  %v9619_v27 = vld [vmem:[%s13820_s5 + $0x88] sm:$0xf]  ;;  %v11200_v28 = vld [vmem:[%s13820_s5 + $0x94] sm:$0xf0] }
 0x491   :  { %6791 = vmatpush.bf16.msrb.mxu1 %v9968_v31  ;;  %v11264_v31 = vld [vmem:[%s13820_s5 + $0x294] sm:$0xf0]  ;;  %v9811_v6 = vld [vmem:[%s13820_s5 + $0x208] sm:$0xf] }
 0x492   :  { %6827 = vmatpush.bf16.msra.mxu0 %v10400_v18  ;;  %6802 = vmatpush.bf16.msrb.mxu2 %v10128_v40  ;;  %v10336_v18 = vor.u32 %v11377_v16, %v10333_v29  ;;  %v5001_v24 = vpop.f32.mrf.mxu3  ;;  %v11212_v40 = vld [vmem:[%s13820_s5 + $0xf4] sm:$0xf0]  ;;  %v9747_v16 = vld [vmem:[%s13820_s5 + $0x188] sm:$0xf]  ;;  %v5000_v29 = vadd.f32 %v12877_v59, %v4987_v13  ;;  %v9876_v30 = vor.u32 %v11264_v31, %v9875_v7  ;;  %v10557_v7 = vld [vmem:[%s13820_s5 + $0x7f0] sm:$0xf0] }
 0x493   :  { %v9668_v60 = vor.u32 %v11212_v40, %v9667_v49  ;;  %v9603_v59 = vld [vmem:[%s13820_s5 + $0x68] sm:$0xf]  ;;  %v11260_v24 = vld [vmem:[%s13820_s5 + $0x274] sm:$0xf0] }
 0x494   :  { %6815 = vmatpush.bf16.msrb.mxu3 %v10256_v42  ;;  %v9795_v42 = vld [vmem:[%s13820_s5 + $0x1e8] sm:$0xf] }
 0x496   :  { %6828 = vmatpush.bf16.msra.mxu0 %v10384_v1  ;;  %6803 = vmatpush.bf16.msrb.mxu2 %v10112_v63  ;;  %v9952_v1 = vor.u32 %v11281_v33, %v9949_v14  ;;  %v9933_v63 = vld [vmem:[%s13820_s5 + $0x310] sm:$0xf0]  ;;  %v11196_v33 = vld [vmem:[%s13820_s5 + $0x74] sm:$0xf0]  ;;  %v9731_v14 = vld [vmem:[%s13820_s5 + $0x168] sm:$0xf] }
 0x497   :  { %v9936_v11 = vor.u32 %v11277_v25, %v9933_v63  ;;  %v9604_v49 = vor.u32 %v11196_v33, %v9603_v59  ;;  %v9732_v40 = vor.u32 %v11228_v50, %v9731_v14  ;;  %v9812_v33 = vor.u32 %v11248_v26, %v9811_v6  ;;  %v11336_v50 = vld [vmem:[%s13820_s5 + $0x4d4] sm:$0xf0]  ;;  %v13200_v26 = vld [vmem:[#allocation9] sm:$0xf] }
 0x498   :  { %6816 = vmatpush.bf16.msrb.mxu3 %v10240_v3  ;;  %v9796_v3 = vor.u32 %v11244_v44, %v9795_v42  ;;  %6792 = vmatpush.bf16.msrb.mxu1 %v9952_v1  ;;  %v9587_v42 = vld [vmem:[%s13820_s5 + $0x48] sm:$0xf]  ;;  %v11192_v44 = vld [vmem:[%s13820_s5 + $0x54] sm:$0xf0] }
 0x499   :  { %v11224_v1 = vld [vmem:[%s13820_s5 + $0x154] sm:$0xf0]  ;;  %v9588_v25 = vor.u32 %v11192_v44, %v9587_v42  ;;  %v10541_v42 = vld [vmem:[%s13820_s5 + $0x7d0] sm:$0xf0]  ;;  %v10419_v44 = vld [vmem:[%s13820_s5 + $0x6c8] sm:$0xf] }
 0x49a   :  { %6829 = vmatpush.bf16.msra.mxu0 %v10368_v48  ;;  %6804 = vmatpush.bf16.msrb.mxu2 %v10096_v5  ;;  %v11240_v48 = vld [vmem:[%s13820_s5 + $0x1d4] sm:$0xf0]  ;;  %v9635_v5 = vld [vmem:[%s13820_s5 + $0xa8] sm:$0xf] }
 0x49b   :  { %v9780_v54 = vor.u32 %v11240_v48, %v9779_v47  ;;  %v11324_v6 = vld [vmem:[%s13820_s5 + $0x474] sm:$0xf0] }
 0x49c   :  { %6817 = vmatpush.bf16.msrb.mxu3 %v10224_v35  ;;  %v11204_v35 = vld [vmem:[%s13820_s5 + $0xb4] sm:$0xf0]  ;;  %6793 = vmatpush.bf16.msrb.mxu1 %v9936_v11 }
 0x49d   :  { %v9636_v12 = vor.u32 %v11204_v35, %v9635_v5  ;;  %v11252_v11 = vld [vmem:[%s13820_s5 + $0x234] sm:$0xf0]  ;;  %v9683_v35 = vld [vmem:[%s13820_s5 + $0x108] sm:$0xf] }
 0x49e   :  { %6830 = vmatpush.bf16.msra.mxu0 %v10352_v37  ;;  %6805 = vmatpush.bf16.msrb.mxu2 %v10080_v32  ;;  %v9764_v37 = vor.u32 %v11236_v15, %v9763_v62  ;;  %v9620_v32 = vor.u32 %v11200_v28, %v9619_v27  ;;  %v11184_v5 = vld [vmem:[%s13820_s5 + $0x14] sm:$0xf0]  ;;  %v9700_v62 = vor.u32 %v11220_v10, %v9699_v8  ;;  %v10307_v27 = vld [vmem:[%s13820_s5 + $0x5e8] sm:$0xf] }
 0x49f   :  { %v9828_v13 = vor.u32 %v11252_v11, %v9827_v19  ;;  %v11216_v15 = vld [vmem:[%s13820_s5 + $0x114] sm:$0xf0]  ;;  %v10259_v11 = vld [vmem:[%s13820_s5 + $0x588] sm:$0xf] }
 0x4a0   :  { %6818 = vmatpush.bf16.msrb.mxu3 %v10208_v4  ;;  %v9748_v4 = vor.u32 %v11232_v0, %v9747_v16  ;;  %v11433_v0 = vld [vmem:[%s13820_s5 + $0x7e4] sm:$0xf]  ;;  %v9684_v59 = vor.u32 %v11216_v15, %v9683_v35  ;;  %v11392_v35 = vld [vmem:[%s13820_s5 + $0x694] sm:$0xf0]  ;;  %v10115_v15 = vld [vmem:[%s13820_s5 + $0x468] sm:$0xf] }
 0x4a2   :  { %6831 = vmatpush.bf16.msra.mxu0 %v10336_v18  ;;  %6806 = vmatpush.bf16.msrb.mxu2 %v10064_v56  ;;  %v5013_v18 = vadd.f32 %v12838_v36, %v5000_v29  ;;  %v9860_v36 = vor.u32 %v11260_v24, %v9859_v34  ;;  %v9843_v56 = vld [vmem:[%s13820_s5 + $0x248] sm:$0xf]  ;;  %v11372_v29 = vld [vmem:[%s13820_s5 + $0x5f4] sm:$0xf0]  ;;  %v10560_v34 = vor.u32 %v11433_v0, %v10557_v7  ;;  %v10493_v0 = vld [vmem:[%s13820_s5 + $0x770] sm:$0xf0] }
 0x4a3   :  { %v10371_v7 = vld [vmem:[%s13820_s5 + $0x668] sm:$0xf] }
 0x4a4   :  { %6819 = vmatpush.bf16.msrb.mxu3 %v10192_v23  ;;  %v5026_v61 = vadd.f32 %v12840_v51, %v5013_v18  ;;  %v11256_v23 = vld [vmem:[%s13820_s5 + $0x254] sm:$0xf0]  ;;  %v9716_v51 = vor.u32 %v11224_v1, %v9715_v46 }
 0x4a5   :  { %6807 = vmatmul.bf16.vlgmr.msrb.gmra.mxu2 %v12574_v17  ;;  %v9844_v63 = vor.u32 %v11256_v23, %v9843_v56  ;;  %v11400_v46 = vld [vmem:[%s13820_s5 + $0x6d4] sm:$0xf0]  ;;  %v10147_v56 = vld [vmem:[%s13820_s5 + $0x4a8] sm:$0xf] }
 0x4a6   :  { %6832 = vmatpush.bf16.msra.mxu0 %v10320_v52  ;;  %6851 = vmatpush.bf16.msra.mxu2 %v9668_v60  ;;  %v5064_v41 = vpop.f32.mrf.mxu0  ;;  %v11332_v23 = vld [vmem:[%s13820_s5 + $0x4b4] sm:$0xf0] }
 0x4a7   :  { %6820 = vmatmul.bf16.vlgmr.msrb.gmra.mxu3 %v12576_v20  ;;  %v10148_v8 = vor.u32 %v11332_v23, %v10147_v56  ;;  %v11316_v56 = vld [vmem:[%s13820_s5 + $0x434] sm:$0xf0] }
 0x4a8   :  { %6864 = vmatpush.bf16.msra.mxu3 %v9796_v3  ;;  %v5077_v45 = vpop.f32.mrf.mxu1  ;;  %v5038_v57 = vpop.f32.mrf.mxu2  ;;  %v9571_v3 = vld [vmem:[%s13820_s5 + $0x28] sm:$0xf] }
 0x4a9   :  { %6833 = vmatmul.bf16.vlgmr.msra.gmra.mxu0 %v12746_v2  ;;  %v5039_v60 = vadd.f32 %v5038_v57, %v5026_v61 }
 0x4aa   :  { %6877 = vmatpush.bf16.msrb.mxu0 %v9924_v58  ;;  %6852 = vmatpush.bf16.msra.mxu2 %v9652_v53  ;;  %v5051_v52 = vpop.f32.mrf.mxu3  ;;  %v11188_v58 = vld [vmem:[%s13820_s5 + $0x34] sm:$0xf0] }
 0x4ab   :  { %v5052_v55 = vadd.f32 %v5051_v52, %v5039_v60  ;;  %v10420_v52 = vor.u32 %v11400_v46, %v10419_v44  ;;  %v10275_v60 = vld [vmem:[%s13820_s5 + $0x5a8] sm:$0xf] }
 0x4ac   :  { %6865 = vmatpush.bf16.msra.mxu3 %v9780_v54  ;;  %v9572_v54 = vor.u32 %v11188_v58, %v9571_v3  ;;  %v10403_v3 = vld [vmem:[%s13820_s5 + $0x6a8] sm:$0xf]  ;;  %v11396_v58 = vld [vmem:[%s13820_s5 + $0x6b4] sm:$0xf0] }
 0x4ad   :  { %v5065_v53 = vadd.f32 %v5064_v41, %v5052_v55  ;;  %v10308_v41 = vor.u32 %v11372_v29, %v10307_v27  ;;  %v10404_v19 = vor.u32 %v11396_v58, %v10403_v3  ;;  %v10243_v27 = vld [vmem:[%s13820_s5 + $0x568] sm:$0xf]  ;;  %v10461_v58 = vld [vmem:[%s13820_s5 + $0x730] sm:$0xf0] }
 0x4ae   :  { %6878 = vmatpush.bf16.msrb.mxu0 %v9908_v22  ;;  %6853 = vmatpush.bf16.msra.mxu2 %v9636_v12  ;;  %v5066_v47 = vpop.f32.mrf.mxu0  ;;  %v9555_v22 = vld [vmem:[%s13820_s5 + $0x8] sm:$0xf] }
 0x4af   :  { %v5078_v12 = vadd.f32 %v5077_v45, %v5065_v53  ;;  %v10163_v45 = vld [vmem:[%s13820_s5 + $0x4c8] sm:$0xf]  ;;  %v11360_v53 = vld [vmem:[%s13820_s5 + $0x594] sm:$0xf0] }
 0x4b0   :  { %6866 = vmatpush.bf16.msra.mxu3 %v9764_v37  ;;  %v5079_v48 = vpop.f32.mrf.mxu1  ;;  %v10179_v37 = vld [vmem:[%s13820_s5 + $0x4e8] sm:$0xf]  ;;  %v5040_v28 = vpop.f32.mrf.mxu2  ;;  %v10164_v61 = vor.u32 %v11336_v50, %v10163_v45  ;;  %v11352_v50 = vld [vmem:[%s13820_s5 + $0x554] sm:$0xf0] }
 0x4b1   :  { %v5088_v31 = vmax.f32 %v5078_v12, 0.0  ;;  %v10131_v47 = vld [vmem:[%s13820_s5 + $0x488] sm:$0xf]  ;;  %v11328_v48 = vld [vmem:[%s13820_s5 + $0x494] sm:$0xf0] }
 0x4b2   :  { %6879 = vmatpush.bf16.msrb.mxu0 %v9892_v9  ;;  %6854 = vmatpush.bf16.msra.mxu2 %v9620_v32  ;;  %v11340_v9 = vld [vmem:[%s13820_s5 + $0x4f4] sm:$0xf0]  ;;  %v5053_v16 = vpop.f32.mrf.mxu3  ;;  %v9556_v32 = vor.u32 %v11184_v5, %v9555_v22  ;;  %v10509_v22 = vld [vmem:[%s13820_s5 + $0x790] sm:$0xf0]  ;;  %v10387_v5 = vld [vmem:[%s13820_s5 + $0x688] sm:$0xf] }
 0x4b3   :  { %v13116_v14 = vpack.c.bf16 %v5088_v31, %v5088_v31  ;;  %v10180_v18 = vor.u32 %v11340_v9, %v10179_v37  ;;  %v10388_v9 = vor.u32 %v11392_v35, %v10387_v5  ;;  %v11356_v28 = vld [vmem:[%s13820_s5 + $0x574] sm:$0xf0]  ;;  %v11417_v16 = vld [vmem:[%s13820_s5 + $0x764] sm:$0xf]  ;;  %v10227_v45 = vld [vmem:[%s13820_s5 + $0x548] sm:$0xf] }
 0x4b4   :  { %6867 = vmatpush.bf16.msra.mxu3 %v9748_v4  ;;  %v10435_v4 = vld [vmem:[%s13820_s5 + $0x6e8] sm:$0xf]  ;;  %v11388_v31 = vld [vmem:[%s13820_s5 + $0x674] sm:$0xf0]  ;;  %v11405_v35 = vld [vmem:[%s13820_s5 + $0x704] sm:$0xf] }
 0x4b5   :  { %6742 = vmatmul.bf16.vlgmr.msra.gmra.mxu1 %v13116_v14 }
 0x4b6   :  { %6880 = vmatpush.bf16.msrb.mxu0 %v9876_v30  ;;  %6855 = vmatpush.bf16.msra.mxu2 %v9604_v49  ;;  %v11404_v30 = vld [vmem:[%s13820_s5 + $0x6f4] sm:$0xf0]  ;;  %v10291_v49 = vld [vmem:[%s13820_s5 + $0x5c8] sm:$0xf] }
 0x4b7   :  { %v10436_v24 = vor.u32 %v11404_v30, %v10435_v4  ;;  %6838 = vmatpush.bf16.msra.mxu1 %v10560_v34  ;;  %v10116_v4 = vor.u32 %v11324_v6, %v10115_v15  ;;  %v10244_v30 = vor.u32 %v11356_v28, %v10243_v27  ;;  %v11413_v34 = vld [vmem:[%s13820_s5 + $0x744] sm:$0xf]  ;;  %v11242_v28 = vld [vmem:[%s13820_s5 + $0x1ec] sm:$0xf] }
 0x4b8   :  { %6868 = vmatpush.bf16.msra.mxu3 %v9732_v40  ;;  %v11368_v40 = vld [vmem:[%s13820_s5 + $0x5d4] sm:$0xf0] }
 0x4b9   :  { %v10292_v1 = vor.u32 %v11368_v40, %v10291_v49  ;;  %v10477_v49 = vld [vmem:[%s13820_s5 + $0x750] sm:$0xf0]  ;;  %v10355_v40 = vld [vmem:[%s13820_s5 + $0x648] sm:$0xf] }
 0x4ba   :  { %6881 = vmatpush.bf16.msrb.mxu0 %v9860_v36  ;;  %6856 = vmatpush.bf16.msra.mxu2 %v9588_v25  ;;  %v11429_v36 = vld [vmem:[%s13820_s5 + $0x7c4] sm:$0xf]  ;;  %v11364_v25 = vld [vmem:[%s13820_s5 + $0x5b4] sm:$0xf0] }
 0x4bb   :  { %v10544_v57 = vor.u32 %v11429_v36, %v10541_v42  ;;  %v10276_v55 = vor.u32 %v11364_v25, %v10275_v60  ;;  %v11384_v36 = vld [vmem:[%s13820_s5 + $0x654] sm:$0xf0]  ;;  %v10211_v25 = vld [vmem:[%s13820_s5 + $0x528] sm:$0xf] }
 0x4bc   :  { %6869 = vmatpush.bf16.msra.mxu3 %v9716_v51  ;;  %v11425_v51 = vld [vmem:[%s13820_s5 + $0x7a4] sm:$0xf]  ;;  %v10356_v60 = vor.u32 %v11384_v36, %v10355_v40  ;;  %v10035_v40 = vld [vmem:[%s13820_s5 + $0x3c8] sm:$0xf]  ;;  %v11304_v36 = vld [vmem:[%s13820_s5 + $0x3d4] sm:$0xf0] }
 0x4bd   :  { %6839 = vmatpush.bf16.msra.mxu1 %v10544_v57 }
 0x4be   :  { %6882 = vmatpush.bf16.msrb.mxu0 %v9844_v63  ;;  %6857 = vmatpush.bf16.msra.mxu2 %v9572_v54  ;;  %v10525_v63 = vld [vmem:[%s13820_s5 + $0x7b0] sm:$0xf0]  ;;  %v11421_v54 = vld [vmem:[%s13820_s5 + $0x784] sm:$0xf] }
 0x4bf   :  { %v10528_v10 = vor.u32 %v11425_v51, %v10525_v63  ;;  %v10512_v37 = vor.u32 %v11421_v54, %v10509_v22  ;;  %v11348_v51 = vld [vmem:[%s13820_s5 + $0x534] sm:$0xf0]  ;;  %v11409_v63 = vld [vmem:[%s13820_s5 + $0x724] sm:$0xf] }
 0x4c0   :  { %6870 = vmatpush.bf16.msra.mxu3 %v9700_v62  ;;  %v10132_v62 = vor.u32 %v11328_v48, %v10131_v47  ;;  %v10067_v48 = vld [vmem:[%s13820_s5 + $0x408] sm:$0xf]  ;;  %v11344_v54 = vld [vmem:[%s13820_s5 + $0x514] sm:$0xf0]  ;;  %v10464_v22 = vor.u32 %v11409_v63, %v10461_v58  ;;  %v11266_v63 = vld [vmem:[%s13820_s5 + $0x2ac] sm:$0xf] }
 0x4c1   :  { %6840 = vmatpush.bf16.msra.mxu1 %v10528_v10 }
 0x4c2   :  { %6883 = vmatpush.bf16.msrb.mxu0 %v9828_v13  ;;  %6858 = vmatpush.bf16.msra.mxu2 %v9556_v32  ;;  %v10260_v13 = vor.u32 %v11360_v53, %v10259_v11  ;;  %v5355_v32 = vperm.slane %v13200_v26, 0  ;;  %v11312_v11 = vld [vmem:[%s13820_s5 + $0x414] sm:$0xf0]  ;;  %v10195_v53 = vld [vmem:[%s13820_s5 + $0x508] sm:$0xf] }
 0x4c4   :  { %6871 = vmatpush.bf16.msra.mxu3 %v9684_v59  ;;  %v10099_v59 = vld [vmem:[%s13820_s5 + $0x448] sm:$0xf] }
 0x4c5   :  { %6859 = vmatmul.bf16.vlgmr.msra.gmra.mxu2 %v12395_v21  ;;  %6841 = vmatpush.bf16.msra.mxu1 %v10512_v37  ;;  %v11210_v37 = vld [vmem:[%s13820_s5 + $0xec] sm:$0xf] }
 0x4c6   :  { %6884 = vmatpush.bf16.msrb.mxu0 %v9812_v33  ;;  %6903 = vmatpush.bf16.msrb.mxu2 %v10180_v18  ;;  %v6678_v12 = vpop.f32.mrf.mxu0  ;;  %v11320_v33 = vld [vmem:[%s13820_s5 + $0x454] sm:$0xf0]  ;;  %v10496_v18 = vor.u32 %v11417_v16, %v10493_v0  ;;  %v9797_v16 = vld [vmem:[%s13820_s5 + $0x1f8] sm:$0xf0]  ;;  %v10068_v0 = vor.u32 %v11312_v11, %v10067_v48 }
 0x4c7   :  { %6872 = vmatmul.bf16.vlgmr.msra.gmra.mxu3 %v12397_v38  ;;  %6794 = vmatmul.bf16.vlgmr.msrb.gmra.mxu1 %v12404_v43  ;;  %v10100_v46 = vor.u32 %v11320_v33, %v10099_v59  ;;  %v9749_v11 = vld [vmem:[%s13820_s5 + $0x198] sm:$0xf0] }
 0x4c8   :  { %6916 = vmatpush.bf16.msrb.mxu3 %v10308_v41  ;;  %v6691_v29 = vpop.f32.mrf.mxu1  ;;  %v10372_v41 = vor.u32 %v11388_v31, %v10371_v7  ;;  %v10196_v7 = vor.u32 %v11344_v54, %v10195_v53  ;;  %v11308_v31 = vld [vmem:[%s13820_s5 + $0x3f4] sm:$0xf0]  ;;  %v10003_v53 = vld [vmem:[%s13820_s5 + $0x388] sm:$0xf] }
 0x4c9   :  { %6885 = vmatmul.bf16.vlgmr.msrb.gmra.mxu0 %v12399_v39  ;;  %6842 = vmatpush.bf16.msra.mxu1 %v10496_v18  ;;  %v9800_v18 = vor.u32 %v11242_v28, %v9797_v16  ;;  %v11296_v54 = vld [vmem:[%s13820_s5 + $0x394] sm:$0xf0]  ;;  %v9987_v28 = vld [vmem:[%s13820_s5 + $0x368] sm:$0xf] }
 0x4ca   :  { %6929 = vmatpush.bf16.msra.mxu0 %v10436_v24  ;;  %6904 = vmatpush.bf16.msrb.mxu2 %v10164_v61  ;;  %v6652_v24 = vpop.f32.mrf.mxu2  ;;  %v6665_v44 = vpop.f32.mrf.mxu3  ;;  %v10228_v61 = vor.u32 %v11352_v50, %v10227_v45  ;;  %v9653_v45 = vld [vmem:[%s13820_s5 + $0xd8] sm:$0xf0]  ;;  %v11292_v16 = vld [vmem:[%s13820_s5 + $0x374] sm:$0xf0] }
 0x4cb   :  { %v6653_v42 = vadd.f32 %v6652_v24, %v5355_v32  ;;  %v11274_v32 = vld [vmem:[%s13820_s5 + $0x2ec] sm:$0xf] }
 0x4cc   :  { %6917 = vmatpush.bf16.msrb.mxu3 %v10292_v1  ;;  %v10083_v1 = vld [vmem:[%s13820_s5 + $0x428] sm:$0xf]  ;;  %v11238_v24 = vld [vmem:[%s13820_s5 + $0x1cc] sm:$0xf] }
 0x4cd   :  { %v6666_v23 = vadd.f32 %v6665_v44, %v6653_v42  ;;  %v10084_v10 = vor.u32 %v11316_v56, %v10083_v1  ;;  %v11270_v42 = vld [vmem:[%s13820_s5 + $0x2cc] sm:$0xf]  ;;  %v9909_v44 = vld [vmem:[%s13820_s5 + $0x2d8] sm:$0xf0] }
 0x4ce   :  { %6930 = vmatpush.bf16.msra.mxu0 %v10420_v52  ;;  %6905 = vmatpush.bf16.msrb.mxu2 %v10148_v8  ;;  %v6680_v57 = vpop.f32.mrf.mxu0  ;;  %v10480_v52 = vor.u32 %v11413_v34, %v10477_v49  ;;  %v10339_v8 = vld [vmem:[%s13820_s5 + $0x628] sm:$0xf]  ;;  %v9781_v49 = vld [vmem:[%s13820_s5 + $0x1d8] sm:$0xf0]  ;;  %v11202_v1 = vld [vmem:[%s13820_s5 + $0xac] sm:$0xf] }
 0x4cf   :  { %v6679_v47 = vadd.f32 %v6678_v12, %v6666_v23  ;;  %v11376_v12 = vld [vmem:[%s13820_s5 + $0x614] sm:$0xf0]  ;;  %v9637_v56 = vld [vmem:[%s13820_s5 + $0xb8] sm:$0xf0]  ;;  %v10036_v23 = vor.u32 %v11304_v36, %v10035_v40  ;;  %v9912_v57 = vor.u32 %v11270_v42, %v9909_v44  ;;  %v11186_v44 = vld [vmem:[%s13820_s5 + $0x2c] sm:$0xf] }
 0x4d0   :  { %6918 = vmatpush.bf16.msrb.mxu3 %v10276_v55  ;;  %v6693_v3 = vpop.f32.mrf.mxu1  ;;  %v11380_v55 = vld [vmem:[%s13820_s5 + $0x634] sm:$0xf0]  ;;  %6843 = vmatpush.bf16.msra.mxu1 %v10480_v52  ;;  %v11234_v52 = vld [vmem:[%s13820_s5 + $0x1ac] sm:$0xf]  ;;  %v9640_v58 = vor.u32 %v11202_v1, %v9637_v56 }
 0x4d1   :  { %v10340_v5 = vor.u32 %v11380_v55, %v10339_v8  ;;  %v13291_v15 = vadd.f32 %v6691_v29, %v6679_v47  ;;  %v10051_v29 = vld [vmem:[%s13820_s5 + $0x3e8] sm:$0xf]  ;;  %v9893_v3 = vld [vmem:[%s13820_s5 + $0x2b8] sm:$0xf0]  ;;  %v11198_v55 = vld [vmem:[%s13820_s5 + $0x8c] sm:$0xf] }
 0x4d2   :  { %6931 = vmatpush.bf16.msra.mxu0 %v10404_v19  ;;  %6906 = vmatpush.bf16.msrb.mxu2 %v10132_v62  ;;  %v10212_v19 = vor.u32 %v11348_v51, %v10211_v25  ;;  %v10445_v62 = vld [vmem:[%s13820_s5 + $0x710] sm:$0xf0]  ;;  %v6654_v6 = vpop.f32.mrf.mxu2  ;;  %v6667_v27 = vpop.f32.mrf.mxu3  ;;  %v10052_v50 = vor.u32 %v11308_v31, %v10051_v29  ;;  %v10019_v25 = vld [vmem:[%s13820_s5 + $0x3a8] sm:$0xf]  ;;  %v11300_v51 = vld [vmem:[%s13820_s5 + $0x3b4] sm:$0xf0] }
 0x4d3   :  { %v9621_v47 = vld [vmem:[%s13820_s5 + $0x98] sm:$0xf0]  ;;  %v10020_v48 = vor.u32 %v11300_v51, %v10019_v25  ;;  %v11258_v29 = vld [vmem:[%s13820_s5 + $0x26c] sm:$0xf] }
 0x4d4   :  { %6919 = vmatpush.bf16.msrb.mxu3 %v10260_v13  ;;  %v10323_v13 = vld [vmem:[%s13820_s5 + $0x608] sm:$0xf]  ;;  %6844 = vmatpush.bf16.msra.mxu1 %v10464_v22  ;;  %v11262_v22 = vld [vmem:[%s13820_s5 + $0x28c] sm:$0xf]  ;;  %v9605_v6 = vld [vmem:[%s13820_s5 + $0x78] sm:$0xf0] }
 0x4d5   :  { %v10324_v59 = vor.u32 %v11376_v12, %v10323_v13  ;;  %v11194_v13 = vld [vmem:[%s13820_s5 + $0x6c] sm:$0xf]  ;;  %v10004_v12 = vor.u32 %v11296_v54, %v10003_v53  ;;  %v9733_v27 = vld [vmem:[%s13820_s5 + $0x178] sm:$0xf0] }
 0x4d6   :  { %6932 = vmatpush.bf16.msra.mxu0 %v10388_v9  ;;  %6907 = vmatpush.bf16.msrb.mxu2 %v10116_v4  ;;  %v9669_v9 = vld [vmem:[%s13820_s5 + $0xf8] sm:$0xf0]  ;;  %v11182_v51 = vld [vmem:[%s13820_s5 + $0xc] sm:$0xf] }
 0x4d7   :  { %v9925_v4 = vld [vmem:[%s13820_s5 + $0x2f8] sm:$0xf0]  ;;  %v9672_v33 = vor.u32 %v11210_v37, %v9669_v9  ;;  %v11226_v9 = vld [vmem:[%s13820_s5 + $0x16c] sm:$0xf] }
 0x4d8   :  { %6920 = vmatpush.bf16.msrb.mxu3 %v10244_v30  ;;  %v10448_v30 = vor.u32 %v11405_v35, %v10445_v62  ;;  %v9928_v34 = vor.u32 %v11274_v32, %v9925_v4  ;;  %v9624_v35 = vor.u32 %v11198_v55, %v9621_v47  ;;  %v9736_v31 = vor.u32 %v11226_v9, %v9733_v27  ;;  %v11190_v32 = vld [vmem:[%s13820_s5 + $0x4c] sm:$0xf]  ;;  %v9589_v4 = vld [vmem:[%s13820_s5 + $0x58] sm:$0xf0]  ;;  %v11436_v9 = vld [vmem:[%s13820_s5 + $0x7f4] sm:$0xf0] }
 0x4d9   :  { %v9592_v36 = vor.u32 %v11190_v32, %v9589_v4  ;;  %v9829_v25 = vld [vmem:[%s13820_s5 + $0x238] sm:$0xf0]  ;;  %v11402_v27 = vld [vmem:[%s13820_s5 + $0x6ec] sm:$0xf] }
 0x4da   :  { %6933 = vmatpush.bf16.msra.mxu0 %v10372_v41  ;;  %6908 = vmatpush.bf16.msrb.mxu2 %v10100_v46  ;;  %v11206_v41 = vld [vmem:[%s13820_s5 + $0xcc] sm:$0xf]  ;;  %v9685_v55 = vld [vmem:[%s13820_s5 + $0x118] sm:$0xf0] }
 0x4db   :  { %6845 = vmatpush.bf16.msra.mxu1 %v10448_v30  ;;  %v9656_v46 = vor.u32 %v11206_v41, %v9653_v45  ;;  %v9988_v30 = vor.u32 %v11292_v16, %v9987_v28  ;;  %v9971_v41 = vld [vmem:[%s13820_s5 + $0x348] sm:$0xf]  ;;  %v10437_v28 = vld [vmem:[%s13820_s5 + $0x6f8] sm:$0xf0] }
 0x4dc   :  { %6921 = vmatpush.bf16.msrb.mxu3 %v10228_v61  ;;  %v9784_v61 = vor.u32 %v11238_v24, %v9781_v49  ;;  %v11254_v24 = vld [vmem:[%s13820_s5 + $0x24c] sm:$0xf]  ;;  %v9845_v49 = vld [vmem:[%s13820_s5 + $0x258] sm:$0xf0] }
 0x4dd   :  { %v9848_v56 = vor.u32 %v11254_v24, %v9845_v49  ;;  %v10165_v32 = vld [vmem:[%s13820_s5 + $0x4d8] sm:$0xf0]  ;;  %v11330_v49 = vld [vmem:[%s13820_s5 + $0x4ac] sm:$0xf] }
 0x4de   :  { %6934 = vmatpush.bf16.msra.mxu0 %v10356_v60  ;;  %6909 = vmatpush.bf16.msrb.mxu2 %v10084_v10  ;;  %v9765_v60 = vld [vmem:[%s13820_s5 + $0x1b8] sm:$0xf0]  ;;  %v9896_v10 = vor.u32 %v11266_v63, %v9893_v3 }
 0x4df   :  { %6890 = vmatpush.bf16.msrb.mxu1 %v10052_v50  ;;  %v9768_v8 = vor.u32 %v11234_v52, %v9765_v60  ;;  %v11284_v52 = vld [vmem:[%s13820_s5 + $0x334] sm:$0xf0]  ;;  %v11250_v60 = vld [vmem:[%s13820_s5 + $0x22c] sm:$0xf] }
 0x4e0   :  { %6922 = vmatpush.bf16.msrb.mxu3 %v10212_v19  ;;  %6846 = vmatmul.bf16.vlgmr.msra.gmra.mxu1 %v13116_v14  ;;  %v11230_v19 = vld [vmem:[%s13820_s5 + $0x18c] sm:$0xf] }
 0x4e1   :  { %v9752_v62 = vor.u32 %v11230_v19, %v9749_v11  ;;  %v11280_v19 = vld [vmem:[%s13820_s5 + $0x314] sm:$0xf0]  ;;  %v11246_v11 = vld [vmem:[%s13820_s5 + $0x20c] sm:$0xf] }
 0x4e2   :  { %6935 = vmatpush.bf16.msra.mxu0 %v10340_v5  ;;  %6910 = vmatpush.bf16.msrb.mxu2 %v10068_v0  ;;  %v9877_v5 = vld [vmem:[%s13820_s5 + $0x298] sm:$0xf0] }
 0x4e3   :  { %6891 = vmatpush.bf16.msrb.mxu1 %v10036_v23  ;;  %v9880_v37 = vor.u32 %v11262_v22, %v9877_v5  ;;  %v9861_v0 = vld [vmem:[%s13820_s5 + $0x278] sm:$0xf0]  ;;  %v11338_v5 = vld [vmem:[%s13820_s5 + $0x4ec] sm:$0xf] }
 0x4e4   :  { %6923 = vmatpush.bf16.msrb.mxu3 %v10196_v7  ;;  %v9608_v7 = vor.u32 %v11194_v13, %v9605_v6  ;;  %v9701_v23 = vld [vmem:[%s13820_s5 + $0x138] sm:$0xf0]  ;;  %v10563_v6 = vld [vmem:[%s13820_s5 + $0x7e8] sm:$0xf] }
 0x4e5   :  { %6911 = vmatmul.bf16.vlgmr.msrb.gmra.mxu2 %v12574_v17  ;;  %v9813_v22 = vld [vmem:[%s13820_s5 + $0x218] sm:$0xf0]  ;;  %v10564_v4 = vor.u32 %v11436_v9, %v10563_v6 }
 0x4e6   :  { %6936 = vmatpush.bf16.msra.mxu0 %v10324_v59  ;;  %6955 = vmatpush.bf16.msra.mxu2 %v9672_v33  ;;  %v9864_v59 = vor.u32 %v11258_v29, %v9861_v0  ;;  %v11222_v33 = vld [vmem:[%s13820_s5 + $0x14c] sm:$0xf]  ;;  %v10309_v13 = vld [vmem:[%s13820_s5 + $0x5f8] sm:$0xf0]  ;;  %v9816_v29 = vor.u32 %v11246_v11, %v9813_v22 }
 0x4e7   :  { %6924 = vmatmul.bf16.vlgmr.msrb.gmra.mxu3 %v12576_v20  ;;  %6892 = vmatpush.bf16.msrb.mxu1 %v10020_v48  ;;  %v9832_v48 = vor.u32 %v11250_v60, %v9829_v25  ;;  %v11326_v60 = vld [vmem:[%s13820_s5 + $0x48c] sm:$0xf]  ;;  %v10133_v25 = vld [vmem:[%s13820_s5 + $0x498] sm:$0xf0] }
 0x4e8   :  { %6968 = vmatpush.bf16.msra.mxu3 %v9800_v18  ;;  %v9717_v18 = vld [vmem:[%s13820_s5 + $0x158] sm:$0xf0]  ;;  %v6704_v45 = vpop.f32.mrf.mxu2  ;;  %v11354_v11 = vld [vmem:[%s13820_s5 + $0x56c] sm:$0xf] }
 0x4e9   :  { %6937 = vmatmul.bf16.vlgmr.msra.gmra.mxu0 %v12746_v2  ;;  %v6705_v40 = vadd.f32 %v6704_v45, %v13291_v15  ;;  %v9720_v42 = vor.u32 %v11222_v33, %v9717_v18  ;;  %v11218_v15 = vld [vmem:[%s13820_s5 + $0x12c] sm:$0xf]  ;;  %v10293_v33 = vld [vmem:[%s13820_s5 + $0x5d8] sm:$0xf0]  ;;  %v10547_v18 = vld [vmem:[%s13820_s5 + $0x7c8] sm:$0xf] }
 0x4ea   :  { %6981 = vmatpush.bf16.msrb.mxu0 %v9928_v34  ;;  %6956 = vmatpush.bf16.msra.mxu2 %v9656_v46  ;;  %v6717_v50 = vpop.f32.mrf.mxu3  ;;  %v11288_v34 = vld [vmem:[%s13820_s5 + $0x354] sm:$0xf0]  ;;  %v9573_v46 = vld [vmem:[%s13820_s5 + $0x38] sm:$0xf0]  ;;  %v9704_v3 = vor.u32 %v11218_v15, %v9701_v23  ;;  %v11398_v45 = vld [vmem:[%s13820_s5 + $0x6cc] sm:$0xf] }
 0x4eb   :  { %6893 = vmatpush.bf16.msrb.mxu1 %v10004_v12  ;;  %v9972_v1 = vor.u32 %v11288_v34, %v9971_v41  ;;  %v9576_v63 = vor.u32 %v11186_v44, %v9573_v46  ;;  %v11432_v41 = vld [vmem:[%s13820_s5 + $0x7d4] sm:$0xf0]  ;;  %v11362_v44 = vld [vmem:[%s13820_s5 + $0x5ac] sm:$0xf]  ;;  %v10277_v46 = vld [vmem:[%s13820_s5 + $0x5b8] sm:$0xf0] }
 0x4ec   :  { %6969 = vmatpush.bf16.msra.mxu3 %v9784_v61  ;;  %v13451_v61 = vadd.f32 %v6717_v50, %v6705_v40  ;;  %v10421_v50 = vld [vmem:[%s13820_s5 + $0x6d8] sm:$0xf0]  ;;  %v11394_v15 = vld [vmem:[%s13820_s5 + $0x6ac] sm:$0xf] }
 0x4ed   :  { %v10149_v40 = vld [vmem:[%s13820_s5 + $0x4b8] sm:$0xf0] }
 0x4ee   :  { %6982 = vmatpush.bf16.msrb.mxu0 %v9912_v57  ;;  %6957 = vmatpush.bf16.msra.mxu2 %v9640_v58  ;;  %v9955_v57 = vld [vmem:[%s13820_s5 + $0x328] sm:$0xf]  ;;  %v9557_v58 = vld [vmem:[%s13820_s5 + $0x18] sm:$0xf0] }
 0x4ef   :  { %6894 = vmatpush.bf16.msrb.mxu1 %v9988_v30  ;;  %v9956_v47 = vor.u32 %v11284_v52, %v9955_v57  ;;  %v9560_v12 = vor.u32 %v11182_v51, %v9557_v58  ;;  %v10440_v30 = vor.u32 %v11402_v27, %v10437_v28  ;;  %v10405_v23 = vld [vmem:[%s13820_s5 + $0x6b8] sm:$0xf0]  ;;  %v11424_v58 = vld [vmem:[%s13820_s5 + $0x794] sm:$0xf0]  ;;  %v11318_v27 = vld [vmem:[%s13820_s5 + $0x44c] sm:$0xf] }
 0x4f0   :  { %6970 = vmatpush.bf16.msra.mxu3 %v9768_v8  ;;  %v11214_v8 = vld [vmem:[%s13820_s5 + $0x10c] sm:$0xf]  ;;  %v6706_v53 = vpop.f32.mrf.mxu2  ;;  %v10245_v22 = vld [vmem:[%s13820_s5 + $0x578] sm:$0xf0] }
 0x4f1   :  { %v10373_v6 = vld [vmem:[%s13820_s5 + $0x678] sm:$0xf0]  ;;  %v10248_v9 = vor.u32 %v11354_v11, %v10245_v22 }
 0x4f2   :  { %6983 = vmatpush.bf16.msrb.mxu0 %v9896_v10  ;;  %6958 = vmatpush.bf16.msra.mxu2 %v9624_v35  ;;  %v9939_v10 = vld [vmem:[%s13820_s5 + $0x308] sm:$0xf]  ;;  %v6719_v54 = vpop.f32.mrf.mxu3  ;;  %v10181_v35 = vld [vmem:[%s13820_s5 + $0x4f8] sm:$0xf0] }
 0x4f3   :  { %6895 = vmatpush.bf16.msrb.mxu1 %v9972_v1  ;;  %v9940_v16 = vor.u32 %v11280_v19, %v9939_v10  ;;  %v10184_v0 = vor.u32 %v11338_v5, %v10181_v35  ;;  %v10531_v1 = vld [vmem:[%s13820_s5 + $0x7a8] sm:$0xf]  ;;  %v11322_v10 = vld [vmem:[%s13820_s5 + $0x46c] sm:$0xf]  ;;  %v10117_v19 = vld [vmem:[%s13820_s5 + $0x478] sm:$0xf0] }
 0x4f4   :  { %6971 = vmatpush.bf16.msra.mxu3 %v9752_v62  ;;  %v11370_v62 = vld [vmem:[%s13820_s5 + $0x5ec] sm:$0xf]  ;;  %v10499_v5 = vld [vmem:[%s13820_s5 + $0x768] sm:$0xf]  ;;  %v11420_v35 = vld [vmem:[%s13820_s5 + $0x774] sm:$0xf0] }
 0x4f5   :  { %v6730_v57 = vpop.f32.mrf.mxu0  ;;  %v10101_v28 = vld [vmem:[%s13820_s5 + $0x458] sm:$0xf0] }
 0x4f6   :  { %6984 = vmatpush.bf16.msrb.mxu0 %v9880_v37  ;;  %6959 = vmatpush.bf16.msra.mxu2 %v9608_v7  ;;  %v9688_v37 = vor.u32 %v11214_v8, %v9685_v55  ;;  %v10312_v7 = vor.u32 %v11370_v62, %v10309_v13  ;;  %v13572_v52 = vadd.f32 %v6730_v57, %v13451_v61  ;;  %v10261_v61 = vld [vmem:[%s13820_s5 + $0x598] sm:$0xf0]  ;;  %v11390_v8 = vld [vmem:[%s13820_s5 + $0x68c] sm:$0xf]  ;;  %v5356_v62 = vperm.slane %v13200_v26, 1 }
 0x4f7   :  { %6896 = vmatpush.bf16.msrb.mxu1 %v9956_v47  ;;  %v10389_v55 = vld [vmem:[%s13820_s5 + $0x698] sm:$0xf0]  ;;  %v10136_v47 = vor.u32 %v11326_v60, %v10133_v25  ;;  %v11386_v13 = vld [vmem:[%s13820_s5 + $0x66c] sm:$0xf] }
 0x4f8   :  { %6972 = vmatpush.bf16.msra.mxu3 %v9736_v31  ;;  %v11334_v31 = vld [vmem:[%s13820_s5 + $0x4cc] sm:$0xf]  ;;  %v10392_v54 = vor.u32 %v11390_v8, %v10389_v55  ;;  %v11408_v8 = vld [vmem:[%s13820_s5 + $0x714] sm:$0xf0] }
 0x4f9   :  { %v10168_v34 = vor.u32 %v11334_v31, %v10165_v32  ;;  %v10229_v31 = vld [vmem:[%s13820_s5 + $0x558] sm:$0xf0]  ;;  %v10483_v32 = vld [vmem:[%s13820_s5 + $0x748] sm:$0xf]  ;;  %v11374_v55 = vld [vmem:[%s13820_s5 + $0x60c] sm:$0xf] }
 0x4fa   :  { %6985 = vmatpush.bf16.msrb.mxu0 %v9864_v59  ;;  %6960 = vmatpush.bf16.msra.mxu2 %v9592_v36  ;;  %v11366_v59 = vld [vmem:[%s13820_s5 + $0x5cc] sm:$0xf]  ;;  %v10548_v36 = vor.u32 %v11432_v41, %v10547_v18  ;;  %v10357_v18 = vld [vmem:[%s13820_s5 + $0x658] sm:$0xf0] }
 0x4fb   :  { %6897 = vmatpush.bf16.msrb.mxu1 %v9940_v16  ;;  %v10296_v24 = vor.u32 %v11366_v59, %v10293_v33  ;;  %v11416_v59 = vld [vmem:[%s13820_s5 + $0x754] sm:$0xf0]  ;;  %v11382_v33 = vld [vmem:[%s13820_s5 + $0x64c] sm:$0xf] }
 0x4fc   :  { %6973 = vmatpush.bf16.msra.mxu3 %v9720_v42  ;;  %v10424_v42 = vor.u32 %v11398_v45, %v10421_v50  ;;  %v10104_v45 = vor.u32 %v11318_v27, %v10101_v28  ;;  %v11290_v28 = vld [vmem:[%s13820_s5 + $0x36c] sm:$0xf] }
 0x4fe   :  { %6986 = vmatpush.bf16.msrb.mxu0 %v9848_v56  ;;  %6961 = vmatpush.bf16.msra.mxu2 %v9576_v63  ;;  %v11428_v56 = vld [vmem:[%s13820_s5 + $0x7b4] sm:$0xf0]  ;;  %v11358_v63 = vld [vmem:[%s13820_s5 + $0x58c] sm:$0xf] }
 0x4ff   :  { %6942 = vmatpush.bf16.msra.mxu1 %v10564_v4  ;;  %v10532_v51 = vor.u32 %v11428_v56, %v10531_v1  ;;  %v11378_v1 = vld [vmem:[%s13820_s5 + $0x62c] sm:$0xf]  ;;  %v10341_v56 = vld [vmem:[%s13820_s5 + $0x638] sm:$0xf0] }
 0x500   :  { %6974 = vmatpush.bf16.msra.mxu3 %v9704_v3  ;;  %6898 = vmatmul.bf16.vlgmr.msrb.gmra.mxu1 %v12404_v43  ;;  %v10515_v3 = vld [vmem:[%s13820_s5 + $0x788] sm:$0xf] }
 0x501   :  { %v10516_v53 = vor.u32 %v11424_v58, %v10515_v3  ;;  %v10451_v3 = vld [vmem:[%s13820_s5 + $0x708] sm:$0xf] }
 0x502   :  { %6987 = vmatpush.bf16.msrb.mxu0 %v9832_v48  ;;  %6962 = vmatpush.bf16.msra.mxu2 %v9560_v12  ;;  %v10264_v48 = vor.u32 %v11358_v63, %v10261_v61  ;;  %v6732_v12 = vpop.f32.mrf.mxu0  ;;  %v11342_v63 = vld [vmem:[%s13820_s5 + $0x50c] sm:$0xf]  ;;  %v10197_v61 = vld [vmem:[%s13820_s5 + $0x518] sm:$0xf0] }
 0x503   :  { %6943 = vmatpush.bf16.msra.mxu1 %v10548_v36  ;;  %v11346_v36 = vld [vmem:[%s13820_s5 + $0x52c] sm:$0xf]  ;;  %v10200_v11 = vor.u32 %v11342_v63, %v10197_v61  ;;  %v10021_v12 = vld [vmem:[%s13820_s5 + $0x3b8] sm:$0xf0] }
 0x504   :  { %6975 = vmatpush.bf16.msra.mxu3 %v9688_v37  ;;  %v10120_v37 = vor.u32 %v11322_v10, %v10117_v19  ;;  %v10053_v10 = vld [vmem:[%s13820_s5 + $0x3f8] sm:$0xf0]  ;;  %v11414_v61 = vld [vmem:[%s13820_s5 + $0x74c] sm:$0xf] }
 0x505   :  { %6963 = vmatmul.bf16.vlgmr.msra.gmra.mxu2 %v12395_v21  ;;  %v10152_v21 = vor.u32 %v11330_v49, %v10149_v40  ;;  %v10484_v49 = vor.u32 %v11416_v59, %v10483_v32  ;;  %v10360_v40 = vor.u32 %v11382_v33, %v10357_v18  ;;  %v9957_v59 = vld [vmem:[%s13820_s5 + $0x338] sm:$0xf0] }
 0x506   :  { %6988 = vmatpush.bf16.msrb.mxu0 %v9816_v29  ;;  %7007 = vmatpush.bf16.msrb.mxu2 %v10184_v0  ;;  %v10500_v29 = vor.u32 %v11420_v35, %v10499_v5  ;;  %v10376_v0 = vor.u32 %v11386_v13, %v10373_v6  ;;  %v11302_v5 = vld [vmem:[%s13820_s5 + $0x3cc] sm:$0xf]  ;;  %v10037_v35 = vld [vmem:[%s13820_s5 + $0x3d8] sm:$0xf0] }
 0x507   :  { %6976 = vmatmul.bf16.vlgmr.msra.gmra.mxu3 %v12397_v38  ;;  %v10280_v38 = vor.u32 %v11362_v44, %v10277_v46  ;;  %6944 = vmatpush.bf16.msra.mxu1 %v10532_v51  ;;  %v10467_v44 = vld [vmem:[%s13820_s5 + $0x728] sm:$0xf]  ;;  %v11412_v46 = vld [vmem:[%s13820_s5 + $0x734] sm:$0xf0]  ;;  %v10344_v51 = vor.u32 %v11378_v1, %v10341_v56  ;;  %v10040_v13 = vor.u32 %v11302_v5, %v10037_v35  ;;  %v11298_v6 = vld [vmem:[%s13820_s5 + $0x3ac] sm:$0xf] }
 0x508   :  { %7020 = vmatpush.bf16.msrb.mxu3 %v10312_v7  ;;  %v6756_v16 = vpop.f32.mrf.mxu2  ;;  %v11350_v7 = vld [vmem:[%s13820_s5 + $0x54c] sm:$0xf]  ;;  %v10468_v25 = vor.u32 %v11412_v46, %v10467_v44  ;;  %v10533_v1 = vld [vmem:[%s13820_s5 + $0x7b8] sm:$0xf0] }
 0x509   :  { %6989 = vmatmul.bf16.vlgmr.msrb.gmra.mxu0 %v12399_v39  ;;  %v10408_v39 = vor.u32 %v11394_v15, %v10405_v23  ;;  %v6757_v4 = vadd.f32 %v6756_v16, %v5356_v62  ;;  %v10232_v50 = vor.u32 %v11350_v7, %v10229_v31  ;;  %v11286_v7 = vld [vmem:[%s13820_s5 + $0x34c] sm:$0xf]  ;;  %v9973_v31 = vld [vmem:[%s13820_s5 + $0x358] sm:$0xf0] }
 0x50a   :  { %7033 = vmatpush.bf16.msra.mxu0 %v10440_v30  ;;  %7008 = vmatpush.bf16.msrb.mxu2 %v10168_v34  ;;  %v6769_v30 = vpop.f32.mrf.mxu3  ;;  %v11314_v34 = vld [vmem:[%s13820_s5 + $0x42c] sm:$0xf]  ;;  %v6782_v57 = vpop.f32.mrf.mxu0 }
 0x50b   :  { %6945 = vmatpush.bf16.msra.mxu1 %v10516_v53  ;;  %v6770_v41 = vadd.f32 %v6769_v30, %v6757_v4  ;;  %v10452_v53 = vor.u32 %v11408_v8, %v10451_v3  ;;  %v9976_v4 = vor.u32 %v11286_v7, %v9973_v31  ;;  %v11282_v30 = vld [vmem:[%s13820_s5 + $0x32c] sm:$0xf]  ;;  %v10485_v3 = vld [vmem:[%s13820_s5 + $0x758] sm:$0xf0] }
 0x50c   :  { %7021 = vmatpush.bf16.msrb.mxu3 %v10296_v24  ;;  %v10085_v24 = vld [vmem:[%s13820_s5 + $0x438] sm:$0xf0]  ;;  %v9960_v33 = vor.u32 %v11282_v30, %v9957_v59  ;;  %v11426_v46 = vld [vmem:[%s13820_s5 + $0x7ac] sm:$0xf] }
 0x50d   :  { %v10088_v15 = vor.u32 %v11314_v34, %v10085_v24  ;;  %v11434_v34 = vld [vmem:[%s13820_s5 + $0x7ec] sm:$0xf]  ;;  %v10565_v24 = vld [vmem:[%s13820_s5 + $0x7f8] sm:$0xf0]  ;;  %v10536_v56 = vor.u32 %v11426_v46, %v10533_v1 }
 0x50e   :  { %7034 = vmatpush.bf16.msra.mxu0 %v10424_v42  ;;  %7009 = vmatpush.bf16.msrb.mxu2 %v10152_v21  ;;  %v10213_v42 = vld [vmem:[%s13820_s5 + $0x538] sm:$0xf0]  ;;  %v11310_v21 = vld [vmem:[%s13820_s5 + $0x40c] sm:$0xf] }
 0x50f   :  { %6946 = vmatpush.bf16.msra.mxu1 %v10500_v29  ;;  %v10216_v23 = vor.u32 %v11346_v36, %v10213_v42  ;;  %v11430_v36 = vld [vmem:[%s13820_s5 + $0x7cc] sm:$0xf]  ;;  %v10549_v42 = vld [vmem:[%s13820_s5 + $0x7d8] sm:$0xf0] }
 0x510   :  { %7022 = vmatpush.bf16.msrb.mxu3 %v10280_v38  ;;  %v10069_v38 = vld [vmem:[%s13820_s5 + $0x418] sm:$0xf0]  ;;  %v6758_v60 = vpop.f32.mrf.mxu2  ;;  %v10552_v44 = vor.u32 %v11430_v36, %v10549_v42  ;;  %v11406_v35 = vld [vmem:[%s13820_s5 + $0x70c] sm:$0xf] }
 0x511   :  { %v10072_v19 = vor.u32 %v11310_v21, %v10069_v38  ;;  %v10517_v21 = vld [vmem:[%s13820_s5 + $0x798] sm:$0xf0] }
 0x512   :  { %7035 = vmatpush.bf16.msra.mxu0 %v10408_v39  ;;  %7010 = vmatpush.bf16.msrb.mxu2 %v10136_v47  ;;  %v13677_v39 = vadd.f32 %v6782_v57, %v6770_v41  ;;  %v6771_v58 = vpop.f32.mrf.mxu3  ;;  %v10325_v47 = vld [vmem:[%s13820_s5 + $0x618] sm:$0xf0]  ;;  %v6784_v62 = vpop.f32.mrf.mxu0  ;;  %v11422_v57 = vld [vmem:[%s13820_s5 + $0x78c] sm:$0xf] }
 0x513   :  { %6947 = vmatpush.bf16.msra.mxu1 %v10484_v49  ;;  %v10520_v38 = vor.u32 %v11422_v57, %v10517_v21  ;;  %v10453_v62 = vld [vmem:[%s13820_s5 + $0x718] sm:$0xf0] }
 0x514   :  { %7023 = vmatpush.bf16.msrb.mxu3 %v10264_v48  ;;  %v11306_v48 = vld [vmem:[%s13820_s5 + $0x3ec] sm:$0xf] }
 0x515   :  { %v10056_v22 = vor.u32 %v11306_v48, %v10053_v10 }
 0x516   :  { %7036 = vmatpush.bf16.msra.mxu0 %v10392_v54  ;;  %7011 = vmatpush.bf16.msrb.mxu2 %v10120_v37  ;;  %v10328_v54 = vor.u32 %v11374_v55, %v10325_v47  ;;  %v10024_v37 = vor.u32 %v11298_v6, %v10021_v12  ;;  %v10488_v47 = vor.u32 %v11414_v61, %v10485_v3 }
 0x517   :  { %6948 = vmatpush.bf16.msra.mxu1 %v10468_v25  ;;  %v10501_v25 = vld [vmem:[%s13820_s5 + $0x778] sm:$0xf0] }
 0x518   :  { %7024 = vmatpush.bf16.msrb.mxu3 %v10248_v9 }
 0x51a   :  { %7037 = vmatpush.bf16.msra.mxu0 %v10376_v0  ;;  %7012 = vmatpush.bf16.msrb.mxu2 %v10104_v45  ;;  %v11278_v45 = vld [vmem:[%s13820_s5 + $0x30c] sm:$0xf] }
 0x51b   :  { %6949 = vmatpush.bf16.msra.mxu1 %v10452_v53 }
 0x51c   :  { %7025 = vmatpush.bf16.msrb.mxu3 %v10232_v50  ;;  %v9941_v50 = vld [vmem:[%s13820_s5 + $0x318] sm:$0xf0] }
 0x51d   :  { %v9944_v49 = vor.u32 %v11278_v45, %v9941_v50  ;;  %v5358_v45 = vperm.slane %v13200_v26, 3 }
 0x51e   :  { %7038 = vmatpush.bf16.msra.mxu0 %v10360_v40  ;;  %7013 = vmatpush.bf16.msrb.mxu2 %v10088_v15  ;;  %v10568_v40 = vor.u32 %v11434_v34, %v10565_v24 }
 0x51f   :  { %6994 = vmatpush.bf16.msrb.mxu1 %v10056_v22 }
 0x520   :  { %7026 = vmatpush.bf16.msrb.mxu3 %v10216_v23  ;;  %6950 = vmatmul.bf16.vlgmr.msra.gmra.mxu1 %v13116_v14 }
 0x522   :  { %7039 = vmatpush.bf16.msra.mxu0 %v10344_v51  ;;  %7014 = vmatpush.bf16.msrb.mxu2 %v10072_v19  ;;  %v11410_v19 = vld [vmem:[%s13820_s5 + $0x72c] sm:$0xf] }
 0x523   :  { %6995 = vmatpush.bf16.msrb.mxu1 %v10040_v13 }
 0x524   :  { %7027 = vmatpush.bf16.msrb.mxu3 %v10200_v11  ;;  %v10469_v11 = vld [vmem:[%s13820_s5 + $0x738] sm:$0xf0] }
 0x525   :  { %7015 = vmatmul.bf16.vlgmr.msrb.gmra.mxu2 %v12574_v17  ;;  %v11294_v17 = vld [vmem:[%s13820_s5 + $0x38c] sm:$0xf] }
 0x526   :  { %7040 = vmatpush.bf16.msra.mxu0 %v10328_v54  ;;  %v13725_v9 = vpop.f32.mrf.mxu0  ;;  %v10472_v54 = vor.u32 %v11410_v19, %v10469_v11 }
 0x527   :  { %7028 = vmatmul.bf16.vlgmr.msrb.gmra.mxu3 %v12576_v20  ;;  %v10005_v20 = vld [vmem:[%s13820_s5 + $0x398] sm:$0xf0]  ;;  %6996 = vmatpush.bf16.msrb.mxu1 %v10024_v37  ;;  %v10456_v37 = vor.u32 %v11406_v35, %v10453_v62 }
 0x528   :  { %v10008_v27 = vor.u32 %v11294_v17, %v10005_v20  ;;  %v13733_v29 = vpop.f32.mrf.mxu2 }
 0x529   :  { %7041 = vmatmul.bf16.vlgmr.msra.gmra.mxu0 %v12746_v2  ;;  %v9989_v2 = vld [vmem:[%s13820_s5 + $0x378] sm:$0xf0] }
 0x52a   :  { %v9992_v16 = vor.u32 %v11290_v28, %v9989_v2  ;;  %v13735_v0 = vpop.f32.mrf.mxu3 }
 0x52b   :  { %6997 = vmatpush.bf16.msrb.mxu1 %v10008_v27 }
 0x52e   :  { %v6836_v32 = vpop.f32.mrf.mxu0 }
 0x52f   :  { %6998 = vmatpush.bf16.msrb.mxu1 %v9992_v16 }
 0x530   :  { %v6810_v18 = vpop.f32.mrf.mxu2 }
 0x532   :  { %v6823_v41 = vpop.f32.mrf.mxu3  ;;  %v6743_v15 = vpop.f32.mrf.mxu1 }
 0x533   :  { %6999 = vmatpush.bf16.msrb.mxu1 %v9976_v4  ;;  %v6744_v23 = vadd.f32 %v6743_v15, %v13572_v52  ;;  %v5357_v52 = vperm.slane %v13200_v26, 2 }
 0x535   :  { %v7059_v7 = vmax.f32 %v6744_v23, 0.0 }
 0x537   :  { %7000 = vmatpush.bf16.msrb.mxu1 %v9960_v33 }
 0x53a   :  { %v6745_v63 = vpop.f32.mrf.mxu1 }
 0x53b   :  { %7001 = vmatpush.bf16.msrb.mxu1 %v9944_v49 }
 0x53e   :  { %7002 = vmatmul.bf16.vlgmr.msrb.gmra.mxu1 %v12404_v43  ;;  %v11418_v43 = vld [vmem:[%s13820_s5 + $0x76c] sm:$0xf]  ;;  %s11584_s5 = smov [#allocation11]  }
 0x53f   :  { %7046 = vmatpush.bf16.msra.mxu1 %v10568_v40  ;;  %v10504_v51 = vor.u32 %v11418_v43, %v10501_v25  ;;  %s7083_s24 = sshll.u32 %s11584_s5, 4  ;;  %s7084_s24 = int_to_ptr.vmem [resolvable:$true] %s7083_s24 }
 0x543   :  { %7047 = vmatpush.bf16.msra.mxu1 %v10552_v44 }
 0x544   :  { %v6795_v22 = vpop.f32.mrf.mxu1 }
 0x545   :  { %v6796_v5 = vadd.f32 %v6795_v22, %v13677_v39 }
 0x546   :  { %v6886_v60 = vpop.f32.mrf.mxu0 }
 0x547   :  { %7048 = vmatpush.bf16.msra.mxu1 %v10536_v56  ;;  %v6809_v12 = vadd.f32 %v13733_v29, %v6796_v5 }
 0x548   :  { %v6860_v58 = vpop.f32.mrf.mxu2 }
 0x549   :  { %v6861_v55 = vadd.f32 %v6860_v58, %v5357_v52  ;;  %v6822_v17 = vadd.f32 %v13735_v0, %v6809_v12 }
 0x54a   :  { %v6873_v8 = vpop.f32.mrf.mxu3 }
 0x54b   :  { %7049 = vmatpush.bf16.msra.mxu1 %v10520_v38  ;;  %v6874_v48 = vadd.f32 %v6873_v8, %v6861_v55  ;;  %v6835_v20 = vadd.f32 %v13725_v9, %v6822_v17 }
 0x54c   :  { %v6797_v39 = vpop.f32.mrf.mxu1 }
 0x54d   :  { %v6887_v53 = vadd.f32 %v6886_v60, %v6874_v48 }
 0x54e   :  { %v6888_v10 = vpop.f32.mrf.mxu0 }
 0x54f   :  { %7050 = vmatpush.bf16.msra.mxu1 %v10504_v51 }
 0x550   :  { %v6862_v13 = vpop.f32.mrf.mxu2 }
 0x552   :  { %v6875_v6 = vpop.f32.mrf.mxu3 }
 0x553   :  { %7051 = vmatpush.bf16.msra.mxu1 %v10488_v47 }
 0x557   :  { %7052 = vmatpush.bf16.msra.mxu1 %v10472_v54 }
 0x55b   :  { %7053 = vmatpush.bf16.msra.mxu1 %v10456_v37 }
 0x55d   :  { %v6847_v28 = vpop.f32.mrf.mxu1 }
 0x55e   :  { %7054 = vmatmul.bf16.vlgmr.msra.gmra.mxu1 %v13116_v14  ;;  %v6848_v2 = vadd.f32 %v6847_v28, %v6835_v20 }
 0x560   :  { %v7060_v16 = vmax.f32 %v6848_v2, 0.0 }
 0x562   :  { %v7067_v31 = vrot.slane %v7060_v16, 6 }
 0x564   :  { %v7071_v29 = vsel %vm7070_vm2, %v7059_v7, %v7067_v31 }
 0x565   :  { %v6849_v59 = vpop.f32.mrf.mxu1 }
 0x566   :  { %v6938_v27 = vpop.f32.mrf.mxu0 }
 0x568   :  { %v6912_v32 = vpop.f32.mrf.mxu2 }
 0x56a   :  { %v6925_v4 = vpop.f32.mrf.mxu3 }
 0x56e   :  { %v6940_v30 = vpop.f32.mrf.mxu0 }
 0x570   :  { %v6914_v33 = vpop.f32.mrf.mxu2 }
 0x572   :  { %v6927_v0 = vpop.f32.mrf.mxu3 }
 0x57d   :  { %v6899_v18 = vpop.f32.mrf.mxu1 }
 0x57e   :  { %v6900_v41 = vadd.f32 %v6899_v18, %v6887_v53 }
 0x580   :  { %v6913_v14 = vadd.f32 %v6912_v32, %v6900_v41 }
 0x582   :  { %v6926_v24 = vadd.f32 %v6925_v4, %v6913_v14 }
 0x584   :  { %v6939_v40 = vadd.f32 %v6938_v27, %v6926_v24 }
 0x585   :  { %v6901_v42 = vpop.f32.mrf.mxu1 }
 0x586   :  { %v6990_v9 = vpop.f32.mrf.mxu0 }
 0x588   :  { %v6964_v50 = vpop.f32.mrf.mxu2 }
 0x589   :  { %v6965_v49 = vadd.f32 %v6964_v50, %v5358_v45 }
 0x58a   :  { %v6977_v34 = vpop.f32.mrf.mxu3 }
 0x58b   :  { %v6978_v36 = vadd.f32 %v6977_v34, %v6965_v49 }
 0x58d   :  { %v6991_v46 = vadd.f32 %v6990_v9, %v6978_v36 }
 0x58e   :  { %v6992_v44 = vpop.f32.mrf.mxu0 }
 0x590   :  { %v6966_v1 = vpop.f32.mrf.mxu2 }
 0x592   :  { %v6979_v56 = vpop.f32.mrf.mxu3 }
 0x59d   :  { %v6951_v15 = vpop.f32.mrf.mxu1 }
 0x59e   :  { %v6952_v3 = vadd.f32 %v6951_v15, %v6939_v40 }
 0x5a0   :  { %v7061_v55 = vmax.f32 %v6952_v3, 0.0 }
 0x5a2   :  { %v7068_v10 = vrot.slane %v7061_v55, 4 }
 0x5a5   :  { %v6953_v38 = vpop.f32.mrf.mxu1 }
 0x5a6   :  { %v7042_v23 = vpop.f32.mrf.mxu0 }
 0x5a8   :  { %v7016_v57 = vpop.f32.mrf.mxu2 }
 0x5aa   :  { %v7029_v21 = vpop.f32.mrf.mxu3 }
 0x5ae   :  { %v7044_v60 = vpop.f32.mrf.mxu0 }
 0x5b0   :  { %v7018_v43 = vpop.f32.mrf.mxu2 }
 0x5b2   :  { %v7031_v26 = vpop.f32.mrf.mxu3 }
 0x5bb   :  { %v7003_v25 = vpop.f32.mrf.mxu1 }
 0x5bc   :  { %v7004_v51 = vadd.f32 %v7003_v25, %v6991_v46 }
 0x5be   :  { %v7017_v63 = vadd.f32 %v7016_v57, %v7004_v51 }
 0x5c0   :  { %v7030_v61 = vadd.f32 %v7029_v21, %v7017_v63 }
 0x5c2   :  { %v7043_v58 = vadd.f32 %v7042_v23, %v7030_v61 }
 0x5c3   :  { %v7005_v52 = vpop.f32.mrf.mxu1 }
 0x5db   :  { %v7055_v8 = vpop.f32.mrf.mxu1 }
 0x5dc   :  { %v7056_v47 = vadd.f32 %v7055_v8, %v7043_v58 }
 0x5de   :  { %v7062_v48 = vmax.f32 %v7056_v47, 0.0 }
 0x5e0   :  { %v7069_v19 = vrot.slane %v7062_v48, 2 }
 0x5e2   :  { %v7073_v11 = vsel %vm7072_vm3, %v7068_v10, %v7069_v19 }
 0x5e3   :  { %v7057_v53 = vpop.f32.mrf.mxu1  ;;  %v7075_v54 = vsel %vm7074_vm4, %v7071_v29, %v7073_v11 }
 0x5e4   :  { %7077 = vst [vmem:[#allocation11] sm:$0xff] %v7075_v54 }
 0x5e5   :  { %7088 = dma.vmem_to_hbm [thread:$0]  %s7084_s24, 128, %s7086_s27, [#allocation5]  }
 0x5e6   :  { %11575 = dma.done.wait [#allocation5], 128  }
 0x5e7   :  { %11576 = vsyncadd [#allocation5], 4294967168 }
 0x5e8   :  { %7093 = vsyncpa [#allocation4], 1 }
 0x5e9   :  { %7094 = vsyncpa [#allocation7], 1 }
 0x5ea   :  { %7095 = vsyncpa [#allocation10], 1 }
 0x5eb   :  { %7096 = vsyncpa [#allocation5], 1 }

</bundles_post_ra>
